<compile_context>
chip_gen: v7x
topology: tpu7x:2x2x1
jax: 0.10.0
libtpu: 0.0.40
codegen_flags: <defaults>
</compile_context>

<pallas_src>
import jax
import jax.numpy as jnp
from jax import lax
from jax.experimental import pallas as pl
from jax.experimental.pallas import tpu as pltpu

NUM_CLASSES = 45          # fc layer exists in __init__ but is unused in forward
NEG_SLOPE = 0.01
EPS = 1e-5


# ---------------------------------------------------------------------------
# Fused kernel: conv1 + BN1 + LeakyReLU -> depthwise 3x3 -> pointwise 1x1
#               + BN2 + LeakyReLU -> global avg pool        (one batch item)
# ---------------------------------------------------------------------------
def ddp_fused_kernel(x_ref, w1_ref, s1_ref, b1_ref,
                     wdw_ref, bdw_ref, wpw_ref, s2_ref, b2_ref,
                     o_ref, col_ref, ypad_ref):
    # x_ref:    (1, H+2, W+2, Cin) f32   zero-padded NHWC input (one item)
    # w1_ref:   (9*Cin, C1)        bf16  conv1 taps, row = (ky*3+kx)*Cin + cin
    # s1/b1:    (1, C1)            f32   folded BN1 (+ conv1 bias)
    # wdw_ref:  (9, 1, C1)         f32   depthwise taps, pre-broadcast layout
    # bdw_ref:  (1, C1)            f32   depthwise bias
    # wpw_ref:  (C1, C2)           f32   pointwise weight
    # s2/b2:    (1, C2)            f32   folded BN2 (+ pointwise bias)
    # o_ref:    (1, 1, C2)               pooled output
    # col_ref:  (H*W, 9*Cin)       bf16  im2col scratch
    # ypad_ref: (H+2, W+2, C1)     f32   padded stage-1 activation scratch
    _, Hp, Wp, Cin = x_ref.shape
    H, W = Hp - 2, Wp - 2
    C1 = wpw_ref.shape[0]

    # ---- Stage 1: conv1 via im2col + one MXU matmul, then BN1 + LeakyReLU
    for ky in range(3):
        for kx in range(3):
            t = ky * 3 + kx
            patch = x_ref[0, ky:ky + H, kx:kx + W, :].reshape(H * W, Cin)
            col_ref[:, t * Cin:(t + 1) * Cin] = patch.astype(jnp.bfloat16)
    y = jnp.dot(col_ref[...], w1_ref[...], preferred_element_type=jnp.float32)
    y = y * s1_ref[...] + b1_ref[...]
    y = jnp.where(y > 0, y, NEG_SLOPE * y)              # LeakyReLU(0.01)

    # ---- 1-pixel zero re-pad entirely in VMEM (no HBM round trip / XLA pad)
    ypad_ref[...] = jnp.zeros_like(ypad_ref)
    ypad_ref[1:H + 1, 1:W + 1, :] = y.reshape(H, W, C1)

    # ---- Stage 2: depthwise 3x3 + pointwise 1x1 + BN2 + LeakyReLU + avgpool
    dw = jnp.zeros((H * W, C1), jnp.float32)
    for ky in range(3):
        for kx in range(3):
            t = ky * 3 + kx
            patch = ypad_ref[ky:ky + H, kx:kx + W, :].reshape(H * W, C1)
            dw += patch * wdw_ref[t]                    # (1, C1) broadcast
    dw = dw + bdw_ref[...]

    z = jnp.dot(dw, wpw_ref[...], preferred_element_type=jnp.float32)
    z = z * s2_ref[...] + b2_ref[...]
    z = jnp.where(z > 0, z, NEG_SLOPE * z)              # LeakyReLU(0.01)
    o_ref[0] = jnp.mean(z, axis=0, keepdims=True)       # AdaptiveAvgPool2d((1,1))


# ---------------------------------------------------------------------------
# Wrapper
# ---------------------------------------------------------------------------
def ddp_forward(x_nchw, p):
    B, Cin, H, W = x_nchw.shape
    C1, C2 = 256, 64

    x = jnp.transpose(x_nchw, (0, 2, 3, 1))                      # -> NHWC
    x_pad = jnp.pad(x, ((0, 0), (1, 1), (1, 1), (0, 0)))

    # Fold BN1 (eval-mode) together with conv1 bias into scale/bias.
    scale1 = p['bn1_gamma'] / jnp.sqrt(p['bn1_var'] + EPS)
    bias1 = (p['conv1_b'] - p['bn1_mean']) * scale1 + p['bn1_beta']
    # conv1 weight (O, I, kh, kw) -> (kh, kw, I, O) -> (9*Cin, C1), bf16 in HBM.
    w1 = jnp.transpose(p['conv1_w'], (2, 3, 1, 0)).reshape(9 * Cin, C1)
    w1 = w1.astype(jnp.bfloat16)

    # Depthwise weight (C1, 1, 3, 3) -> (3, 3, C1) -> (9, 1, C1)
    wdw = jnp.transpose(p['dw_w'][:, 0, :, :], (1, 2, 0)).reshape(9, 1, C1)
    # Pointwise weight (C2, C1, 1, 1) -> (C1, C2)
    wpw = jnp.transpose(p['pw_w'][:, :, 0, 0], (1, 0))
    # Fold BN2 (eval-mode) together with pointwise bias.
    scale2 = p['bn2_gamma'] / jnp.sqrt(p['bn2_var'] + EPS)
    bias2 = (p['pw_b'] - p['bn2_mean']) * scale2 + p['bn2_beta']

    out = pl.pallas_call(
        ddp_fused_kernel,
        out_shape=jax.ShapeDtypeStruct((B, 1, C2), jnp.float32),
        grid=(B,),
        in_specs=[
            pl.BlockSpec((1, H + 2, W + 2, Cin), lambda b: (b, 0, 0, 0)),
            pl.BlockSpec((9 * Cin, C1), lambda b: (0, 0)),
            pl.BlockSpec((1, C1), lambda b: (0, 0)),
            pl.BlockSpec((1, C1), lambda b: (0, 0)),
            pl.BlockSpec((9, 1, C1), lambda b: (0, 0, 0)),
            pl.BlockSpec((1, C1), lambda b: (0, 0)),
            pl.BlockSpec((C1, C2), lambda b: (0, 0)),
            pl.BlockSpec((1, C2), lambda b: (0, 0)),
            pl.BlockSpec((1, C2), lambda b: (0, 0)),
        ],
        out_specs=pl.BlockSpec((1, 1, C2), lambda b: (b, 0, 0)),
        scratch_shapes=[
            pltpu.VMEM((H * W, 9 * Cin), jnp.bfloat16),   # im2col
            pltpu.VMEM((H + 2, W + 2, C1), jnp.float32),  # padded stage-1 act
        ],
        compiler_params=pltpu.CompilerParams(
            dimension_semantics=("parallel",),            # batch items independent
            vmem_limit_bytes=32 << 20),
    )(x_pad, w1, scale1[None, :], bias1[None, :],
      wdw, p['dw_b'][None, :], wpw, scale2[None, :], bias2[None, :])

    return out[:, 0, :]     # x.view(B, -1) -> (B, 64)


# ---------------------------------------------------------------------------
# Deterministic parameter init (synthetic; shapes match the PyTorch module)
# ---------------------------------------------------------------------------
def init_params(key):
    ks = jax.random.split(key, 14)
    p = {}
    p['conv1_w'] = 0.02 * jax.random.normal(ks[0], (256, 1024, 3, 3), jnp.float32)
    p['conv1_b'] = 0.01 * jax.random.normal(ks[1], (256,), jnp.float32)
    p['bn1_gamma'] = 1.0 + 0.1 * jax.random.normal(ks[2], (256,), jnp.float32)
    p['bn1_beta'] = 0.1 * jax.random.normal(ks[3], (256,), jnp.float32)
    p['bn1_mean'] = 0.1 * jax.random.normal(ks[4], (256,), jnp.float32)
    p['bn1_var'] = 1.0 + 0.1 * jnp.abs(jax.random.normal(ks[5], (256,), jnp.float32))
    p['dw_w'] = 0.1 * jax.random.normal(ks[6], (256, 1, 3, 3), jnp.float32)
    p['dw_b'] = 0.01 * jax.random.normal(ks[7], (256,), jnp.float32)
    p['pw_w'] = 0.05 * jax.random.normal(ks[8], (64, 256, 1, 1), jnp.float32)
    p['pw_b'] = 0.01 * jax.random.normal(ks[9], (64,), jnp.float32)
    p['bn2_gamma'] = 1.0 + 0.1 * jax.random.normal(ks[10], (64,), jnp.float32)
    p['bn2_beta'] = 0.1 * jax.random.normal(ks[11], (64,), jnp.float32)
    p['bn2_mean'] = 0.1 * jax.random.normal(ks[12], (64,), jnp.float32)
    p['bn2_var'] = 1.0 + 0.1 * jnp.abs(jax.random.normal(ks[13], (64,), jnp.float32))
    return p


# ---------------------------------------------------------------------------
# Pure-JAX reference (NCHW, mirrors the PyTorch forward exactly, eval-mode BN)
# ---------------------------------------------------------------------------
def reference_forward(x, p):
    dn = ('NCHW', 'OIHW', 'NCHW')

    def bn(y, g, b, m, v):
        return (y - m[None, :, None, None]) / jnp.sqrt(v + EPS)[None, :, None, None] \
               * g[None, :, None, None] + b[None, :, None, None]

    y = lax.conv_general_dilated(x, p['conv1_w'], (1, 1), 'SAME',
                                 dimension_numbers=dn)
    y = y + p['conv1_b'][None, :, None, None]
    y = bn(y, p['bn1_gamma'], p['bn1_beta'], p['bn1_mean'], p['bn1_var'])
    y = jnp.where(y > 0, y, NEG_SLOPE * y)
    y = lax.conv_general_dilated(y, p['dw_w'], (1, 1), 'SAME',
                                 dimension_numbers=dn, feature_group_count=256)
    y = y + p['dw_b'][None, :, None, None]
    y = lax.conv_general_dilated(y, p['pw_w'], (1, 1), 'SAME',
                                 dimension_numbers=dn)
    y = y + p['pw_b'][None, :, None, None]
    y = bn(y, p['bn2_gamma'], p['bn2_beta'], p['bn2_mean'], p['bn2_var'])
    y = jnp.where(y > 0, y, NEG_SLOPE * y)
    return jnp.mean(y, axis=(2, 3))


if __name__ == "__main__":
    key = jax.random.PRNGKey(0)
    kx, kp = jax.random.split(key)

    B, Cin, H, W = 2, 1024, 8, 8          # Cin=1024 is fixed by the module
    x = jax.random.normal(kx, (B, Cin, H, W), jnp.float32)
    params = init_params(kp)

    out = jax.block_until_ready(ddp_forward(x, params))
    ref = jax.block_until_ready(reference_forward(x, params))

    assert out.shape == (B, 64), out.shape
    err = float(jnp.max(jnp.abs(out - ref)))
    if err > 5e-2:
        raise AssertionError(f"Pallas/Reference mismatch, max abs err = {err}")
    print("KERNEL_OK")
</pallas_src>

<mosaic_0001>
module attributes {stable_mosaic.version = 11 : i64} {
  func.func @ddp_fused_kernel(%arg0: i32, %arg1: memref<1x10x10x1024xf32, #tpu.memory_space<vmem>>, %arg2: memref<9216x256xbf16, #tpu.memory_space<vmem>>, %arg3: memref<1x256xf32, #tpu.memory_space<vmem>>, %arg4: memref<1x256xf32, #tpu.memory_space<vmem>>, %arg5: memref<9x1x256xf32, #tpu.memory_space<vmem>>, %arg6: memref<1x256xf32, #tpu.memory_space<vmem>>, %arg7: memref<256x64xf32, #tpu.memory_space<vmem>>, %arg8: memref<1x64xf32, #tpu.memory_space<vmem>>, %arg9: memref<1x64xf32, #tpu.memory_space<vmem>>, %arg10: memref<1x1x64xf32, #tpu.memory_space<vmem>>, %arg11: memref<64x9216xbf16, #tpu.memory_space<vmem>>, %arg12: memref<10x10x256xf32, #tpu.memory_space<vmem>>) attributes {dimension_semantics = [#tpu.dimension_semantics<parallel>], iteration_bounds = array<i64: 2>, scalar_prefetch = 0 : i64, scratch_operands = 2 : i64, tpu.core_type = #tpu.core_type<tc>, window_params = [{transform_indices = @transform_0, window_bounds = array<i64: 1, 10, 10, 1024>}, {pipeline_mode = #tpu.pipeline_mode<synchronous>, transform_indices = @transform_1, window_bounds = array<i64: 9216, 256>}, {pipeline_mode = #tpu.pipeline_mode<synchronous>, transform_indices = @transform_2, window_bounds = array<i64: 1, 256>}, {pipeline_mode = #tpu.pipeline_mode<synchronous>, transform_indices = @transform_3, window_bounds = array<i64: 1, 256>}, {pipeline_mode = #tpu.pipeline_mode<synchronous>, transform_indices = @transform_4, window_bounds = array<i64: 9, 1, 256>}, {pipeline_mode = #tpu.pipeline_mode<synchronous>, transform_indices = @transform_5, window_bounds = array<i64: 1, 256>}, {pipeline_mode = #tpu.pipeline_mode<synchronous>, transform_indices = @transform_6, window_bounds = array<i64: 256, 64>}, {pipeline_mode = #tpu.pipeline_mode<synchronous>, transform_indices = @transform_7, window_bounds = array<i64: 1, 64>}, {pipeline_mode = #tpu.pipeline_mode<synchronous>, transform_indices = @transform_8, window_bounds = array<i64: 1, 64>}, {transform_indices = @transform_9, window_bounds = array<i64: 1, 1, 64>}]} {
    %c0 = arith.constant 0 : index
    %c0_0 = arith.constant 0 : index
    %c0_1 = arith.constant 0 : index
    %c0_2 = arith.constant 0 : index
    %0 = vector.load %arg1[%c0, %c0_0, %c0_1, %c0_2] : memref<1x10x10x1024xf32, #tpu.memory_space<vmem>>, vector<1x8x8x1024xf32>
    %1 = vector.shape_cast %0 : vector<1x8x8x1024xf32> to vector<8x8x1024xf32>
    %2 = vector.shape_cast %1 : vector<8x8x1024xf32> to vector<64x1024xf32>
    %3 = arith.truncf %2 : vector<64x1024xf32> to vector<64x1024xbf16>
    %c0_3 = arith.constant 0 : index
    %c0_4 = arith.constant 0 : index
    %4 = vector.load %arg11[%c0_3, %c0_4] : memref<64x9216xbf16, #tpu.memory_space<vmem>>, vector<64x1024xbf16>
    tpu.vector_store %arg11[%c0_3, %c0_4], %3 {strides = array<i32>} : memref<64x9216xbf16, #tpu.memory_space<vmem>>, vector<64x1024xbf16>,
    %c0_5 = arith.constant 0 : index
    %c0_6 = arith.constant 0 : index
    %c1 = arith.constant 1 : index
    %c0_7 = arith.constant 0 : index
    %5 = vector.load %arg1[%c0_5, %c0_6, %c1, %c0_7] : memref<1x10x10x1024xf32, #tpu.memory_space<vmem>>, vector<1x8x8x1024xf32>
    %6 = vector.shape_cast %5 : vector<1x8x8x1024xf32> to vector<8x8x1024xf32>
    %7 = vector.shape_cast %6 : vector<8x8x1024xf32> to vector<64x1024xf32>
    %8 = arith.truncf %7 : vector<64x1024xf32> to vector<64x1024xbf16>
    %c0_8 = arith.constant 0 : index
    %c1024 = arith.constant 1024 : index
    %9 = vector.load %arg11[%c0_8, %c1024] : memref<64x9216xbf16, #tpu.memory_space<vmem>>, vector<64x1024xbf16>
    tpu.vector_store %arg11[%c0_8, %c1024], %8 {strides = array<i32>} : memref<64x9216xbf16, #tpu.memory_space<vmem>>, vector<64x1024xbf16>,
    %c0_9 = arith.constant 0 : index
    %c0_10 = arith.constant 0 : index
    %c2 = arith.constant 2 : index
    %c0_11 = arith.constant 0 : index
    %10 = vector.load %arg1[%c0_9, %c0_10, %c2, %c0_11] : memref<1x10x10x1024xf32, #tpu.memory_space<vmem>>, vector<1x8x8x1024xf32>
    %11 = vector.shape_cast %10 : vector<1x8x8x1024xf32> to vector<8x8x1024xf32>
    %12 = vector.shape_cast %11 : vector<8x8x1024xf32> to vector<64x1024xf32>
    %13 = arith.truncf %12 : vector<64x1024xf32> to vector<64x1024xbf16>
    %c0_12 = arith.constant 0 : index
    %c2048 = arith.constant 2048 : index
    %14 = vector.load %arg11[%c0_12, %c2048] : memref<64x9216xbf16, #tpu.memory_space<vmem>>, vector<64x1024xbf16>
    tpu.vector_store %arg11[%c0_12, %c2048], %13 {strides = array<i32>} : memref<64x9216xbf16, #tpu.memory_space<vmem>>, vector<64x1024xbf16>,
    %c0_13 = arith.constant 0 : index
    %c1_14 = arith.constant 1 : index
    %c0_15 = arith.constant 0 : index
    %c0_16 = arith.constant 0 : index
    %15 = vector.load %arg1[%c0_13, %c1_14, %c0_15, %c0_16] : memref<1x10x10x1024xf32, #tpu.memory_space<vmem>>, vector<1x8x8x1024xf32>
    %16 = vector.shape_cast %15 : vector<1x8x8x1024xf32> to vector<8x8x1024xf32>
    %17 = vector.shape_cast %16 : vector<8x8x1024xf32> to vector<64x1024xf32>
    %18 = arith.truncf %17 : vector<64x1024xf32> to vector<64x1024xbf16>
    %c0_17 = arith.constant 0 : index
    %c3072 = arith.constant 3072 : index
    %19 = vector.load %arg11[%c0_17, %c3072] : memref<64x9216xbf16, #tpu.memory_space<vmem>>, vector<64x1024xbf16>
    tpu.vector_store %arg11[%c0_17, %c3072], %18 {strides = array<i32>} : memref<64x9216xbf16, #tpu.memory_space<vmem>>, vector<64x1024xbf16>,
    %c0_18 = arith.constant 0 : index
    %c1_19 = arith.constant 1 : index
    %c1_20 = arith.constant 1 : index
    %c0_21 = arith.constant 0 : index
    %20 = vector.load %arg1[%c0_18, %c1_19, %c1_20, %c0_21] : memref<1x10x10x1024xf32, #tpu.memory_space<vmem>>, vector<1x8x8x1024xf32>
    %21 = vector.shape_cast %20 : vector<1x8x8x1024xf32> to vector<8x8x1024xf32>
    %22 = vector.shape_cast %21 : vector<8x8x1024xf32> to vector<64x1024xf32>
    %23 = arith.truncf %22 : vector<64x1024xf32> to vector<64x1024xbf16>
    %c0_22 = arith.constant 0 : index
    %c4096 = arith.constant 4096 : index
    %24 = vector.load %arg11[%c0_22, %c4096] : memref<64x9216xbf16, #tpu.memory_space<vmem>>, vector<64x1024xbf16>
    tpu.vector_store %arg11[%c0_22, %c4096], %23 {strides = array<i32>} : memref<64x9216xbf16, #tpu.memory_space<vmem>>, vector<64x1024xbf16>,
    %c0_23 = arith.constant 0 : index
    %c1_24 = arith.constant 1 : index
    %c2_25 = arith.constant 2 : index
    %c0_26 = arith.constant 0 : index
    %25 = vector.load %arg1[%c0_23, %c1_24, %c2_25, %c0_26] : memref<1x10x10x1024xf32, #tpu.memory_space<vmem>>, vector<1x8x8x1024xf32>
    %26 = vector.shape_cast %25 : vector<1x8x8x1024xf32> to vector<8x8x1024xf32>
    %27 = vector.shape_cast %26 : vector<8x8x1024xf32> to vector<64x1024xf32>
    %28 = arith.truncf %27 : vector<64x1024xf32> to vector<64x1024xbf16>
    %c0_27 = arith.constant 0 : index
    %c5120 = arith.constant 5120 : index
    %29 = vector.load %arg11[%c0_27, %c5120] : memref<64x9216xbf16, #tpu.memory_space<vmem>>, vector<64x1024xbf16>
    tpu.vector_store %arg11[%c0_27, %c5120], %28 {strides = array<i32>} : memref<64x9216xbf16, #tpu.memory_space<vmem>>, vector<64x1024xbf16>,
    %c0_28 = arith.constant 0 : index
    %c2_29 = arith.constant 2 : index
    %c0_30 = arith.constant 0 : index
    %c0_31 = arith.constant 0 : index
    %30 = vector.load %arg1[%c0_28, %c2_29, %c0_30, %c0_31] : memref<1x10x10x1024xf32, #tpu.memory_space<vmem>>, vector<1x8x8x1024xf32>
    %31 = vector.shape_cast %30 : vector<1x8x8x1024xf32> to vector<8x8x1024xf32>
    %32 = vector.shape_cast %31 : vector<8x8x1024xf32> to vector<64x1024xf32>
    %33 = arith.truncf %32 : vector<64x1024xf32> to vector<64x1024xbf16>
    %c0_32 = arith.constant 0 : index
    %c6144 = arith.constant 6144 : index
    %34 = vector.load %arg11[%c0_32, %c6144] : memref<64x9216xbf16, #tpu.memory_space<vmem>>, vector<64x1024xbf16>
    tpu.vector_store %arg11[%c0_32, %c6144], %33 {strides = array<i32>} : memref<64x9216xbf16, #tpu.memory_space<vmem>>, vector<64x1024xbf16>,
    %c0_33 = arith.constant 0 : index
    %c2_34 = arith.constant 2 : index
    %c1_35 = arith.constant 1 : index
    %c0_36 = arith.constant 0 : index
    %35 = vector.load %arg1[%c0_33, %c2_34, %c1_35, %c0_36] : memref<1x10x10x1024xf32, #tpu.memory_space<vmem>>, vector<1x8x8x1024xf32>
    %36 = vector.shape_cast %35 : vector<1x8x8x1024xf32> to vector<8x8x1024xf32>
    %37 = vector.shape_cast %36 : vector<8x8x1024xf32> to vector<64x1024xf32>
    %38 = arith.truncf %37 : vector<64x1024xf32> to vector<64x1024xbf16>
    %c0_37 = arith.constant 0 : index
    %c7168 = arith.constant 7168 : index
    %39 = vector.load %arg11[%c0_37, %c7168] : memref<64x9216xbf16, #tpu.memory_space<vmem>>, vector<64x1024xbf16>
    tpu.vector_store %arg11[%c0_37, %c7168], %38 {strides = array<i32>} : memref<64x9216xbf16, #tpu.memory_space<vmem>>, vector<64x1024xbf16>,
    %c0_38 = arith.constant 0 : index
    %c2_39 = arith.constant 2 : index
    %c2_40 = arith.constant 2 : index
    %c0_41 = arith.constant 0 : index
    %40 = vector.load %arg1[%c0_38, %c2_39, %c2_40, %c0_41] : memref<1x10x10x1024xf32, #tpu.memory_space<vmem>>, vector<1x8x8x1024xf32>
    %41 = vector.shape_cast %40 : vector<1x8x8x1024xf32> to vector<8x8x1024xf32>
    %42 = vector.shape_cast %41 : vector<8x8x1024xf32> to vector<64x1024xf32>
    %43 = arith.truncf %42 : vector<64x1024xf32> to vector<64x1024xbf16>
    %c0_42 = arith.constant 0 : index
    %c8192 = arith.constant 8192 : index
    %44 = vector.load %arg11[%c0_42, %c8192] : memref<64x9216xbf16, #tpu.memory_space<vmem>>, vector<64x1024xbf16>
    tpu.vector_store %arg11[%c0_42, %c8192], %43 {strides = array<i32>} : memref<64x9216xbf16, #tpu.memory_space<vmem>>, vector<64x1024xbf16>,
    %c0_43 = arith.constant 0 : index
    %c0_44 = arith.constant 0 : index
    %45 = vector.load %arg11[%c0_43, %c0_44] : memref<64x9216xbf16, #tpu.memory_space<vmem>>, vector<64x9216xbf16>
    %c0_45 = arith.constant 0 : index
    %c0_46 = arith.constant 0 : index
    %46 = vector.load %arg2[%c0_45, %c0_46] : memref<9216x256xbf16, #tpu.memory_space<vmem>>, vector<9216x256xbf16>
    %cst = arith.constant dense<0.000000e+00> : vector<64x256xf32>
    %47 = tpu.matmul %45, %46, %cst {dimension_numbers = #tpu.dot_dimension_numbers<[1], [0], [0], [1], [0, 0, 1, 1], [], []>} : vector<64x9216xbf16>, vector<9216x256xbf16>, vector<64x256xf32> -> vector<64x256xf32>
    %c0_47 = arith.constant 0 : index
    %c0_48 = arith.constant 0 : index
    %48 = vector.load %arg3[%c0_47, %c0_48] : memref<1x256xf32, #tpu.memory_space<vmem>>, vector<1x256xf32>
    %49 = vector.broadcast %48 : vector<1x256xf32> to vector<64x256xf32>
    %50 = arith.mulf %47, %49 : vector<64x256xf32>
    %c0_49 = arith.constant 0 : index
    %c0_50 = arith.constant 0 : index
    %51 = vector.load %arg4[%c0_49, %c0_50] : memref<1x256xf32, #tpu.memory_space<vmem>>, vector<1x256xf32>
    %52 = vector.broadcast %51 : vector<1x256xf32> to vector<64x256xf32>
    %53 = arith.addf %50, %52 : vector<64x256xf32>
    %cst_51 = arith.constant 0.000000e+00 : f32
    %54 = vector.broadcast %cst_51 : f32 to vector<64x256xf32>
    %55 = arith.cmpf ogt, %53, %54 : vector<64x256xf32>
    %cst_52 = arith.constant 0.00999999977 : f32
    %56 = vector.broadcast %cst_52 : f32 to vector<64x256xf32>
    %57 = arith.mulf %56, %53 : vector<64x256xf32>
    %58 = arith.select %55, %53, %57 : vector<64x256xi1>, vector<64x256xf32>
    %cst_53 = arith.constant 0.000000e+00 : f32
    %59 = vector.broadcast %cst_53 : f32 to vector<10x10x256xf32>
    %c0_54 = arith.constant 0 : index
    %c0_55 = arith.constant 0 : index
    %c0_56 = arith.constant 0 : index
    %60 = vector.load %arg12[%c0_54, %c0_55, %c0_56] : memref<10x10x256xf32, #tpu.memory_space<vmem>>, vector<10x10x256xf32>
    tpu.vector_store %arg12[%c0_54, %c0_55, %c0_56], %59 {strides = array<i32>} : memref<10x10x256xf32, #tpu.memory_space<vmem>>, vector<10x10x256xf32>,
    %61 = vector.shape_cast %58 : vector<64x256xf32> to vector<8x8x256xf32>
    %c1_57 = arith.constant 1 : index
    %c1_58 = arith.constant 1 : index
    %c0_59 = arith.constant 0 : index
    %62 = vector.load %arg12[%c1_57, %c1_58, %c0_59] : memref<10x10x256xf32, #tpu.memory_space<vmem>>, vector<8x8x256xf32>
    tpu.vector_store %arg12[%c1_57, %c1_58, %c0_59], %61 {strides = array<i32>} : memref<10x10x256xf32, #tpu.memory_space<vmem>>, vector<8x8x256xf32>,
    %cst_60 = arith.constant 0.000000e+00 : f32
    %63 = vector.broadcast %cst_60 : f32 to vector<64x256xf32>
    %c0_61 = arith.constant 0 : index
    %c0_62 = arith.constant 0 : index
    %c0_63 = arith.constant 0 : index
    %64 = vector.load %arg12[%c0_61, %c0_62, %c0_63] : memref<10x10x256xf32, #tpu.memory_space<vmem>>, vector<8x8x256xf32>
    %65 = vector.shape_cast %64 : vector<8x8x256xf32> to vector<64x256xf32>
    %c0_64 = arith.constant 0 : index
    %c0_65 = arith.constant 0 : index
    %c0_66 = arith.constant 0 : index
    %66 = vector.load %arg5[%c0_64, %c0_65, %c0_66] : memref<9x1x256xf32, #tpu.memory_space<vmem>>, vector<1x1x256xf32>
    %67 = vector.shape_cast %66 : vector<1x1x256xf32> to vector<1x256xf32>
    %68 = vector.broadcast %67 : vector<1x256xf32> to vector<64x256xf32>
    %69 = arith.mulf %65, %68 : vector<64x256xf32>
    %70 = arith.addf %63, %69 : vector<64x256xf32>
    %c0_67 = arith.constant 0 : index
    %c1_68 = arith.constant 1 : index
    %c0_69 = arith.constant 0 : index
    %71 = vector.load %arg12[%c0_67, %c1_68, %c0_69] : memref<10x10x256xf32, #tpu.memory_space<vmem>>, vector<8x8x256xf32>
    %72 = vector.shape_cast %71 : vector<8x8x256xf32> to vector<64x256xf32>
    %c1_70 = arith.constant 1 : index
    %c0_71 = arith.constant 0 : index
    %c0_72 = arith.constant 0 : index
    %73 = vector.load %arg5[%c1_70, %c0_71, %c0_72] : memref<9x1x256xf32, #tpu.memory_space<vmem>>, vector<1x1x256xf32>
    %74 = vector.shape_cast %73 : vector<1x1x256xf32> to vector<1x256xf32>
    %75 = vector.broadcast %74 : vector<1x256xf32> to vector<64x256xf32>
    %76 = arith.mulf %72, %75 : vector<64x256xf32>
    %77 = arith.addf %70, %76 : vector<64x256xf32>
    %c0_73 = arith.constant 0 : index
    %c2_74 = arith.constant 2 : index
    %c0_75 = arith.constant 0 : index
    %78 = vector.load %arg12[%c0_73, %c2_74, %c0_75] : memref<10x10x256xf32, #tpu.memory_space<vmem>>, vector<8x8x256xf32>
    %79 = vector.shape_cast %78 : vector<8x8x256xf32> to vector<64x256xf32>
    %c2_76 = arith.constant 2 : index
    %c0_77 = arith.constant 0 : index
    %c0_78 = arith.constant 0 : index
    %80 = vector.load %arg5[%c2_76, %c0_77, %c0_78] : memref<9x1x256xf32, #tpu.memory_space<vmem>>, vector<1x1x256xf32>
    %81 = vector.shape_cast %80 : vector<1x1x256xf32> to vector<1x256xf32>
    %82 = vector.broadcast %81 : vector<1x256xf32> to vector<64x256xf32>
    %83 = arith.mulf %79, %82 : vector<64x256xf32>
    %84 = arith.addf %77, %83 : vector<64x256xf32>
    %c1_79 = arith.constant 1 : index
    %c0_80 = arith.constant 0 : index
    %c0_81 = arith.constant 0 : index
    %85 = vector.load %arg12[%c1_79, %c0_80, %c0_81] : memref<10x10x256xf32, #tpu.memory_space<vmem>>, vector<8x8x256xf32>
    %86 = vector.shape_cast %85 : vector<8x8x256xf32> to vector<64x256xf32>
    %c3 = arith.constant 3 : index
    %c0_82 = arith.constant 0 : index
    %c0_83 = arith.constant 0 : index
    %87 = vector.load %arg5[%c3, %c0_82, %c0_83] : memref<9x1x256xf32, #tpu.memory_space<vmem>>, vector<1x1x256xf32>
    %88 = vector.shape_cast %87 : vector<1x1x256xf32> to vector<1x256xf32>
    %89 = vector.broadcast %88 : vector<1x256xf32> to vector<64x256xf32>
    %90 = arith.mulf %86, %89 : vector<64x256xf32>
    %91 = arith.addf %84, %90 : vector<64x256xf32>
    %c1_84 = arith.constant 1 : index
    %c1_85 = arith.constant 1 : index
    %c0_86 = arith.constant 0 : index
    %92 = vector.load %arg12[%c1_84, %c1_85, %c0_86] : memref<10x10x256xf32, #tpu.memory_space<vmem>>, vector<8x8x256xf32>
    %93 = vector.shape_cast %92 : vector<8x8x256xf32> to vector<64x256xf32>
    %c4 = arith.constant 4 : index
    %c0_87 = arith.constant 0 : index
    %c0_88 = arith.constant 0 : index
    %94 = vector.load %arg5[%c4, %c0_87, %c0_88] : memref<9x1x256xf32, #tpu.memory_space<vmem>>, vector<1x1x256xf32>
    %95 = vector.shape_cast %94 : vector<1x1x256xf32> to vector<1x256xf32>
    %96 = vector.broadcast %95 : vector<1x256xf32> to vector<64x256xf32>
    %97 = arith.mulf %93, %96 : vector<64x256xf32>
    %98 = arith.addf %91, %97 : vector<64x256xf32>
    %c1_89 = arith.constant 1 : index
    %c2_90 = arith.constant 2 : index
    %c0_91 = arith.constant 0 : index
    %99 = vector.load %arg12[%c1_89, %c2_90, %c0_91] : memref<10x10x256xf32, #tpu.memory_space<vmem>>, vector<8x8x256xf32>
    %100 = vector.shape_cast %99 : vector<8x8x256xf32> to vector<64x256xf32>
    %c5 = arith.constant 5 : index
    %c0_92 = arith.constant 0 : index
    %c0_93 = arith.constant 0 : index
    %101 = vector.load %arg5[%c5, %c0_92, %c0_93] : memref<9x1x256xf32, #tpu.memory_space<vmem>>, vector<1x1x256xf32>
    %102 = vector.shape_cast %101 : vector<1x1x256xf32> to vector<1x256xf32>
    %103 = vector.broadcast %102 : vector<1x256xf32> to vector<64x256xf32>
    %104 = arith.mulf %100, %103 : vector<64x256xf32>
    %105 = arith.addf %98, %104 : vector<64x256xf32>
    %c2_94 = arith.constant 2 : index
    %c0_95 = arith.constant 0 : index
    %c0_96 = arith.constant 0 : index
    %106 = vector.load %arg12[%c2_94, %c0_95, %c0_96] : memref<10x10x256xf32, #tpu.memory_space<vmem>>, vector<8x8x256xf32>
    %107 = vector.shape_cast %106 : vector<8x8x256xf32> to vector<64x256xf32>
    %c6 = arith.constant 6 : index
    %c0_97 = arith.constant 0 : index
    %c0_98 = arith.constant 0 : index
    %108 = vector.load %arg5[%c6, %c0_97, %c0_98] : memref<9x1x256xf32, #tpu.memory_space<vmem>>, vector<1x1x256xf32>
    %109 = vector.shape_cast %108 : vector<1x1x256xf32> to vector<1x256xf32>
    %110 = vector.broadcast %109 : vector<1x256xf32> to vector<64x256xf32>
    %111 = arith.mulf %107, %110 : vector<64x256xf32>
    %112 = arith.addf %105, %111 : vector<64x256xf32>
    %c2_99 = arith.constant 2 : index
    %c1_100 = arith.constant 1 : index
    %c0_101 = arith.constant 0 : index
    %113 = vector.load %arg12[%c2_99, %c1_100, %c0_101] : memref<10x10x256xf32, #tpu.memory_space<vmem>>, vector<8x8x256xf32>
    %114 = vector.shape_cast %113 : vector<8x8x256xf32> to vector<64x256xf32>
    %c7 = arith.constant 7 : index
    %c0_102 = arith.constant 0 : index
    %c0_103 = arith.constant 0 : index
    %115 = vector.load %arg5[%c7, %c0_102, %c0_103] : memref<9x1x256xf32, #tpu.memory_space<vmem>>, vector<1x1x256xf32>
    %116 = vector.shape_cast %115 : vector<1x1x256xf32> to vector<1x256xf32>
    %117 = vector.broadcast %116 : vector<1x256xf32> to vector<64x256xf32>
    %118 = arith.mulf %114, %117 : vector<64x256xf32>
    %119 = arith.addf %112, %118 : vector<64x256xf32>
    %c2_104 = arith.constant 2 : index
    %c2_105 = arith.constant 2 : index
    %c0_106 = arith.constant 0 : index
    %120 = vector.load %arg12[%c2_104, %c2_105, %c0_106] : memref<10x10x256xf32, #tpu.memory_space<vmem>>, vector<8x8x256xf32>
    %121 = vector.shape_cast %120 : vector<8x8x256xf32> to vector<64x256xf32>
    %c8 = arith.constant 8 : index
    %c0_107 = arith.constant 0 : index
    %c0_108 = arith.constant 0 : index
    %122 = vector.load %arg5[%c8, %c0_107, %c0_108] : memref<9x1x256xf32, #tpu.memory_space<vmem>>, vector<1x1x256xf32>
    %123 = vector.shape_cast %122 : vector<1x1x256xf32> to vector<1x256xf32>
    %124 = vector.broadcast %123 : vector<1x256xf32> to vector<64x256xf32>
    %125 = arith.mulf %121, %124 : vector<64x256xf32>
    %126 = arith.addf %119, %125 : vector<64x256xf32>
    %c0_109 = arith.constant 0 : index
    %c0_110 = arith.constant 0 : index
    %127 = vector.load %arg6[%c0_109, %c0_110] : memref<1x256xf32, #tpu.memory_space<vmem>>, vector<1x256xf32>
    %128 = vector.broadcast %127 : vector<1x256xf32> to vector<64x256xf32>
    %129 = arith.addf %126, %128 : vector<64x256xf32>
    %c0_111 = arith.constant 0 : index
    %c0_112 = arith.constant 0 : index
    %130 = vector.load %arg7[%c0_111, %c0_112] : memref<256x64xf32, #tpu.memory_space<vmem>>, vector<256x64xf32>
    %cst_113 = arith.constant dense<0.000000e+00> : vector<64x64xf32>
    %131 = tpu.matmul %129, %130, %cst_113 {dimension_numbers = #tpu.dot_dimension_numbers<[1], [0], [0], [1], [0, 0, 1, 1], [], []>} : vector<64x256xf32>, vector<256x64xf32>, vector<64x64xf32> -> vector<64x64xf32>
    %c0_114 = arith.constant 0 : index
    %c0_115 = arith.constant 0 : index
    %132 = vector.load %arg8[%c0_114, %c0_115] : memref<1x64xf32, #tpu.memory_space<vmem>>, vector<1x64xf32>
    %133 = vector.broadcast %132 : vector<1x64xf32> to vector<64x64xf32>
    %134 = arith.mulf %131, %133 : vector<64x64xf32>
    %c0_116 = arith.constant 0 : index
    %c0_117 = arith.constant 0 : index
    %135 = vector.load %arg9[%c0_116, %c0_117] : memref<1x64xf32, #tpu.memory_space<vmem>>, vector<1x64xf32>
    %136 = vector.broadcast %135 : vector<1x64xf32> to vector<64x64xf32>
    %137 = arith.addf %134, %136 : vector<64x64xf32>
    %cst_118 = arith.constant 0.000000e+00 : f32
    %138 = vector.broadcast %cst_118 : f32 to vector<64x64xf32>
    %139 = arith.cmpf ogt, %137, %138 : vector<64x64xf32>
    %cst_119 = arith.constant 0.00999999977 : f32
    %140 = vector.broadcast %cst_119 : f32 to vector<64x64xf32>
    %141 = arith.mulf %140, %137 : vector<64x64xf32>
    %142 = arith.select %139, %137, %141 : vector<64x64xi1>, vector<64x64xf32>
    %cst_120 = arith.constant dense<0.000000e+00> : vector<64xf32>
    %143 = vector.multi_reduction <add>, %142, %cst_120 [0] : vector<64x64xf32> to vector<64xf32>
    %144 = vector.shape_cast %143 : vector<64xf32> to vector<1x64xf32>
    %cst_121 = arith.constant 6.400000e+01 : f32
    %145 = vector.broadcast %cst_121 : f32 to vector<1x64xf32>
    %146 = arith.divf %144, %145 : vector<1x64xf32>
    %c0_122 = arith.constant 0 : index
    %c0_123 = arith.constant 0 : index
    %c0_124 = arith.constant 0 : index
    %147 = vector.load %arg10[%c0_122, %c0_123, %c0_124] : memref<1x1x64xf32, #tpu.memory_space<vmem>>, vector<1x1x64xf32>
    %148 = vector.shape_cast %147 : vector<1x1x64xf32> to vector<1x64xf32>
    %149 = vector.shape_cast %146 : vector<1x64xf32> to vector<1x1x64xf32>
    tpu.vector_store %arg10[%c0_122, %c0_123, %c0_124], %149 {strides = array<i32>} : memref<1x1x64xf32, #tpu.memory_space<vmem>>, vector<1x1x64xf32>,
    return
  }
  func.func @transform_0(%arg0: i32) -> (i32, i32, i32, i32) {
    %c0_i32 = arith.constant 0 : i32
    %c0_i32_0 = arith.constant 0 : i32
    %c0_i32_1 = arith.constant 0 : i32
    %c0_i32_2 = arith.constant 0 : i32
    return %arg0, %c0_i32, %c0_i32_0, %c0_i32_1 : i32, i32, i32, i32
  }
  func.func @transform_1(%arg0: i32) -> (i32, i32) {
    %c0_i32 = arith.constant 0 : i32
    %c0_i32_0 = arith.constant 0 : i32
    %c0_i32_1 = arith.constant 0 : i32
    return %c0_i32, %c0_i32_0 : i32, i32
  }
  func.func @transform_2(%arg0: i32) -> (i32, i32) {
    %c0_i32 = arith.constant 0 : i32
    %c0_i32_0 = arith.constant 0 : i32
    %c0_i32_1 = arith.constant 0 : i32
    return %c0_i32, %c0_i32_0 : i32, i32
  }
  func.func @transform_3(%arg0: i32) -> (i32, i32) {
    %c0_i32 = arith.constant 0 : i32
    %c0_i32_0 = arith.constant 0 : i32
    %c0_i32_1 = arith.constant 0 : i32
    return %c0_i32, %c0_i32_0 : i32, i32
  }
  func.func @transform_4(%arg0: i32) -> (i32, i32, i32) {
    %c0_i32 = arith.constant 0 : i32
    %c0_i32_0 = arith.constant 0 : i32
    %c0_i32_1 = arith.constant 0 : i32
    %c0_i32_2 = arith.constant 0 : i32
    return %c0_i32, %c0_i32_0, %c0_i32_1 : i32, i32, i32
  }
  func.func @transform_5(%arg0: i32) -> (i32, i32) {
    %c0_i32 = arith.constant 0 : i32
    %c0_i32_0 = arith.constant 0 : i32
    %c0_i32_1 = arith.constant 0 : i32
    return %c0_i32, %c0_i32_0 : i32, i32
  }
  func.func @transform_6(%arg0: i32) -> (i32, i32) {
    %c0_i32 = arith.constant 0 : i32
    %c0_i32_0 = arith.constant 0 : i32
    %c0_i32_1 = arith.constant 0 : i32
    return %c0_i32, %c0_i32_0 : i32, i32
  }
  func.func @transform_7(%arg0: i32) -> (i32, i32) {
    %c0_i32 = arith.constant 0 : i32
    %c0_i32_0 = arith.constant 0 : i32
    %c0_i32_1 = arith.constant 0 : i32
    return %c0_i32, %c0_i32_0 : i32, i32
  }
  func.func @transform_8(%arg0: i32) -> (i32, i32) {
    %c0_i32 = arith.constant 0 : i32
    %c0_i32_0 = arith.constant 0 : i32
    %c0_i32_1 = arith.constant 0 : i32
    return %c0_i32, %c0_i32_0 : i32, i32
  }
  func.func @transform_9(%arg0: i32) -> (i32, i32, i32) {
    %c0_i32 = arith.constant 0 : i32
    %c0_i32_0 = arith.constant 0 : i32
    %c0_i32_1 = arith.constant 0 : i32
    return %arg0, %c0_i32, %c0_i32_0 : i32, i32, i32
  }
}

</mosaic_0001>

<bundles_post_ra>
// kernel: tpu_custom_call.1
= control target key start
LH: loop header
LB: loop body
LE: loop exit
PB: predicated region body
PF: predicated region fallthrough
CT: control target
= control target key end

     0   :  { %s22820_s0 = inlined_call_operand.vmem [shape: f32[2,10,10,1024], index: 0, kind: input, shape index: {}]   ;;  %s22821_s1 = inlined_call_operand.hbm [shape: bf16[9216,256], index: 1, kind: input, shape index: {}]   ;;  %s22822_s2 = inlined_call_operand.hbm [shape: f32[1,256], index: 2, kind: input, shape index: {}]   ;;  %s22823_s3 = inlined_call_operand.hbm [shape: f32[1,256], index: 3, kind: input, shape index: {}]   ;;  %s22824_s4 = inlined_call_operand.hbm [shape: f32[9,1,256], index: 4, kind: input, shape index: {}]   ;;  %s22825_s5 = inlined_call_operand.hbm [shape: f32[1,256], index: 5, kind: input, shape index: {}]   ;;  %s22826_s6 = inlined_call_operand.vmem [shape: f32[256,64], index: 6, kind: input, shape index: {}]   ;;  %s22827_s7 = inlined_call_operand.hbm [shape: f32[1,64], index: 7, kind: input, shape index: {}]   ;;  %s22828_s8 = inlined_call_operand.hbm [shape: f32[1,64], index: 8, kind: input, shape index: {}]   ;;  %s22829_s9 = inlined_call_operand.hbm [shape: f32[2,1,64], index: 9, kind: output, shape index: {}]  }
   0x1   :  { %22836 = sst [smem:[#allocation25_spill]] %s22822_s2 }
   0x2   :  { %22837 = sst [smem:[#allocation26_spill]] %s22824_s4 }
   0x3   :  { %14 = vsyncpa [#allocation5], 0 }
   0x4   :  { %15 = vsyncpa [#allocation8], 0 }
   0x5   :  { %16 = vsyncpa [#allocation11], 0 }
   0x6   :  { %17 = vsyncpa [#allocation14], 0 }
   0x7   :  { %18 = vsyncpa [#allocation6], 0 }
   0x8   :  { %20 = vsyncpa [#allocation6 + $0x1], 0  ;;  %s20586_s30 = smov 0   ;;  %s20588_s10 = smov 0  }
   0x9   :  { %s20590_s11 = smov 0   ;;  %s20592_s12 = smov 0  }
   0xa LB: > { %22838 = sst [smem:[#allocation22_spill]] %s20517_s11  ;;  %s20607_s13 = sadd.s32 4294967295, %s20521_s12   ;;  %s20521_s12 = sphi %s20592_s12, %s22859_s12   ;;  %s20517_s11 = sphi %s20590_s11, %s22861_s11   ;;  %s20513_s10 = sphi %s20588_s10, %s22863_s10   ;;  %s20509_s30 = sphi %s20586_s30, %s22862_s30  }
   0xb   : > { %s15922_s14 = sadd.s32 4294967294, %s20521_s12   ;;  %s20611_s15 = sadd.s32 1, %s20521_s12  }
   0xc   : > { %22839 = sst [smem:[#allocation23_spill]] %s20611_s15  ;;  %s227_s16 = sadd.s32 1, %s20517_s11 }
   0xd   : > { %s224_s17 = ssub.s32 %s20521_s12, %s20611_s15  ;;  %p237_p0 = scmp.ne.s32.totalorder %s20517_s11, %s20513_s10 }
   0xe   : > { %p225_p1 = scmp.eq.s32.totalorder %s224_s17, 0  ;;  %p238_p2 = scmp.eq.s32.totalorder %s20607_s13, 1 }
   0xf   : > { %p243_p3 = scmp.ne.s32.totalorder %s20513_s10, %s20509_s30  ;;  %p244_p4 = scmp.eq.s32.totalorder %s15922_s14, 1 }
  0x10   : > { %s20622_s18 = scalar_select %p225_p1, %s20517_s11, %s227_s16  }
  0x11   : > { %p20624_p5 = por %p238_p2, %p237_p0  ;;  %p20628_p6 = por %p244_p4, %p243_p3 }
  0x12   : > { %22840 = sst [smem:[#allocation24_spill]] %s20622_s18  ;;  %p15923_p7 = scmp.ge.s32.totalorder %s20521_s12, 1 }
  0x13   : > { %s22841_s19 = scalar_select %p20624_p5, 1, 0 }
  0x14   : > { %s22842_s20 = scalar_select %p20628_p6, 1, 0 }
  0x15   : > { %p251_p8 = scmp.lt.s32.totalorder %s20521_s12, 3  ;;  %p22830_p9 = scmp.eq.s32.totalorder %s20607_s13, 0 }
  0x16   : > { %s20523_s22 = smov [#allocation7]   ;;  %s20524_s24 = smov [#allocation10]  }
  0x17   : > { %p20635_p10 = pnand %p15923_p7, %p251_p8  ;;  %s277_s23 = sshll.u32 %s20523_s22, 4  ;;  %s278_s23 = int_to_ptr.vmem [resolvable:$true] %s277_s23 }
  0x18   : > { %s298_s25 = sshll.u32 %s20524_s24, 4  ;;  %s20525_s27 = smov [#allocation13]   ;;  %s20647_s25 = int_to_ptr.vmem [resolvable:$true] %s298_s25 }
  0x19   : > { %s22843_s21 = scalar_select %p20635_p10, 1, 0 }
  0x1a   : > { %p18433_p11 = pneg %p20635_p10  ;;  %s20649_s28 = sshll.u32 %s20525_s27, 4  ;;  %s327_s28 = int_to_ptr.vmem [resolvable:$true] %s20649_s28 }
  0x1b   : > { %s22845_s2 = sld [smem:[#allocation25_spill]] }
  0x1c   : > { %p20643_p12 = pnand %p22830_p9, %p18433_p11 }
  0x1e   : > { %p20659_p0 = pneg %p20643_p12 }
  0x21   : > { %s20247_s16 = scalar_lea.hbm %s22845_s2, 32 }
  0x22   : > { %p20248_p13 = scmp.ne.s32.totalorder %s22845_s2, %s20247_s16  ;;  %p20254_p3 = scmp.lt.u32.totalorder %s20247_s16, %s22845_s2 }
  0x24   : > { %p20250_p1 = pnand %p20659_p0, %p20248_p13 }
  0x26   : > { %p20251_p2 = pneg %p20250_p1 }
  0x28   : > { %p20256_p4 = pnand %p20254_p3, %p20251_p2 }
  0x2a   : > { %20259 = shalt.err (!%p20256_p4)
}
  0x2b   : > { %s20260_s29 = scalar_lea.vmem %s278_s23, 32  ;;  %p20268_p9 = scmp.lt.s32.totalorder %s278_s23, %s278_s23 }
  0x2c   : > { %p20261_p7 = scmp.ne.s32.totalorder %s278_s23, %s20260_s29  ;;  %p20269_p6 = scmp.lt.s32.totalorder %s20260_s29, %s20260_s29 }
  0x2e   : > { %p20263_p8 = pnand %p20261_p7, %p20659_p0  ;;  %p20270_p5 = por %p20269_p6, %p20268_p9 }
  0x30   : > { %p20264_p11 = pneg %p20263_p8 }
  0x32   : > { %p20271_p10 = pnand %p20270_p5, %p20264_p11 }
  0x34   : > { %20274 = shalt.err (!%p20271_p10)
}
  0x35   : > { %18439 = dma.hbm_to_vmem [thread:$0]  (!%p20643_p12), %s22845_s2, 32, %s278_s23, [#allocation8]  }
  0x36   : > { %s22847_s4 = sld [smem:[#allocation26_spill]] }
  0x3c   : > { %s20275_s22 = scalar_lea.hbm %s22847_s4, 288 }
  0x3d   : > { %p20276_p13 = scmp.ne.s32.totalorder %s22847_s4, %s20275_s22  ;;  %p20282_p5 = scmp.lt.u32.totalorder %s20275_s22, %s22847_s4 }
  0x3f   : > { %p20278_p1 = pnand %p20276_p13, %p20659_p0 }
  0x41   : > { %p20279_p6 = pneg %p20278_p1 }
  0x43   : > { %p20284_p9 = pnand %p20282_p5, %p20279_p6 }
  0x45   : > { %20287 = shalt.err (!%p20284_p9)
}
  0x46   : > { %s20288_s23 = scalar_lea.vmem %s20647_s25, 288  ;;  %p20296_p4 = scmp.lt.s32.totalorder %s20647_s25, %s20647_s25 }
  0x47   : > { %p20289_p10 = scmp.ne.s32.totalorder %s20647_s25, %s20288_s23  ;;  %p20297_p7 = scmp.lt.s32.totalorder %s20288_s23, %s20288_s23 }
  0x49   : > { %p20291_p2 = pnand %p20289_p10, %p20659_p0  ;;  %p20298_p8 = por %p20297_p7, %p20296_p4 }
  0x4b   : > { %p20292_p3 = pneg %p20291_p2 }
  0x4d   : > { %p20299_p11 = pnand %p20298_p8, %p20292_p3 }
  0x4f   : > { %20302 = shalt.err (!%p20299_p11)
}
  0x50   : > { %s20526_s11 = smov 32   ;;  %s20527_s15 = smov 2  }
  0x51   : > { %18445 = dma.hbm_to_vmem [thread:$0]  (!%p20643_p12), %s22847_s4, 288, %s20647_s25, [#allocation11], %s20526_s11, %s20526_s11, %s20527_s15  }
  0x52   : > { %s20303_s22 = scalar_lea.hbm %s22827_s7, 16 }
  0x53   : > { %p20304_p13 = scmp.ne.s32.totalorder %s22827_s7, %s20303_s22  ;;  %p20310_p5 = scmp.lt.u32.totalorder %s20303_s22, %s22827_s7 }
  0x55   : > { %p20306_p1 = pnand %p20304_p13, %p20659_p0 }
  0x57   : > { %p20307_p6 = pneg %p20306_p1 }
  0x59   : > { %p20312_p9 = pnand %p20310_p5, %p20307_p6 }
  0x5b   : > { %20315 = shalt.err (!%p20312_p9)
}
  0x5c   : > { %s20316_s14 = scalar_lea.vmem %s327_s28, 16  ;;  %s20323_s25 = scalar_lea.vmem %s327_s28, 32 }
  0x5d   : > { %p20317_p10 = scmp.ne.s32.totalorder %s327_s28, %s20316_s14  ;;  %p20324_p4 = scmp.lt.s32.totalorder %s327_s28, %s327_s28 }
  0x5e   : > { %p20325_p7 = scmp.lt.s32.totalorder %s20323_s25, %s20316_s14 }
  0x5f   : > { %p20319_p2 = pnand %p20317_p10, %p20659_p0 }
  0x60   : > { %p20326_p8 = por %p20325_p7, %p20324_p4 }
  0x61   : > { %p20320_p3 = pneg %p20319_p2 }
  0x63   : > { %p20327_p11 = pnand %p20326_p8, %p20320_p3 }
  0x65   : > { %20330 = shalt.err (!%p20327_p11)
}
  0x66   : > { %18451 = dma.hbm_to_vmem [thread:$0]  (!%p20643_p12), %s22827_s7, 16, %s327_s28, [#allocation14]  }
  0x67   : > { %s20528_s2 = smov [#allocation4]   ;;  %s20331_s22 = scalar_lea.hbm %s22821_s1, 147456 }
  0x68   : > { %s263_s17 = sshll.u32 %s20528_s2, 4  ;;  %p20332_p13 = scmp.ne.s32.totalorder %s22821_s1, %s20331_s22  ;;  %s264_s17 = int_to_ptr.vmem [resolvable:$true] %s263_s17 }
  0x69   : > { %p20338_p5 = scmp.lt.u32.totalorder %s20331_s22, %s22821_s1 }
  0x6a   : > { %p20334_p1 = pnand %p20332_p13, %p20659_p0 }
  0x6c   : > { %p20335_p6 = pneg %p20334_p1 }
  0x6e   : > { %p20340_p9 = pnand %p20338_p5, %p20335_p6 }
  0x70   : > { %20343 = shalt.err (!%p20340_p9)
}
  0x71   : > { %s20344_s28 = scalar_lea.vmem %s264_s17, 147456  ;;  %p20352_p4 = scmp.lt.s32.totalorder %s264_s17, %s264_s17 }
  0x72   : > { %p20345_p10 = scmp.ne.s32.totalorder %s264_s17, %s20344_s28  ;;  %p20353_p7 = scmp.lt.s32.totalorder %s20344_s28, %s20344_s28 }
  0x74   : > { %p20347_p2 = pnand %p20345_p10, %p20659_p0  ;;  %p20354_p8 = por %p20353_p7, %p20352_p4 }
  0x76   : > { %p20348_p3 = pneg %p20347_p2 }
  0x78   : > { %p20355_p11 = pnand %p20354_p8, %p20348_p3 }
  0x7a   : > { %20358 = shalt.err (!%p20355_p11)
}
  0x7b   : > { %s20529_s25 = smov 128   ;;  %s20530_s11 = smov 8  }
  0x7c   : > { %18436 = dma.hbm_to_vmem [thread:$0]  (!%p20643_p12), %s22821_s1, 147456, %s264_s17, [#allocation5], %s20529_s25, %s20529_s25, %s20530_s11  }
  0x7d   : > { %s20531_s18 = smov [#allocation9]   ;;  %s20532_s22 = smov [#allocation12]  }
  0x7e   : > { %s288_s16 = sshll.u32 %s20531_s18, 4  ;;  %s312_s27 = sshll.u32 %s20532_s22, 4  ;;  %s289_s16 = int_to_ptr.vmem [resolvable:$true] %s288_s16  ;;  %s20735_s27 = int_to_ptr.vmem [resolvable:$true] %s312_s27 }
  0x7f   : > { %s20359_s14 = scalar_lea.hbm %s22823_s3, 32 }
  0x80   : > { %p20360_p13 = scmp.ne.s32.totalorder %s22823_s3, %s20359_s14  ;;  %p20366_p5 = scmp.lt.u32.totalorder %s20359_s14, %s22823_s3 }
  0x82   : > { %p20362_p1 = pnand %p20360_p13, %p20659_p0 }
  0x84   : > { %p20363_p6 = pneg %p20362_p1 }
  0x86   : > { %p20368_p9 = pnand %p20366_p5, %p20363_p6 }
  0x88   : > { %20371 = shalt.err (!%p20368_p9)
}
  0x89   : > { %s20372_s25 = scalar_lea.vmem %s289_s16, 32  ;;  %p20380_p4 = scmp.lt.s32.totalorder %s289_s16, %s289_s16 }
  0x8a   : > { %p20373_p10 = scmp.ne.s32.totalorder %s289_s16, %s20372_s25  ;;  %p20381_p7 = scmp.lt.s32.totalorder %s20372_s25, %s20372_s25 }
  0x8c   : > { %p20375_p2 = pnand %p20373_p10, %p20659_p0  ;;  %p20382_p8 = por %p20381_p7, %p20380_p4 }
  0x8e   : > { %p20376_p3 = pneg %p20375_p2 }
  0x90   : > { %p20383_p11 = pnand %p20382_p8, %p20376_p3 }
  0x92   : > { %20386 = shalt.err (!%p20383_p11)
}
  0x93   : > { %18442 = dma.hbm_to_vmem [thread:$0]  (!%p20643_p12), %s22823_s3, 32, %s289_s16, [#allocation8]  }
  0x94   : > { %s20387_s22 = scalar_lea.hbm %s22825_s5, 32 }
  0x95   : > { %p20388_p13 = scmp.ne.s32.totalorder %s22825_s5, %s20387_s22  ;;  %p20394_p5 = scmp.lt.u32.totalorder %s20387_s22, %s22825_s5 }
  0x97   : > { %p20390_p1 = pnand %p20388_p13, %p20659_p0 }
  0x99   : > { %p20391_p6 = pneg %p20390_p1 }
  0x9b   : > { %p20396_p9 = pnand %p20394_p5, %p20391_p6 }
  0x9d   : > { %20399 = shalt.err (!%p20396_p9)
}
  0x9e   : > { %s20400_s16 = scalar_lea.vmem %s20735_s27, 32  ;;  %p20408_p4 = scmp.lt.s32.totalorder %s20735_s27, %s20735_s27 }
  0x9f   : > { %p20401_p10 = scmp.ne.s32.totalorder %s20735_s27, %s20400_s16  ;;  %p20409_p7 = scmp.lt.s32.totalorder %s20400_s16, %s20400_s16 }
  0xa1   : > { %p20403_p2 = pnand %p20401_p10, %p20659_p0  ;;  %p20410_p8 = por %p20409_p7, %p20408_p4 }
  0xa3   : > { %p20404_p3 = pneg %p20403_p2 }
  0xa5   : > { %p20411_p11 = pnand %p20410_p8, %p20404_p3 }
  0xa7   : > { %20414 = shalt.err (!%p20411_p11)
}
  0xa8   : > { %18448 = dma.hbm_to_vmem [thread:$0]  (!%p20643_p12), %s22825_s5, 32, %s20735_s27, [#allocation11]  }
  0xa9   : > { %s20533_s25 = smov [#allocation15]   ;;  %s20415_s18 = scalar_lea.hbm %s22828_s8, 16 }
  0xaa   : > { %s337_s4 = sshll.u32 %s20533_s25, 4  ;;  %p20416_p13 = scmp.ne.s32.totalorder %s22828_s8, %s20415_s18  ;;  %s338_s4 = int_to_ptr.vmem [resolvable:$true] %s337_s4 }
  0xab   : > { %p20422_p5 = scmp.lt.u32.totalorder %s20415_s18, %s22828_s8 }
  0xac   : > { %p20418_p1 = pnand %p20416_p13, %p20659_p0 }
  0xae   : > { %p20419_p6 = pneg %p20418_p1 }
  0xb0   : > { %p20424_p9 = pnand %p20422_p5, %p20419_p6 }
  0xb2   : > { %20427 = shalt.err (!%p20424_p9)
}
  0xb3   : > { %s20428_s27 = scalar_lea.vmem %s338_s4, 16  ;;  %s20435_s28 = scalar_lea.vmem %s338_s4, 32 }
  0xb4   : > { %p20429_p10 = scmp.ne.s32.totalorder %s338_s4, %s20428_s27  ;;  %p20436_p4 = scmp.lt.s32.totalorder %s338_s4, %s338_s4 }
  0xb5   : > { %p20437_p7 = scmp.lt.s32.totalorder %s20435_s28, %s20428_s27 }
  0xb6   : > { %p20431_p2 = pnand %p20429_p10, %p20659_p0 }
  0xb7   : > { %p20438_p8 = por %p20437_p7, %p20436_p4 }
  0xb8   : > { %p20432_p3 = pneg %p20431_p2 }
  0xba   : > { %p20439_p11 = pnand %p20438_p8, %p20432_p3 }
  0xbc   : > { %20442 = shalt.err (!%p20439_p11)
}
  0xbd   : > { %18454 = dma.hbm_to_vmem [thread:$0]  (!%p20643_p12), %s22828_s8, 16, %s338_s4, [#allocation14]  }
  0xbe   : > { %p22848_p13 = scmp.ne.s32.totalorder %s22843_s21, 0 }
  0xbf   : > { %p22849_p1 = scmp.eq.s32.totalorder (!%p22848_p13), %s20607_s13, 0 }
  0xc0   : > { %358 = sbr.rel (%p22848_p13) target bundleno = 2013 (0x7dd), region = 56 }
  0xc7   : > { %20488 = dma.done.wait (%p22849_p1), [#allocation5], 147456   ;;  %p22850_p0 = pmov %p22849_p1 }
  0xc9   : > { %20490 = vsyncadd (%p22850_p0), [#allocation5], 4294819840  ;;  %p22851_p6 = pmov %p22850_p0 }
  0xca   : > { %p22852_p5 = pmov %p22850_p0 }
  0xcb   : > { %20492 = dma.done.wait (%p22851_p6), [#allocation8], 64  }
  0xcc   : > { %20494 = vsyncadd (%p22852_p5), [#allocation8], 4294967232  ;;  %p22853_p9 = pmov %p22850_p0 }
  0xcd   : > { %p22854_p12 = pmov %p22850_p0 }
  0xce   : > { %20496 = dma.done.wait (%p22853_p9), [#allocation11], 320  }
  0xcf   : > { %20498 = vsyncadd (%p22854_p12), [#allocation11], 4294966976  ;;  %p22855_p10 = pmov %p22850_p0 }
  0xd0   : > { %p22856_p2 = pmov %p22850_p0 }
  0xd1   : > { %20500 = dma.done.wait (%p22855_p10), [#allocation14], 32  }
  0xd2   : > { %20502 = vsyncadd (%p22856_p2), [#allocation14], 4294967264  ;;  %v18518_v0 = vld [vmem:[#allocation4 + $0x4] ss:$8 sps:$4 sm:$0xff]   ;;  %v18522_v2 = vld [vmem:[#allocation4] ss:$8 sps:$4 sm:$0xff]  }
  0xd3   : > { %v18520_v1 = vld [vmem:[#allocation4 + $0x1204] ss:$8 sps:$4 sm:$0xff]   ;;  %11466 = vmatprep.subr.bf16.mxu1 %v18518_v0  ;;  %v18523_v3 = vld [vmem:[#allocation4 + $0x1200] ss:$8 sps:$4 sm:$0xff]   ;;  %v18524_v4 = vld [vmem:[#allocation4 + $0x14] ss:$8 sps:$4 sm:$0xff]  }
  0xd4   : > { %12780 = vmatprep.subr.bf16.mxu0 %v18520_v1  ;;  %11467 = vmatpush1.bf16.msra.mxu1 %v18522_v2  ;;  %v18526_v5 = vld [vmem:[#allocation4 + $0x1214] ss:$8 sps:$4 sm:$0xff]   ;;  %v18528_v6 = vld [vmem:[#allocation4 + $0x10] ss:$8 sps:$4 sm:$0xff]   ;;  %v18530_v8 = vld [vmem:[#allocation4 + $0x24] ss:$8 sps:$4 sm:$0xff]  }
  0xd5   : > { %12781 = vmatpush1.bf16.msra.mxu0 %v18523_v3  ;;  %11468 = vmatprep.subr.bf16.mxu1 %v18524_v4  ;;  %v18529_v7 = vld [vmem:[#allocation4 + $0x1210] ss:$8 sps:$4 sm:$0xff]   ;;  %v18532_v9 = vld [vmem:[#allocation4 + $0x1224] ss:$8 sps:$4 sm:$0xff]   ;;  %v18534_v10 = vld [vmem:[#allocation4 + $0x20] ss:$8 sps:$4 sm:$0xff]  }
  0xd6   : > { %12782 = vmatprep.subr.bf16.mxu0 %v18526_v5  ;;  %v18535_v11 = vld [vmem:[#allocation4 + $0x1220] ss:$8 sps:$4 sm:$0xff]   ;;  %v18536_v12 = vld [vmem:[#allocation4 + $0x34] ss:$8 sps:$4 sm:$0xff]   ;;  %v18540_v14 = vld [vmem:[#allocation4 + $0x30] ss:$8 sps:$4 sm:$0xff]  }
  0xd7   : > { %v18538_v13 = vld [vmem:[#allocation4 + $0x1234] ss:$8 sps:$4 sm:$0xff]   ;;  %v18541_v15 = vld [vmem:[#allocation4 + $0x1230] ss:$8 sps:$4 sm:$0xff]   ;;  %v18542_v16 = vld [vmem:[#allocation4 + $0x44] ss:$8 sps:$4 sm:$0xff]  }
  0xd8   : > { %11469 = vmatpush1.bf16.msra.mxu1 %v18528_v6  ;;  %v18544_v17 = vld [vmem:[#allocation4 + $0x1244] ss:$8 sps:$4 sm:$0xff]   ;;  %v18546_v18 = vld [vmem:[#allocation4 + $0x40] ss:$8 sps:$4 sm:$0xff]   ;;  %v18548_v20 = vld [vmem:[#allocation4 + $0x54] ss:$8 sps:$4 sm:$0xff]  }
  0xd9   : > { %12783 = vmatpush1.bf16.msra.mxu0 %v18529_v7  ;;  %11470 = vmatprep.subr.bf16.mxu1 %v18530_v8  ;;  %v18547_v19 = vld [vmem:[#allocation4 + $0x1240] ss:$8 sps:$4 sm:$0xff]   ;;  %v18550_v21 = vld [vmem:[#allocation4 + $0x1254] ss:$8 sps:$4 sm:$0xff]   ;;  %v18552_v22 = vld [vmem:[#allocation4 + $0x50] ss:$8 sps:$4 sm:$0xff]  }
  0xda   : > { %12784 = vmatprep.subr.bf16.mxu0 %v18532_v9  ;;  %v18553_v23 = vld [vmem:[#allocation4 + $0x1250] ss:$8 sps:$4 sm:$0xff]   ;;  %v18554_v24 = vld [vmem:[#allocation4 + $0x64] ss:$8 sps:$4 sm:$0xff]   ;;  %v18558_v26 = vld [vmem:[#allocation4 + $0x60] ss:$8 sps:$4 sm:$0xff]  }
  0xdb   : > { %v18556_v25 = vld [vmem:[#allocation4 + $0x1264] ss:$8 sps:$4 sm:$0xff]   ;;  %v18559_v27 = vld [vmem:[#allocation4 + $0x1260] ss:$8 sps:$4 sm:$0xff]   ;;  %v18560_v28 = vld [vmem:[#allocation4 + $0x74] ss:$8 sps:$4 sm:$0xff]  }
  0xdc   : > { %11471 = vmatpush1.bf16.msra.mxu1 %v18534_v10  ;;  %v18562_v29 = vld [vmem:[#allocation4 + $0x1274] ss:$8 sps:$4 sm:$0xff]   ;;  %v18564_v30 = vld [vmem:[#allocation4 + $0x70] ss:$8 sps:$4 sm:$0xff]   ;;  %v18566_v32 = vld [vmem:[#allocation4 + $0x84] ss:$8 sps:$4 sm:$0xff]  }
  0xdd   : > { %12785 = vmatpush1.bf16.msra.mxu0 %v18535_v11  ;;  %11472 = vmatprep.subr.bf16.mxu1 %v18536_v12  ;;  %v18565_v31 = vld [vmem:[#allocation4 + $0x1270] ss:$8 sps:$4 sm:$0xff]   ;;  %v18568_v33 = vld [vmem:[#allocation4 + $0x1284] ss:$8 sps:$4 sm:$0xff]   ;;  %p417_p3 = scmp.lt.s32.totalorder %s20607_s13, 1  ;;  %vm806_vm0 = vcmask 1046528  }
  0xde   : > { %12786 = vmatprep.subr.bf16.mxu0 %v18538_v13  ;;  %v18570_v34 = vld [vmem:[#allocation4 + $0x80] ss:$8 sps:$4 sm:$0xff]   ;;  %v18572_v36 = vld [vmem:[#allocation4 + $0x94] ss:$8 sps:$4 sm:$0xff]   ;;  %v18576_v38 = vld [vmem:[#allocation4 + $0x90] ss:$8 sps:$4 sm:$0xff]  }
  0xdf   : > { %v18571_v35 = vld [vmem:[#allocation4 + $0x1280] ss:$8 sps:$4 sm:$0xff]   ;;  %v18574_v37 = vld [vmem:[#allocation4 + $0x1294] ss:$8 sps:$4 sm:$0xff]   ;;  %s418_s21 = scalar_select %p417_p3, %s20607_s13, 1  ;;  %vm1383_vm1 = vcmask 1045504  }
  0xe0   : > { %11473 = vmatpush1.bf16.msra.mxu1 %v18540_v14  ;;  %v18577_v39 = vld [vmem:[#allocation4 + $0x1290] ss:$8 sps:$4 sm:$0xff]   ;;  %v18578_v40 = vld [vmem:[#allocation4 + $0xa4] ss:$8 sps:$4 sm:$0xff]   ;;  %v18582_v42 = vld [vmem:[#allocation4 + $0xa0] ss:$8 sps:$4 sm:$0xff]  }
  0xe1   : > { %12787 = vmatpush1.bf16.msra.mxu0 %v18541_v15  ;;  %11474 = vmatprep.subr.bf16.mxu1 %v18542_v16  ;;  %v18580_v41 = vld [vmem:[#allocation4 + $0x12a4] ss:$8 sps:$4 sm:$0xff]   ;;  %s18402_s26 = smul.u32 1280, %s418_s21  ;;  %v18583_v43 = vld [vmem:[#allocation4 + $0x12a0] ss:$8 sps:$4 sm:$0xff]   ;;  %s17735_s24 = sshll.u32 %s20607_s13, 4 }
  0xe2   : > { %12788 = vmatprep.subr.bf16.mxu0 %v18544_v17  ;;  %v18584_v44 = vld [vmem:[#allocation4 + $0xb4] ss:$8 sps:$4 sm:$0xff]   ;;  %v18588_v46 = vld [vmem:[#allocation4 + $0xb0] ss:$8 sps:$4 sm:$0xff]   ;;  %v18590_v50 = vld [vmem:[#allocation4 + $0xc4] ss:$8 sps:$4 sm:$0xff]   ;;  %s22778_s2 = scalar_lea.hbm %s22829_s9, %s17735_s24 }
  0xe3   : > { %v18586_v45 = vld [vmem:[#allocation4 + $0x12b4] ss:$8 sps:$4 sm:$0xff]   ;;  %s20819_s25 = scalar_lea.vmem %s22820_s0, %s18402_s26  ;;  %v18589_v47 = vld [vmem:[#allocation4 + $0x12b0] ss:$8 sps:$4 sm:$0xff]   ;;  %v18592_v51 = vld [vmem:[#allocation4 + $0x12c4] ss:$8 sps:$4 sm:$0xff]  }
  0xe4   : > { %11475 = vmatpush1.bf16.msra.mxu1 %v18546_v18  ;;  %v423_v48 = vld [vmem:[%s20819_s25 + $0x8] sm:$0xff]  ;;  %v18596_v1 = vld [vmem:[#allocation4 + $0xd4] ss:$8 sps:$4 sm:$0xff]   ;;  %v18600_v4 = vld [vmem:[#allocation4 + $0xd0] ss:$8 sps:$4 sm:$0xff]   ;;  %s415_s26 = sand.u32 1, %s20513_s10  }
  0xe5   : > { %12789 = vmatpush1.bf16.msra.mxu0 %v18547_v19  ;;  %11476 = vmatprep.subr.bf16.mxu1 %v18548_v20  ;;  %v431_v49 = vld [vmem:[%s20819_s25 + $0x88] sm:$0xff]  ;;  %v18598_v2 = vld [vmem:[#allocation4 + $0x12d4] ss:$8 sps:$4 sm:$0xff]   ;;  %v18601_v5 = vld [vmem:[#allocation4 + $0x12d0] ss:$8 sps:$4 sm:$0xff]   ;;  %s416_s17 = scalar_lea.vmem [#allocation16], %s415_s26 }
  0xe6   : > { %12790 = vmatprep.subr.bf16.mxu0 %v18550_v21  ;;  %v487_v52 = vpack.c.bf16 %v431_v49, %v423_v48  ;;  %v16010_v53 = vld [vmem:[%s20819_s25 + $0xa8] sm:$0xfe]  ;;  %v16018_v54 = vld [vmem:[%s20819_s25 + $0xe8] sm:$0x1]  ;;  %v16009_v8 = vld [vmem:[%s20819_s25 + $0xa0] sm:$0xfe] }
  0xe7   : > { %v16026_v55 = vld [vmem:[%s20819_s25 + $0x128] sm:$0xfe]  ;;  %v16034_v56 = vld [vmem:[%s20819_s25 + $0x168] sm:$0x1]  ;;  %v2104_v57 = vrot.slane %v16010_v53, 1  ;;  %v2105_v58 = vrot.slane %v16018_v54, 1 }
  0xe8   : > { %11477 = vmatpush1.bf16.msra.mxu1 %v18552_v22  ;;  %11498 = vmatprep.mubr.bf16.mxu1 %v487_v52  ;;  %v2128_v59 = vrot.slane %v16026_v55, 1  ;;  %v2129_v60 = vrot.slane %v16034_v56, 1  ;;  %v18594_v61 = vld [vmem:[#allocation4 + $0xc0] ss:$8 sps:$4 sm:$0xff]   ;;  %v18602_v6 = vld [vmem:[#allocation4 + $0xe4] ss:$8 sps:$4 sm:$0xff]  }
  0xe9   : > { %12791 = vmatpush1.bf16.msra.mxu0 %v18553_v23  ;;  %11478 = vmatprep.subr.bf16.mxu1 %v18554_v24  ;;  %v18595_v62 = vld [vmem:[#allocation4 + $0x12c0] ss:$8 sps:$4 sm:$0xff]   ;;  %v2106_v63 = vsel %vm806_vm0, %v2104_v57, %v2105_v58  ;;  %v18604_v7 = vld [vmem:[#allocation4 + $0x12e4] ss:$8 sps:$4 sm:$0xff]   ;;  %v2101_v14 = vrot.slane %v16009_v8, 1  ;;  %s15786_s18 = scalar_lea.sflag [#allocation6], %s415_s26 }
  0xea   : > { %12792 = vmatprep.subr.bf16.mxu0 %v18556_v25  ;;  %v2130_v0 = vsel %vm806_vm0, %v2128_v59, %v2129_v60  ;;  %v16017_v9 = vld [vmem:[%s20819_s25 + $0xe0] sm:$0x1]  ;;  %v16025_v10 = vld [vmem:[%s20819_s25 + $0x120] sm:$0xfe]  ;;  %v18608_v18 = vld [vmem:[#allocation4 + $0xf4] ss:$8 sps:$4 sm:$0xff]  }
  0xeb   : > { %v2350_v3 = vpack.c.bf16 %v2130_v0, %v2106_v63  ;;  %v16033_v11 = vld [vmem:[%s20819_s25 + $0x160] sm:$0x1]  ;;  %v2102_v15 = vrot.slane %v16017_v9, 1  ;;  %v2125_v16 = vrot.slane %v16025_v10, 1  ;;  %v18610_v19 = vld [vmem:[#allocation4 + $0x12f4] ss:$8 sps:$4 sm:$0xff]  }
  0xec   : > { %11479 = vmatpush1.bf16.msra.mxu1 %v18558_v26  ;;  %v18606_v12 = vld [vmem:[#allocation4 + $0xe0] ss:$8 sps:$4 sm:$0xff]   ;;  %v2126_v17 = vrot.slane %v16033_v11, 1  ;;  %v18612_v20 = vld [vmem:[#allocation4 + $0xf0] ss:$8 sps:$4 sm:$0xff]   ;;  %p22857_p7 = scmp.ne.s32.totalorder %s22841_s19, 0 }
  0xed   : > { %12793 = vmatpush1.bf16.msra.mxu0 %v18559_v27  ;;  %11480 = vmatprep.subr.bf16.mxu1 %v18560_v28  ;;  %v18607_v13 = vld [vmem:[#allocation4 + $0x12e0] ss:$8 sps:$4 sm:$0xff]   ;;  %v18613_v21 = vld [vmem:[#allocation4 + $0x12f0] ss:$8 sps:$4 sm:$0xff]   ;;  %v2103_v24 = vsel %vm806_vm0, %v2101_v14, %v2102_v15  ;;  %v18616_v26 = vld [vmem:[#allocation4 + $0x104] ss:$8 sps:$4 sm:$0xff]  }
  0xee   : > { %12794 = vmatprep.subr.bf16.mxu0 %v18562_v29  ;;  %12812 = vmatprep.mubr.bf16.mxu0 %v2350_v3  ;;  %v422_v22 = vld [vmem:[%s20819_s25] sm:$0xff]  ;;  %v2127_v25 = vsel %vm806_vm0, %v2125_v16, %v2126_v17  ;;  %v16042_v49 = vld [vmem:[%s20819_s25 + $0x1a8] sm:$0xfe]  ;;  %v16066_v52 = vld [vmem:[%s20819_s25 + $0x268] sm:$0x1]  ;;  %s20535_s13 = smov [#allocation16]  }
  0xef   : > { %v430_v23 = vld [vmem:[%s20819_s25 + $0x80] sm:$0xff]  ;;  %v2349_v29 = vpack.c.bf16 %v2127_v25, %v2103_v24  ;;  %v2152_v53 = vrot.slane %v16042_v49, 1  ;;  %v2177_v58 = vrot.slane %v16066_v52, 1  ;;  %v18646_v59 = vld [vmem:[#allocation4 + $0x154] ss:$8 sps:$4 sm:$0xff]   ;;  %v455_v14 = vld [vmem:[%s20819_s25 + $0x208] sm:$0xff] }
  0xf0   : > { %11481 = vmatpush1.bf16.msra.mxu1 %v18564_v30  ;;  %v18619_v27 = vld [vmem:[#allocation4 + $0x1304] ss:$8 sps:$4 sm:$0xff]   ;;  %v486_v28 = vpack.c.bf16 %v430_v23, %v422_v22  ;;  %v18614_v30 = vld [vmem:[#allocation4 + $0x100] ss:$8 sps:$4 sm:$0xff]   ;;  %v18649_v60 = vld [vmem:[#allocation4 + $0x1354] ss:$8 sps:$4 sm:$0xff]  }
  0xf1   : > { %12795 = vmatpush1.bf16.msra.mxu0 %v18565_v31  ;;  %11482 = vmatprep.subr.bf16.mxu1 %v18566_v32  ;;  %v18617_v31 = vld [vmem:[#allocation4 + $0x1300] ss:$8 sps:$4 sm:$0xff]   ;;  %v18622_v32 = vld [vmem:[#allocation4 + $0x114] ss:$8 sps:$4 sm:$0xff]   ;;  %v18644_v11 = vld [vmem:[#allocation4 + $0x150] ss:$8 sps:$4 sm:$0xff]  }
  0xf2   : > { %12796 = vmatprep.subr.bf16.mxu0 %v18568_v33  ;;  %v18625_v33 = vld [vmem:[#allocation4 + $0x1314] ss:$8 sps:$4 sm:$0xff]   ;;  %v18638_v56 = vld [vmem:[#allocation4 + $0x140] ss:$8 sps:$4 sm:$0xff]   ;;  %v18652_v17 = vld [vmem:[#allocation4 + $0x164] ss:$8 sps:$4 sm:$0xff]  }
  0xf3   : > { %v18641_v57 = vld [vmem:[#allocation4 + $0x1340] ss:$8 sps:$4 sm:$0xff]   ;;  %s20447_s29 = sshll.u32 %s20535_s13, 4  ;;  %s20448_s29 = int_to_ptr.vmem [resolvable:$false] %s20447_s29 }
  0xf4   : > { %11483 = vmatpush1.bf16.msra.mxu1 %v18570_v34  ;;  %v18620_v34 = vld [vmem:[#allocation4 + $0x110] ss:$8 sps:$4 sm:$0xff]   ;;  %v446_v63 = vld [vmem:[%s20819_s25 + $0x180] sm:$0xff]  ;;  %v463_v16 = vld [vmem:[%s20819_s25 + $0x288] sm:$0xff]  ;;  %s20449_s23 = scalar_lea.vmem %s20448_s29, 32 }
  0xf5   : > { %12797 = vmatpush1.bf16.msra.mxu0 %v18571_v35  ;;  %11484 = vmatprep.subr.bf16.mxu1 %v18572_v36  ;;  %v18623_v35 = vld [vmem:[#allocation4 + $0x1310] ss:$8 sps:$4 sm:$0xff]   ;;  %v18628_v36 = vld [vmem:[#allocation4 + $0x124] ss:$8 sps:$4 sm:$0xff]   ;;  %v16049_v3 = vld [vmem:[%s20819_s25 + $0x1e0] sm:$0x1] }
  0xf6   : > { %12798 = vmatprep.subr.bf16.mxu0 %v18574_v37  ;;  %v18631_v37 = vld [vmem:[#allocation4 + $0x1324] ss:$8 sps:$4 sm:$0xff]   ;;  %v2150_v8 = vrot.slane %v16049_v3, 1  ;;  %v18650_v22 = vld [vmem:[#allocation4 + $0x160] ss:$8 sps:$4 sm:$0xff]  }
  0xf7   : > { %v16041_v0 = vld [vmem:[%s20819_s25 + $0x1a0] sm:$0xfe]  ;;  %v16082_v24 = vld [vmem:[%s20819_s25 + $0x2e8] sm:$0x1]  ;;  %v16090_v25 = vld [vmem:[%s20819_s25 + $0x328] sm:$0xfe] }
  0xf8   : > { %11485 = vmatpush1.bf16.msra.mxu1 %v18576_v38  ;;  %v18626_v38 = vld [vmem:[#allocation4 + $0x120] ss:$8 sps:$4 sm:$0xff]  }
  0xf9   : > { %12799 = vmatpush1.bf16.msra.mxu0 %v18577_v39  ;;  %11486 = vmatprep.subr.bf16.mxu1 %v18578_v40  ;;  %v18629_v39 = vld [vmem:[#allocation4 + $0x1320] ss:$8 sps:$4 sm:$0xff]   ;;  %v18634_v40 = vld [vmem:[#allocation4 + $0x134] ss:$8 sps:$4 sm:$0xff]  }
  0xfa   : > { %12800 = vmatprep.subr.bf16.mxu0 %v18580_v41  ;;  %v18637_v41 = vld [vmem:[#allocation4 + $0x1334] ss:$8 sps:$4 sm:$0xff]   ;;  %v18653_v23 = vld [vmem:[#allocation4 + $0x1360] ss:$8 sps:$4 sm:$0xff]  }
  0xfc   : > { %11487 = vmatpush1.bf16.msra.mxu1 %v18582_v42  ;;  %v18632_v42 = vld [vmem:[#allocation4 + $0x130] ss:$8 sps:$4 sm:$0xff]  }
  0xfd   : > { %12801 = vmatpush1.bf16.msra.mxu0 %v18583_v43  ;;  %11488 = vmatprep.subr.bf16.mxu1 %v18584_v44  ;;  %v18635_v43 = vld [vmem:[#allocation4 + $0x1330] ss:$8 sps:$4 sm:$0xff]   ;;  %v439_v44 = vld [vmem:[%s20819_s25 + $0x108] sm:$0xff] }
  0xfe   : > { %12802 = vmatprep.subr.bf16.mxu0 %v18586_v45  ;;  %v447_v45 = vld [vmem:[%s20819_s25 + $0x188] sm:$0xff] }
  0xff   : > { %v495_v48 = vpack.c.bf16 %v447_v45, %v439_v44  ;;  %v18656_v45 = vld [vmem:[#allocation4 + $0x170] ss:$8 sps:$4 sm:$0xff]  }
 0x100   : > { %11489 = vmatpush1.bf16.msra.mxu1 %v18588_v46  ;;  %v18640_v46 = vld [vmem:[#allocation4 + $0x144] ss:$8 sps:$4 sm:$0xff]  }
 0x101   : > { %12803 = vmatpush1.bf16.msra.mxu0 %v18589_v47  ;;  %11490 = vmatprep.subr.bf16.mxu1 %v18590_v50  ;;  %v18643_v47 = vld [vmem:[#allocation4 + $0x1344] ss:$8 sps:$4 sm:$0xff]   ;;  %v16050_v50 = vld [vmem:[%s20819_s25 + $0x1e8] sm:$0x1] }
 0x102   : > { %12804 = vmatprep.subr.bf16.mxu0 %v18592_v51  ;;  %v16058_v51 = vld [vmem:[%s20819_s25 + $0x228] sm:$0xfe]  ;;  %v2153_v54 = vrot.slane %v16050_v50, 1 }
 0x103   : > { %v2176_v55 = vrot.slane %v16058_v51, 1  ;;  %v18664_v50 = vld [vmem:[#allocation4 + $0x184] ss:$8 sps:$4 sm:$0xff]  }
 0x104   : > { %11491 = vmatpush1.bf16.msra.mxu1 %v18594_v61  ;;  %v2154_v61 = vsel %vm806_vm0, %v2152_v53, %v2153_v54  ;;  %v18667_v51 = vld [vmem:[#allocation4 + $0x1384] ss:$8 sps:$4 sm:$0xff]   ;;  %v18662_v54 = vld [vmem:[#allocation4 + $0x180] ss:$8 sps:$4 sm:$0xff]  }
 0x105   : > { %12805 = vmatpush1.bf16.msra.mxu0 %v18595_v62  ;;  %11492 = vmatprep.subr.bf16.mxu1 %v18596_v1  ;;  %v438_v62 = vld [vmem:[%s20819_s25 + $0x100] sm:$0xff]  ;;  %v2178_v1 = vsel %vm806_vm0, %v2176_v55, %v2177_v58  ;;  %v471_v53 = vld [vmem:[%s20819_s25 + $0x308] sm:$0xff]  ;;  %v18670_v58 = vld [vmem:[#allocation4 + $0x194] ss:$8 sps:$4 sm:$0xff]  }
 0x106   : > { %12806 = vmatprep.subr.bf16.mxu0 %v18598_v2  ;;  %v494_v2 = vpack.c.bf16 %v446_v63, %v438_v62  ;;  %v18665_v55 = vld [vmem:[#allocation4 + $0x1380] ss:$8 sps:$4 sm:$0xff]  }
 0x107   : > { %v16114_v62 = vld [vmem:[%s20819_s25 + $0x3e8] sm:$0x1]  ;;  %v16122_v63 = vld [vmem:[%s20819_s25 + $0x428] sm:$0xfe] }
 0x108   : > { %11493 = vmatpush1.bf16.msra.mxu1 %v18600_v4  ;;  %v16057_v4 = vld [vmem:[%s20819_s25 + $0x220] sm:$0xfe]  ;;  %v2272_v3 = vrot.slane %v16122_v63, 1 }
 0x109   : > { %12807 = vmatpush1.bf16.msra.mxu0 %v18601_v5  ;;  %11494 = vmatprep.subr.bf16.mxu1 %v18602_v6  ;;  %v16065_v5 = vld [vmem:[%s20819_s25 + $0x260] sm:$0x1]  ;;  %v2358_v6 = vpack.c.bf16 %v2178_v1, %v2154_v61  ;;  %v2173_v9 = vrot.slane %v16057_v4, 1  ;;  %v16106_v61 = vld [vmem:[%s20819_s25 + $0x3a8] sm:$0xfe] }
 0x10a   : > { %12808 = vmatprep.subr.bf16.mxu0 %v18604_v7  ;;  %v2149_v7 = vrot.slane %v16041_v0, 1  ;;  %v2174_v10 = vrot.slane %v16065_v5, 1  ;;  %v16130_v0 = vld [vmem:[%s20819_s25 + $0x468] sm:$0x1]  ;;  %v2248_v1 = vrot.slane %v16106_v61, 1 }
 0x10b   : > { %v2273_v4 = vrot.slane %v16130_v0, 1  ;;  %v18668_v5 = vld [vmem:[#allocation4 + $0x190] ss:$8 sps:$4 sm:$0xff]   ;;  %v18701_v61 = vld [vmem:[#allocation4 + $0x13e0] ss:$8 sps:$4 sm:$0xff]  }
 0x10c   : > { %11495 = vmatpush1.bf16.msra.mxu1 %v18606_v12  ;;  %v18647_v12 = vld [vmem:[#allocation4 + $0x1350] ss:$8 sps:$4 sm:$0xff]   ;;  %v2175_v15 = vsel %vm806_vm0, %v2173_v9, %v2174_v10 }
 0x10d   : > { %12809 = vmatpush1.bf16.msra.mxu0 %v18607_v13  ;;  %11496 = vmatprep.subr.bf16.mxu1 %v18608_v18  ;;  %v2151_v13 = vsel %vm806_vm0, %v2149_v7, %v2150_v8  ;;  %v18655_v18 = vld [vmem:[#allocation4 + $0x1364] ss:$8 sps:$4 sm:$0xff]   ;;  %v2274_v10 = vsel %vm806_vm0, %v2272_v3, %v2273_v4  ;;  %v18709_v3 = vld [vmem:[#allocation4 + $0x13f4] ss:$8 sps:$4 sm:$0xff]   ;;  %v18704_v4 = vld [vmem:[#allocation4 + $0x1f0] ss:$8 sps:$4 sm:$0xff]  }
 0x10e   : > { %12810 = vmatprep.subr.bf16.mxu0 %v18610_v19  ;;  %v2357_v19 = vpack.c.bf16 %v2175_v15, %v2151_v13  ;;  %v470_v7 = vld [vmem:[%s20819_s25 + $0x300] sm:$0xff] }
 0x10f   : > { %v18676_v8 = vld [vmem:[#allocation4 + $0x1a4] ss:$8 sps:$4 sm:$0xff]   ;;  %v16113_v13 = vld [vmem:[%s20819_s25 + $0x3e0] sm:$0x1] }
 0x110   : > { %11497 = vmatpush1.bf16.msra.mxu1 %v18612_v20  ;;  %v503_v20 = vpack.c.bf16 %v463_v16, %v455_v14  ;;  %v16121_v16 = vld [vmem:[%s20819_s25 + $0x420] sm:$0xfe] }
 0x111   : > { %12811 = vmatpush1.bf16.msra.mxu0 %v18613_v21  ;;  %11539 = vmatprep.subr.bf16.mxu1 %v18616_v26  ;;  %v16074_v21 = vld [vmem:[%s20819_s25 + $0x2a8] sm:$0xfe]  ;;  %v16098_v26 = vld [vmem:[%s20819_s25 + $0x368] sm:$0x1] }
 0x112   : > { %12853 = vmatprep.subr.bf16.mxu0 %v18619_v27  ;;  %v2200_v27 = vrot.slane %v16074_v21, 1  ;;  %v2269_v21 = vrot.slane %v16121_v16, 1  ;;  %v18718_v16 = vld [vmem:[#allocation4 + $0x214] ss:$8 sps:$4 sm:$0xff]  }
 0x113   : > { %11499 = vmatmul.mubr.bf16.vlgmr.msra.gmra.mrb[0].mxu1 %v486_v28  ;;  %v2201_v28 = vrot.slane %v16082_v24, 1  ;;  %v18674_v24 = vld [vmem:[#allocation4 + $0x1a0] ss:$8 sps:$4 sm:$0xff]  }
 0x114   : > { %12813 = vmatmul.mubr.bf16.vlgmr.msra.gmra.mrb[0].mxu0 %v2349_v29  ;;  %11540 = vmatpush1.bf16.msra.mxu1 %v18614_v30  ;;  %v2224_v29 = vrot.slane %v16090_v25, 1  ;;  %v2225_v30 = vrot.slane %v16098_v26, 1  ;;  %v18677_v25 = vld [vmem:[#allocation4 + $0x13a0] ss:$8 sps:$4 sm:$0xff]  }
 0x115   : > { %12854 = vmatpush1.bf16.msra.mxu0 %v18617_v31  ;;  %11541 = vmatprep.subr.bf16.mxu1 %v18622_v32  ;;  %v18658_v31 = vld [vmem:[#allocation4 + $0x174] ss:$8 sps:$4 sm:$0xff]  }
 0x116   : > { %12855 = vmatprep.subr.bf16.mxu0 %v18625_v33  ;;  %11508 = vmatprep.mubr.bf16.mxu1 %v495_v48  ;;  %v18661_v32 = vld [vmem:[#allocation4 + $0x1374] ss:$8 sps:$4 sm:$0xff]   ;;  %v454_v33 = vld [vmem:[%s20819_s25 + $0x200] sm:$0xff]  ;;  %v18659_v48 = vld [vmem:[#allocation4 + $0x1370] ss:$8 sps:$4 sm:$0xff]  }
 0x117   : > { %12822 = vmatprep.mubr.bf16.mxu0 %v2358_v6  ;;  %v18671_v6 = vld [vmem:[#allocation4 + $0x1390] ss:$8 sps:$4 sm:$0xff]  }
 0x118   : > { %11542 = vmatpush1.bf16.msra.mxu1 %v18620_v34  ;;  %v2202_v34 = vsel %vm806_vm0, %v2200_v27, %v2201_v28  ;;  %v425_v27 = vld [vmem:[%s20819_s25 + $0x18] sm:$0xff] }
 0x119   : > { %12856 = vmatpush1.bf16.msra.mxu0 %v18623_v35  ;;  %11543 = vmatprep.subr.bf16.mxu1 %v18628_v36  ;;  %v2226_v35 = vsel %vm806_vm0, %v2224_v29, %v2225_v30  ;;  %v462_v36 = vld [vmem:[%s20819_s25 + $0x280] sm:$0xff]  ;;  %v433_v29 = vld [vmem:[%s20819_s25 + $0x98] sm:$0xff] }
 0x11a   : > { %12857 = vmatprep.subr.bf16.mxu0 %v18631_v37  ;;  %v16073_v37 = vld [vmem:[%s20819_s25 + $0x2a0] sm:$0xfe]  ;;  %v18682_v30 = vld [vmem:[#allocation4 + $0x1b4] ss:$8 sps:$4 sm:$0xff]  }
 0x11b   : > { %11509 = vmatmul.mubr.bf16.gmra.mrb[4].mxu1 %v494_v2  ;;  %v2249_v2 = vrot.slane %v16114_v62, 1 }
 0x11c   : > { %11544 = vmatpush1.bf16.msra.mxu1 %v18626_v38  ;;  %12823 = vmatmul.mubr.bf16.gmra.mrb[4].mxu0 %v2357_v19  ;;  %v16081_v38 = vld [vmem:[%s20819_s25 + $0x2e0] sm:$0x1]  ;;  %v2246_v19 = vrot.slane %v16113_v13, 1 }
 0x11d   : > { %12858 = vmatpush1.bf16.msra.mxu0 %v18629_v39  ;;  %11545 = vmatprep.subr.bf16.mxu1 %v18634_v40  ;;  %v2366_v39 = vpack.c.bf16 %v2226_v35, %v2202_v34  ;;  %v502_v40 = vpack.c.bf16 %v462_v36, %v454_v33  ;;  %v2198_v44 = vrot.slane %v16081_v38, 1  ;;  %v2250_v9 = vsel %vm806_vm0, %v2248_v1, %v2249_v2  ;;  %v16012_v33 = vld [vmem:[%s20819_s25 + $0xb8] sm:$0xfe]  ;;  %v16020_v34 = vld [vmem:[%s20819_s25 + $0xf8] sm:$0x1] }
 0x11e   : > { %12859 = vmatprep.subr.bf16.mxu0 %v18637_v41  ;;  %11518 = vmatprep.mubr.bf16.mxu1 %v503_v20  ;;  %v16089_v41 = vld [vmem:[%s20819_s25 + $0x320] sm:$0xfe]  ;;  %v2374_v14 = vpack.c.bf16 %v2274_v10, %v2250_v9  ;;  %v16028_v35 = vld [vmem:[%s20819_s25 + $0x138] sm:$0xfe]  ;;  %v16036_v36 = vld [vmem:[%s20819_s25 + $0x178] sm:$0x1] }
 0x11f   : > { %12832 = vmatprep.mubr.bf16.mxu0 %v2366_v39  ;;  %v18679_v20 = vld [vmem:[#allocation4 + $0x13a4] ss:$8 sps:$4 sm:$0xff]   ;;  %v2111_v38 = vrot.slane %v16020_v34, 1  ;;  %v2134_v39 = vrot.slane %v16028_v35, 1  ;;  %v18706_v2 = vld [vmem:[#allocation4 + $0x1f4] ss:$8 sps:$4 sm:$0xff]  }
 0x120   : > { %11546 = vmatpush1.bf16.msra.mxu1 %v18632_v42  ;;  %v16097_v42 = vld [vmem:[%s20819_s25 + $0x360] sm:$0x1]  ;;  %v18712_v10 = vld [vmem:[#allocation4 + $0x204] ss:$8 sps:$4 sm:$0xff]   ;;  %v16068_v34 = vld [vmem:[%s20819_s25 + $0x278] sm:$0x1] }
 0x121   : > { %12860 = vmatpush1.bf16.msra.mxu0 %v18635_v43  ;;  %11547 = vmatprep.subr.bf16.mxu1 %v18640_v46  ;;  %v2197_v43 = vrot.slane %v16073_v37, 1  ;;  %v2221_v46 = vrot.slane %v16089_v41, 1  ;;  %v2110_v37 = vrot.slane %v16012_v33, 1  ;;  %v18680_v41 = vld [vmem:[#allocation4 + $0x1b0] ss:$8 sps:$4 sm:$0xff]  }
 0x122   : > { %12861 = vmatprep.subr.bf16.mxu0 %v18643_v47  ;;  %v2222_v47 = vrot.slane %v16097_v42, 1  ;;  %v18683_v42 = vld [vmem:[#allocation4 + $0x13b0] ss:$8 sps:$4 sm:$0xff]  }
 0x123   : > { %v2199_v49 = vsel %vm806_vm0, %v2197_v43, %v2198_v44  ;;  %11519 = vmatmul.mubr.bf16.gmra.mrb[8].mxu1 %v502_v40  ;;  %v2135_v40 = vrot.slane %v16036_v36, 1  ;;  %v18688_v43 = vld [vmem:[#allocation4 + $0x1c4] ss:$8 sps:$4 sm:$0xff]   ;;  %v18731_v33 = vld [vmem:[#allocation4 + $0x1430] ss:$8 sps:$4 sm:$0xff]  }
 0x124   : > { %11548 = vmatpush1.bf16.msra.mxu1 %v18638_v56  ;;  %v2223_v52 = vsel %vm806_vm0, %v2221_v46, %v2222_v47  ;;  %v18691_v44 = vld [vmem:[#allocation4 + $0x13c4] ss:$8 sps:$4 sm:$0xff]  }
 0x125   : > { %12862 = vmatpush1.bf16.msra.mxu0 %v18641_v57  ;;  %11549 = vmatprep.subr.bf16.mxu1 %v18646_v59  ;;  %v2365_v56 = vpack.c.bf16 %v2223_v52, %v2199_v49  ;;  %v479_v57 = vld [vmem:[%s20819_s25 + $0x388] sm:$0xff]  ;;  %v18673_v59 = vld [vmem:[#allocation4 + $0x1394] ss:$8 sps:$4 sm:$0xff]   ;;  %v2136_v46 = vsel %vm806_vm0, %v2134_v39, %v2135_v40  ;;  %v18692_v52 = vld [vmem:[#allocation4 + $0x1d0] ss:$8 sps:$4 sm:$0xff]   ;;  %v2183_v40 = vrot.slane %v16068_v34, 1 }
 0x126   : > { %12863 = vmatprep.subr.bf16.mxu0 %v18649_v60  ;;  %v511_v60 = vpack.c.bf16 %v479_v57, %v471_v53  ;;  %v18689_v49 = vld [vmem:[#allocation4 + $0x13c0] ss:$8 sps:$4 sm:$0xff]   ;;  %v18695_v53 = vld [vmem:[#allocation4 + $0x13d0] ss:$8 sps:$4 sm:$0xff]   ;;  %v18739_v39 = vld [vmem:[#allocation4 + $0x1444] ss:$8 sps:$4 sm:$0xff]  }
 0x127   : > { %12833 = vmatmul.mubr.bf16.gmra.mrb[8].mxu0 %v2365_v56  ;;  %v16011_v56 = vld [vmem:[%s20819_s25 + $0xb0] sm:$0xfe]  ;;  %v16019_v57 = vld [vmem:[%s20819_s25 + $0xf0] sm:$0x1] }
 0x128   : > { %11550 = vmatpush1.bf16.msra.mxu1 %v18644_v11  ;;  %11528 = vmatprep.mubr.bf16.mxu1 %v511_v60  ;;  %v478_v11 = vld [vmem:[%s20819_s25 + $0x380] sm:$0xff]  ;;  %v2107_v62 = vrot.slane %v16011_v56, 1  ;;  %v2108_v63 = vrot.slane %v16019_v57, 1  ;;  %v18742_v57 = vld [vmem:[#allocation4 + $0x254] ss:$8 sps:$4 sm:$0xff]  }
 0x129   : > { %12864 = vmatpush1.bf16.msra.mxu0 %v18647_v12  ;;  %11551 = vmatprep.subr.bf16.mxu1 %v18652_v17  ;;  %v16105_v12 = vld [vmem:[%s20819_s25 + $0x3a0] sm:$0xfe]  ;;  %v510_v15 = vpack.c.bf16 %v478_v11, %v470_v7  ;;  %v16129_v17 = vld [vmem:[%s20819_s25 + $0x460] sm:$0x1]  ;;  %v432_v7 = vld [vmem:[%s20819_s25 + $0x90] sm:$0xff] }
 0x12a   : > { %12865 = vmatprep.subr.bf16.mxu0 %v18655_v18  ;;  %v2245_v18 = vrot.slane %v16105_v12, 1  ;;  %12842 = vmatprep.mubr.bf16.mxu0 %v2374_v14  ;;  %v18698_v60 = vld [vmem:[#allocation4 + $0x1e0] ss:$8 sps:$4 sm:$0xff]   ;;  %v18715_v11 = vld [vmem:[#allocation4 + $0x1404] ss:$8 sps:$4 sm:$0xff]  }
 0x12b   : > { %11529 = vmatmul.mubr.bf16.gmra.mrb[12].mxu1 %v510_v15  ;;  %v18710_v12 = vld [vmem:[#allocation4 + $0x200] ss:$8 sps:$4 sm:$0xff]  }
 0x12c   : > { %11552 = vmatpush1.bf16.msra.mxu1 %v18650_v22  ;;  %v2270_v22 = vrot.slane %v16129_v17, 1  ;;  %v18713_v15 = vld [vmem:[#allocation4 + $0x1400] ss:$8 sps:$4 sm:$0xff]   ;;  %v18721_v17 = vld [vmem:[#allocation4 + $0x1414] ss:$8 sps:$4 sm:$0xff]  }
 0x12d   : > { %12866 = vmatpush1.bf16.msra.mxu0 %v18653_v23  ;;  %11553 = vmatprep.subr.bf16.mxu1 %v18658_v31  ;;  %v2247_v23 = vsel %vm806_vm0, %v2245_v18, %v2246_v19  ;;  %v18685_v31 = vld [vmem:[#allocation4 + $0x13b4] ss:$8 sps:$4 sm:$0xff]   ;;  %v18716_v18 = vld [vmem:[#allocation4 + $0x210] ss:$8 sps:$4 sm:$0xff]  }
 0x12e   : > { %12867 = vmatprep.subr.bf16.mxu0 %v18661_v32  ;;  %v2271_v26 = vsel %vm806_vm0, %v2269_v21, %v2270_v22  ;;  %v489_v32 = vpack.c.bf16 %v433_v29, %v425_v27  ;;  %v18719_v19 = vld [vmem:[#allocation4 + $0x1410] ss:$8 sps:$4 sm:$0xff]   ;;  %v18727_v21 = vld [vmem:[#allocation4 + $0x1424] ss:$8 sps:$4 sm:$0xff]   ;;  %v18722_v22 = vld [vmem:[#allocation4 + $0x220] ss:$8 sps:$4 sm:$0xff]  }
 0x12f   : > { %v2373_v28 = vpack.c.bf16 %v2271_v26, %v2247_v23  ;;  %v18725_v23 = vld [vmem:[#allocation4 + $0x1420] ss:$8 sps:$4 sm:$0xff]   ;;  %v18730_v26 = vld [vmem:[#allocation4 + $0x234] ss:$8 sps:$4 sm:$0xff]  }
 0x130   : > { %11554 = vmatpush1.bf16.msra.mxu1 %v18656_v45  ;;  %11571 = vmatprep.mubr.bf16.mxu1 %v489_v32  ;;  %v2112_v45 = vsel %vm806_vm0, %v2110_v37, %v2111_v38  ;;  %v18733_v27 = vld [vmem:[#allocation4 + $0x1434] ss:$8 sps:$4 sm:$0xff]   ;;  %v18728_v32 = vld [vmem:[#allocation4 + $0x230] ss:$8 sps:$4 sm:$0xff]   ;;  %v18736_v38 = vld [vmem:[#allocation4 + $0x244] ss:$8 sps:$4 sm:$0xff]  }
 0x131   : > { %12868 = vmatpush1.bf16.msra.mxu0 %v18659_v48  ;;  %11555 = vmatprep.subr.bf16.mxu1 %v18664_v50  ;;  %v2352_v47 = vpack.c.bf16 %v2136_v46, %v2112_v45  ;;  %v18686_v48 = vld [vmem:[#allocation4 + $0x1c0] ss:$8 sps:$4 sm:$0xff]   ;;  %v18694_v50 = vld [vmem:[#allocation4 + $0x1d4] ss:$8 sps:$4 sm:$0xff]  }
 0x132   : > { %12869 = vmatprep.subr.bf16.mxu0 %v18667_v51  ;;  %12843 = vmatmul.mubr.bf16.gmra.mrb[12].mxu0 %v2373_v28  ;;  %v18697_v51 = vld [vmem:[#allocation4 + $0x13d4] ss:$8 sps:$4 sm:$0xff]  }
 0x133   : > { %12885 = vmatprep.mubr.bf16.mxu0 %v2352_v47  ;;  %v16044_v29 = vld [vmem:[%s20819_s25 + $0x1b8] sm:$0xfe]  ;;  %v16051_v47 = vld [vmem:[%s20819_s25 + $0x1f0] sm:$0x1] }
 0x134   : > { %11556 = vmatpush1.bf16.msra.mxu1 %v18662_v54  ;;  %v18700_v54 = vld [vmem:[#allocation4 + $0x1e4] ss:$8 sps:$4 sm:$0xff]   ;;  %v2158_v35 = vrot.slane %v16044_v29, 1 }
 0x135   : > { %12870 = vmatpush1.bf16.msra.mxu0 %v18665_v55  ;;  %11557 = vmatprep.subr.bf16.mxu1 %v18670_v58  ;;  %v18703_v55 = vld [vmem:[#allocation4 + $0x13e4] ss:$8 sps:$4 sm:$0xff]   ;;  %v16027_v58 = vld [vmem:[%s20819_s25 + $0x130] sm:$0xfe] }
 0x136   : > { %12871 = vmatprep.subr.bf16.mxu0 %v18673_v59  ;;  %v16035_v59 = vld [vmem:[%s20819_s25 + $0x170] sm:$0x1]  ;;  %v2131_v0 = vrot.slane %v16027_v58, 1  ;;  %v18745_v58 = vld [vmem:[#allocation4 + $0x1454] ss:$8 sps:$4 sm:$0xff]  }
 0x137   : > { %v2132_v1 = vrot.slane %v16035_v59, 1 }
 0x138   : > { %11558 = vmatpush1.bf16.msra.mxu1 %v18668_v5  ;;  %v18707_v5 = vld [vmem:[#allocation4 + $0x13f0] ss:$8 sps:$4 sm:$0xff]  }
 0x139   : > { %12872 = vmatpush1.bf16.msra.mxu0 %v18671_v6  ;;  %11559 = vmatprep.subr.bf16.mxu1 %v18676_v8  ;;  %v424_v6 = vld [vmem:[%s20819_s25 + $0x10] sm:$0xff]  ;;  %v2109_v8 = vsel %vm806_vm0, %v2107_v62, %v2108_v63  ;;  %v2133_v9 = vsel %vm806_vm0, %v2131_v0, %v2132_v1  ;;  %v465_v62 = vld [vmem:[%s20819_s25 + $0x298] sm:$0xff] }
 0x13a   : > { %12873 = vmatprep.subr.bf16.mxu0 %v18679_v20  ;;  %v488_v13 = vpack.c.bf16 %v432_v7, %v424_v6  ;;  %v2351_v14 = vpack.c.bf16 %v2133_v9, %v2109_v8  ;;  %v18724_v20 = vld [vmem:[#allocation4 + $0x224] ss:$8 sps:$4 sm:$0xff]   ;;  %v18740_v63 = vld [vmem:[#allocation4 + $0x250] ss:$8 sps:$4 sm:$0xff]  }
 0x13b   : > { %v18743_v0 = vld [vmem:[#allocation4 + $0x1450] ss:$8 sps:$4 sm:$0xff]  }
 0x13c   : > { %11560 = vmatpush1.bf16.msra.mxu1 %v18674_v24  ;;  %v441_v24 = vld [vmem:[%s20819_s25 + $0x118] sm:$0xff] }
 0x13d   : > { %12874 = vmatpush1.bf16.msra.mxu0 %v18677_v25  ;;  %11561 = vmatprep.subr.bf16.mxu1 %v18682_v30  ;;  %v449_v25 = vld [vmem:[%s20819_s25 + $0x198] sm:$0xff] }
 0x13e   : > { %12875 = vmatprep.subr.bf16.mxu0 %v18685_v31  ;;  %v497_v28 = vpack.c.bf16 %v449_v25, %v441_v24  ;;  %v16052_v30 = vld [vmem:[%s20819_s25 + $0x1f8] sm:$0x1]  ;;  %v16060_v31 = vld [vmem:[%s20819_s25 + $0x238] sm:$0xfe]  ;;  %v16099_v24 = vld [vmem:[%s20819_s25 + $0x370] sm:$0x1] }
 0x13f   : > { %v2159_v36 = vrot.slane %v16052_v30, 1  ;;  %v2182_v37 = vrot.slane %v16060_v31, 1  ;;  %v16100_v6 = vld [vmem:[%s20819_s25 + $0x378] sm:$0x1]  ;;  %v2228_v29 = vrot.slane %v16099_v24, 1 }
 0x140   : > { %11562 = vmatpush1.bf16.msra.mxu1 %v18680_v41  ;;  %v18757_v30 = vld [vmem:[#allocation4 + $0x1474] ss:$8 sps:$4 sm:$0xff]  }
 0x141   : > { %12876 = vmatpush1.bf16.msra.mxu0 %v18683_v42  ;;  %11563 = vmatprep.subr.bf16.mxu1 %v18688_v43  ;;  %v2160_v41 = vsel %vm806_vm0, %v2158_v35, %v2159_v36  ;;  %v440_v42 = vld [vmem:[%s20819_s25 + $0x110] sm:$0xff]  ;;  %v2184_v45 = vsel %vm806_vm0, %v2182_v37, %v2183_v40  ;;  %v473_v35 = vld [vmem:[%s20819_s25 + $0x318] sm:$0xff] }
 0x142   : > { %12877 = vmatprep.subr.bf16.mxu0 %v18691_v44  ;;  %v448_v43 = vld [vmem:[%s20819_s25 + $0x190] sm:$0xff]  ;;  %v481_v37 = vld [vmem:[%s20819_s25 + $0x398] sm:$0xff] }
 0x143   : > { %v16043_v44 = vld [vmem:[%s20819_s25 + $0x1b0] sm:$0xfe]  ;;  %v496_v46 = vpack.c.bf16 %v448_v43, %v440_v42  ;;  %v513_v40 = vpack.c.bf16 %v481_v37, %v473_v35  ;;  %v16116_v42 = vld [vmem:[%s20819_s25 + $0x3f8] sm:$0x1]  ;;  %v16124_v43 = vld [vmem:[%s20819_s25 + $0x438] sm:$0xfe] }
 0x144   : > { %11564 = vmatpush1.bf16.msra.mxu1 %v18686_v48  ;;  %v16059_v48 = vld [vmem:[%s20819_s25 + $0x230] sm:$0xfe] }
 0x145   : > { %12878 = vmatpush1.bf16.msra.mxu0 %v18689_v49  ;;  %11565 = vmatprep.subr.bf16.mxu1 %v18694_v50  ;;  %v16067_v49 = vld [vmem:[%s20819_s25 + $0x270] sm:$0x1]  ;;  %v2360_v50 = vpack.c.bf16 %v2184_v45, %v2160_v41  ;;  %v16108_v41 = vld [vmem:[%s20819_s25 + $0x3b8] sm:$0xfe]  ;;  %v18758_v45 = vld [vmem:[#allocation4 + $0x280] ss:$8 sps:$4 sm:$0xff]  }
 0x146   : > { %12879 = vmatprep.subr.bf16.mxu0 %v18697_v51  ;;  %v2155_v51 = vrot.slane %v16043_v44, 1  ;;  %v2180_v56 = vrot.slane %v16067_v49, 1  ;;  %v16132_v44 = vld [vmem:[%s20819_s25 + $0x478] sm:$0x1]  ;;  %v2278_v49 = vrot.slane %v16124_v43, 1 }
 0x147   : > { %v18781_v24 = vld [vmem:[#allocation4 + $0x14b4] ss:$8 sps:$4 sm:$0xff]   ;;  %v18791_v37 = vld [vmem:[#allocation4 + $0x14d0] ss:$8 sps:$4 sm:$0xff]   ;;  %v16157_v43 = vld [vmem:[%s20819_s25 + $0x140] sm:$0x3] }
 0x148   : > { %11566 = vmatpush1.bf16.msra.mxu1 %v18692_v52  ;;  %v2156_v52 = vrot.slane %v16051_v47, 1  ;;  %v2254_v47 = vrot.slane %v16108_v41, 1  ;;  %v18793_v35 = vld [vmem:[#allocation4 + $0x14d4] ss:$8 sps:$4 sm:$0xff]   ;;  %v16141_v41 = vld [vmem:[%s20819_s25 + $0xc0] sm:$0x3] }
 0x149   : > { %12880 = vmatpush1.bf16.msra.mxu0 %v18695_v53  ;;  %11567 = vmatprep.subr.bf16.mxu1 %v18700_v54  ;;  %v2179_v53 = vrot.slane %v16059_v48, 1  ;;  %v18734_v54 = vld [vmem:[#allocation4 + $0x240] ss:$8 sps:$4 sm:$0xff]   ;;  %v2255_v48 = vrot.slane %v16116_v42, 1 }
 0x14a   : > { %12881 = vmatprep.subr.bf16.mxu0 %v18703_v55  ;;  %v18737_v55 = vld [vmem:[#allocation4 + $0x1440] ss:$8 sps:$4 sm:$0xff]   ;;  %v2157_v59 = vsel %vm806_vm0, %v2155_v51, %v2156_v52  ;;  %v18766_v51 = vld [vmem:[#allocation4 + $0x294] ss:$8 sps:$4 sm:$0xff]  }
 0x14b   : > { %v18769_v52 = vld [vmem:[#allocation4 + $0x1494] ss:$8 sps:$4 sm:$0xff]   ;;  %v16149_v42 = vld [vmem:[%s20819_s25 + $0x100] sm:$0xfc] }
 0x14c   : > { %11568 = vmatpush1.bf16.msra.mxu1 %v18698_v60  ;;  %v457_v60 = vld [vmem:[%s20819_s25 + $0x218] sm:$0xff] }
 0x14d   : > { %12882 = vmatpush1.bf16.msra.mxu0 %v18701_v61  ;;  %11569 = vmatprep.subr.bf16.mxu1 %v18706_v2  ;;  %v2181_v61 = vsel %vm806_vm0, %v2179_v53, %v2180_v56  ;;  %v505_v2 = vpack.c.bf16 %v465_v62, %v457_v60  ;;  %v472_v53 = vld [vmem:[%s20819_s25 + $0x310] sm:$0xff] }
 0x14e   : > { %12883 = vmatprep.subr.bf16.mxu0 %v18709_v3  ;;  %v2359_v1 = vpack.c.bf16 %v2181_v61, %v2157_v59  ;;  %v16076_v3 = vld [vmem:[%s20819_s25 + $0x2b8] sm:$0xfe]  ;;  %v480_v56 = vld [vmem:[%s20819_s25 + $0x390] sm:$0xff] }
 0x14f   : > { %v2206_v7 = vrot.slane %v16076_v3, 1  ;;  %v512_v60 = vpack.c.bf16 %v480_v56, %v472_v53  ;;  %v16123_v61 = vld [vmem:[%s20819_s25 + $0x430] sm:$0xfe]  ;;  %v16131_v62 = vld [vmem:[%s20819_s25 + $0x470] sm:$0x1]  ;;  %v434_v56 = vld [vmem:[%s20819_s25 + $0xa0] sm:$0xff] }
 0x150   : > { %11570 = vmatpush1.bf16.msra.mxu1 %v18704_v4  ;;  %v16084_v4 = vld [vmem:[%s20819_s25 + $0x2f8] sm:$0x1]  ;;  %v2276_v3 = vrot.slane %v16131_v62, 1 }
 0x151   : > { %12884 = vmatpush1.bf16.msra.mxu0 %v18707_v5  ;;  %11612 = vmatprep.subr.bf16.mxu1 %v18712_v10  ;;  %v16092_v5 = vld [vmem:[%s20819_s25 + $0x338] sm:$0xfe]  ;;  %v2207_v8 = vrot.slane %v16084_v4, 1  ;;  %v2231_v10 = vrot.slane %v16100_v6, 1  ;;  %v18772_v6 = vld [vmem:[#allocation4 + $0x2a4] ss:$8 sps:$4 sm:$0xff]  }
 0x152   : > { %12926 = vmatprep.subr.bf16.mxu0 %v18715_v11  ;;  %v2230_v9 = vrot.slane %v16092_v5, 1  ;;  %v18748_v11 = vld [vmem:[#allocation4 + $0x264] ss:$8 sps:$4 sm:$0xff]   ;;  %v18767_v4 = vld [vmem:[#allocation4 + $0x1490] ss:$8 sps:$4 sm:$0xff]  }
 0x153   : > { %11572 = vmatmul.mubr.bf16.vlgmr.msra.gmra.mrb[0].mxu1 %v488_v13  ;;  %v456_v13 = vld [vmem:[%s20819_s25 + $0x210] sm:$0xff] }
 0x154   : > { %12886 = vmatmul.mubr.bf16.vlgmr.msra.gmra.mrb[0].mxu0 %v2351_v14  ;;  %11613 = vmatpush1.bf16.msra.mxu1 %v18710_v12  ;;  %v18751_v12 = vld [vmem:[#allocation4 + $0x1464] ss:$8 sps:$4 sm:$0xff]   ;;  %v18746_v14 = vld [vmem:[#allocation4 + $0x260] ss:$8 sps:$4 sm:$0xff]   ;;  %v18803_v53 = vld [vmem:[#allocation4 + $0x14f0] ss:$8 sps:$4 sm:$0xff]  }
 0x155   : > { %12927 = vmatpush1.bf16.msra.mxu0 %v18713_v15  ;;  %11614 = vmatprep.subr.bf16.mxu1 %v18718_v16  ;;  %v18749_v15 = vld [vmem:[#allocation4 + $0x1460] ss:$8 sps:$4 sm:$0xff]   ;;  %v2208_v16 = vsel %vm806_vm0, %v2206_v7, %v2207_v8  ;;  %v18775_v7 = vld [vmem:[#allocation4 + $0x14a4] ss:$8 sps:$4 sm:$0xff]  }
 0x156   : > { %12928 = vmatprep.subr.bf16.mxu0 %v18721_v17  ;;  %11581 = vmatprep.mubr.bf16.mxu1 %v497_v28  ;;  %v2232_v17 = vsel %vm806_vm0, %v2230_v9, %v2231_v10  ;;  %v427_v9 = vld [vmem:[%s20819_s25 + $0x28] sm:$0xff] }
 0x157   : > { %12895 = vmatprep.mubr.bf16.mxu0 %v2360_v50  ;;  %v2279_v50 = vrot.slane %v16132_v44, 1  ;;  %v18794_v44 = vld [vmem:[#allocation4 + $0x2e0] ss:$8 sps:$4 sm:$0xff]  }
 0x158   : > { %11615 = vmatpush1.bf16.msra.mxu1 %v18716_v18  ;;  %v464_v18 = vld [vmem:[%s20819_s25 + $0x290] sm:$0xff] }
 0x159   : > { %12929 = vmatpush1.bf16.msra.mxu0 %v18719_v19  ;;  %11616 = vmatprep.subr.bf16.mxu1 %v18724_v20  ;;  %v16075_v19 = vld [vmem:[%s20819_s25 + $0x2b0] sm:$0xfe]  ;;  %v16083_v20 = vld [vmem:[%s20819_s25 + $0x2f0] sm:$0x1] }
 0x15a   : > { %12930 = vmatprep.subr.bf16.mxu0 %v18727_v21  ;;  %v2368_v21 = vpack.c.bf16 %v2232_v17, %v2208_v16  ;;  %v2203_v25 = vrot.slane %v16075_v19, 1  ;;  %v16142_v16 = vld [vmem:[%s20819_s25 + $0xc8] sm:$0x3]  ;;  %v16150_v17 = vld [vmem:[%s20819_s25 + $0x108] sm:$0xfc] }
 0x15b   : > { %11582 = vmatmul.mubr.bf16.gmra.mrb[4].mxu1 %v496_v46  ;;  %v18761_v46 = vld [vmem:[#allocation4 + $0x1480] ss:$8 sps:$4 sm:$0xff]  }
 0x15c   : > { %11617 = vmatpush1.bf16.msra.mxu1 %v18722_v22  ;;  %12896 = vmatmul.mubr.bf16.gmra.mrb[4].mxu0 %v2359_v1  ;;  %v504_v22 = vpack.c.bf16 %v464_v18, %v456_v13  ;;  %v18764_v1 = vld [vmem:[#allocation4 + $0x290] ss:$8 sps:$4 sm:$0xff]   ;;  %v18773_v13 = vld [vmem:[#allocation4 + $0x14a0] ss:$8 sps:$4 sm:$0xff]  }
 0x15d   : > { %12931 = vmatpush1.bf16.msra.mxu0 %v18725_v23  ;;  %11618 = vmatprep.subr.bf16.mxu1 %v18730_v26  ;;  %v16091_v23 = vld [vmem:[%s20819_s25 + $0x330] sm:$0xfe]  ;;  %v2204_v26 = vrot.slane %v16083_v20, 1  ;;  %v16158_v18 = vld [vmem:[%s20819_s25 + $0x148] sm:$0x3]  ;;  %v2669_v20 = vrot.slane %v16142_v16, 2 }
 0x15e   : > { %12932 = vmatprep.subr.bf16.mxu0 %v18733_v27  ;;  %11591 = vmatprep.mubr.bf16.mxu1 %v505_v2  ;;  %v18754_v27 = vld [vmem:[#allocation4 + $0x274] ss:$8 sps:$4 sm:$0xff]   ;;  %v2227_v28 = vrot.slane %v16091_v23, 1  ;;  %v2275_v2 = vrot.slane %v16123_v61, 1  ;;  %v18809_v61 = vld [vmem:[#allocation4 + $0x1500] ss:$8 sps:$4 sm:$0xff]  }
 0x15f   : > { %v2205_v31 = vsel %vm806_vm0, %v2203_v25, %v2204_v26  ;;  %12905 = vmatprep.mubr.bf16.mxu0 %v2368_v21  ;;  %v2692_v21 = vrot.slane %v16150_v17, 2  ;;  %v18778_v23 = vld [vmem:[#allocation4 + $0x2b4] ss:$8 sps:$4 sm:$0xff]  }
 0x160   : > { %11619 = vmatpush1.bf16.msra.mxu1 %v18728_v32  ;;  %v18752_v32 = vld [vmem:[#allocation4 + $0x270] ss:$8 sps:$4 sm:$0xff]   ;;  %v2229_v34 = vsel %vm806_vm0, %v2227_v28, %v2228_v29  ;;  %v2277_v8 = vsel %vm806_vm0, %v2275_v2, %v2276_v3 }
 0x161   : > { %12933 = vmatpush1.bf16.msra.mxu0 %v18731_v33  ;;  %11620 = vmatprep.subr.bf16.mxu1 %v18736_v38  ;;  %v18755_v33 = vld [vmem:[#allocation4 + $0x1470] ss:$8 sps:$4 sm:$0xff]   ;;  %v2367_v36 = vpack.c.bf16 %v2229_v34, %v2205_v31  ;;  %v18760_v38 = vld [vmem:[#allocation4 + $0x284] ss:$8 sps:$4 sm:$0xff]   ;;  %v18790_v34 = vld [vmem:[#allocation4 + $0x2d4] ss:$8 sps:$4 sm:$0xff]  }
 0x162   : > { %12934 = vmatprep.subr.bf16.mxu0 %v18739_v39  ;;  %v18763_v39 = vld [vmem:[#allocation4 + $0x1484] ss:$8 sps:$4 sm:$0xff]   ;;  %v18779_v28 = vld [vmem:[#allocation4 + $0x14b0] ss:$8 sps:$4 sm:$0xff]  }
 0x163   : > { %11592 = vmatmul.mubr.bf16.gmra.mrb[8].mxu1 %v504_v22  ;;  %v2693_v22 = vrot.slane %v16158_v18, 2  ;;  %v18787_v31 = vld [vmem:[#allocation4 + $0x14c4] ss:$8 sps:$4 sm:$0xff]   ;;  %v18812_v2 = vld [vmem:[#allocation4 + $0x310] ss:$8 sps:$4 sm:$0xff]  }
 0x164   : > { %11621 = vmatpush1.bf16.msra.mxu1 %v18734_v54  ;;  %12906 = vmatmul.mubr.bf16.gmra.mrb[8].mxu0 %v2367_v36  ;;  %v2256_v54 = vsel %vm806_vm0, %v2254_v47, %v2255_v48  ;;  %v18788_v36 = vld [vmem:[#allocation4 + $0x2d0] ss:$8 sps:$4 sm:$0xff]   ;;  %v2666_v48 = vrot.slane %v16141_v41, 2  ;;  %v18826_v18 = vld [vmem:[#allocation4 + $0x334] ss:$8 sps:$4 sm:$0xff]  }
 0x165   : > { %12935 = vmatpush1.bf16.msra.mxu0 %v18737_v55  ;;  %11622 = vmatprep.subr.bf16.mxu1 %v18742_v57  ;;  %v2280_v55 = vsel %vm806_vm0, %v2278_v49, %v2279_v50  ;;  %v16107_v57 = vld [vmem:[%s20819_s25 + $0x3b0] sm:$0xfe]  ;;  %v2694_v26 = vsel %vm1383_vm1, %v2692_v21, %v2693_v22  ;;  %v2689_v49 = vrot.slane %v16149_v42, 2  ;;  %v2690_v50 = vrot.slane %v16157_v43, 2  ;;  %v442_v22 = vld [vmem:[%s20819_s25 + $0x120] sm:$0xff] }
 0x166   : > { %12936 = vmatprep.subr.bf16.mxu0 %v18745_v58  ;;  %11601 = vmatprep.mubr.bf16.mxu1 %v513_v40  ;;  %v16115_v58 = vld [vmem:[%s20819_s25 + $0x3f0] sm:$0x1]  ;;  %v2376_v59 = vpack.c.bf16 %v2280_v55, %v2256_v54  ;;  %v16133_v40 = vld [vmem:[%s20819_s25 + $0x80] sm:$0xfc] }
 0x167   : > { %v2665_v47 = vrot.slane %v16133_v40, 2  ;;  %v18808_v54 = vld [vmem:[#allocation4 + $0x304] ss:$8 sps:$4 sm:$0xff]   ;;  %v18815_v3 = vld [vmem:[#allocation4 + $0x1510] ss:$8 sps:$4 sm:$0xff]  }
 0x168   : > { %11623 = vmatpush1.bf16.msra.mxu1 %v18740_v63  ;;  %v2251_v63 = vrot.slane %v16107_v57, 1  ;;  %12915 = vmatprep.mubr.bf16.mxu0 %v2376_v59  ;;  %v426_v55 = vld [vmem:[%s20819_s25 + $0x20] sm:$0xff]  ;;  %v459_v40 = vld [vmem:[%s20819_s25 + $0x228] sm:$0xff] }
 0x169   : > { %12937 = vmatpush1.bf16.msra.mxu0 %v18743_v0  ;;  %11624 = vmatprep.subr.bf16.mxu1 %v18748_v11  ;;  %v2252_v0 = vrot.slane %v16115_v58, 1  ;;  %v435_v11 = vld [vmem:[%s20819_s25 + $0xa8] sm:$0xff]  ;;  %v2667_v57 = vsel %vm1383_vm1, %v2665_v47, %v2666_v48  ;;  %v2691_v58 = vsel %vm1383_vm1, %v2689_v49, %v2690_v50  ;;  %v490_v62 = vpack.c.bf16 %v434_v56, %v426_v55 }
 0x16a   : > { %12938 = vmatprep.subr.bf16.mxu0 %v18751_v12  ;;  %v18770_v12 = vld [vmem:[#allocation4 + $0x2a0] ss:$8 sps:$4 sm:$0xff]   ;;  %v18811_v59 = vld [vmem:[#allocation4 + $0x1504] ss:$8 sps:$4 sm:$0xff]  }
 0x16b   : > { %11602 = vmatmul.mubr.bf16.gmra.mrb[12].mxu1 %v512_v60  ;;  %v2253_v5 = vsel %vm806_vm0, %v2251_v63, %v2252_v0  ;;  %v18806_v60 = vld [vmem:[#allocation4 + $0x300] ss:$8 sps:$4 sm:$0xff]   ;;  %v2921_v63 = vpack.c.bf16 %v2691_v58, %v2667_v57  ;;  %v18814_v0 = vld [vmem:[#allocation4 + $0x314] ss:$8 sps:$4 sm:$0xff]   ;;  %v18836_v57 = vld [vmem:[#allocation4 + $0x350] ss:$8 sps:$4 sm:$0xff]  }
 0x16c   : > { %11625 = vmatpush1.bf16.msra.mxu1 %v18746_v14  ;;  %v2375_v10 = vpack.c.bf16 %v2277_v8, %v2253_v5  ;;  %v491_v14 = vpack.c.bf16 %v435_v11, %v427_v9  ;;  %v451_v5 = vld [vmem:[%s20819_s25 + $0x1a8] sm:$0xff]  ;;  %v18839_v58 = vld [vmem:[#allocation4 + $0x1550] ss:$8 sps:$4 sm:$0xff]  }
 0x16d   : > { %12939 = vmatpush1.bf16.msra.mxu0 %v18749_v15  ;;  %11626 = vmatprep.subr.bf16.mxu1 %v18754_v27  ;;  %v16134_v15 = vld [vmem:[%s20819_s25 + $0x88] sm:$0xfc]  ;;  %v18776_v27 = vld [vmem:[#allocation4 + $0x2b0] ss:$8 sps:$4 sm:$0xff]   ;;  %v16206_v50 = vld [vmem:[%s20819_s25 + $0x2c8] sm:$0x3] }
 0x16e   : > { %12940 = vmatprep.subr.bf16.mxu0 %v18757_v30  ;;  %12916 = vmatmul.mubr.bf16.gmra.mrb[12].mxu0 %v2375_v10  ;;  %v2668_v19 = vrot.slane %v16134_v15, 2  ;;  %v18784_v30 = vld [vmem:[#allocation4 + $0x2c4] ss:$8 sps:$4 sm:$0xff]   ;;  %v18818_v9 = vld [vmem:[#allocation4 + $0x320] ss:$8 sps:$4 sm:$0xff]  }
 0x16f   : > { %11644 = vmatprep.mubr.bf16.mxu1 %v491_v14  ;;  %v18821_v10 = vld [vmem:[#allocation4 + $0x1520] ss:$8 sps:$4 sm:$0xff]  }
 0x170   : > { %11627 = vmatpush1.bf16.msra.mxu1 %v18752_v32  ;;  %v2670_v25 = vsel %vm1383_vm1, %v2668_v19, %v2669_v20  ;;  %v18782_v32 = vld [vmem:[#allocation4 + $0x2c0] ss:$8 sps:$4 sm:$0xff]   ;;  %v18829_v19 = vld [vmem:[#allocation4 + $0x1534] ss:$8 sps:$4 sm:$0xff]  }
 0x171   : > { %12941 = vmatpush1.bf16.msra.mxu0 %v18755_v33  ;;  %11628 = vmatprep.subr.bf16.mxu1 %v18760_v38  ;;  %v2922_v29 = vpack.c.bf16 %v2694_v26, %v2670_v25  ;;  %v18785_v33 = vld [vmem:[#allocation4 + $0x14c0] ss:$8 sps:$4 sm:$0xff]   ;;  %v18796_v38 = vld [vmem:[#allocation4 + $0x2e4] ss:$8 sps:$4 sm:$0xff]  }
 0x172   : > { %12942 = vmatprep.subr.bf16.mxu0 %v18763_v39  ;;  %v18799_v39 = vld [vmem:[#allocation4 + $0x14e4] ss:$8 sps:$4 sm:$0xff]   ;;  %v16190_v14 = vld [vmem:[%s20819_s25 + $0x248] sm:$0x3] }
 0x173   : > { %12958 = vmatprep.mubr.bf16.mxu0 %v2922_v29  ;;  %v16166_v11 = vld [vmem:[%s20819_s25 + $0x188] sm:$0xfc]  ;;  %v2741_v20 = vrot.slane %v16190_v14, 2  ;;  %v16189_v29 = vld [vmem:[%s20819_s25 + $0x240] sm:$0x3] }
 0x174   : > { %11629 = vmatpush1.bf16.msra.mxu1 %v18758_v45  ;;  %v18797_v45 = vld [vmem:[#allocation4 + $0x14e0] ss:$8 sps:$4 sm:$0xff]   ;;  %v2716_v15 = vrot.slane %v16166_v11, 2 }
 0x175   : > { %12943 = vmatpush1.bf16.msra.mxu0 %v18761_v46  ;;  %11630 = vmatprep.subr.bf16.mxu1 %v18766_v51  ;;  %v18802_v46 = vld [vmem:[#allocation4 + $0x2f4] ss:$8 sps:$4 sm:$0xff]   ;;  %v18830_v41 = vld [vmem:[#allocation4 + $0x340] ss:$8 sps:$4 sm:$0xff]  }
 0x176   : > { %12944 = vmatprep.subr.bf16.mxu0 %v18769_v52  ;;  %v18805_v51 = vld [vmem:[#allocation4 + $0x14f4] ss:$8 sps:$4 sm:$0xff]   ;;  %v18800_v52 = vld [vmem:[#allocation4 + $0x2f0] ss:$8 sps:$4 sm:$0xff]   ;;  %v18833_v42 = vld [vmem:[#allocation4 + $0x1540] ss:$8 sps:$4 sm:$0xff]  }
 0x177   : > { %v16198_v49 = vld [vmem:[%s20819_s25 + $0x288] sm:$0xfc] }
 0x178   : > { %11631 = vmatpush1.bf16.msra.mxu1 %v18764_v1  ;;  %v18817_v1 = vld [vmem:[#allocation4 + $0x1514] ss:$8 sps:$4 sm:$0xff]  }
 0x179   : > { %12945 = vmatpush1.bf16.msra.mxu0 %v18767_v4  ;;  %11632 = vmatprep.subr.bf16.mxu1 %v18772_v6  ;;  %v443_v4 = vld [vmem:[%s20819_s25 + $0x128] sm:$0xff] }
 0x17a   : > { %12946 = vmatprep.subr.bf16.mxu0 %v18775_v7  ;;  %v18820_v6 = vld [vmem:[#allocation4 + $0x324] ss:$8 sps:$4 sm:$0xff]   ;;  %v499_v8 = vpack.c.bf16 %v451_v5, %v443_v4  ;;  %v16221_v5 = vld [vmem:[%s20819_s25 + $0x340] sm:$0x3] }
 0x17b   : > { %v18823_v7 = vld [vmem:[#allocation4 + $0x1524] ss:$8 sps:$4 sm:$0xff]  }
 0x17c   : > { %11633 = vmatpush1.bf16.msra.mxu1 %v18770_v12  ;;  %v16174_v12 = vld [vmem:[%s20819_s25 + $0x1c8] sm:$0x3]  ;;  %v16213_v4 = vld [vmem:[%s20819_s25 + $0x300] sm:$0xfc] }
 0x17d   : > { %12947 = vmatpush1.bf16.msra.mxu0 %v18773_v13  ;;  %11634 = vmatprep.subr.bf16.mxu1 %v18778_v23  ;;  %v16182_v13 = vld [vmem:[%s20819_s25 + $0x208] sm:$0xfc]  ;;  %v2717_v16 = vrot.slane %v16174_v12, 2  ;;  %v450_v23 = vld [vmem:[%s20819_s25 + $0x1a0] sm:$0xff] }
 0x17e   : > { %12948 = vmatprep.subr.bf16.mxu0 %v18781_v24  ;;  %v2740_v17 = vrot.slane %v16182_v13, 2  ;;  %v16165_v24 = vld [vmem:[%s20819_s25 + $0x180] sm:$0xfc]  ;;  %v498_v26 = vpack.c.bf16 %v450_v23, %v442_v22  ;;  %v18848_v22 = vld [vmem:[#allocation4 + $0x370] ss:$8 sps:$4 sm:$0xff]  }
 0x17f   : > { %v2718_v21 = vsel %vm1383_vm1, %v2716_v15, %v2717_v16  ;;  %v18842_v12 = vld [vmem:[#allocation4 + $0x360] ss:$8 sps:$4 sm:$0xff]   ;;  %v18851_v23 = vld [vmem:[#allocation4 + $0x1570] ss:$8 sps:$4 sm:$0xff]  }
 0x180   : > { %11635 = vmatpush1.bf16.msra.mxu1 %v18776_v27  ;;  %v2742_v25 = vsel %vm1383_vm1, %v2740_v17, %v2741_v20  ;;  %v16173_v27 = vld [vmem:[%s20819_s25 + $0x1c0] sm:$0x3]  ;;  %v475_v15 = vld [vmem:[%s20819_s25 + $0x328] sm:$0xff] }
 0x181   : > { %12949 = vmatpush1.bf16.msra.mxu0 %v18779_v28  ;;  %11636 = vmatprep.subr.bf16.mxu1 %v18784_v30  ;;  %v16181_v28 = vld [vmem:[%s20819_s25 + $0x200] sm:$0xfc]  ;;  %v2930_v30 = vpack.c.bf16 %v2742_v25, %v2718_v21  ;;  %v483_v17 = vld [vmem:[%s20819_s25 + $0x3a8] sm:$0xff] }
 0x182   : > { %12950 = vmatprep.subr.bf16.mxu0 %v18787_v31  ;;  %v2713_v31 = vrot.slane %v16165_v24, 2  ;;  %v18845_v13 = vld [vmem:[#allocation4 + $0x1560] ss:$8 sps:$4 sm:$0xff]   ;;  %v515_v20 = vpack.c.bf16 %v483_v17, %v475_v15  ;;  %v18883_v15 = vld [vmem:[#allocation4 + $0x15c4] ss:$8 sps:$4 sm:$0xff]  }
 0x183   : > { %v16230_v21 = vld [vmem:[%s20819_s25 + $0x388] sm:$0xfc]  ;;  %v16238_v24 = vld [vmem:[%s20819_s25 + $0x3c8] sm:$0x3] }
 0x184   : > { %11637 = vmatpush1.bf16.msra.mxu1 %v18782_v32  ;;  %v2714_v32 = vrot.slane %v16173_v27, 2  ;;  %v16246_v25 = vld [vmem:[%s20819_s25 + $0x408] sm:$0xfc]  ;;  %v2812_v27 = vrot.slane %v16230_v21, 2  ;;  %v18887_v21 = vld [vmem:[#allocation4 + $0x15d0] ss:$8 sps:$4 sm:$0xff]  }
 0x185   : > { %12951 = vmatpush1.bf16.msra.mxu0 %v18785_v33  ;;  %11638 = vmatprep.subr.bf16.mxu1 %v18790_v34  ;;  %v2737_v33 = vrot.slane %v16181_v28, 2  ;;  %v18824_v34 = vld [vmem:[#allocation4 + $0x330] ss:$8 sps:$4 sm:$0xff]   ;;  %v2813_v28 = vrot.slane %v16238_v24, 2  ;;  %v18881_v17 = vld [vmem:[#allocation4 + $0x15c0] ss:$8 sps:$4 sm:$0xff]  }
 0x186   : > { %12952 = vmatprep.subr.bf16.mxu0 %v18793_v35  ;;  %v18827_v35 = vld [vmem:[#allocation4 + $0x1530] ss:$8 sps:$4 sm:$0xff]  }
 0x187   : > { %v16135_v24 = vld [vmem:[%s20819_s25 + $0x90] sm:$0xfc] }
 0x188   : > { %11639 = vmatpush1.bf16.msra.mxu1 %v18788_v36  ;;  %v2738_v36 = vrot.slane %v16189_v29, 2  ;;  %v2836_v29 = vrot.slane %v16246_v25, 2  ;;  %v16143_v25 = vld [vmem:[%s20819_s25 + $0xd0] sm:$0x3] }
 0x189   : > { %12953 = vmatpush1.bf16.msra.mxu0 %v18791_v37  ;;  %11640 = vmatprep.subr.bf16.mxu1 %v18796_v38  ;;  %v18832_v37 = vld [vmem:[#allocation4 + $0x344] ss:$8 sps:$4 sm:$0xff]  }
 0x18a   : > { %12954 = vmatprep.subr.bf16.mxu0 %v18799_v39  ;;  %v18835_v38 = vld [vmem:[#allocation4 + $0x1544] ss:$8 sps:$4 sm:$0xff]   ;;  %v2715_v39 = vsel %vm1383_vm1, %v2713_v31, %v2714_v32  ;;  %v2739_v43 = vsel %vm1383_vm1, %v2737_v33, %v2738_v36 }
 0x18b   : > { %v2929_v47 = vpack.c.bf16 %v2739_v43, %v2715_v39  ;;  %v18856_v31 = vld [vmem:[#allocation4 + $0x384] ss:$8 sps:$4 sm:$0xff]  }
 0x18c   : > { %11641 = vmatpush1.bf16.msra.mxu1 %v18794_v44  ;;  %v467_v44 = vld [vmem:[%s20819_s25 + $0x2a8] sm:$0xff]  ;;  %v474_v33 = vld [vmem:[%s20819_s25 + $0x320] sm:$0xff] }
 0x18d   : > { %12955 = vmatpush1.bf16.msra.mxu0 %v18797_v45  ;;  %11642 = vmatprep.subr.bf16.mxu1 %v18802_v46  ;;  %v18838_v45 = vld [vmem:[#allocation4 + $0x354] ss:$8 sps:$4 sm:$0xff]   ;;  %v507_v48 = vpack.c.bf16 %v467_v44, %v459_v40  ;;  %v18859_v32 = vld [vmem:[#allocation4 + $0x1584] ss:$8 sps:$4 sm:$0xff]  }
 0x18e   : > { %12956 = vmatprep.subr.bf16.mxu0 %v18805_v51  ;;  %v18841_v46 = vld [vmem:[#allocation4 + $0x1554] ss:$8 sps:$4 sm:$0xff]   ;;  %v16214_v51 = vld [vmem:[%s20819_s25 + $0x308] sm:$0xfc]  ;;  %v482_v36 = vld [vmem:[%s20819_s25 + $0x3a0] sm:$0xff] }
 0x18f   : > { %v2788_v55 = vrot.slane %v16214_v51, 2  ;;  %v514_v40 = vpack.c.bf16 %v482_v36, %v474_v33  ;;  %v18865_v51 = vld [vmem:[#allocation4 + $0x1594] ss:$8 sps:$4 sm:$0xff]   ;;  %v18896_v36 = vld [vmem:[#allocation4 + $0x3f0] ss:$8 sps:$4 sm:$0xff]  }
 0x190   : > { %11643 = vmatpush1.bf16.msra.mxu1 %v18800_v52  ;;  %v16222_v52 = vld [vmem:[%s20819_s25 + $0x348] sm:$0x3] }
 0x191   : > { %12957 = vmatpush1.bf16.msra.mxu0 %v18803_v53  ;;  %11685 = vmatprep.subr.bf16.mxu1 %v18808_v54  ;;  %v2764_v53 = vrot.slane %v16198_v49, 2  ;;  %v2765_v54 = vrot.slane %v16206_v50, 2  ;;  %v2789_v56 = vrot.slane %v16222_v52, 2  ;;  %v18862_v50 = vld [vmem:[#allocation4 + $0x394] ss:$8 sps:$4 sm:$0xff]  }
 0x192   : > { %12999 = vmatprep.subr.bf16.mxu0 %v18811_v59  ;;  %v458_v59 = vld [vmem:[%s20819_s25 + $0x220] sm:$0xff] }
 0x193   : > { %11645 = vmatmul.mubr.bf16.vlgmr.msra.gmra.mrb[0].mxu1 %v490_v62  ;;  %v2790_v62 = vsel %vm1383_vm1, %v2788_v55, %v2789_v56  ;;  %v18863_v55 = vld [vmem:[#allocation4 + $0x1590] ss:$8 sps:$4 sm:$0xff]  }
 0x194   : > { %12959 = vmatmul.mubr.bf16.vlgmr.msra.gmra.mrb[0].mxu0 %v2921_v63  ;;  %11686 = vmatpush1.bf16.msra.mxu1 %v18806_v60  ;;  %v18844_v60 = vld [vmem:[#allocation4 + $0x364] ss:$8 sps:$4 sm:$0xff]  }
 0x195   : > { %13000 = vmatpush1.bf16.msra.mxu0 %v18809_v61  ;;  %11687 = vmatprep.subr.bf16.mxu1 %v18814_v0  ;;  %v2766_v61 = vsel %vm1383_vm1, %v2764_v53, %v2765_v54  ;;  %v466_v63 = vld [vmem:[%s20819_s25 + $0x2a0] sm:$0xff]  ;;  %v429_v53 = vld [vmem:[%s20819_s25 + $0x38] sm:$0xff] }
 0x196   : > { %13001 = vmatprep.subr.bf16.mxu0 %v18817_v1  ;;  %11654 = vmatprep.mubr.bf16.mxu1 %v499_v8  ;;  %v16197_v0 = vld [vmem:[%s20819_s25 + $0x280] sm:$0xfc]  ;;  %v16205_v1 = vld [vmem:[%s20819_s25 + $0x2c0] sm:$0x3]  ;;  %v18860_v54 = vld [vmem:[#allocation4 + $0x390] ss:$8 sps:$4 sm:$0xff]  }
 0x197   : > { %12968 = vmatprep.mubr.bf16.mxu0 %v2930_v30  ;;  %v18847_v8 = vld [vmem:[#allocation4 + $0x1564] ss:$8 sps:$4 sm:$0xff]  }
 0x198   : > { %11688 = vmatpush1.bf16.msra.mxu1 %v18812_v2  ;;  %v2938_v2 = vpack.c.bf16 %v2790_v62, %v2766_v61  ;;  %v16136_v61 = vld [vmem:[%s20819_s25 + $0x98] sm:$0xfc]  ;;  %v16144_v62 = vld [vmem:[%s20819_s25 + $0xd8] sm:$0x3] }
 0x199   : > { %13002 = vmatpush1.bf16.msra.mxu0 %v18815_v3  ;;  %11689 = vmatprep.subr.bf16.mxu1 %v18820_v6  ;;  %v506_v3 = vpack.c.bf16 %v466_v63, %v458_v59  ;;  %v2761_v6 = vrot.slane %v16197_v0, 2  ;;  %v18871_v59 = vld [vmem:[#allocation4 + $0x15a4] ss:$8 sps:$4 sm:$0xff]   ;;  %v16152_v63 = vld [vmem:[%s20819_s25 + $0x118] sm:$0xfc] }
 0x19a   : > { %13003 = vmatprep.subr.bf16.mxu0 %v18823_v7  ;;  %v2762_v7 = vrot.slane %v16205_v1, 2  ;;  %v16160_v0 = vld [vmem:[%s20819_s25 + $0x158] sm:$0x3]  ;;  %v2674_v1 = vrot.slane %v16136_v61, 2 }
 0x19b   : > { %11655 = vmatmul.mubr.bf16.gmra.mrb[4].mxu1 %v498_v26  ;;  %v16254_v26 = vld [vmem:[%s20819_s25 + $0x448] sm:$0x3] }
 0x19c   : > { %11690 = vmatpush1.bf16.msra.mxu1 %v18818_v9  ;;  %12969 = vmatmul.mubr.bf16.gmra.mrb[4].mxu0 %v2929_v47  ;;  %v2785_v9 = vrot.slane %v16213_v4, 2  ;;  %v2763_v11 = vsel %vm1383_vm1, %v2761_v6, %v2762_v7  ;;  %v2837_v30 = vrot.slane %v16254_v26, 2  ;;  %v2699_v4 = vrot.slane %v16160_v0, 2  ;;  %v18866_v7 = vld [vmem:[#allocation4 + $0x3a0] ss:$8 sps:$4 sm:$0xff]  }
 0x19d   : > { %13004 = vmatpush1.bf16.msra.mxu0 %v18821_v10  ;;  %11691 = vmatprep.subr.bf16.mxu1 %v18826_v18  ;;  %v2786_v10 = vrot.slane %v16221_v5, 2  ;;  %v18850_v18 = vld [vmem:[#allocation4 + $0x374] ss:$8 sps:$4 sm:$0xff]  }
 0x19e   : > { %13005 = vmatprep.subr.bf16.mxu0 %v18829_v19  ;;  %11664 = vmatprep.mubr.bf16.mxu1 %v507_v48  ;;  %v18853_v19 = vld [vmem:[#allocation4 + $0x1574] ss:$8 sps:$4 sm:$0xff]   ;;  %v18857_v48 = vld [vmem:[#allocation4 + $0x1580] ss:$8 sps:$4 sm:$0xff]  }
 0x19f   : > { %12978 = vmatprep.mubr.bf16.mxu0 %v2938_v2  ;;  %v2787_v14 = vsel %vm1383_vm1, %v2785_v9, %v2786_v10  ;;  %v2675_v2 = vrot.slane %v16144_v62, 2  ;;  %v18874_v9 = vld [vmem:[#allocation4 + $0x3b4] ss:$8 sps:$4 sm:$0xff]   ;;  %v18916_v62 = vld [vmem:[#allocation4 + $0x424] ss:$8 sps:$4 sm:$0xff]  }
 0x1a0   : > { %11692 = vmatpush1.bf16.msra.mxu1 %v18824_v34  ;;  %v2937_v16 = vpack.c.bf16 %v2787_v14, %v2763_v11  ;;  %v2814_v34 = vsel %vm1383_vm1, %v2812_v27, %v2813_v28  ;;  %v18877_v11 = vld [vmem:[#allocation4 + $0x15b4] ss:$8 sps:$4 sm:$0xff]   ;;  %v18880_v14 = vld [vmem:[#allocation4 + $0x3c4] ss:$8 sps:$4 sm:$0xff]   ;;  %v16159_v27 = vld [vmem:[%s20819_s25 + $0x150] sm:$0x3] }
 0x1a1   : > { %13006 = vmatpush1.bf16.msra.mxu0 %v18827_v35  ;;  %11693 = vmatprep.subr.bf16.mxu1 %v18832_v37  ;;  %v2838_v35 = vsel %vm1383_vm1, %v2836_v29, %v2837_v30  ;;  %v16229_v37 = vld [vmem:[%s20819_s25 + $0x380] sm:$0xfc]  ;;  %v2676_v5 = vsel %vm1383_vm1, %v2674_v1, %v2675_v2  ;;  %v16151_v26 = vld [vmem:[%s20819_s25 + $0x110] sm:$0xfc] }
 0x1a2   : > { %13007 = vmatprep.subr.bf16.mxu0 %v18835_v38  ;;  %v16237_v38 = vld [vmem:[%s20819_s25 + $0x3c0] sm:$0x3]  ;;  %v2946_v39 = vpack.c.bf16 %v2838_v35, %v2814_v34  ;;  %v2809_v43 = vrot.slane %v16229_v37, 2  ;;  %v18898_v30 = vld [vmem:[#allocation4 + $0x3f4] ss:$8 sps:$4 sm:$0xff]   ;;  %v2695_v33 = vrot.slane %v16151_v26, 2 }
 0x1a3   : > { %11665 = vmatmul.mubr.bf16.gmra.mrb[8].mxu1 %v506_v3  ;;  %v2810_v44 = vrot.slane %v16237_v38, 2  ;;  %v2698_v3 = vrot.slane %v16152_v63, 2  ;;  %v18890_v28 = vld [vmem:[#allocation4 + $0x3e0] ss:$8 sps:$4 sm:$0xff]   ;;  %v2696_v34 = vrot.slane %v16159_v27, 2 }
 0x1a4   : > { %11694 = vmatpush1.bf16.msra.mxu1 %v18830_v41  ;;  %12979 = vmatmul.mubr.bf16.gmra.mrb[8].mxu0 %v2937_v16  ;;  %v16245_v41 = vld [vmem:[%s20819_s25 + $0x400] sm:$0xfc]  ;;  %v18901_v35 = vld [vmem:[#allocation4 + $0x15f4] ss:$8 sps:$4 sm:$0xff]   ;;  %v18899_v37 = vld [vmem:[#allocation4 + $0x15f0] ss:$8 sps:$4 sm:$0xff]  }
 0x1a5   : > { %13008 = vmatpush1.bf16.msra.mxu0 %v18833_v42  ;;  %11695 = vmatprep.subr.bf16.mxu1 %v18838_v45  ;;  %v16253_v42 = vld [vmem:[%s20819_s25 + $0x440] sm:$0x3]  ;;  %v2811_v49 = vsel %vm1383_vm1, %v2809_v43, %v2810_v44  ;;  %v2700_v6 = vsel %vm1383_vm1, %v2698_v3, %v2699_v4  ;;  %v18904_v38 = vld [vmem:[#allocation4 + $0x404] ss:$8 sps:$4 sm:$0xff]   ;;  %v444_v4 = vld [vmem:[%s20819_s25 + $0x130] sm:$0xff] }
 0x1a6   : > { %13009 = vmatprep.subr.bf16.mxu0 %v18841_v46  ;;  %11674 = vmatprep.mubr.bf16.mxu1 %v515_v20  ;;  %v18854_v45 = vld [vmem:[#allocation4 + $0x380] ss:$8 sps:$4 sm:$0xff]   ;;  %v2833_v46 = vrot.slane %v16245_v41, 2  ;;  %v2834_v47 = vrot.slane %v16253_v42, 2  ;;  %v2924_v10 = vpack.c.bf16 %v2700_v6, %v2676_v5  ;;  %v18884_v20 = vld [vmem:[#allocation4 + $0x3d0] ss:$8 sps:$4 sm:$0xff]   ;;  %v2697_v42 = vsel %vm1383_vm1, %v2695_v33, %v2696_v34 }
 0x1a7   : > { %12988 = vmatprep.mubr.bf16.mxu0 %v2946_v39  ;;  %v18878_v16 = vld [vmem:[#allocation4 + $0x3c0] ss:$8 sps:$4 sm:$0xff]   ;;  %v428_v39 = vld [vmem:[%s20819_s25 + $0x30] sm:$0xff]  ;;  %v18907_v43 = vld [vmem:[#allocation4 + $0x1604] ss:$8 sps:$4 sm:$0xff]  }
 0x1a8   : > { %11696 = vmatpush1.bf16.msra.mxu1 %v18836_v57  ;;  %v2835_v52 = vsel %vm1383_vm1, %v2833_v46, %v2834_v47  ;;  %v437_v57 = vld [vmem:[%s20819_s25 + $0xb8] sm:$0xff]  ;;  %v18893_v29 = vld [vmem:[#allocation4 + $0x15e0] ss:$8 sps:$4 sm:$0xff]   ;;  %v18919_v63 = vld [vmem:[#allocation4 + $0x1624] ss:$8 sps:$4 sm:$0xff]  }
 0x1a9   : > { %13010 = vmatpush1.bf16.msra.mxu0 %v18839_v58  ;;  %11697 = vmatprep.subr.bf16.mxu1 %v18844_v60  ;;  %v2945_v56 = vpack.c.bf16 %v2835_v52, %v2811_v49  ;;  %v18868_v58 = vld [vmem:[#allocation4 + $0x3a4] ss:$8 sps:$4 sm:$0xff]   ;;  %v493_v60 = vpack.c.bf16 %v437_v57, %v429_v53  ;;  %v18902_v44 = vld [vmem:[#allocation4 + $0x400] ss:$8 sps:$4 sm:$0xff]   ;;  %v18913_v49 = vld [vmem:[#allocation4 + $0x1614] ss:$8 sps:$4 sm:$0xff]  }
 0x1aa   : > { %13011 = vmatprep.subr.bf16.mxu0 %v18847_v8  ;;  %v18869_v8 = vld [vmem:[#allocation4 + $0x15a0] ss:$8 sps:$4 sm:$0xff]   ;;  %v18908_v52 = vld [vmem:[#allocation4 + $0x410] ss:$8 sps:$4 sm:$0xff]   ;;  %v18931_v26 = vld [vmem:[#allocation4 + $0x1644] ss:$8 sps:$4 sm:$0xff]  }
 0x1ab   : > { %11675 = vmatmul.mubr.bf16.gmra.mrb[12].mxu1 %v514_v40  ;;  %v436_v40 = vld [vmem:[%s20819_s25 + $0xb0] sm:$0xff]  ;;  %v16184_v57 = vld [vmem:[%s20819_s25 + $0x218] sm:$0xfc]  ;;  %v18914_v1 = vld [vmem:[#allocation4 + $0x420] ss:$8 sps:$4 sm:$0xff]  }
 0x1ac   : > { %11698 = vmatpush1.bf16.msra.mxu1 %v18842_v12  ;;  %12989 = vmatmul.mubr.bf16.gmra.mrb[12].mxu0 %v2945_v56  ;;  %v18872_v12 = vld [vmem:[#allocation4 + $0x3b0] ss:$8 sps:$4 sm:$0xff]   ;;  %v492_v46 = vpack.c.bf16 %v436_v40, %v428_v39  ;;  %v2746_v61 = vrot.slane %v16184_v57, 2  ;;  %v18917_v2 = vld [vmem:[#allocation4 + $0x1620] ss:$8 sps:$4 sm:$0xff]  }
 0x1ad   : > { %13012 = vmatpush1.bf16.msra.mxu0 %v18845_v13  ;;  %11699 = vmatprep.subr.bf16.mxu1 %v18850_v18  ;;  %v18875_v13 = vld [vmem:[#allocation4 + $0x15b0] ss:$8 sps:$4 sm:$0xff]   ;;  %v18886_v18 = vld [vmem:[#allocation4 + $0x3d4] ss:$8 sps:$4 sm:$0xff]   ;;  %v18926_v33 = vld [vmem:[#allocation4 + $0x440] ss:$8 sps:$4 sm:$0xff]  }
 0x1ae   : > { %13013 = vmatprep.subr.bf16.mxu0 %v18853_v19  ;;  %11717 = vmatprep.mubr.bf16.mxu1 %v493_v60  ;;  %v18889_v19 = vld [vmem:[#allocation4 + $0x15d4] ss:$8 sps:$4 sm:$0xff]   ;;  %v18911_v53 = vld [vmem:[#allocation4 + $0x1610] ss:$8 sps:$4 sm:$0xff]   ;;  %v18929_v34 = vld [vmem:[#allocation4 + $0x1640] ss:$8 sps:$4 sm:$0xff]  }
 0x1af   : > { %13031 = vmatprep.mubr.bf16.mxu0 %v2924_v10  ;;  %v16176_v56 = vld [vmem:[%s20819_s25 + $0x1d8] sm:$0x3]  ;;  %v452_v5 = vld [vmem:[%s20819_s25 + $0x1b0] sm:$0xff] }
 0x1b0   : > { %11700 = vmatpush1.bf16.msra.mxu1 %v18848_v22  ;;  %v18892_v22 = vld [vmem:[#allocation4 + $0x3e4] ss:$8 sps:$4 sm:$0xff]   ;;  %v2723_v60 = vrot.slane %v16176_v56, 2  ;;  %v16167_v6 = vld [vmem:[%s20819_s25 + $0x190] sm:$0xfc] }
 0x1b1   : > { %13014 = vmatpush1.bf16.msra.mxu0 %v18851_v23  ;;  %11701 = vmatprep.subr.bf16.mxu1 %v18856_v31  ;;  %v18895_v23 = vld [vmem:[#allocation4 + $0x15e4] ss:$8 sps:$4 sm:$0xff]   ;;  %v2671_v31 = vrot.slane %v16135_v24, 2  ;;  %v16183_v10 = vld [vmem:[%s20819_s25 + $0x210] sm:$0xfc]  ;;  %v469_v24 = vld [vmem:[%s20819_s25 + $0x2b8] sm:$0xff] }
 0x1b2   : > { %13015 = vmatprep.subr.bf16.mxu0 %v18859_v32  ;;  %v2672_v32 = vrot.slane %v16143_v25, 2  ;;  %v18928_v25 = vld [vmem:[#allocation4 + $0x444] ss:$8 sps:$4 sm:$0xff]   ;;  %v18934_v39 = vld [vmem:[#allocation4 + $0x454] ss:$8 sps:$4 sm:$0xff]  }
 0x1b3   : > { %v18937_v40 = vld [vmem:[#allocation4 + $0x1654] ss:$8 sps:$4 sm:$0xff]   ;;  %v18935_v56 = vld [vmem:[#allocation4 + $0x1650] ss:$8 sps:$4 sm:$0xff]  }
 0x1b4   : > { %11702 = vmatpush1.bf16.msra.mxu1 %v18854_v45  ;;  %v2673_v41 = vsel %vm1383_vm1, %v2671_v31, %v2672_v32  ;;  %v18905_v45 = vld [vmem:[#allocation4 + $0x1600] ss:$8 sps:$4 sm:$0xff]   ;;  %v16216_v31 = vld [vmem:[%s20819_s25 + $0x318] sm:$0xfc]  ;;  %v16224_v32 = vld [vmem:[%s20819_s25 + $0x358] sm:$0x3] }
 0x1b5   : > { %13016 = vmatpush1.bf16.msra.mxu0 %v18857_v48  ;;  %11703 = vmatprep.subr.bf16.mxu1 %v18862_v50  ;;  %v2923_v47 = vpack.c.bf16 %v2697_v42, %v2673_v41  ;;  %v18910_v48 = vld [vmem:[#allocation4 + $0x414] ss:$8 sps:$4 sm:$0xff]  }
 0x1b6   : > { %13017 = vmatprep.subr.bf16.mxu0 %v18865_v51  ;;  %v445_v50 = vld [vmem:[%s20819_s25 + $0x138] sm:$0xff]  ;;  %v460_v41 = vld [vmem:[%s20819_s25 + $0x230] sm:$0xff] }
 0x1b7   : > { %v453_v51 = vld [vmem:[%s20819_s25 + $0x1b8] sm:$0xff] }
 0x1b8   : > { %11704 = vmatpush1.bf16.msra.mxu1 %v18860_v54  ;;  %v501_v54 = vpack.c.bf16 %v453_v51, %v445_v50  ;;  %v16223_v50 = vld [vmem:[%s20819_s25 + $0x350] sm:$0x3] }
 0x1b9   : > { %13018 = vmatpush1.bf16.msra.mxu0 %v18863_v55  ;;  %11705 = vmatprep.subr.bf16.mxu1 %v18868_v58  ;;  %v16168_v55 = vld [vmem:[%s20819_s25 + $0x198] sm:$0xfc]  ;;  %v16192_v58 = vld [vmem:[%s20819_s25 + $0x258] sm:$0x3] }
 0x1ba   : > { %13019 = vmatprep.subr.bf16.mxu0 %v18871_v59  ;;  %v2722_v59 = vrot.slane %v16168_v55, 2  ;;  %v2747_v0 = vrot.slane %v16192_v58, 2  ;;  %v2792_v55 = vrot.slane %v16223_v50, 2  ;;  %v18940_v58 = vld [vmem:[#allocation4 + $0x464] ss:$8 sps:$4 sm:$0xff]  }
 0x1bb   : > { %v16154_v50 = vld [vmem:[%s20819_s25 + $0x128] sm:$0xfc] }
 0x1bc   : > { %11706 = vmatpush1.bf16.msra.mxu1 %v18866_v7  ;;  %v2724_v3 = vsel %vm1383_vm1, %v2722_v59, %v2723_v60  ;;  %v2748_v7 = vsel %vm1383_vm1, %v2746_v61, %v2747_v0  ;;  %v18943_v59 = vld [vmem:[#allocation4 + $0x1664] ss:$8 sps:$4 sm:$0xff]   ;;  %v477_v61 = vld [vmem:[%s20819_s25 + $0x338] sm:$0xff]  ;;  %v18938_v0 = vld [vmem:[#allocation4 + $0x460] ss:$8 sps:$4 sm:$0xff]  }
 0x1bd   : > { %13020 = vmatpush1.bf16.msra.mxu0 %v18869_v8  ;;  %11707 = vmatprep.subr.bf16.mxu1 %v18874_v9  ;;  %v500_v8 = vpack.c.bf16 %v452_v5, %v444_v4  ;;  %v16175_v9 = vld [vmem:[%s20819_s25 + $0x1d0] sm:$0x3]  ;;  %v16240_v4 = vld [vmem:[%s20819_s25 + $0x3d8] sm:$0x3]  ;;  %v16248_v5 = vld [vmem:[%s20819_s25 + $0x418] sm:$0xfc] }
 0x1be   : > { %13021 = vmatprep.subr.bf16.mxu0 %v18877_v11  ;;  %v16191_v11 = vld [vmem:[%s20819_s25 + $0x250] sm:$0x3] }
 0x1c0   : > { %11708 = vmatpush1.bf16.msra.mxu1 %v18872_v12  ;;  %v2932_v12 = vpack.c.bf16 %v2748_v7, %v2724_v3  ;;  %v16232_v3 = vld [vmem:[%s20819_s25 + $0x398] sm:$0xfc] }
 0x1c1   : > { %13022 = vmatpush1.bf16.msra.mxu0 %v18875_v13  ;;  %11709 = vmatprep.subr.bf16.mxu1 %v18880_v14  ;;  %v2719_v13 = vrot.slane %v16167_v6, 2  ;;  %v2720_v14 = vrot.slane %v16175_v9, 2  ;;  %v16256_v6 = vld [vmem:[%s20819_s25 + $0x458] sm:$0x3]  ;;  %v2818_v7 = vrot.slane %v16232_v3, 2  ;;  %v2842_v9 = vrot.slane %v16248_v5, 2 }
 0x1c2   : > { %13023 = vmatprep.subr.bf16.mxu0 %v18883_v15  ;;  %v2743_v15 = vrot.slane %v16183_v10, 2  ;;  %v2843_v10 = vrot.slane %v16256_v6, 2  ;;  %v18973_v3 = vld [vmem:[#allocation4 + $0x16b4] ss:$8 sps:$4 sm:$0xff]   ;;  %v18971_v5 = vld [vmem:[#allocation4 + $0x16b0] ss:$8 sps:$4 sm:$0xff]  }
 0x1c3   : > { %v18976_v6 = vld [vmem:[#allocation4 + $0x4c4] ss:$8 sps:$4 sm:$0xff]  }
 0x1c4   : > { %11710 = vmatpush1.bf16.msra.mxu1 %v18878_v16  ;;  %v18922_v16 = vld [vmem:[#allocation4 + $0x434] ss:$8 sps:$4 sm:$0xff]  }
 0x1c5   : > { %13024 = vmatpush1.bf16.msra.mxu0 %v18881_v17  ;;  %11711 = vmatprep.subr.bf16.mxu1 %v18886_v18  ;;  %v18925_v17 = vld [vmem:[#allocation4 + $0x1634] ss:$8 sps:$4 sm:$0xff]   ;;  %v2744_v18 = vrot.slane %v16191_v11, 2 }
 0x1c6   : > { %13025 = vmatprep.subr.bf16.mxu0 %v18889_v19  ;;  %v18920_v19 = vld [vmem:[#allocation4 + $0x430] ss:$8 sps:$4 sm:$0xff]   ;;  %v18946_v11 = vld [vmem:[#allocation4 + $0x474] ss:$8 sps:$4 sm:$0xff]  }
 0x1c8   : > { %11712 = vmatpush1.bf16.msra.mxu1 %v18884_v20  ;;  %v18923_v20 = vld [vmem:[#allocation4 + $0x1630] ss:$8 sps:$4 sm:$0xff]  }
 0x1c9   : > { %13026 = vmatpush1.bf16.msra.mxu0 %v18887_v21  ;;  %11713 = vmatprep.subr.bf16.mxu1 %v18892_v22  ;;  %v2721_v21 = vsel %vm1383_vm1, %v2719_v13, %v2720_v14  ;;  %v461_v22 = vld [vmem:[%s20819_s25 + $0x238] sm:$0xff]  ;;  %v476_v13 = vld [vmem:[%s20819_s25 + $0x330] sm:$0xff] }
 0x1ca   : > { %13027 = vmatprep.subr.bf16.mxu0 %v18895_v23  ;;  %v2745_v23 = vsel %vm1383_vm1, %v2743_v15, %v2744_v18  ;;  %v18944_v14 = vld [vmem:[#allocation4 + $0x470] ss:$8 sps:$4 sm:$0xff]  }
 0x1cb   : > { %v2931_v27 = vpack.c.bf16 %v2745_v23, %v2721_v21  ;;  %v18947_v15 = vld [vmem:[#allocation4 + $0x1670] ss:$8 sps:$4 sm:$0xff]  }
 0x1cc   : > { %11714 = vmatpush1.bf16.msra.mxu1 %v18890_v28  ;;  %v509_v28 = vpack.c.bf16 %v469_v24, %v461_v22  ;;  %v484_v18 = vld [vmem:[%s20819_s25 + $0x3b0] sm:$0xff] }
 0x1cd   : > { %13028 = vmatpush1.bf16.msra.mxu0 %v18893_v29  ;;  %11715 = vmatprep.subr.bf16.mxu1 %v18898_v30  ;;  %v16200_v29 = vld [vmem:[%s20819_s25 + $0x298] sm:$0xfc]  ;;  %v16208_v30 = vld [vmem:[%s20819_s25 + $0x2d8] sm:$0x3]  ;;  %v516_v22 = vpack.c.bf16 %v484_v18, %v476_v13  ;;  %v16247_v23 = vld [vmem:[%s20819_s25 + $0x410] sm:$0xfc] }
 0x1ce   : > { %13029 = vmatprep.subr.bf16.mxu0 %v18901_v35  ;;  %v2770_v35 = vrot.slane %v16200_v29, 2  ;;  %v16255_v24 = vld [vmem:[%s20819_s25 + $0x450] sm:$0x3]  ;;  %v18988_v18 = vld [vmem:[#allocation4 + $0x4e4] ss:$8 sps:$4 sm:$0xff]  }
 0x1cf   : > { %v2840_v29 = vrot.slane %v16255_v24, 2  ;;  %v18983_v13 = vld [vmem:[#allocation4 + $0x16d0] ss:$8 sps:$4 sm:$0xff]   ;;  %v18986_v24 = vld [vmem:[#allocation4 + $0x4e0] ss:$8 sps:$4 sm:$0xff]  }
 0x1d0   : > { %11716 = vmatpush1.bf16.msra.mxu1 %v18896_v36  ;;  %v2771_v36 = vrot.slane %v16208_v30, 2  ;;  %v18955_v30 = vld [vmem:[#allocation4 + $0x1684] ss:$8 sps:$4 sm:$0xff]  }
 0x1d1   : > { %13030 = vmatpush1.bf16.msra.mxu0 %v18899_v37  ;;  %11758 = vmatprep.subr.bf16.mxu1 %v18904_v38  ;;  %v2794_v37 = vrot.slane %v16216_v31, 2  ;;  %v2795_v38 = vrot.slane %v16224_v32, 2  ;;  %v18950_v32 = vld [vmem:[#allocation4 + $0x480] ss:$8 sps:$4 sm:$0xff]  }
 0x1d2   : > { %13072 = vmatprep.subr.bf16.mxu0 %v18907_v43  ;;  %v2772_v42 = vsel %vm1383_vm1, %v2770_v35, %v2771_v36  ;;  %v551_v35 = vld [vmem:[%s20819_s25 + $0x8] sm:$0xfe] }
 0x1d3   : > { %11718 = vmatmul.mubr.bf16.vlgmr.msra.gmra.mrb[0].mxu1 %v492_v46  ;;  %v2796_v43 = vsel %vm1383_vm1, %v2794_v37, %v2795_v38  ;;  %v16207_v46 = vld [vmem:[%s20819_s25 + $0x2d0] sm:$0x3]  ;;  %v559_v37 = vld [vmem:[%s20819_s25 + $0x48] sm:$0x1]  ;;  %v567_v38 = vld [vmem:[%s20819_s25 + $0x88] sm:$0xfe] }
 0x1d4   : > { %13032 = vmatmul.mubr.bf16.vlgmr.msra.gmra.mrb[0].mxu0 %v2923_v47  ;;  %11759 = vmatpush1.bf16.msra.mxu1 %v18902_v44  ;;  %v468_v44 = vld [vmem:[%s20819_s25 + $0x2b0] sm:$0xff]  ;;  %v2940_v47 = vpack.c.bf16 %v2796_v43, %v2772_v42  ;;  %v834_v42 = vrot.slane %v567_v38, 1 }
 0x1d5   : > { %13073 = vmatpush1.bf16.msra.mxu0 %v18905_v45  ;;  %11760 = vmatprep.subr.bf16.mxu1 %v18910_v48  ;;  %v16199_v45 = vld [vmem:[%s20819_s25 + $0x290] sm:$0xfc]  ;;  %v508_v48 = vpack.c.bf16 %v468_v44, %v460_v41  ;;  %v811_v41 = vrot.slane %v559_v37, 1 }
 0x1d6   : > { %13074 = vmatprep.subr.bf16.mxu0 %v18913_v49  ;;  %11727 = vmatprep.mubr.bf16.mxu1 %v501_v54  ;;  %v16215_v49 = vld [vmem:[%s20819_s25 + $0x310] sm:$0xfc]  ;;  %v2767_v51 = vrot.slane %v16199_v45, 2 }
 0x1d7   : > { %13041 = vmatprep.mubr.bf16.mxu0 %v2932_v12  ;;  %v2791_v54 = vrot.slane %v16215_v49, 2  ;;  %v18949_v12 = vld [vmem:[#allocation4 + $0x1674] ss:$8 sps:$4 sm:$0xff]   ;;  %v16146_v49 = vld [vmem:[%s20819_s25 + $0xe8] sm:$0x3] }
 0x1d8   : > { %11761 = vmatpush1.bf16.msra.mxu1 %v18908_v52  ;;  %v2768_v52 = vrot.slane %v16207_v46, 2  ;;  %v18958_v44 = vld [vmem:[#allocation4 + $0x494] ss:$8 sps:$4 sm:$0xff]   ;;  %v16138_v46 = vld [vmem:[%s20819_s25 + $0xa8] sm:$0xfc] }
 0x1d9   : > { %13075 = vmatpush1.bf16.msra.mxu0 %v18911_v53  ;;  %11762 = vmatprep.subr.bf16.mxu1 %v18916_v62  ;;  %v18932_v53 = vld [vmem:[#allocation4 + $0x450] ss:$8 sps:$4 sm:$0xff]   ;;  %v2793_v60 = vsel %vm1383_vm1, %v2791_v54, %v2792_v55  ;;  %v18961_v45 = vld [vmem:[#allocation4 + $0x1694] ss:$8 sps:$4 sm:$0xff]   ;;  %v2681_v54 = vrot.slane %v16146_v49, 2  ;;  %v2704_v55 = vrot.slane %v16154_v50, 2 }
 0x1da   : > { %13076 = vmatprep.subr.bf16.mxu0 %v18919_v63  ;;  %v2769_v57 = vsel %vm1383_vm1, %v2767_v51, %v2768_v52  ;;  %v485_v63 = vld [vmem:[%s20819_s25 + $0x3b8] sm:$0xff]  ;;  %v16162_v51 = vld [vmem:[%s20819_s25 + $0x168] sm:$0x3] }
 0x1db   : > { %11728 = vmatmul.mubr.bf16.gmra.mrb[4].mxu1 %v500_v8  ;;  %v2939_v62 = vpack.c.bf16 %v2793_v60, %v2769_v57  ;;  %v2819_v8 = vrot.slane %v16240_v4, 2  ;;  %v18959_v57 = vld [vmem:[#allocation4 + $0x1690] ss:$8 sps:$4 sm:$0xff]   ;;  %v18967_v60 = vld [vmem:[#allocation4 + $0x16a4] ss:$8 sps:$4 sm:$0xff]  }
 0x1dc   : > { %11763 = vmatpush1.bf16.msra.mxu1 %v18914_v1  ;;  %13042 = vmatmul.mubr.bf16.gmra.mrb[4].mxu0 %v2931_v27  ;;  %v18941_v1 = vld [vmem:[#allocation4 + $0x1660] ss:$8 sps:$4 sm:$0xff]   ;;  %v18952_v27 = vld [vmem:[#allocation4 + $0x484] ss:$8 sps:$4 sm:$0xff]   ;;  %v18968_v4 = vld [vmem:[#allocation4 + $0x4b0] ss:$8 sps:$4 sm:$0xff]  }
 0x1dd   : > { %13077 = vmatpush1.bf16.msra.mxu0 %v18917_v2  ;;  %11764 = vmatprep.subr.bf16.mxu1 %v18922_v16  ;;  %v517_v2 = vpack.c.bf16 %v485_v63, %v477_v61  ;;  %v2820_v16 = vsel %vm1383_vm1, %v2818_v7, %v2819_v8  ;;  %v18979_v7 = vld [vmem:[#allocation4 + $0x16c4] ss:$8 sps:$4 sm:$0xff]   ;;  %v18974_v8 = vld [vmem:[#allocation4 + $0x4c0] ss:$8 sps:$4 sm:$0xff]   ;;  %v18995_v37 = vld [vmem:[#allocation4 + $0x16f0] ss:$8 sps:$4 sm:$0xff]  }
 0x1de   : > { %13078 = vmatprep.subr.bf16.mxu0 %v18925_v17  ;;  %11737 = vmatprep.mubr.bf16.mxu1 %v509_v28  ;;  %v2844_v17 = vsel %vm1383_vm1, %v2842_v9, %v2843_v10  ;;  %v2839_v28 = vrot.slane %v16247_v23, 2  ;;  %v18977_v9 = vld [vmem:[#allocation4 + $0x16c0] ss:$8 sps:$4 sm:$0xff]   ;;  %v18982_v10 = vld [vmem:[#allocation4 + $0x4d4] ss:$8 sps:$4 sm:$0xff]  }
 0x1df   : > { %13051 = vmatprep.mubr.bf16.mxu0 %v2940_v47  ;;  %v2948_v21 = vpack.c.bf16 %v2844_v17, %v2820_v16  ;;  %v566_v16 = vld [vmem:[%s20819_s25 + $0x80] sm:$0xfe]  ;;  %v574_v17 = vld [vmem:[%s20819_s25 + $0xc0] sm:$0x1]  ;;  %v19009_v49 = vld [vmem:[#allocation4 + $0x1714] ss:$8 sps:$4 sm:$0xff]  }
 0x1e0   : > { %11765 = vmatpush1.bf16.msra.mxu1 %v18920_v19  ;;  %v16231_v19 = vld [vmem:[%s20819_s25 + $0x390] sm:$0xfc]  ;;  %v16161_v23 = vld [vmem:[%s20819_s25 + $0x160] sm:$0x3]  ;;  %v583_v50 = vld [vmem:[%s20819_s25 + $0x108] sm:$0xfe] }
 0x1e1   : > { %13079 = vmatpush1.bf16.msra.mxu0 %v18923_v20  ;;  %11766 = vmatprep.subr.bf16.mxu1 %v18928_v25  ;;  %v16239_v20 = vld [vmem:[%s20819_s25 + $0x3d0] sm:$0x3]  ;;  %v2815_v25 = vrot.slane %v16231_v19, 2  ;;  %v18991_v19 = vld [vmem:[#allocation4 + $0x16e4] ss:$8 sps:$4 sm:$0xff]  }
 0x1e2   : > { %13080 = vmatprep.subr.bf16.mxu0 %v18931_v26  ;;  %v2816_v26 = vrot.slane %v16239_v20, 2  ;;  %v16137_v20 = vld [vmem:[%s20819_s25 + $0xa0] sm:$0xfc] }
 0x1e3   : > { %11738 = vmatmul.mubr.bf16.gmra.mrb[8].mxu1 %v508_v48 }
 0x1e4   : > { %11767 = vmatpush1.bf16.msra.mxu1 %v18926_v33  ;;  %13052 = vmatmul.mubr.bf16.gmra.mrb[8].mxu0 %v2939_v62  ;;  %v2817_v31 = vsel %vm1383_vm1, %v2815_v25, %v2816_v26  ;;  %v18953_v33 = vld [vmem:[#allocation4 + $0x1680] ss:$8 sps:$4 sm:$0xff]   ;;  %v18994_v26 = vld [vmem:[#allocation4 + $0x4f4] ss:$8 sps:$4 sm:$0xff]  }
 0x1e5   : > { %13081 = vmatpush1.bf16.msra.mxu0 %v18929_v34  ;;  %11768 = vmatprep.subr.bf16.mxu1 %v18934_v39  ;;  %v2841_v34 = vsel %vm1383_vm1, %v2839_v28, %v2840_v29  ;;  %v575_v39 = vld [vmem:[%s20819_s25 + $0xc8] sm:$0x1]  ;;  %v831_v29 = vrot.slane %v566_v16, 1  ;;  %v19021_v16 = vld [vmem:[#allocation4 + $0x1734] ss:$8 sps:$4 sm:$0xff]  }
 0x1e6   : > { %13082 = vmatprep.subr.bf16.mxu0 %v18937_v40  ;;  %11747 = vmatprep.mubr.bf16.mxu1 %v517_v2  ;;  %v2947_v36 = vpack.c.bf16 %v2841_v34, %v2817_v31  ;;  %v810_v40 = vrot.slane %v551_v35, 1  ;;  %v835_v43 = vrot.slane %v575_v39, 1  ;;  %v18970_v2 = vld [vmem:[#allocation4 + $0x4b4] ss:$8 sps:$4 sm:$0xff]   ;;  %v18989_v25 = vld [vmem:[#allocation4 + $0x16e0] ss:$8 sps:$4 sm:$0xff]  }
 0x1e7   : > { %13061 = vmatprep.mubr.bf16.mxu0 %v2948_v21  ;;  %v16145_v21 = vld [vmem:[%s20819_s25 + $0xe0] sm:$0x3]  ;;  %v2677_v31 = vrot.slane %v16137_v20, 2  ;;  %v2702_v34 = vrot.slane %v16161_v23, 2  ;;  %v18997_v35 = vld [vmem:[#allocation4 + $0x16f4] ss:$8 sps:$4 sm:$0xff]  }
 0x1e8   : > { %11769 = vmatpush1.bf16.msra.mxu1 %v18932_v53  ;;  %v812_v47 = vsel %vm806_vm0, %v810_v40, %v811_v41  ;;  %v836_v48 = vsel %vm806_vm0, %v834_v42, %v835_v43  ;;  %v2680_v53 = vrot.slane %v16138_v46, 2  ;;  %v19000_v39 = vld [vmem:[#allocation4 + $0x504] ss:$8 sps:$4 sm:$0xff]  }
 0x1e9   : > { %13083 = vmatpush1.bf16.msra.mxu0 %v18935_v56  ;;  %11770 = vmatprep.subr.bf16.mxu1 %v18940_v58  ;;  %v1064_v52 = vpack.c.bf16 %v836_v48, %v812_v47  ;;  %v18956_v56 = vld [vmem:[#allocation4 + $0x490] ss:$8 sps:$4 sm:$0xff]   ;;  %v2705_v58 = vrot.slane %v16162_v51, 2  ;;  %v19003_v43 = vld [vmem:[#allocation4 + $0x1704] ss:$8 sps:$4 sm:$0xff]  }
 0x1ea   : > { %13084 = vmatprep.subr.bf16.mxu0 %v18943_v59  ;;  %v18964_v59 = vld [vmem:[#allocation4 + $0x4a4] ss:$8 sps:$4 sm:$0xff]   ;;  %v2682_v61 = vsel %vm1383_vm1, %v2680_v53, %v2681_v54  ;;  %v19006_v48 = vld [vmem:[#allocation4 + $0x514] ss:$8 sps:$4 sm:$0xff]   ;;  %v591_v51 = vld [vmem:[%s20819_s25 + $0x148] sm:$0x1] }
 0x1eb   : > { %11748 = vmatmul.mubr.bf16.gmra.mrb[12].mxu1 %v516_v22  ;;  %v2706_v62 = vsel %vm1383_vm1, %v2704_v55, %v2705_v58  ;;  %v16153_v22 = vld [vmem:[%s20819_s25 + $0x120] sm:$0xfc]  ;;  %v607_v53 = vld [vmem:[%s20819_s25 + $0x1c8] sm:$0x1]  ;;  %v858_v54 = vrot.slane %v583_v50, 1  ;;  %v859_v55 = vrot.slane %v591_v51, 1 }
 0x1ec   : > { %11771 = vmatpush1.bf16.msra.mxu1 %v18938_v0  ;;  %13062 = vmatmul.mubr.bf16.gmra.mrb[12].mxu0 %v2947_v36  ;;  %v2926_v63 = vpack.c.bf16 %v2706_v62, %v2682_v61  ;;  %v18962_v0 = vld [vmem:[#allocation4 + $0x4a0] ss:$8 sps:$4 sm:$0xff]   ;;  %v18992_v36 = vld [vmem:[#allocation4 + $0x4f0] ss:$8 sps:$4 sm:$0xff]  }
 0x1ed   : > { %13085 = vmatpush1.bf16.msra.mxu0 %v18941_v1  ;;  %11772 = vmatprep.subr.bf16.mxu1 %v18946_v11  ;;  %v18965_v1 = vld [vmem:[#allocation4 + $0x16a0] ss:$8 sps:$4 sm:$0xff]   ;;  %v18985_v11 = vld [vmem:[#allocation4 + $0x16d4] ss:$8 sps:$4 sm:$0xff]   ;;  %v19007_v58 = vld [vmem:[#allocation4 + $0x1710] ss:$8 sps:$4 sm:$0xff]  }
 0x1ee   : > { %13086 = vmatprep.subr.bf16.mxu0 %v18949_v12  ;;  %11790 = vmatprep.mubr.bf16.mxu1 %v1064_v52  ;;  %v18980_v12 = vld [vmem:[#allocation4 + $0x4d0] ss:$8 sps:$4 sm:$0xff]   ;;  %v599_v52 = vld [vmem:[%s20819_s25 + $0x188] sm:$0xfe] }
 0x1ef   : > { %13104 = vmatprep.mubr.bf16.mxu0 %v2926_v63  ;;  %v16170_v61 = vld [vmem:[%s20819_s25 + $0x1a8] sm:$0xfc]  ;;  %v16178_v62 = vld [vmem:[%s20819_s25 + $0x1e8] sm:$0x3] }
 0x1f0   : > { %11773 = vmatpush1.bf16.msra.mxu1 %v18944_v14  ;;  %v550_v14 = vld [vmem:[%s20819_s25] sm:$0xfe]  ;;  %v16186_v63 = vld [vmem:[%s20819_s25 + $0x228] sm:$0xfc] }
 0x1f1   : > { %13087 = vmatpush1.bf16.msra.mxu0 %v18947_v15  ;;  %11774 = vmatprep.subr.bf16.mxu1 %v18952_v27  ;;  %v558_v15 = vld [vmem:[%s20819_s25 + $0x40] sm:$0x1]  ;;  %v807_v27 = vrot.slane %v550_v14, 1  ;;  %v598_v14 = vld [vmem:[%s20819_s25 + $0x180] sm:$0xfe] }
 0x1f2   : > { %13088 = vmatprep.subr.bf16.mxu0 %v18955_v30  ;;  %v808_v28 = vrot.slane %v558_v15, 1  ;;  %v832_v30 = vrot.slane %v574_v17, 1  ;;  %v19018_v15 = vld [vmem:[#allocation4 + $0x534] ss:$8 sps:$4 sm:$0xff]  }
 0x1f4   : > { %11775 = vmatpush1.bf16.msra.mxu1 %v18950_v32  ;;  %v2678_v32 = vrot.slane %v16145_v21, 2  ;;  %v809_v38 = vsel %vm806_vm0, %v807_v27, %v808_v28  ;;  %v833_v40 = vsel %vm806_vm0, %v831_v29, %v832_v30  ;;  %v879_v21 = vrot.slane %v598_v14, 1  ;;  %v16185_v27 = vld [vmem:[%s20819_s25 + $0x220] sm:$0xfc]  ;;  %v16193_v28 = vld [vmem:[%s20819_s25 + $0x260] sm:$0x3] }
 0x1f5   : > { %13089 = vmatpush1.bf16.msra.mxu0 %v18953_v33  ;;  %11776 = vmatprep.subr.bf16.mxu1 %v18958_v44  ;;  %v2701_v33 = vrot.slane %v16153_v22, 2  ;;  %v18998_v44 = vld [vmem:[#allocation4 + $0x500] ss:$8 sps:$4 sm:$0xff]   ;;  %v1063_v46 = vpack.c.bf16 %v833_v40, %v809_v38 }
 0x1f6   : > { %13090 = vmatprep.subr.bf16.mxu0 %v18961_v45  ;;  %v2679_v41 = vsel %vm1383_vm1, %v2677_v31, %v2678_v32  ;;  %v19001_v45 = vld [vmem:[#allocation4 + $0x1700] ss:$8 sps:$4 sm:$0xff]   ;;  %v19016_v31 = vld [vmem:[#allocation4 + $0x530] ss:$8 sps:$4 sm:$0xff]  }
 0x1f7   : > { %v2703_v42 = vsel %vm1383_vm1, %v2701_v33, %v2702_v34  ;;  %v19019_v32 = vld [vmem:[#allocation4 + $0x1730] ss:$8 sps:$4 sm:$0xff]   ;;  %v2749_v34 = vrot.slane %v16185_v27, 2  ;;  %v19037_v27 = vld [vmem:[#allocation4 + $0x1760] ss:$8 sps:$4 sm:$0xff]  }
 0x1f8   : > { %11777 = vmatpush1.bf16.msra.mxu1 %v18956_v56  ;;  %v2925_v47 = vpack.c.bf16 %v2703_v42, %v2679_v41  ;;  %v882_v56 = vrot.slane %v599_v52, 1  ;;  %v615_v41 = vld [vmem:[%s20819_s25 + $0x208] sm:$0xfe]  ;;  %v623_v42 = vld [vmem:[%s20819_s25 + $0x248] sm:$0x1] }
 0x1f9   : > { %13091 = vmatpush1.bf16.msra.mxu0 %v18959_v57  ;;  %11778 = vmatprep.subr.bf16.mxu1 %v18964_v59  ;;  %v19004_v57 = vld [vmem:[#allocation4 + $0x510] ss:$8 sps:$4 sm:$0xff]   ;;  %v883_v59 = vrot.slane %v607_v53, 1  ;;  %v19030_v52 = vld [vmem:[#allocation4 + $0x554] ss:$8 sps:$4 sm:$0xff]  }
 0x1fa   : > { %13092 = vmatprep.subr.bf16.mxu0 %v18967_v60  ;;  %v860_v60 = vsel %vm806_vm0, %v858_v54, %v859_v55  ;;  %v16202_v54 = vld [vmem:[%s20819_s25 + $0x2a8] sm:$0xfc]  ;;  %v16210_v55 = vld [vmem:[%s20819_s25 + $0x2e8] sm:$0x3] }
 0x1fc   : > { %11779 = vmatpush1.bf16.msra.mxu1 %v18962_v0  ;;  %v884_v0 = vsel %vm806_vm0, %v882_v56, %v883_v59  ;;  %v2776_v59 = vrot.slane %v16202_v54, 2 }
 0x1fd   : > { %13093 = vmatpush1.bf16.msra.mxu0 %v18965_v1  ;;  %11780 = vmatprep.subr.bf16.mxu1 %v18970_v2  ;;  %v16194_v1 = vld [vmem:[%s20819_s25 + $0x268] sm:$0x3]  ;;  %v2728_v2 = vrot.slane %v16170_v61, 2  ;;  %v19033_v61 = vld [vmem:[#allocation4 + $0x1754] ss:$8 sps:$4 sm:$0xff]  }
 0x1fe   : > { %13094 = vmatprep.subr.bf16.mxu0 %v18973_v3  ;;  %v2729_v3 = vrot.slane %v16178_v62, 2 }
 0x200   : > { %11781 = vmatpush1.bf16.msra.mxu1 %v18968_v4  ;;  %v2752_v4 = vrot.slane %v16186_v63, 2 }
 0x201   : > { %13095 = vmatpush1.bf16.msra.mxu0 %v18971_v5  ;;  %11782 = vmatprep.subr.bf16.mxu1 %v18976_v6  ;;  %v19012_v5 = vld [vmem:[#allocation4 + $0x524] ss:$8 sps:$4 sm:$0xff]  }
 0x202   : > { %13096 = vmatprep.subr.bf16.mxu0 %v18979_v7  ;;  %v19015_v6 = vld [vmem:[#allocation4 + $0x1724] ss:$8 sps:$4 sm:$0xff]   ;;  %v1072_v7 = vpack.c.bf16 %v884_v0, %v860_v60  ;;  %v2777_v60 = vrot.slane %v16210_v55, 2 }
 0x204   : > { %11783 = vmatpush1.bf16.msra.mxu1 %v18974_v8  ;;  %v2753_v8 = vrot.slane %v16194_v1, 2  ;;  %v19028_v1 = vld [vmem:[#allocation4 + $0x550] ss:$8 sps:$4 sm:$0xff]  }
 0x205   : > { %13097 = vmatpush1.bf16.msra.mxu0 %v18977_v9  ;;  %11784 = vmatprep.subr.bf16.mxu1 %v18982_v10  ;;  %v19010_v9 = vld [vmem:[#allocation4 + $0x520] ss:$8 sps:$4 sm:$0xff]  }
 0x206   : > { %13098 = vmatprep.subr.bf16.mxu0 %v18985_v11  ;;  %v19013_v10 = vld [vmem:[#allocation4 + $0x1720] ss:$8 sps:$4 sm:$0xff]   ;;  %v2730_v11 = vsel %vm1383_vm1, %v2728_v2, %v2729_v3  ;;  %v2754_v17 = vsel %vm1383_vm1, %v2752_v4, %v2753_v8  ;;  %v19031_v2 = vld [vmem:[#allocation4 + $0x1750] ss:$8 sps:$4 sm:$0xff]   ;;  %v2778_v3 = vsel %vm1383_vm1, %v2776_v59, %v2777_v60  ;;  %v19054_v59 = vld [vmem:[#allocation4 + $0x594] ss:$8 sps:$4 sm:$0xff]  }
 0x207   : > { %v2934_v22 = vpack.c.bf16 %v2754_v17, %v2730_v11  ;;  %v614_v4 = vld [vmem:[%s20819_s25 + $0x200] sm:$0xfe]  ;;  %v19057_v60 = vld [vmem:[#allocation4 + $0x1794] ss:$8 sps:$4 sm:$0xff]  }
 0x208   : > { %11785 = vmatpush1.bf16.msra.mxu1 %v18980_v12  ;;  %v582_v12 = vld [vmem:[%s20819_s25 + $0x100] sm:$0xfe]  ;;  %v903_v11 = vrot.slane %v614_v4, 1 }
 0x209   : > { %13099 = vmatpush1.bf16.msra.mxu0 %v18983_v13  ;;  %11786 = vmatprep.subr.bf16.mxu1 %v18988_v18  ;;  %v590_v13 = vld [vmem:[%s20819_s25 + $0x140] sm:$0x1] }
 0x20a   : > { %13100 = vmatprep.subr.bf16.mxu0 %v18991_v19  ;;  %v606_v18 = vld [vmem:[%s20819_s25 + $0x1c0] sm:$0x1]  ;;  %v855_v19 = vrot.slane %v582_v12, 1  ;;  %v856_v20 = vrot.slane %v590_v13, 1 }
 0x20b   : > { %v880_v23 = vrot.slane %v606_v18, 1  ;;  %v16209_v17 = vld [vmem:[%s20819_s25 + $0x2e0] sm:$0x3] }
 0x20c   : > { %11787 = vmatpush1.bf16.msra.mxu1 %v18986_v24  ;;  %v16169_v24 = vld [vmem:[%s20819_s25 + $0x1a0] sm:$0xfc] }
 0x20d   : > { %13101 = vmatpush1.bf16.msra.mxu0 %v18989_v25  ;;  %11788 = vmatprep.subr.bf16.mxu1 %v18994_v26  ;;  %v16177_v25 = vld [vmem:[%s20819_s25 + $0x1e0] sm:$0x3]  ;;  %v857_v26 = vsel %vm806_vm0, %v855_v19, %v856_v20  ;;  %v2725_v29 = vrot.slane %v16169_v24, 2  ;;  %v881_v33 = vsel %vm806_vm0, %v879_v21, %v880_v23  ;;  %v16217_v19 = vld [vmem:[%s20819_s25 + $0x320] sm:$0xfc] }
 0x20e   : > { %13102 = vmatprep.subr.bf16.mxu0 %v18997_v35  ;;  %v2726_v30 = vrot.slane %v16177_v25, 2  ;;  %v2750_v35 = vrot.slane %v16193_v28, 2  ;;  %v16225_v20 = vld [vmem:[%s20819_s25 + $0x360] sm:$0x3]  ;;  %v2797_v25 = vrot.slane %v16217_v19, 2 }
 0x20f   : > { %v19034_v23 = vld [vmem:[#allocation4 + $0x560] ss:$8 sps:$4 sm:$0xff]  }
 0x210   : > { %11789 = vmatpush1.bf16.msra.mxu1 %v18992_v36  ;;  %v19024_v36 = vld [vmem:[#allocation4 + $0x544] ss:$8 sps:$4 sm:$0xff]   ;;  %v2727_v38 = vsel %vm1383_vm1, %v2725_v29, %v2726_v30  ;;  %v2751_v40 = vsel %vm1383_vm1, %v2749_v34, %v2750_v35  ;;  %v19042_v30 = vld [vmem:[#allocation4 + $0x574] ss:$8 sps:$4 sm:$0xff]   ;;  %v655_v35 = vld [vmem:[%s20819_s25 + $0x348] sm:$0x1] }
 0x211   : > { %13103 = vmatpush1.bf16.msra.mxu0 %v18995_v37  ;;  %11831 = vmatprep.subr.bf16.mxu1 %v19000_v39  ;;  %v1071_v37 = vpack.c.bf16 %v881_v33, %v857_v26  ;;  %v19027_v39 = vld [vmem:[#allocation4 + $0x1744] ss:$8 sps:$4 sm:$0xff]   ;;  %v2798_v26 = vrot.slane %v16225_v20, 2 }
 0x212   : > { %13145 = vmatprep.subr.bf16.mxu0 %v19003_v43  ;;  %v2933_v43 = vpack.c.bf16 %v2751_v40, %v2727_v38  ;;  %v647_v33 = vld [vmem:[%s20819_s25 + $0x308] sm:$0xfe]  ;;  %v19040_v38 = vld [vmem:[#allocation4 + $0x570] ss:$8 sps:$4 sm:$0xff]  }
 0x213   : > { %11791 = vmatmul.mubr.bf16.vlgmr.msra.gmra.mrb[0].mxu1 %v1063_v46  ;;  %v906_v46 = vrot.slane %v615_v41, 1  ;;  %v954_v40 = vrot.slane %v647_v33, 1  ;;  %v955_v41 = vrot.slane %v655_v35, 1  ;;  %v19060_v20 = vld [vmem:[#allocation4 + $0x5a4] ss:$8 sps:$4 sm:$0xff]  }
 0x214   : > { %13105 = vmatmul.mubr.bf16.vlgmr.msra.gmra.mrb[0].mxu0 %v2925_v47  ;;  %11832 = vmatpush1.bf16.msra.mxu1 %v18998_v44  ;;  %v631_v44 = vld [vmem:[%s20819_s25 + $0x288] sm:$0xfe]  ;;  %v907_v47 = vrot.slane %v623_v42, 1  ;;  %v19066_v35 = vld [vmem:[#allocation4 + $0x5b4] ss:$8 sps:$4 sm:$0xff]  }
 0x215   : > { %13146 = vmatpush1.bf16.msra.mxu0 %v19001_v45  ;;  %11833 = vmatprep.subr.bf16.mxu1 %v19006_v48  ;;  %v639_v45 = vld [vmem:[%s20819_s25 + $0x2c8] sm:$0x1]  ;;  %v930_v50 = vrot.slane %v631_v44, 1  ;;  %v19048_v44 = vld [vmem:[#allocation4 + $0x584] ss:$8 sps:$4 sm:$0xff]  }
 0x216   : > { %13147 = vmatprep.subr.bf16.mxu0 %v19009_v49  ;;  %11800 = vmatprep.mubr.bf16.mxu1 %v1072_v7  ;;  %v19022_v48 = vld [vmem:[#allocation4 + $0x540] ss:$8 sps:$4 sm:$0xff]   ;;  %v931_v51 = vrot.slane %v639_v45, 1  ;;  %v908_v53 = vsel %vm806_vm0, %v906_v46, %v907_v47  ;;  %v19039_v7 = vld [vmem:[#allocation4 + $0x1764] ss:$8 sps:$4 sm:$0xff]   ;;  %v956_v47 = vsel %vm806_vm0, %v954_v40, %v955_v41 }
 0x217   : > { %13114 = vmatprep.mubr.bf16.mxu0 %v2934_v22  ;;  %v19025_v49 = vld [vmem:[#allocation4 + $0x1740] ss:$8 sps:$4 sm:$0xff]   ;;  %v2774_v22 = vrot.slane %v16209_v17, 2  ;;  %v19051_v45 = vld [vmem:[#allocation4 + $0x1784] ss:$8 sps:$4 sm:$0xff]  }
 0x218   : > { %11834 = vmatpush1.bf16.msra.mxu1 %v19004_v57  ;;  %v932_v56 = vsel %vm806_vm0, %v930_v50, %v931_v51  ;;  %v16218_v57 = vld [vmem:[%s20819_s25 + $0x328] sm:$0xfc]  ;;  %v16258_v51 = vld [vmem:[%s20819_s25 + $0x468] sm:$0x3]  ;;  %v16148_v40 = vld [vmem:[%s20819_s25 + $0xf8] sm:$0x3] }
 0x219   : > { %13148 = vmatpush1.bf16.msra.mxu0 %v19007_v58  ;;  %11835 = vmatprep.subr.bf16.mxu1 %v19012_v5  ;;  %v16226_v58 = vld [vmem:[%s20819_s25 + $0x368] sm:$0x3]  ;;  %v1080_v62 = vpack.c.bf16 %v932_v56, %v908_v53  ;;  %v2800_v63 = vrot.slane %v16218_v57, 2  ;;  %v622_v5 = vld [vmem:[%s20819_s25 + $0x240] sm:$0x1] }
 0x21a   : > { %13149 = vmatprep.subr.bf16.mxu0 %v19015_v6  ;;  %v2801_v0 = vrot.slane %v16226_v58, 2  ;;  %v19036_v6 = vld [vmem:[#allocation4 + $0x564] ss:$8 sps:$4 sm:$0xff]   ;;  %v904_v12 = vrot.slane %v622_v5, 1  ;;  %v19046_v56 = vld [vmem:[#allocation4 + $0x580] ss:$8 sps:$4 sm:$0xff]  }
 0x21b   : > { %11801 = vmatmul.mubr.bf16.gmra.mrb[4].mxu1 %v1071_v37  ;;  %v671_v37 = vld [vmem:[%s20819_s25 + $0x3c8] sm:$0x1]  ;;  %v16234_v46 = vld [vmem:[%s20819_s25 + $0x3a8] sm:$0xfc]  ;;  %v2849_v58 = vrot.slane %v16258_v51, 2 }
 0x21c   : > { %11836 = vmatpush1.bf16.msra.mxu1 %v19010_v9  ;;  %13115 = vmatmul.mubr.bf16.gmra.mrb[4].mxu0 %v2933_v43  ;;  %v2802_v8 = vsel %vm1383_vm1, %v2800_v63, %v2801_v0  ;;  %v630_v9 = vld [vmem:[%s20819_s25 + $0x280] sm:$0xfe]  ;;  %v905_v18 = vsel %vm806_vm0, %v903_v11, %v904_v12  ;;  %v979_v43 = vrot.slane %v671_v37, 1  ;;  %v16250_v50 = vld [vmem:[%s20819_s25 + $0x428] sm:$0xfc]  ;;  %v2824_v53 = vrot.slane %v16234_v46, 2 }
 0x21d   : > { %13150 = vmatpush1.bf16.msra.mxu0 %v19013_v10  ;;  %11837 = vmatprep.subr.bf16.mxu1 %v19018_v15  ;;  %v638_v10 = vld [vmem:[%s20819_s25 + $0x2c0] sm:$0x1]  ;;  %v2942_v13 = vpack.c.bf16 %v2802_v8, %v2778_v3  ;;  %v927_v14 = vrot.slane %v630_v9, 1  ;;  %v2848_v55 = vrot.slane %v16250_v50, 2  ;;  %v662_v0 = vld [vmem:[%s20819_s25 + $0x380] sm:$0xfe] }
 0x21e   : > { %13151 = vmatprep.subr.bf16.mxu0 %v19021_v16  ;;  %11810 = vmatprep.mubr.bf16.mxu1 %v1080_v62  ;;  %v928_v15 = vrot.slane %v638_v10, 1  ;;  %v16201_v16 = vld [vmem:[%s20819_s25 + $0x2a0] sm:$0xfc]  ;;  %v654_v63 = vld [vmem:[%s20819_s25 + $0x340] sm:$0x1]  ;;  %v975_v5 = vrot.slane %v662_v0, 1 }
 0x21f   : > { %v2773_v21 = vrot.slane %v16201_v16, 2  ;;  %13124 = vmatprep.mubr.bf16.mxu0 %v2942_v13  ;;  %v19049_v57 = vld [vmem:[#allocation4 + $0x1780] ss:$8 sps:$4 sm:$0xff]   ;;  %v952_v4 = vrot.slane %v654_v63, 1  ;;  %v19055_v16 = vld [vmem:[#allocation4 + $0x1790] ss:$8 sps:$4 sm:$0xff]  }
 0x220   : > { %11838 = vmatpush1.bf16.msra.mxu1 %v19016_v31  ;;  %v929_v24 = vsel %vm806_vm0, %v927_v14, %v928_v15  ;;  %v19045_v31 = vld [vmem:[#allocation4 + $0x1774] ss:$8 sps:$4 sm:$0xff]   ;;  %v646_v62 = vld [vmem:[%s20819_s25 + $0x300] sm:$0xfe]  ;;  %v19052_v15 = vld [vmem:[#allocation4 + $0x590] ss:$8 sps:$4 sm:$0xff]  }
 0x221   : > { %13152 = vmatpush1.bf16.msra.mxu0 %v19019_v32  ;;  %11839 = vmatprep.subr.bf16.mxu1 %v19024_v36  ;;  %v1079_v28 = vpack.c.bf16 %v929_v24, %v905_v18  ;;  %v2775_v29 = vsel %vm1383_vm1, %v2773_v21, %v2774_v22  ;;  %v2799_v32 = vsel %vm1383_vm1, %v2797_v25, %v2798_v26  ;;  %v663_v36 = vld [vmem:[%s20819_s25 + $0x388] sm:$0xfe]  ;;  %v951_v3 = vrot.slane %v646_v62, 1  ;;  %v16233_v8 = vld [vmem:[%s20819_s25 + $0x3a0] sm:$0xfc] }
 0x222   : > { %13153 = vmatprep.subr.bf16.mxu0 %v19027_v39  ;;  %v2941_v34 = vpack.c.bf16 %v2799_v32, %v2775_v29  ;;  %v19043_v39 = vld [vmem:[#allocation4 + $0x1770] ss:$8 sps:$4 sm:$0xff]   ;;  %v978_v42 = vrot.slane %v663_v36, 1  ;;  %v16241_v9 = vld [vmem:[%s20819_s25 + $0x3e0] sm:$0x3]  ;;  %v2821_v13 = vrot.slane %v16233_v8, 2 }
 0x223   : > { %11811 = vmatmul.mubr.bf16.gmra.mrb[8].mxu1 %v1079_v28  ;;  %v953_v10 = vsel %vm806_vm0, %v951_v3, %v952_v4  ;;  %v16249_v11 = vld [vmem:[%s20819_s25 + $0x420] sm:$0xfc]  ;;  %v16257_v12 = vld [vmem:[%s20819_s25 + $0x460] sm:$0x3]  ;;  %v2822_v14 = vrot.slane %v16241_v9, 2 }
 0x224   : > { %11840 = vmatpush1.bf16.msra.mxu1 %v19022_v48  ;;  %13125 = vmatmul.mubr.bf16.gmra.mrb[8].mxu0 %v2941_v34  ;;  %v980_v48 = vsel %vm806_vm0, %v978_v42, %v979_v43  ;;  %v2845_v18 = vrot.slane %v16249_v11, 2  ;;  %v2846_v19 = vrot.slane %v16257_v12, 2  ;;  %v19063_v21 = vld [vmem:[#allocation4 + $0x17a4] ss:$8 sps:$4 sm:$0xff]   ;;  %v553_v24 = vld [vmem:[%s20819_s25 + $0x18] sm:$0xfe] }
 0x225   : > { %13154 = vmatpush1.bf16.msra.mxu0 %v19025_v49  ;;  %11841 = vmatprep.subr.bf16.mxu1 %v19030_v52  ;;  %v16242_v49 = vld [vmem:[%s20819_s25 + $0x3e8] sm:$0x3]  ;;  %v1088_v52 = vpack.c.bf16 %v980_v48, %v956_v47  ;;  %v561_v26 = vld [vmem:[%s20819_s25 + $0x58] sm:$0x1]  ;;  %v816_v32 = vrot.slane %v553_v24, 1 }
 0x226   : > { %13155 = vmatprep.subr.bf16.mxu0 %v19033_v61  ;;  %v2825_v54 = vrot.slane %v16242_v49, 2  ;;  %v2847_v25 = vsel %vm1383_vm1, %v2845_v18, %v2846_v19  ;;  %v577_v28 = vld [vmem:[%s20819_s25 + $0xd8] sm:$0x1]  ;;  %v19058_v29 = vld [vmem:[#allocation4 + $0x5a0] ss:$8 sps:$4 sm:$0xff]   ;;  %v817_v33 = vrot.slane %v561_v26, 1 }
 0x227   : > { %11820 = vmatprep.mubr.bf16.mxu1 %v1088_v52  ;;  %v19069_v36 = vld [vmem:[#allocation4 + $0x17b4] ss:$8 sps:$4 sm:$0xff]   ;;  %v841_v37 = vrot.slane %v577_v28, 1  ;;  %v16164_v43 = vld [vmem:[%s20819_s25 + $0x178] sm:$0x3] }
 0x228   : > { %11842 = vmatpush1.bf16.msra.mxu1 %v19028_v1  ;;  %v2826_v61 = vsel %vm1383_vm1, %v2824_v53, %v2825_v54  ;;  %v2850_v1 = vsel %vm1383_vm1, %v2848_v55, %v2849_v58  ;;  %v16156_v41 = vld [vmem:[%s20819_s25 + $0x138] sm:$0xfc]  ;;  %v2711_v48 = vrot.slane %v16164_v43, 2  ;;  %v19072_v53 = vld [vmem:[#allocation4 + $0x5c4] ss:$8 sps:$4 sm:$0xff]  }
 0x229   : > { %13156 = vmatpush1.bf16.msra.mxu0 %v19031_v2  ;;  %11843 = vmatprep.subr.bf16.mxu1 %v19036_v6  ;;  %v670_v2 = vld [vmem:[%s20819_s25 + $0x3c0] sm:$0x1]  ;;  %v2950_v6 = vpack.c.bf16 %v2850_v1, %v2826_v61  ;;  %v2710_v46 = vrot.slane %v16156_v41, 2  ;;  %v19064_v50 = vld [vmem:[#allocation4 + $0x5b0] ss:$8 sps:$4 sm:$0xff]  }
 0x22a   : > { %13157 = vmatprep.subr.bf16.mxu0 %v19039_v7  ;;  %v976_v7 = vrot.slane %v670_v2, 1  ;;  %v19067_v51 = vld [vmem:[#allocation4 + $0x17b0] ss:$8 sps:$4 sm:$0xff]   ;;  %v19075_v54 = vld [vmem:[#allocation4 + $0x17c4] ss:$8 sps:$4 sm:$0xff]  }
 0x22b   : > { %13134 = vmatprep.mubr.bf16.mxu0 %v2950_v6  ;;  %v2712_v52 = vsel %vm1383_vm1, %v2710_v46, %v2711_v48  ;;  %v19078_v58 = vld [vmem:[#allocation4 + $0x5d4] ss:$8 sps:$4 sm:$0xff]   ;;  %v19079_v61 = vld [vmem:[#allocation4 + $0x17d0] ss:$8 sps:$4 sm:$0xff]   ;;  %v19084_v1 = vld [vmem:[#allocation4 + $0x5e4] ss:$8 sps:$4 sm:$0xff]  }
 0x22c   : > { %11844 = vmatpush1.bf16.msra.mxu1 %v19034_v23  ;;  %v977_v17 = vsel %vm806_vm0, %v975_v5, %v976_v7  ;;  %v2823_v23 = vsel %vm1383_vm1, %v2821_v13, %v2822_v14  ;;  %v552_v62 = vld [vmem:[%s20819_s25 + $0x10] sm:$0xfe]  ;;  %v560_v63 = vld [vmem:[%s20819_s25 + $0x50] sm:$0x1]  ;;  %v19087_v2 = vld [vmem:[#allocation4 + $0x17e4] ss:$8 sps:$4 sm:$0xff]  }
 0x22d   : > { %13158 = vmatpush1.bf16.msra.mxu0 %v19037_v27  ;;  %11845 = vmatprep.subr.bf16.mxu1 %v19042_v30  ;;  %v1087_v22 = vpack.c.bf16 %v977_v17, %v953_v10  ;;  %v569_v27 = vld [vmem:[%s20819_s25 + $0x98] sm:$0xfe]  ;;  %v19061_v30 = vld [vmem:[#allocation4 + $0x17a0] ss:$8 sps:$4 sm:$0xff]   ;;  %v568_v0 = vld [vmem:[%s20819_s25 + $0x90] sm:$0xfe] }
 0x22e   : > { %13159 = vmatprep.subr.bf16.mxu0 %v19045_v31  ;;  %v2949_v31 = vpack.c.bf16 %v2847_v25, %v2823_v23  ;;  %v840_v34 = vrot.slane %v569_v27, 1  ;;  %v576_v3 = vld [vmem:[%s20819_s25 + $0xd0] sm:$0x1]  ;;  %v16139_v4 = vld [vmem:[%s20819_s25 + $0xb0] sm:$0xfc]  ;;  %v813_v10 = vrot.slane %v552_v62, 1 }
 0x22f   : > { %11821 = vmatmul.mubr.bf16.gmra.mrb[12].mxu1 %v1087_v22  ;;  %v16147_v5 = vld [vmem:[%s20819_s25 + $0xf0] sm:$0x3]  ;;  %v16155_v6 = vld [vmem:[%s20819_s25 + $0x130] sm:$0xfc]  ;;  %v19082_v8 = vld [vmem:[#allocation4 + $0x5e0] ss:$8 sps:$4 sm:$0xff]  }
 0x230   : > { %11846 = vmatpush1.bf16.msra.mxu1 %v19040_v38  ;;  %v818_v38 = vsel %vm806_vm0, %v816_v32, %v817_v33  ;;  %v842_v42 = vsel %vm806_vm0, %v840_v34, %v841_v37  ;;  %13135 = vmatmul.mubr.bf16.gmra.mrb[12].mxu0 %v2949_v31  ;;  %v16163_v7 = vld [vmem:[%s20819_s25 + $0x170] sm:$0x3]  ;;  %v19085_v9 = vld [vmem:[#allocation4 + $0x17e0] ss:$8 sps:$4 sm:$0xff]   ;;  %v814_v11 = vrot.slane %v560_v63, 1  ;;  %v837_v12 = vrot.slane %v568_v0, 1 }
 0x231   : > { %13160 = vmatpush1.bf16.msra.mxu0 %v19043_v39  ;;  %11847 = vmatprep.subr.bf16.mxu1 %v19048_v44  ;;  %v16140_v39 = vld [vmem:[%s20819_s25 + $0xb8] sm:$0xfc]  ;;  %v1066_v47 = vpack.c.bf16 %v842_v42, %v818_v38  ;;  %v838_v13 = vrot.slane %v576_v3, 1  ;;  %v2683_v14 = vrot.slane %v16139_v4, 2  ;;  %v2708_v17 = vrot.slane %v16163_v7, 2 }
 0x232   : > { %13161 = vmatprep.subr.bf16.mxu0 %v19051_v45  ;;  %v2686_v44 = vrot.slane %v16140_v39, 2  ;;  %v2687_v45 = vrot.slane %v16148_v40, 2  ;;  %v19090_v18 = vld [vmem:[#allocation4 + $0x5f4] ss:$8 sps:$4 sm:$0xff]   ;;  %v19091_v22 = vld [vmem:[#allocation4 + $0x17f0] ss:$8 sps:$4 sm:$0xff]  }
 0x233   : > { %11863 = vmatprep.mubr.bf16.mxu1 %v1066_v47  ;;  %v19093_v19 = vld [vmem:[#allocation4 + $0x17f4] ss:$8 sps:$4 sm:$0xff]   ;;  %v839_v23 = vsel %vm806_vm0, %v837_v12, %v838_v13  ;;  %v19096_v26 = vld [vmem:[#allocation4 + $0x604] ss:$8 sps:$4 sm:$0xff]   ;;  %v19097_v31 = vld [vmem:[#allocation4 + $0x1800] ss:$8 sps:$4 sm:$0xff]  }
 0x234   : > { %11848 = vmatpush1.bf16.msra.mxu1 %v19046_v56  ;;  %v2688_v49 = vsel %vm1383_vm1, %v2686_v44, %v2687_v45  ;;  %v19070_v56 = vld [vmem:[#allocation4 + $0x5c0] ss:$8 sps:$4 sm:$0xff]   ;;  %v19099_v27 = vld [vmem:[#allocation4 + $0x1804] ss:$8 sps:$4 sm:$0xff]   ;;  %v19102_v32 = vld [vmem:[#allocation4 + $0x614] ss:$8 sps:$4 sm:$0xff]  }
 0x235   : > { %13162 = vmatpush1.bf16.msra.mxu0 %v19049_v57  ;;  %11849 = vmatprep.subr.bf16.mxu1 %v19054_v59  ;;  %v2928_v55 = vpack.c.bf16 %v2712_v52, %v2688_v49  ;;  %v19073_v57 = vld [vmem:[#allocation4 + $0x17c0] ss:$8 sps:$4 sm:$0xff]   ;;  %v19081_v59 = vld [vmem:[#allocation4 + $0x17d4] ss:$8 sps:$4 sm:$0xff]   ;;  %v19100_v34 = vld [vmem:[#allocation4 + $0x610] ss:$8 sps:$4 sm:$0xff]  }
 0x236   : > { %13163 = vmatprep.subr.bf16.mxu0 %v19057_v60  ;;  %v19076_v60 = vld [vmem:[#allocation4 + $0x5d0] ss:$8 sps:$4 sm:$0xff]   ;;  %v19105_v33 = vld [vmem:[#allocation4 + $0x1814] ss:$8 sps:$4 sm:$0xff]   ;;  %v19111_v37 = vld [vmem:[#allocation4 + $0x1824] ss:$8 sps:$4 sm:$0xff]  }
 0x237   : > { %13177 = vmatprep.mubr.bf16.mxu0 %v2928_v55  ;;  %v19106_v38 = vld [vmem:[#allocation4 + $0x620] ss:$8 sps:$4 sm:$0xff]   ;;  %v585_v40 = vld [vmem:[%s20819_s25 + $0x118] sm:$0xfe]  ;;  %v593_v41 = vld [vmem:[%s20819_s25 + $0x158] sm:$0x1] }
 0x238   : > { %11850 = vmatpush1.bf16.msra.mxu1 %v19052_v15  ;;  %v2684_v15 = vrot.slane %v16147_v5, 2  ;;  %v19109_v39 = vld [vmem:[#allocation4 + $0x1820] ss:$8 sps:$4 sm:$0xff]   ;;  %v601_v42 = vld [vmem:[%s20819_s25 + $0x198] sm:$0xfe]  ;;  %v864_v44 = vrot.slane %v585_v40, 1 }
 0x239   : > { %13164 = vmatpush1.bf16.msra.mxu0 %v19055_v16  ;;  %11851 = vmatprep.subr.bf16.mxu1 %v19060_v20  ;;  %v2707_v16 = vrot.slane %v16155_v6, 2  ;;  %v815_v20 = vsel %vm806_vm0, %v813_v10, %v814_v11  ;;  %v609_v43 = vld [vmem:[%s20819_s25 + $0x1d8] sm:$0x1]  ;;  %v865_v45 = vrot.slane %v593_v41, 1  ;;  %v888_v46 = vrot.slane %v601_v42, 1 }
 0x23a   : > { %13165 = vmatprep.subr.bf16.mxu0 %v19063_v21  ;;  %v19088_v21 = vld [vmem:[#allocation4 + $0x5f0] ss:$8 sps:$4 sm:$0xff]   ;;  %v2685_v24 = vsel %vm1383_vm1, %v2683_v14, %v2684_v15  ;;  %v1065_v28 = vpack.c.bf16 %v839_v23, %v815_v20  ;;  %v19114_v47 = vld [vmem:[#allocation4 + $0x634] ss:$8 sps:$4 sm:$0xff]   ;;  %v889_v49 = vrot.slane %v609_v43, 1 }
 0x23b   : > { %v2709_v25 = vsel %vm1383_vm1, %v2707_v16, %v2708_v17  ;;  %v19117_v48 = vld [vmem:[#allocation4 + $0x1834] ss:$8 sps:$4 sm:$0xff]   ;;  %v16180_v52 = vld [vmem:[%s20819_s25 + $0x1f8] sm:$0x3]  ;;  %v19123_v62 = vld [vmem:[#allocation4 + $0x1844] ss:$8 sps:$4 sm:$0xff]  }
 0x23c   : > { %11852 = vmatpush1.bf16.msra.mxu1 %v19058_v29  ;;  %v2927_v29 = vpack.c.bf16 %v2709_v25, %v2685_v24  ;;  %v19115_v55 = vld [vmem:[#allocation4 + $0x1830] ss:$8 sps:$4 sm:$0xff]   ;;  %v19118_v10 = vld [vmem:[#allocation4 + $0x640] ss:$8 sps:$4 sm:$0xff]   ;;  %v19129_v25 = vld [vmem:[#allocation4 + $0x1854] ss:$8 sps:$4 sm:$0xff]  }
 0x23d   : > { %13166 = vmatpush1.bf16.msra.mxu0 %v19061_v30  ;;  %11853 = vmatprep.subr.bf16.mxu1 %v19066_v35  ;;  %v19094_v30 = vld [vmem:[#allocation4 + $0x600] ss:$8 sps:$4 sm:$0xff]   ;;  %v19103_v35 = vld [vmem:[#allocation4 + $0x1810] ss:$8 sps:$4 sm:$0xff]   ;;  %v19135_v41 = vld [vmem:[#allocation4 + $0x1864] ss:$8 sps:$4 sm:$0xff]  }
 0x23e   : > { %13167 = vmatprep.subr.bf16.mxu0 %v19069_v36  ;;  %v19108_v36 = vld [vmem:[#allocation4 + $0x624] ss:$8 sps:$4 sm:$0xff]   ;;  %v592_v3 = vld [vmem:[%s20819_s25 + $0x150] sm:$0x1]  ;;  %v600_v4 = vld [vmem:[%s20819_s25 + $0x190] sm:$0xfe] }
 0x23f   : > { %v608_v6 = vld [vmem:[%s20819_s25 + $0x1d0] sm:$0x1]  ;;  %v16171_v13 = vld [vmem:[%s20819_s25 + $0x1b0] sm:$0xfc]  ;;  %v19121_v20 = vld [vmem:[#allocation4 + $0x1840] ss:$8 sps:$4 sm:$0xff]  }
 0x240   : > { %11854 = vmatpush1.bf16.msra.mxu1 %v19064_v50  ;;  %v866_v50 = vsel %vm806_vm0, %v864_v44, %v865_v45  ;;  %v886_v12 = vrot.slane %v608_v6, 1  ;;  %v16179_v14 = vld [vmem:[%s20819_s25 + $0x1f0] sm:$0x3]  ;;  %v16187_v16 = vld [vmem:[%s20819_s25 + $0x230] sm:$0xfc] }
 0x241   : > { %13168 = vmatpush1.bf16.msra.mxu0 %v19067_v51  ;;  %11855 = vmatprep.subr.bf16.mxu1 %v19072_v53  ;;  %v16172_v51 = vld [vmem:[%s20819_s25 + $0x1b8] sm:$0xfc]  ;;  %v16195_v17 = vld [vmem:[%s20819_s25 + $0x270] sm:$0x3]  ;;  %v2755_v23 = vrot.slane %v16187_v16, 2 }
 0x242   : > { %13169 = vmatprep.subr.bf16.mxu0 %v19075_v54  ;;  %v16188_v53 = vld [vmem:[%s20819_s25 + $0x238] sm:$0xfc]  ;;  %v2756_v24 = vrot.slane %v16195_v17, 2  ;;  %v16212_v44 = vld [vmem:[%s20819_s25 + $0x2f8] sm:$0x3] }
 0x243   : > { %v19112_v54 = vld [vmem:[#allocation4 + $0x630] ss:$8 sps:$4 sm:$0xff]   ;;  %v19130_v45 = vld [vmem:[#allocation4 + $0x660] ss:$8 sps:$4 sm:$0xff]   ;;  %v19147_v17 = vld [vmem:[#allocation4 + $0x1884] ss:$8 sps:$4 sm:$0xff]  }
 0x244   : > { %11856 = vmatpush1.bf16.msra.mxu1 %v19070_v56  ;;  %v890_v56 = vsel %vm806_vm0, %v888_v46, %v889_v49  ;;  %v16204_v43 = vld [vmem:[%s20819_s25 + $0x2b8] sm:$0xfc]  ;;  %v19133_v46 = vld [vmem:[#allocation4 + $0x1860] ss:$8 sps:$4 sm:$0xff]   ;;  %v16228_v49 = vld [vmem:[%s20819_s25 + $0x378] sm:$0x3] }
 0x245   : > { %13170 = vmatpush1.bf16.msra.mxu0 %v19073_v57  ;;  %11857 = vmatprep.subr.bf16.mxu1 %v19078_v58  ;;  %v16196_v57 = vld [vmem:[%s20819_s25 + $0x278] sm:$0x3]  ;;  %v2734_v58 = vrot.slane %v16172_v51, 2  ;;  %v1074_v63 = vpack.c.bf16 %v890_v56, %v866_v50  ;;  %v2782_v50 = vrot.slane %v16204_v43, 2  ;;  %v2783_v51 = vrot.slane %v16212_v44, 2 }
 0x246   : > { %13171 = vmatprep.subr.bf16.mxu0 %v19081_v59  ;;  %v2735_v59 = vrot.slane %v16180_v52, 2  ;;  %v2759_v0 = vrot.slane %v16196_v57, 2  ;;  %v19138_v52 = vld [vmem:[#allocation4 + $0x674] ss:$8 sps:$4 sm:$0xff]  }
 0x247   : > { %v19141_v56 = vld [vmem:[#allocation4 + $0x1874] ss:$8 sps:$4 sm:$0xff]   ;;  %v2784_v57 = vsel %vm1383_vm1, %v2782_v50, %v2783_v51  ;;  %v656_v51 = vld [vmem:[%s20819_s25 + $0x350] sm:$0x1] }
 0x248   : > { %11858 = vmatpush1.bf16.msra.mxu1 %v19076_v60  ;;  %v2758_v60 = vrot.slane %v16188_v53, 2  ;;  %v16203_v6 = vld [vmem:[%s20819_s25 + $0x2b0] sm:$0xfc] }
 0x249   : > { %13172 = vmatpush1.bf16.msra.mxu0 %v19079_v61  ;;  %11859 = vmatprep.subr.bf16.mxu1 %v19084_v1  ;;  %v19120_v61 = vld [vmem:[#allocation4 + $0x644] ss:$8 sps:$4 sm:$0xff]   ;;  %v2736_v1 = vsel %vm1383_vm1, %v2734_v58, %v2735_v59  ;;  %v616_v58 = vld [vmem:[%s20819_s25 + $0x210] sm:$0xfe]  ;;  %v624_v59 = vld [vmem:[%s20819_s25 + $0x250] sm:$0x1] }
 0x24a   : > { %13173 = vmatprep.subr.bf16.mxu0 %v19087_v2  ;;  %v584_v2 = vld [vmem:[%s20819_s25 + $0x110] sm:$0xfe]  ;;  %v2760_v5 = vsel %vm1383_vm1, %v2758_v60, %v2759_v0  ;;  %v910_v0 = vrot.slane %v624_v59, 1 }
 0x24b   : > { %v861_v7 = vrot.slane %v584_v2, 1  ;;  %v2936_v11 = vpack.c.bf16 %v2760_v5, %v2736_v1  ;;  %v19136_v1 = vld [vmem:[#allocation4 + $0x670] ss:$8 sps:$4 sm:$0xff]  }
 0x24c   : > { %11860 = vmatpush1.bf16.msra.mxu1 %v19082_v8  ;;  %v862_v8 = vrot.slane %v592_v3, 1  ;;  %v19139_v2 = vld [vmem:[#allocation4 + $0x1870] ss:$8 sps:$4 sm:$0xff]  }
 0x24d   : > { %13174 = vmatpush1.bf16.msra.mxu0 %v19085_v9  ;;  %11861 = vmatprep.subr.bf16.mxu1 %v19090_v18  ;;  %v885_v9 = vrot.slane %v600_v4, 1  ;;  %v2731_v18 = vrot.slane %v16171_v13, 2  ;;  %v19144_v13 = vld [vmem:[#allocation4 + $0x684] ss:$8 sps:$4 sm:$0xff]   ;;  %v648_v50 = vld [vmem:[%s20819_s25 + $0x310] sm:$0xfe] }
 0x24e   : > { %13175 = vmatprep.subr.bf16.mxu0 %v19093_v19  ;;  %v863_v15 = vsel %vm806_vm0, %v861_v7, %v862_v8  ;;  %v2732_v19 = vrot.slane %v16179_v14, 2  ;;  %v16211_v7 = vld [vmem:[%s20819_s25 + $0x2f0] sm:$0x3] }
 0x250   : > { %11862 = vmatpush1.bf16.msra.mxu1 %v19088_v21  ;;  %v19126_v21 = vld [vmem:[#allocation4 + $0x654] ss:$8 sps:$4 sm:$0xff]  }
 0x251   : > { %13176 = vmatpush1.bf16.msra.mxu0 %v19091_v22  ;;  %11904 = vmatprep.subr.bf16.mxu1 %v19096_v26  ;;  %v887_v22 = vsel %vm806_vm0, %v885_v9, %v886_v12  ;;  %v16219_v9 = vld [vmem:[%s20819_s25 + $0x330] sm:$0xfc]  ;;  %v2780_v12 = vrot.slane %v16211_v7, 2 }
 0x252   : > { %13218 = vmatprep.subr.bf16.mxu0 %v19099_v27  ;;  %v1073_v26 = vpack.c.bf16 %v887_v22, %v863_v15  ;;  %v2733_v27 = vsel %vm1383_vm1, %v2731_v18, %v2732_v19  ;;  %v2803_v15 = vrot.slane %v16219_v9, 2 }
 0x253   : > { %11864 = vmatmul.mubr.bf16.vlgmr.msra.gmra.mrb[0].mxu1 %v1065_v28  ;;  %v19124_v28 = vld [vmem:[#allocation4 + $0x650] ss:$8 sps:$4 sm:$0xff]  }
 0x254   : > { %13178 = vmatmul.mubr.bf16.vlgmr.msra.gmra.mrb[0].mxu0 %v2927_v29  ;;  %11905 = vmatpush1.bf16.msra.mxu1 %v19094_v30  ;;  %v19127_v29 = vld [vmem:[#allocation4 + $0x1850] ss:$8 sps:$4 sm:$0xff]   ;;  %v2757_v30 = vsel %vm1383_vm1, %v2755_v23, %v2756_v24 }
 0x255   : > { %13219 = vmatpush1.bf16.msra.mxu0 %v19097_v31  ;;  %11906 = vmatprep.subr.bf16.mxu1 %v19102_v32  ;;  %v617_v31 = vld [vmem:[%s20819_s25 + $0x218] sm:$0xfe]  ;;  %v625_v32 = vld [vmem:[%s20819_s25 + $0x258] sm:$0x1] }
 0x256   : > { %13220 = vmatprep.subr.bf16.mxu0 %v19105_v33  ;;  %11873 = vmatprep.mubr.bf16.mxu1 %v1074_v63  ;;  %v2935_v33 = vpack.c.bf16 %v2757_v30, %v2733_v27  ;;  %v909_v63 = vrot.slane %v616_v58, 1  ;;  %v649_v23 = vld [vmem:[%s20819_s25 + $0x318] sm:$0xfe]  ;;  %v673_v27 = vld [vmem:[%s20819_s25 + $0x3d8] sm:$0x1]  ;;  %v958_v58 = vrot.slane %v656_v51, 1 }
 0x257   : > { %13187 = vmatprep.mubr.bf16.mxu0 %v2936_v11  ;;  %v2779_v11 = vrot.slane %v16203_v6, 2  ;;  %v19165_v6 = vld [vmem:[#allocation4 + $0x18b4] ss:$8 sps:$4 sm:$0xff]  }
 0x258   : > { %11907 = vmatpush1.bf16.msra.mxu1 %v19100_v34  ;;  %v633_v34 = vld [vmem:[%s20819_s25 + $0x298] sm:$0xfe]  ;;  %v911_v8 = vsel %vm806_vm0, %v909_v63, %v910_v0  ;;  %v16243_v63 = vld [vmem:[%s20819_s25 + $0x3f0] sm:$0x3] }
 0x259   : > { %13221 = vmatpush1.bf16.msra.mxu0 %v19103_v35  ;;  %11908 = vmatprep.subr.bf16.mxu1 %v19108_v36  ;;  %v641_v35 = vld [vmem:[%s20819_s25 + $0x2d8] sm:$0x1]  ;;  %v912_v36 = vrot.slane %v617_v31, 1  ;;  %v2781_v19 = vsel %vm1383_vm1, %v2779_v11, %v2780_v12  ;;  %v985_v31 = vrot.slane %v673_v27, 1  ;;  %v16270_v27 = vld [vmem:[%s20819_s25 + $0x188] sm:$0xff] }
 0x25a   : > { %13222 = vmatprep.subr.bf16.mxu0 %v19111_v37  ;;  %v913_v37 = vrot.slane %v625_v32, 1  ;;  %v937_v40 = vrot.slane %v641_v35, 1  ;;  %v19150_v32 = vld [vmem:[#allocation4 + $0x694] ss:$8 sps:$4 sm:$0xff]   ;;  %v19148_v35 = vld [vmem:[#allocation4 + $0x690] ss:$8 sps:$4 sm:$0xff]  }
 0x25b   : > { %11874 = vmatmul.mubr.bf16.gmra.mrb[4].mxu1 %v1073_v26  ;;  %v665_v26 = vld [vmem:[%s20819_s25 + $0x398] sm:$0xfe] }
 0x25c   : > { %11909 = vmatpush1.bf16.msra.mxu1 %v19106_v38  ;;  %v19132_v38 = vld [vmem:[#allocation4 + $0x664] ss:$8 sps:$4 sm:$0xff]   ;;  %v914_v42 = vsel %vm806_vm0, %v912_v36, %v913_v37  ;;  %13188 = vmatmul.mubr.bf16.gmra.mrb[4].mxu0 %v2935_v33  ;;  %v984_v30 = vrot.slane %v665_v26, 1  ;;  %v19153_v33 = vld [vmem:[#allocation4 + $0x1894] ss:$8 sps:$4 sm:$0xff]  }
 0x25d   : > { %13223 = vmatpush1.bf16.msra.mxu0 %v19109_v39  ;;  %11910 = vmatprep.subr.bf16.mxu1 %v19114_v47  ;;  %v936_v39 = vrot.slane %v633_v34, 1  ;;  %v16236_v34 = vld [vmem:[%s20819_s25 + $0x3b8] sm:$0xfc] }
 0x25e   : > { %13224 = vmatprep.subr.bf16.mxu0 %v19117_v48  ;;  %v16220_v48 = vld [vmem:[%s20819_s25 + $0x338] sm:$0xfc]  ;;  %v2830_v43 = vrot.slane %v16236_v34, 2 }
 0x25f   : > { %v938_v47 = vsel %vm806_vm0, %v936_v39, %v937_v40  ;;  %v19151_v36 = vld [vmem:[#allocation4 + $0x1890] ss:$8 sps:$4 sm:$0xff]   ;;  %v19174_v34 = vld [vmem:[#allocation4 + $0x6d4] ss:$8 sps:$4 sm:$0xff]  }
 0x260   : > { %11911 = vmatpush1.bf16.msra.mxu1 %v19112_v54  ;;  %v1082_v53 = vpack.c.bf16 %v938_v47, %v914_v42  ;;  %v2806_v54 = vrot.slane %v16220_v48, 2  ;;  %v16244_v39 = vld [vmem:[%s20819_s25 + $0x3f8] sm:$0x3]  ;;  %v16252_v40 = vld [vmem:[%s20819_s25 + $0x438] sm:$0xfc] }
 0x261   : > { %13225 = vmatpush1.bf16.msra.mxu0 %v19115_v55  ;;  %11912 = vmatprep.subr.bf16.mxu1 %v19120_v61  ;;  %v2807_v55 = vrot.slane %v16228_v49, 2  ;;  %v632_v61 = vld [vmem:[%s20819_s25 + $0x290] sm:$0xfe]  ;;  %v2831_v44 = vrot.slane %v16244_v39, 2  ;;  %v19159_v47 = vld [vmem:[#allocation4 + $0x18a4] ss:$8 sps:$4 sm:$0xff]  }
 0x262   : > { %13226 = vmatprep.subr.bf16.mxu0 %v19123_v62  ;;  %v640_v62 = vld [vmem:[%s20819_s25 + $0x2d0] sm:$0x1]  ;;  %11883 = vmatprep.mubr.bf16.mxu1 %v1082_v53  ;;  %v933_v4 = vrot.slane %v632_v61, 1  ;;  %v19154_v53 = vld [vmem:[#allocation4 + $0x6a0] ss:$8 sps:$4 sm:$0xff]  }
 0x263   : > { %v2808_v60 = vsel %vm1383_vm1, %v2806_v54, %v2807_v55  ;;  %v934_v5 = vrot.slane %v640_v62, 1  ;;  %v2832_v49 = vsel %vm1383_vm1, %v2830_v43, %v2831_v44  ;;  %v19157_v54 = vld [vmem:[#allocation4 + $0x18a0] ss:$8 sps:$4 sm:$0xff]   ;;  %v16235_v62 = vld [vmem:[%s20819_s25 + $0x3b0] sm:$0xfc] }
 0x264   : > { %11913 = vmatpush1.bf16.msra.mxu1 %v19118_v10  ;;  %v2944_v3 = vpack.c.bf16 %v2808_v60, %v2784_v57  ;;  %v16227_v10 = vld [vmem:[%s20819_s25 + $0x370] sm:$0x3]  ;;  %v957_v57 = vrot.slane %v648_v50, 1  ;;  %v19183_v39 = vld [vmem:[#allocation4 + $0x18e4] ss:$8 sps:$4 sm:$0xff]  }
 0x265   : > { %13227 = vmatpush1.bf16.msra.mxu0 %v19121_v20  ;;  %11914 = vmatprep.subr.bf16.mxu1 %v19126_v21  ;;  %v935_v14 = vsel %vm806_vm0, %v933_v4, %v934_v5  ;;  %v2804_v16 = vrot.slane %v16227_v10, 2  ;;  %v19142_v20 = vld [vmem:[#allocation4 + $0x680] ss:$8 sps:$4 sm:$0xff]   ;;  %v2828_v4 = vrot.slane %v16243_v63, 2  ;;  %v19162_v5 = vld [vmem:[#allocation4 + $0x6b4] ss:$8 sps:$4 sm:$0xff]  }
 0x266   : > { %13228 = vmatprep.subr.bf16.mxu0 %v19129_v25  ;;  %v1081_v18 = vpack.c.bf16 %v935_v14, %v911_v8  ;;  %v19145_v21 = vld [vmem:[#allocation4 + $0x1880] ss:$8 sps:$4 sm:$0xff]   ;;  %13197 = vmatprep.mubr.bf16.mxu0 %v2944_v3  ;;  %v657_v25 = vld [vmem:[%s20819_s25 + $0x358] sm:$0x1]  ;;  %v959_v0 = vsel %vm806_vm0, %v957_v57, %v958_v58  ;;  %v2827_v3 = vrot.slane %v16235_v62, 2 }
 0x267   : > { %v2805_v22 = vsel %vm1383_vm1, %v2803_v15, %v2804_v16  ;;  %v19160_v10 = vld [vmem:[#allocation4 + $0x6b0] ss:$8 sps:$4 sm:$0xff]   ;;  %v555_v14 = vld [vmem:[%s20819_s25 + $0x28] sm:$0xfe]  ;;  %v563_v16 = vld [vmem:[%s20819_s25 + $0x68] sm:$0x1] }
 0x268   : > { %11915 = vmatpush1.bf16.msra.mxu1 %v19124_v28  ;;  %v2943_v24 = vpack.c.bf16 %v2805_v22, %v2781_v19  ;;  %v960_v28 = vrot.slane %v649_v23, 1  ;;  %v19163_v11 = vld [vmem:[#allocation4 + $0x18b0] ss:$8 sps:$4 sm:$0xff]   ;;  %v16262_v23 = vld [vmem:[%s20819_s25 + $0x108] sm:$0xff]  ;;  %v578_v43 = vld [vmem:[%s20819_s25 + $0xe0] sm:$0x1] }
 0x269   : > { %13229 = vmatpush1.bf16.msra.mxu0 %v19127_v29  ;;  %11916 = vmatprep.subr.bf16.mxu1 %v19132_v38  ;;  %v961_v29 = vrot.slane %v657_v25, 1  ;;  %v986_v38 = vsel %vm806_vm0, %v984_v30, %v985_v31  ;;  %v19171_v25 = vld [vmem:[#allocation4 + $0x18c4] ss:$8 sps:$4 sm:$0xff]   ;;  %v19166_v31 = vld [vmem:[#allocation4 + $0x6c0] ss:$8 sps:$4 sm:$0xff]  }
 0x26a   : > { %13230 = vmatprep.subr.bf16.mxu0 %v19135_v41  ;;  %11884 = vmatmul.mubr.bf16.gmra.mrb[8].mxu1 %v1081_v18  ;;  %v16260_v41 = vld [vmem:[%s20819_s25 + $0x478] sm:$0x3]  ;;  %v579_v18 = vld [vmem:[%s20819_s25 + $0xe8] sm:$0x1]  ;;  %v19186_v50 = vld [vmem:[#allocation4 + $0x6f4] ss:$8 sps:$4 sm:$0xff]  }
 0x26b   : > { %13198 = vmatmul.mubr.bf16.gmra.mrb[8].mxu0 %v2943_v24  ;;  %v962_v37 = vsel %vm806_vm0, %v960_v28, %v961_v29  ;;  %v2855_v48 = vrot.slane %v16260_v41, 2  ;;  %v19168_v24 = vld [vmem:[#allocation4 + $0x6c4] ss:$8 sps:$4 sm:$0xff]   ;;  %v847_v26 = vrot.slane %v579_v18, 1  ;;  %v3051_v29 = vpack.c.bf16 %v16270_v27, %v16262_v23  ;;  %v562_v41 = vld [vmem:[%s20819_s25 + $0x60] sm:$0x1] }
 0x26c   : > { %11917 = vmatpush1.bf16.msra.mxu1 %v19130_v45  ;;  %v1090_v42 = vpack.c.bf16 %v986_v38, %v962_v37  ;;  %v2854_v45 = vrot.slane %v16252_v40, 2  ;;  %v19175_v37 = vld [vmem:[#allocation4 + $0x18d0] ss:$8 sps:$4 sm:$0xff]   ;;  %v19180_v38 = vld [vmem:[#allocation4 + $0x6e4] ss:$8 sps:$4 sm:$0xff]  }
 0x26d   : > { %13231 = vmatpush1.bf16.msra.mxu0 %v19133_v46  ;;  %11918 = vmatprep.subr.bf16.mxu1 %v19138_v52  ;;  %v19156_v46 = vld [vmem:[#allocation4 + $0x6a4] ss:$8 sps:$4 sm:$0xff]   ;;  %v664_v52 = vld [vmem:[%s20819_s25 + $0x390] sm:$0xfe]  ;;  %v19178_v44 = vld [vmem:[#allocation4 + $0x6e0] ss:$8 sps:$4 sm:$0xff]  }
 0x26e   : > { %13232 = vmatprep.subr.bf16.mxu0 %v19141_v56  ;;  %11893 = vmatprep.mubr.bf16.mxu1 %v1090_v42  ;;  %v2856_v55 = vsel %vm1383_vm1, %v2854_v45, %v2855_v48  ;;  %v672_v56 = vld [vmem:[%s20819_s25 + $0x3d0] sm:$0x1]  ;;  %v981_v59 = vrot.slane %v664_v52, 1  ;;  %v554_v40 = vld [vmem:[%s20819_s25 + $0x20] sm:$0xfe] }
 0x26f   : > { %v2952_v60 = vpack.c.bf16 %v2856_v55, %v2832_v49  ;;  %v982_v61 = vrot.slane %v672_v56, 1  ;;  %v570_v42 = vld [vmem:[%s20819_s25 + $0xa0] sm:$0xfe]  ;;  %v844_v49 = vrot.slane %v578_v43, 1  ;;  %v19189_v51 = vld [vmem:[#allocation4 + $0x18f4] ss:$8 sps:$4 sm:$0xff]  }
 0x270   : > { %11919 = vmatpush1.bf16.msra.mxu1 %v19136_v1  ;;  %v16251_v1 = vld [vmem:[%s20819_s25 + $0x430] sm:$0xfc]  ;;  %v19181_v45 = vld [vmem:[#allocation4 + $0x18e0] ss:$8 sps:$4 sm:$0xff]   ;;  %v843_v48 = vrot.slane %v570_v42, 1 }
 0x271   : > { %13233 = vmatpush1.bf16.msra.mxu0 %v19139_v2  ;;  %11920 = vmatprep.subr.bf16.mxu1 %v19144_v13  ;;  %v16259_v2 = vld [vmem:[%s20819_s25 + $0x470] sm:$0x3]  ;;  %v983_v7 = vsel %vm806_vm0, %v981_v59, %v982_v61  ;;  %v2851_v8 = vrot.slane %v16251_v1, 2  ;;  %v2829_v13 = vsel %vm1383_vm1, %v2827_v3, %v2828_v4  ;;  %v16269_v57 = vld [vmem:[%s20819_s25 + $0x180] sm:$0xff]  ;;  %v19201_v1 = vld [vmem:[#allocation4 + $0x1914] ss:$8 sps:$4 sm:$0xff]  }
 0x272   : > { %13234 = vmatprep.subr.bf16.mxu0 %v19147_v17  ;;  %v2852_v9 = vrot.slane %v16259_v2, 2  ;;  %13207 = vmatprep.mubr.bf16.mxu0 %v2952_v60  ;;  %v1089_v12 = vpack.c.bf16 %v983_v7, %v959_v0  ;;  %v571_v17 = vld [vmem:[%s20819_s25 + $0xa8] sm:$0xfe]  ;;  %v19184_v52 = vld [vmem:[#allocation4 + $0x6f0] ss:$8 sps:$4 sm:$0xff]   ;;  %v845_v56 = vsel %vm806_vm0, %v843_v48, %v844_v49 }
 0x273   : > { %v846_v22 = vrot.slane %v571_v17, 1  ;;  %v19192_v58 = vld [vmem:[#allocation4 + $0x704] ss:$8 sps:$4 sm:$0xff]   ;;  %v19190_v60 = vld [vmem:[#allocation4 + $0x700] ss:$8 sps:$4 sm:$0xff]  }
 0x274   : > { %11921 = vmatpush1.bf16.msra.mxu1 %v19142_v20  ;;  %v2853_v15 = vsel %vm1383_vm1, %v2851_v8, %v2852_v9  ;;  %v822_v20 = vrot.slane %v555_v14, 1  ;;  %v19195_v59 = vld [vmem:[#allocation4 + $0x1904] ss:$8 sps:$4 sm:$0xff]   ;;  %v19193_v63 = vld [vmem:[#allocation4 + $0x1900] ss:$8 sps:$4 sm:$0xff]  }
 0x275   : > { %13235 = vmatpush1.bf16.msra.mxu0 %v19145_v21  ;;  %11922 = vmatprep.subr.bf16.mxu1 %v19150_v32  ;;  %v2951_v19 = vpack.c.bf16 %v2853_v15, %v2829_v13  ;;  %v823_v21 = vrot.slane %v563_v16, 1  ;;  %v848_v30 = vsel %vm806_vm0, %v846_v22, %v847_v26  ;;  %v19169_v32 = vld [vmem:[#allocation4 + $0x18c0] ss:$8 sps:$4 sm:$0xff]   ;;  %v19198_v0 = vld [vmem:[#allocation4 + $0x714] ss:$8 sps:$4 sm:$0xff]  }
 0x276   : > { %13236 = vmatprep.subr.bf16.mxu0 %v19153_v33  ;;  %11894 = vmatmul.mubr.bf16.gmra.mrb[12].mxu1 %v1089_v12  ;;  %v19196_v2 = vld [vmem:[#allocation4 + $0x710] ss:$8 sps:$4 sm:$0xff]   ;;  %v19204_v4 = vld [vmem:[#allocation4 + $0x724] ss:$8 sps:$4 sm:$0xff]   ;;  %v19205_v7 = vld [vmem:[#allocation4 + $0x1920] ss:$8 sps:$4 sm:$0xff]  }
 0x277   : > { %13208 = vmatmul.mubr.bf16.gmra.mrb[12].mxu0 %v2951_v19  ;;  %v824_v28 = vsel %vm806_vm0, %v822_v20, %v823_v21  ;;  %v19199_v3 = vld [vmem:[#allocation4 + $0x1910] ss:$8 sps:$4 sm:$0xff]   ;;  %v19210_v8 = vld [vmem:[#allocation4 + $0x734] ss:$8 sps:$4 sm:$0xff]   ;;  %v595_v13 = vld [vmem:[%s20819_s25 + $0x168] sm:$0x1] }
 0x278   : > { %11923 = vmatpush1.bf16.msra.mxu1 %v19148_v35  ;;  %v1068_v33 = vpack.c.bf16 %v848_v30, %v824_v28  ;;  %v19177_v35 = vld [vmem:[#allocation4 + $0x18d4] ss:$8 sps:$4 sm:$0xff]   ;;  %13250 = vmatprep.mubr.bf16.mxu0 %v3051_v29  ;;  %v19211_v12 = vld [vmem:[#allocation4 + $0x1930] ss:$8 sps:$4 sm:$0xff]   ;;  %v603_v14 = vld [vmem:[%s20819_s25 + $0x1a8] sm:$0xfe] }
 0x279   : > { %13237 = vmatpush1.bf16.msra.mxu0 %v19151_v36  ;;  %11924 = vmatprep.subr.bf16.mxu1 %v19156_v46  ;;  %v19172_v36 = vld [vmem:[#allocation4 + $0x6d0] ss:$8 sps:$4 sm:$0xff]   ;;  %v819_v46 = vrot.slane %v554_v40, 1  ;;  %v19213_v9 = vld [vmem:[#allocation4 + $0x1934] ss:$8 sps:$4 sm:$0xff]   ;;  %v871_v17 = vrot.slane %v595_v13, 1 }
 0x27a   : > { %13238 = vmatprep.subr.bf16.mxu0 %v19159_v47  ;;  %11936 = vmatprep.mubr.bf16.mxu1 %v1068_v33  ;;  %v820_v47 = vrot.slane %v562_v41, 1  ;;  %v611_v15 = vld [vmem:[%s20819_s25 + $0x1e8] sm:$0x1]  ;;  %v894_v18 = vrot.slane %v603_v14, 1  ;;  %v19216_v20 = vld [vmem:[#allocation4 + $0x744] ss:$8 sps:$4 sm:$0xff]  }
 0x27b   : > { %v895_v19 = vrot.slane %v611_v15, 1  ;;  %v19219_v21 = vld [vmem:[#allocation4 + $0x1944] ss:$8 sps:$4 sm:$0xff]   ;;  %v19214_v26 = vld [vmem:[#allocation4 + $0x740] ss:$8 sps:$4 sm:$0xff]  }
 0x27c   : > { %11925 = vmatpush1.bf16.msra.mxu1 %v19154_v53  ;;  %v19187_v53 = vld [vmem:[#allocation4 + $0x18f0] ss:$8 sps:$4 sm:$0xff]   ;;  %v821_v55 = vsel %vm806_vm0, %v819_v46, %v820_v47  ;;  %v16278_v22 = vld [vmem:[%s20819_s25 + $0x208] sm:$0xff]  ;;  %v586_v30 = vld [vmem:[%s20819_s25 + $0x120] sm:$0xfe] }
 0x27d   : > { %13239 = vmatpush1.bf16.msra.mxu0 %v19157_v54  ;;  %11926 = vmatprep.subr.bf16.mxu1 %v19162_v5  ;;  %v16261_v54 = vld [vmem:[%s20819_s25 + $0x100] sm:$0xff]  ;;  %v1067_v61 = vpack.c.bf16 %v845_v56, %v821_v55  ;;  %v19225_v41 = vld [vmem:[#allocation4 + $0x1954] ss:$8 sps:$4 sm:$0xff]   ;;  %v19220_v43 = vld [vmem:[#allocation4 + $0x750] ss:$8 sps:$4 sm:$0xff]  }
 0x27e   : > { %13240 = vmatprep.subr.bf16.mxu0 %v19165_v6  ;;  %v3050_v62 = vpack.c.bf16 %v16269_v57, %v16261_v54  ;;  %v19207_v5 = vld [vmem:[#allocation4 + $0x1924] ss:$8 sps:$4 sm:$0xff]   ;;  %v19202_v6 = vld [vmem:[#allocation4 + $0x720] ss:$8 sps:$4 sm:$0xff]   ;;  %v19232_v14 = vld [vmem:[#allocation4 + $0x770] ss:$8 sps:$4 sm:$0xff]  }
 0x27f   : > { %v19217_v27 = vld [vmem:[#allocation4 + $0x1940] ss:$8 sps:$4 sm:$0xff]   ;;  %v19228_v47 = vld [vmem:[#allocation4 + $0x764] ss:$8 sps:$4 sm:$0xff]  }
 0x280   : > { %11927 = vmatpush1.bf16.msra.mxu1 %v19160_v10  ;;  %v587_v10 = vld [vmem:[%s20819_s25 + $0x128] sm:$0xfe]  ;;  %v602_v33 = vld [vmem:[%s20819_s25 + $0x1a0] sm:$0xfe] }
 0x281   : > { %13241 = vmatpush1.bf16.msra.mxu0 %v19163_v11  ;;  %11928 = vmatprep.subr.bf16.mxu1 %v19168_v24  ;;  %v19208_v11 = vld [vmem:[#allocation4 + $0x730] ss:$8 sps:$4 sm:$0xff]   ;;  %v870_v16 = vrot.slane %v587_v10, 1  ;;  %v896_v24 = vsel %vm806_vm0, %v894_v18, %v895_v19  ;;  %v16285_v40 = vld [vmem:[%s20819_s25 + $0x280] sm:$0xff] }
 0x282   : > { %13242 = vmatprep.subr.bf16.mxu0 %v19171_v25  ;;  %v16286_v25 = vld [vmem:[%s20819_s25 + $0x288] sm:$0xff]  ;;  %v16301_v13 = vld [vmem:[%s20819_s25 + $0x380] sm:$0xff] }
 0x283   : > { %v872_v23 = vsel %vm806_vm0, %v870_v16, %v871_v17  ;;  %v3059_v29 = vpack.c.bf16 %v16286_v25, %v16278_v22  ;;  %v19231_v48 = vld [vmem:[#allocation4 + $0x1964] ss:$8 sps:$4 sm:$0xff]   ;;  %v19235_v16 = vld [vmem:[#allocation4 + $0x1970] ss:$8 sps:$4 sm:$0xff]   ;;  %v659_v25 = vld [vmem:[%s20819_s25 + $0x368] sm:$0x1] }
 0x284   : > { %11929 = vmatpush1.bf16.msra.mxu1 %v19166_v31  ;;  %v1076_v28 = vpack.c.bf16 %v896_v24, %v872_v23  ;;  %v19222_v31 = vld [vmem:[#allocation4 + $0x754] ss:$8 sps:$4 sm:$0xff]   ;;  %v19240_v19 = vld [vmem:[#allocation4 + $0x784] ss:$8 sps:$4 sm:$0xff]   ;;  %v19238_v23 = vld [vmem:[#allocation4 + $0x780] ss:$8 sps:$4 sm:$0xff]  }
 0x285   : > { %13243 = vmatpush1.bf16.msra.mxu0 %v19169_v32  ;;  %11930 = vmatprep.subr.bf16.mxu1 %v19174_v34  ;;  %v594_v32 = vld [vmem:[%s20819_s25 + $0x160] sm:$0x1]  ;;  %v651_v22 = vld [vmem:[%s20819_s25 + $0x328] sm:$0xfe] }
 0x286   : > { %13244 = vmatprep.subr.bf16.mxu0 %v19177_v35  ;;  %v610_v34 = vld [vmem:[%s20819_s25 + $0x1e0] sm:$0x1]  ;;  %v867_v35 = vrot.slane %v586_v30, 1 }
 0x287   : > { %v19241_v24 = vld [vmem:[#allocation4 + $0x1980] ss:$8 sps:$4 sm:$0xff]  }
 0x288   : > { %11931 = vmatpush1.bf16.msra.mxu1 %v19172_v36  ;;  %v868_v36 = vrot.slane %v594_v32, 1  ;;  %v19246_v32 = vld [vmem:[#allocation4 + $0x794] ss:$8 sps:$4 sm:$0xff]  }
 0x289   : > { %13245 = vmatpush1.bf16.msra.mxu0 %v19175_v37  ;;  %11932 = vmatprep.subr.bf16.mxu1 %v19180_v38  ;;  %v891_v37 = vrot.slane %v602_v33, 1  ;;  %v892_v38 = vrot.slane %v610_v34, 1  ;;  %v19249_v33 = vld [vmem:[#allocation4 + $0x1994] ss:$8 sps:$4 sm:$0xff]   ;;  %v16310_v34 = vld [vmem:[%s20819_s25 + $0x408] sm:$0xff] }
 0x28a   : > { %13246 = vmatprep.subr.bf16.mxu0 %v19183_v39  ;;  %v16277_v39 = vld [vmem:[%s20819_s25 + $0x200] sm:$0xff] }
 0x28b   : > { %v3058_v42 = vpack.c.bf16 %v16285_v40, %v16277_v39  ;;  %v893_v46 = vsel %vm806_vm0, %v891_v37, %v892_v38  ;;  %v16318_v37 = vld [vmem:[%s20819_s25 + $0x488] sm:$0xff]  ;;  %v19244_v38 = vld [vmem:[#allocation4 + $0x790] ss:$8 sps:$4 sm:$0xff]  }
 0x28c   : > { %11933 = vmatpush1.bf16.msra.mxu1 %v19178_v44  ;;  %v19223_v44 = vld [vmem:[#allocation4 + $0x1950] ss:$8 sps:$4 sm:$0xff]  }
 0x28d   : > { %13247 = vmatpush1.bf16.msra.mxu0 %v19181_v45  ;;  %11934 = vmatprep.subr.bf16.mxu1 %v19186_v50  ;;  %v869_v45 = vsel %vm806_vm0, %v867_v35, %v868_v36  ;;  %v619_v50 = vld [vmem:[%s20819_s25 + $0x228] sm:$0xfe]  ;;  %v19247_v39 = vld [vmem:[#allocation4 + $0x1990] ss:$8 sps:$4 sm:$0xff]  }
 0x28e   : > { %13248 = vmatprep.subr.bf16.mxu0 %v19189_v51  ;;  %v1075_v49 = vpack.c.bf16 %v893_v46, %v869_v45  ;;  %v627_v51 = vld [vmem:[%s20819_s25 + $0x268] sm:$0x1]  ;;  %v918_v54 = vrot.slane %v619_v50, 1  ;;  %v666_v45 = vld [vmem:[%s20819_s25 + $0x3a0] sm:$0xfe] }
 0x28f   : > { %v919_v55 = vrot.slane %v627_v51, 1  ;;  %v674_v46 = vld [vmem:[%s20819_s25 + $0x3e0] sm:$0x1] }
 0x290   : > { %11935 = vmatpush1.bf16.msra.mxu1 %v19184_v52  ;;  %v635_v52 = vld [vmem:[%s20819_s25 + $0x2a8] sm:$0xfe]  ;;  %v988_v50 = vrot.slane %v674_v46, 1  ;;  %v16309_v51 = vld [vmem:[%s20819_s25 + $0x400] sm:$0xff] }
 0x291   : > { %13249 = vmatpush1.bf16.msra.mxu0 %v19187_v53  ;;  %11977 = vmatprep.subr.bf16.mxu1 %v19192_v58  ;;  %v643_v53 = vld [vmem:[%s20819_s25 + $0x2e8] sm:$0x1]  ;;  %v942_v56 = vrot.slane %v635_v52, 1  ;;  %v16317_v52 = vld [vmem:[%s20819_s25 + $0x480] sm:$0xff] }
 0x292   : > { %13291 = vmatprep.subr.bf16.mxu0 %v19195_v59  ;;  %v943_v57 = vrot.slane %v643_v53, 1  ;;  %v19226_v58 = vld [vmem:[#allocation4 + $0x760] ss:$8 sps:$4 sm:$0xff]   ;;  %v19255_v53 = vld [vmem:[#allocation4 + $0x19a4] ss:$8 sps:$4 sm:$0xff]  }
 0x293   : > { %11937 = vmatmul.mubr.bf16.vlgmr.msra.gmra.mrb[0].mxu1 %v1067_v61  ;;  %v19229_v59 = vld [vmem:[#allocation4 + $0x1960] ss:$8 sps:$4 sm:$0xff]   ;;  %v920_v61 = vsel %vm806_vm0, %v918_v54, %v919_v55  ;;  %v3074_v54 = vpack.c.bf16 %v16317_v52, %v16309_v51  ;;  %v19295_v51 = vld [vmem:[#allocation4 + $0x1a10] ss:$8 sps:$4 sm:$0xff]   ;;  %v19300_v52 = vld [vmem:[#allocation4 + $0x824] ss:$8 sps:$4 sm:$0xff]  }
 0x294   : > { %13251 = vmatmul.mubr.bf16.vlgmr.msra.gmra.mrb[0].mxu0 %v3050_v62  ;;  %11978 = vmatpush1.bf16.msra.mxu1 %v19190_v60  ;;  %v16294_v60 = vld [vmem:[%s20819_s25 + $0x308] sm:$0xff]  ;;  %v944_v62 = vsel %vm806_vm0, %v942_v56, %v943_v57 }
 0x295   : > { %13292 = vmatpush1.bf16.msra.mxu0 %v19193_v63  ;;  %11979 = vmatprep.subr.bf16.mxu1 %v19198_v0  ;;  %v16302_v63 = vld [vmem:[%s20819_s25 + $0x388] sm:$0xff]  ;;  %v19234_v0 = vld [vmem:[#allocation4 + $0x774] ss:$8 sps:$4 sm:$0xff]  }
 0x296   : > { %13293 = vmatprep.subr.bf16.mxu0 %v19201_v1  ;;  %11946 = vmatprep.mubr.bf16.mxu1 %v1076_v28  ;;  %v19237_v1 = vld [vmem:[#allocation4 + $0x1974] ss:$8 sps:$4 sm:$0xff]   ;;  %v966_v28 = vrot.slane %v651_v22, 1  ;;  %v19250_v55 = vld [vmem:[#allocation4 + $0x7a0] ss:$8 sps:$4 sm:$0xff]  }
 0x297   : > { %13260 = vmatprep.mubr.bf16.mxu0 %v3059_v29  ;;  %v967_v29 = vrot.slane %v659_v25, 1  ;;  %v19253_v56 = vld [vmem:[#allocation4 + $0x19a0] ss:$8 sps:$4 sm:$0xff]   ;;  %v19276_v22 = vld [vmem:[#allocation4 + $0x7e4] ss:$8 sps:$4 sm:$0xff]  }
 0x298   : > { %11980 = vmatpush1.bf16.msra.mxu1 %v19196_v2  ;;  %v1084_v2 = vpack.c.bf16 %v944_v62, %v920_v61  ;;  %v557_v62 = vld [vmem:[%s20819_s25 + $0x38] sm:$0xfe]  ;;  %v564_v25 = vld [vmem:[%s20819_s25 + $0x70] sm:$0x1] }
 0x299   : > { %13294 = vmatpush1.bf16.msra.mxu0 %v19199_v3  ;;  %11981 = vmatprep.subr.bf16.mxu1 %v19204_v4  ;;  %v3067_v3 = vpack.c.bf16 %v16302_v63, %v16294_v60  ;;  %v618_v4 = vld [vmem:[%s20819_s25 + $0x220] sm:$0xfe]  ;;  %v968_v35 = vsel %vm806_vm0, %v966_v28, %v967_v29  ;;  %v19261_v60 = vld [vmem:[#allocation4 + $0x19b4] ss:$8 sps:$4 sm:$0xff]   ;;  %v565_v63 = vld [vmem:[%s20819_s25 + $0x78] sm:$0x1] }
 0x29a   : > { %13295 = vmatprep.subr.bf16.mxu0 %v19207_v5  ;;  %v626_v5 = vld [vmem:[%s20819_s25 + $0x260] sm:$0x1] }
 0x29b   : > { %11947 = vmatmul.mubr.bf16.gmra.mrb[4].mxu1 %v1075_v49  ;;  %v987_v49 = vrot.slane %v666_v45, 1  ;;  %v19274_v28 = vld [vmem:[#allocation4 + $0x7e0] ss:$8 sps:$4 sm:$0xff]  }
 0x29c   : > { %11982 = vmatpush1.bf16.msra.mxu1 %v19202_v6  ;;  %13261 = vmatmul.mubr.bf16.gmra.mrb[4].mxu0 %v3058_v42  ;;  %v634_v6 = vld [vmem:[%s20819_s25 + $0x2a0] sm:$0xfe] }
 0x29d   : > { %13296 = vmatpush1.bf16.msra.mxu0 %v19205_v7  ;;  %11983 = vmatprep.subr.bf16.mxu1 %v19210_v8  ;;  %v642_v7 = vld [vmem:[%s20819_s25 + $0x2e0] sm:$0x1]  ;;  %v915_v8 = vrot.slane %v618_v4, 1  ;;  %v939_v10 = vrot.slane %v634_v6, 1  ;;  %v650_v42 = vld [vmem:[%s20819_s25 + $0x320] sm:$0xfe] }
 0x29e   : > { %13297 = vmatprep.subr.bf16.mxu0 %v19213_v9  ;;  %11956 = vmatprep.mubr.bf16.mxu1 %v1084_v2  ;;  %v916_v9 = vrot.slane %v626_v5, 1  ;;  %v828_v2 = vrot.slane %v557_v62, 1  ;;  %v16264_v6 = vld [vmem:[%s20819_s25 + $0x118] sm:$0xff]  ;;  %v19277_v29 = vld [vmem:[#allocation4 + $0x19e0] ss:$8 sps:$4 sm:$0xff]  }
 0x29f   : > { %13270 = vmatprep.mubr.bf16.mxu0 %v3067_v3  ;;  %v829_v3 = vrot.slane %v565_v63, 1  ;;  %v19306_v63 = vld [vmem:[#allocation4 + $0x834] ss:$8 sps:$4 sm:$0xff]  }
 0x2a0   : > { %11984 = vmatpush1.bf16.msra.mxu1 %v19208_v11  ;;  %v940_v11 = vrot.slane %v642_v7, 1  ;;  %v917_v17 = vsel %vm806_vm0, %v915_v8, %v916_v9  ;;  %v16272_v9 = vld [vmem:[%s20819_s25 + $0x198] sm:$0xff] }
 0x2a1   : > { %13298 = vmatpush1.bf16.msra.mxu0 %v19211_v12  ;;  %11985 = vmatprep.subr.bf16.mxu1 %v19216_v20  ;;  %v16293_v12 = vld [vmem:[%s20819_s25 + $0x300] sm:$0xff]  ;;  %v830_v7 = vsel %vm806_vm0, %v828_v2, %v829_v3  ;;  %v19304_v2 = vld [vmem:[#allocation4 + $0x830] ss:$8 sps:$4 sm:$0xff]  }
 0x2a2   : > { %13299 = vmatprep.subr.bf16.mxu0 %v19219_v21  ;;  %v3066_v15 = vpack.c.bf16 %v16301_v13, %v16293_v12  ;;  %v941_v18 = vsel %vm806_vm0, %v939_v10, %v940_v11  ;;  %v19243_v20 = vld [vmem:[#allocation4 + $0x1984] ss:$8 sps:$4 sm:$0xff]   ;;  %v19256_v10 = vld [vmem:[#allocation4 + $0x7b0] ss:$8 sps:$4 sm:$0xff]   ;;  %v3053_v13 = vpack.c.bf16 %v16272_v9, %v16264_v6 }
 0x2a3   : > { %v1083_v21 = vpack.c.bf16 %v941_v18, %v917_v17  ;;  %v19259_v11 = vld [vmem:[#allocation4 + $0x19b0] ss:$8 sps:$4 sm:$0xff]   ;;  %v19265_v17 = vld [vmem:[#allocation4 + $0x19c0] ss:$8 sps:$4 sm:$0xff]   ;;  %v19270_v18 = vld [vmem:[#allocation4 + $0x7d4] ss:$8 sps:$4 sm:$0xff]  }
 0x2a4   : > { %11986 = vmatpush1.bf16.msra.mxu1 %v19214_v26  ;;  %13271 = vmatmul.mubr.bf16.gmra.mrb[8].mxu0 %v3066_v15  ;;  %v667_v26 = vld [vmem:[%s20819_s25 + $0x3a8] sm:$0xfe]  ;;  %v19307_v3 = vld [vmem:[#allocation4 + $0x1a30] ss:$8 sps:$4 sm:$0xff]  }
 0x2a5   : > { %13300 = vmatpush1.bf16.msra.mxu0 %v19217_v27  ;;  %11987 = vmatprep.subr.bf16.mxu1 %v19222_v31  ;;  %v675_v27 = vld [vmem:[%s20819_s25 + $0x3e8] sm:$0x1]  ;;  %v990_v30 = vrot.slane %v667_v26, 1  ;;  %v19267_v15 = vld [vmem:[#allocation4 + $0x19c4] ss:$8 sps:$4 sm:$0xff]   ;;  %v16288_v6 = vld [vmem:[%s20819_s25 + $0x298] sm:$0xff] }
 0x2a6   : > { %13301 = vmatprep.subr.bf16.mxu0 %v19225_v41  ;;  %11957 = vmatmul.mubr.bf16.gmra.mrb[8].mxu1 %v1083_v21  ;;  %v991_v31 = vrot.slane %v675_v27, 1  ;;  %v3075_v41 = vpack.c.bf16 %v16318_v37, %v16310_v34  ;;  %v19271_v21 = vld [vmem:[#allocation4 + $0x19d0] ss:$8 sps:$4 sm:$0xff]   ;;  %v19282_v34 = vld [vmem:[#allocation4 + $0x7f4] ss:$8 sps:$4 sm:$0xff]  }
 0x2a7   : > { %v572_v26 = vld [vmem:[%s20819_s25 + $0xb0] sm:$0xfe]  ;;  %v580_v27 = vld [vmem:[%s20819_s25 + $0xf0] sm:$0x1] }
 0x2a8   : > { %11988 = vmatpush1.bf16.msra.mxu1 %v19220_v43  ;;  %v992_v36 = vsel %vm806_vm0, %v990_v30, %v991_v31  ;;  %v19252_v43 = vld [vmem:[#allocation4 + $0x7a4] ss:$8 sps:$4 sm:$0xff]   ;;  %13280 = vmatprep.mubr.bf16.mxu0 %v3075_v41  ;;  %v826_v31 = vrot.slane %v564_v25, 1  ;;  %v19283_v37 = vld [vmem:[#allocation4 + $0x19f0] ss:$8 sps:$4 sm:$0xff]  }
 0x2a9   : > { %13302 = vmatpush1.bf16.msra.mxu0 %v19223_v44  ;;  %11989 = vmatprep.subr.bf16.mxu1 %v19228_v47  ;;  %v1092_v40 = vpack.c.bf16 %v992_v36, %v968_v35  ;;  %v658_v44 = vld [vmem:[%s20819_s25 + $0x360] sm:$0x1]  ;;  %v963_v47 = vrot.slane %v650_v42, 1  ;;  %v19285_v35 = vld [vmem:[#allocation4 + $0x19f4] ss:$8 sps:$4 sm:$0xff]  }
 0x2aa   : > { %13303 = vmatprep.subr.bf16.mxu0 %v19231_v48  ;;  %v964_v48 = vrot.slane %v658_v44, 1  ;;  %v19280_v36 = vld [vmem:[#allocation4 + $0x7f0] ss:$8 sps:$4 sm:$0xff]   ;;  %v19288_v42 = vld [vmem:[#allocation4 + $0x804] ss:$8 sps:$4 sm:$0xff]  }
 0x2ab   : > { %11966 = vmatprep.mubr.bf16.mxu1 %v1092_v40  ;;  %v16271_v41 = vld [vmem:[%s20819_s25 + $0x190] sm:$0xff]  ;;  %v19286_v44 = vld [vmem:[#allocation4 + $0x800] ss:$8 sps:$4 sm:$0xff]  }
 0x2ac   : > { %11990 = vmatpush1.bf16.msra.mxu1 %v19226_v58  ;;  %v965_v57 = vsel %vm806_vm0, %v963_v47, %v964_v48  ;;  %v989_v58 = vsel %vm806_vm0, %v987_v49, %v988_v50  ;;  %13281 = vmatmul.mubr.bf16.gmra.mrb[12].mxu0 %v3074_v54  ;;  %v19289_v47 = vld [vmem:[#allocation4 + $0x1a00] ss:$8 sps:$4 sm:$0xff]   ;;  %v19294_v48 = vld [vmem:[#allocation4 + $0x814] ss:$8 sps:$4 sm:$0xff]   ;;  %v19292_v50 = vld [vmem:[#allocation4 + $0x810] ss:$8 sps:$4 sm:$0xff]  }
 0x2ad   : > { %13304 = vmatpush1.bf16.msra.mxu0 %v19229_v59  ;;  %11991 = vmatprep.subr.bf16.mxu1 %v19234_v0  ;;  %v19258_v59 = vld [vmem:[#allocation4 + $0x7b4] ss:$8 sps:$4 sm:$0xff]   ;;  %v1091_v61 = vpack.c.bf16 %v989_v58, %v965_v57  ;;  %v19298_v54 = vld [vmem:[#allocation4 + $0x820] ss:$8 sps:$4 sm:$0xff]   ;;  %v597_v57 = vld [vmem:[%s20819_s25 + $0x178] sm:$0x1] }
 0x2ae   : > { %13305 = vmatprep.subr.bf16.mxu0 %v19237_v1  ;;  %v573_v0 = vld [vmem:[%s20819_s25 + $0xb8] sm:$0xfe]  ;;  %v581_v1 = vld [vmem:[%s20819_s25 + $0xf8] sm:$0x1]  ;;  %13323 = vmatprep.mubr.bf16.mxu0 %v3053_v13  ;;  %v596_v13 = vld [vmem:[%s20819_s25 + $0x170] sm:$0x1] }
 0x2af   : > { %v852_v4 = vrot.slane %v573_v0, 1  ;;  %v853_v5 = vrot.slane %v581_v1, 1  ;;  %11967 = vmatmul.mubr.bf16.gmra.mrb[12].mxu1 %v1091_v61  ;;  %v19297_v49 = vld [vmem:[#allocation4 + $0x1a14] ss:$8 sps:$4 sm:$0xff]   ;;  %v877_v61 = vrot.slane %v597_v57, 1 }
 0x2b0   : > { %11992 = vmatpush1.bf16.msra.mxu1 %v19232_v14  ;;  %v19264_v14 = vld [vmem:[#allocation4 + $0x7c4] ss:$8 sps:$4 sm:$0xff]   ;;  %v605_v58 = vld [vmem:[%s20819_s25 + $0x1b8] sm:$0xfe]  ;;  %v16295_v57 = vld [vmem:[%s20819_s25 + $0x310] sm:$0xff] }
 0x2b1   : > { %13306 = vmatpush1.bf16.msra.mxu0 %v19235_v16  ;;  %11993 = vmatprep.subr.bf16.mxu1 %v19240_v19  ;;  %v854_v8 = vsel %vm806_vm0, %v852_v4, %v853_v5  ;;  %v19262_v16 = vld [vmem:[#allocation4 + $0x7c0] ss:$8 sps:$4 sm:$0xff]   ;;  %v19273_v19 = vld [vmem:[#allocation4 + $0x19d4] ss:$8 sps:$4 sm:$0xff]   ;;  %v900_v62 = vrot.slane %v605_v58, 1 }
 0x2b2   : > { %13307 = vmatprep.subr.bf16.mxu0 %v19243_v20  ;;  %v1070_v12 = vpack.c.bf16 %v854_v8, %v830_v7  ;;  %v19268_v20 = vld [vmem:[#allocation4 + $0x7d0] ss:$8 sps:$4 sm:$0xff]   ;;  %v19309_v0 = vld [vmem:[#allocation4 + $0x1a34] ss:$8 sps:$4 sm:$0xff]   ;;  %v19312_v7 = vld [vmem:[#allocation4 + $0x844] ss:$8 sps:$4 sm:$0xff]  }
 0x2b3   : > { %v16280_v5 = vld [vmem:[%s20819_s25 + $0x218] sm:$0xff]  ;;  %v19315_v8 = vld [vmem:[#allocation4 + $0x1a44] ss:$8 sps:$4 sm:$0xff]  }
 0x2b4   : > { %11994 = vmatpush1.bf16.msra.mxu1 %v19238_v23  ;;  %12009 = vmatprep.mubr.bf16.mxu1 %v1070_v12  ;;  %v19279_v23 = vld [vmem:[#allocation4 + $0x19e4] ss:$8 sps:$4 sm:$0xff]   ;;  %v588_v12 = vld [vmem:[%s20819_s25 + $0x130] sm:$0xfe] }
 0x2b5   : > { %13308 = vmatpush1.bf16.msra.mxu0 %v19241_v24  ;;  %11995 = vmatprep.subr.bf16.mxu1 %v19246_v32  ;;  %v556_v24 = vld [vmem:[%s20819_s25 + $0x30] sm:$0xfe]  ;;  %v849_v32 = vrot.slane %v572_v26, 1 }
 0x2b6   : > { %13309 = vmatprep.subr.bf16.mxu0 %v19249_v33  ;;  %v825_v30 = vrot.slane %v556_v24, 1  ;;  %v850_v33 = vrot.slane %v580_v27, 1  ;;  %v19318_v26 = vld [vmem:[#allocation4 + $0x854] ss:$8 sps:$4 sm:$0xff]  }
 0x2b7   : > { %v19321_v27 = vld [vmem:[#allocation4 + $0x1a54] ss:$8 sps:$4 sm:$0xff]  }
 0x2b8   : > { %11996 = vmatpush1.bf16.msra.mxu1 %v19244_v38  ;;  %v16263_v38 = vld [vmem:[%s20819_s25 + $0x110] sm:$0xff]  ;;  %v851_v40 = vsel %vm806_vm0, %v849_v32, %v850_v33  ;;  %v637_v32 = vld [vmem:[%s20819_s25 + $0x2b8] sm:$0xfe]  ;;  %v645_v33 = vld [vmem:[%s20819_s25 + $0x2f8] sm:$0x1] }
 0x2b9   : > { %13310 = vmatpush1.bf16.msra.mxu0 %v19247_v39  ;;  %11997 = vmatprep.subr.bf16.mxu1 %v19252_v43  ;;  %v827_v39 = vsel %vm806_vm0, %v825_v30, %v826_v31  ;;  %v19291_v43 = vld [vmem:[#allocation4 + $0x1a04] ss:$8 sps:$4 sm:$0xff]   ;;  %v3052_v46 = vpack.c.bf16 %v16271_v41, %v16263_v38  ;;  %v621_v30 = vld [vmem:[%s20819_s25 + $0x238] sm:$0xfe]  ;;  %v629_v31 = vld [vmem:[%s20819_s25 + $0x278] sm:$0x1] }
 0x2ba   : > { %13311 = vmatprep.subr.bf16.mxu0 %v19255_v53  ;;  %v1069_v45 = vpack.c.bf16 %v851_v40, %v827_v39  ;;  %v19303_v53 = vld [vmem:[#allocation4 + $0x1a24] ss:$8 sps:$4 sm:$0xff]   ;;  %v19319_v38 = vld [vmem:[#allocation4 + $0x1a50] ss:$8 sps:$4 sm:$0xff]   ;;  %v949_v39 = vrot.slane %v645_v33, 1 }
 0x2bb   : > { %v16296_v41 = vld [vmem:[%s20819_s25 + $0x318] sm:$0xff]  ;;  %v16319_v33 = vld [vmem:[%s20819_s25 + $0x490] sm:$0xff] }
 0x2bc   : > { %11998 = vmatpush1.bf16.msra.mxu1 %v19250_v55  ;;  %v19301_v55 = vld [vmem:[#allocation4 + $0x1a20] ss:$8 sps:$4 sm:$0xff]  }
 0x2bd   : > { %13312 = vmatpush1.bf16.msra.mxu0 %v19253_v56  ;;  %11999 = vmatprep.subr.bf16.mxu1 %v19258_v59  ;;  %v589_v56 = vld [vmem:[%s20819_s25 + $0x138] sm:$0xfe]  ;;  %v613_v59 = vld [vmem:[%s20819_s25 + $0x1f8] sm:$0x1] }
 0x2be   : > { %13313 = vmatprep.subr.bf16.mxu0 %v19261_v60  ;;  %v876_v60 = vrot.slane %v589_v56, 1  ;;  %v901_v1 = vrot.slane %v613_v59, 1  ;;  %v16303_v59 = vld [vmem:[%s20819_s25 + $0x390] sm:$0xff] }
 0x2c0   : > { %12000 = vmatpush1.bf16.msra.mxu1 %v19256_v10  ;;  %v878_v4 = vsel %vm806_vm0, %v876_v60, %v877_v61  ;;  %v902_v9 = vsel %vm806_vm0, %v900_v62, %v901_v1  ;;  %v3061_v10 = vpack.c.bf16 %v16288_v6, %v16280_v5  ;;  %v19330_v60 = vld [vmem:[#allocation4 + $0x874] ss:$8 sps:$4 sm:$0xff]   ;;  %v19331_v1 = vld [vmem:[#allocation4 + $0x1a70] ss:$8 sps:$4 sm:$0xff]  }
 0x2c1   : > { %13314 = vmatpush1.bf16.msra.mxu0 %v19259_v11  ;;  %12001 = vmatprep.subr.bf16.mxu1 %v19264_v14  ;;  %v1078_v11 = vpack.c.bf16 %v902_v9, %v878_v4  ;;  %v604_v14 = vld [vmem:[%s20819_s25 + $0x1b0] sm:$0xfe]  ;;  %v653_v4 = vld [vmem:[%s20819_s25 + $0x338] sm:$0xfe]  ;;  %v661_v5 = vld [vmem:[%s20819_s25 + $0x378] sm:$0x1] }
 0x2c2   : > { %13315 = vmatprep.subr.bf16.mxu0 %v19267_v15  ;;  %v612_v15 = vld [vmem:[%s20819_s25 + $0x1f0] sm:$0x1]  ;;  %v19333_v61 = vld [vmem:[#allocation4 + $0x1a74] ss:$8 sps:$4 sm:$0xff]   ;;  %v973_v9 = vrot.slane %v661_v5, 1 }
 0x2c3   : > { %v669_v6 = vld [vmem:[%s20819_s25 + $0x3b8] sm:$0xfe] }
 0x2c4   : > { %12002 = vmatpush1.bf16.msra.mxu1 %v19262_v16  ;;  %v873_v16 = vrot.slane %v588_v12, 1  ;;  %v19339_v12 = vld [vmem:[#allocation4 + $0x1a84] ss:$8 sps:$4 sm:$0xff]   ;;  %v19367_v5 = vld [vmem:[#allocation4 + $0x1ad0] ss:$8 sps:$4 sm:$0xff]  }
 0x2c5   : > { %13316 = vmatpush1.bf16.msra.mxu0 %v19265_v17  ;;  %12003 = vmatprep.subr.bf16.mxu1 %v19270_v18  ;;  %v874_v17 = vrot.slane %v596_v13, 1  ;;  %v897_v18 = vrot.slane %v604_v14, 1  ;;  %v19334_v14 = vld [vmem:[#allocation4 + $0x880] ss:$8 sps:$4 sm:$0xff]  }
 0x2c6   : > { %13317 = vmatprep.subr.bf16.mxu0 %v19273_v19  ;;  %v16279_v19 = vld [vmem:[%s20819_s25 + $0x210] sm:$0xff] }
 0x2c7   : > { %v875_v24 = vsel %vm806_vm0, %v873_v16, %v874_v17  ;;  %v16312_v17 = vld [vmem:[%s20819_s25 + $0x418] sm:$0xff] }
 0x2c8   : > { %12004 = vmatpush1.bf16.msra.mxu1 %v19268_v20  ;;  %v898_v20 = vrot.slane %v612_v15, 1  ;;  %v19337_v15 = vld [vmem:[#allocation4 + $0x1a80] ss:$8 sps:$4 sm:$0xff]  }
 0x2c9   : > { %13318 = vmatpush1.bf16.msra.mxu0 %v19271_v21  ;;  %12005 = vmatprep.subr.bf16.mxu1 %v19276_v22  ;;  %v16287_v21 = vld [vmem:[%s20819_s25 + $0x290] sm:$0xff]  ;;  %v19310_v22 = vld [vmem:[#allocation4 + $0x840] ss:$8 sps:$4 sm:$0xff]  }
 0x2ca   : > { %13319 = vmatprep.subr.bf16.mxu0 %v19279_v23  ;;  %v19313_v23 = vld [vmem:[#allocation4 + $0x1a40] ss:$8 sps:$4 sm:$0xff]   ;;  %v3060_v25 = vpack.c.bf16 %v16287_v21, %v16279_v19  ;;  %v19342_v19 = vld [vmem:[#allocation4 + $0x894] ss:$8 sps:$4 sm:$0xff]  }
 0x2cc   : > { %12006 = vmatpush1.bf16.msra.mxu1 %v19274_v28  ;;  %v899_v28 = vsel %vm806_vm0, %v897_v18, %v898_v20  ;;  %v16320_v18 = vld [vmem:[%s20819_s25 + $0x498] sm:$0xff] }
 0x2cd   : > { %13320 = vmatpush1.bf16.msra.mxu0 %v19277_v29  ;;  %12007 = vmatprep.subr.bf16.mxu1 %v19282_v34  ;;  %v1077_v29 = vpack.c.bf16 %v899_v28, %v875_v24  ;;  %v924_v34 = vrot.slane %v621_v30, 1  ;;  %v19345_v20 = vld [vmem:[#allocation4 + $0x1a94] ss:$8 sps:$4 sm:$0xff]  }
 0x2ce   : > { %13321 = vmatprep.subr.bf16.mxu0 %v19285_v35  ;;  %v925_v35 = vrot.slane %v629_v31, 1  ;;  %v652_v24 = vld [vmem:[%s20819_s25 + $0x330] sm:$0xfe] }
 0x2cf   : > { %v969_v28 = vrot.slane %v652_v24, 1  ;;  %v16311_v31 = vld [vmem:[%s20819_s25 + $0x410] sm:$0xff] }
 0x2d0   : > { %12008 = vmatpush1.bf16.msra.mxu1 %v19280_v36  ;;  %v948_v36 = vrot.slane %v637_v32, 1  ;;  %v926_v40 = vsel %vm806_vm0, %v924_v34, %v925_v35  ;;  %v19340_v34 = vld [vmem:[#allocation4 + $0x890] ss:$8 sps:$4 sm:$0xff]  }
 0x2d1   : > { %13322 = vmatpush1.bf16.msra.mxu0 %v19283_v37  ;;  %12050 = vmatprep.subr.bf16.mxu1 %v19288_v42  ;;  %v19316_v37 = vld [vmem:[#allocation4 + $0x850] ss:$8 sps:$4 sm:$0xff]  }
 0x2d2   : > { %13364 = vmatprep.subr.bf16.mxu0 %v19291_v43  ;;  %v16304_v42 = vld [vmem:[%s20819_s25 + $0x398] sm:$0xff]  ;;  %v19324_v43 = vld [vmem:[#allocation4 + $0x864] ss:$8 sps:$4 sm:$0xff]  }
 0x2d3   : > { %12010 = vmatmul.mubr.bf16.vlgmr.msra.gmra.mrb[0].mxu1 %v1069_v45  ;;  %v950_v45 = vsel %vm806_vm0, %v948_v36, %v949_v39  ;;  %v19343_v35 = vld [vmem:[#allocation4 + $0x1a90] ss:$8 sps:$4 sm:$0xff]   ;;  %v19351_v39 = vld [vmem:[#allocation4 + $0x1aa4] ss:$8 sps:$4 sm:$0xff]  }
 0x2d4   : > { %13324 = vmatmul.mubr.bf16.vlgmr.msra.gmra.mrb[0].mxu0 %v3052_v46  ;;  %12051 = vmatpush1.bf16.msra.mxu1 %v19286_v44  ;;  %v19327_v44 = vld [vmem:[#allocation4 + $0x1a64] ss:$8 sps:$4 sm:$0xff]   ;;  %v3069_v46 = vpack.c.bf16 %v16304_v42, %v16296_v41 }
 0x2d5   : > { %13365 = vmatpush1.bf16.msra.mxu0 %v19289_v47  ;;  %12052 = vmatprep.subr.bf16.mxu1 %v19294_v48  ;;  %v19322_v47 = vld [vmem:[#allocation4 + $0x860] ss:$8 sps:$4 sm:$0xff]  }
 0x2d6   : > { %13366 = vmatprep.subr.bf16.mxu0 %v19297_v49  ;;  %12019 = vmatprep.mubr.bf16.mxu1 %v1078_v11  ;;  %v19325_v48 = vld [vmem:[#allocation4 + $0x1a60] ss:$8 sps:$4 sm:$0xff]   ;;  %v1086_v49 = vpack.c.bf16 %v950_v45, %v926_v40  ;;  %v19336_v11 = vld [vmem:[#allocation4 + $0x884] ss:$8 sps:$4 sm:$0xff]  }
 0x2d7   : > { %13333 = vmatprep.mubr.bf16.mxu0 %v3061_v10  ;;  %v996_v10 = vrot.slane %v669_v6, 1  ;;  %v1128_v42 = vld [vmem:[%s20819_s25 + $0x8] sm:$0xfc]  ;;  %v1152_v45 = vld [vmem:[%s20819_s25 + $0xc8] sm:$0x3] }
 0x2d8   : > { %12053 = vmatpush1.bf16.msra.mxu1 %v19292_v50  ;;  %v620_v50 = vld [vmem:[%s20819_s25 + $0x230] sm:$0xfe]  ;;  %v19372_v6 = vld [vmem:[#allocation4 + $0x8e4] ss:$8 sps:$4 sm:$0xff]  }
 0x2d9   : > { %13367 = vmatpush1.bf16.msra.mxu0 %v19295_v51  ;;  %12054 = vmatprep.subr.bf16.mxu1 %v19300_v52  ;;  %v628_v51 = vld [vmem:[%s20819_s25 + $0x270] sm:$0x1]  ;;  %v636_v52 = vld [vmem:[%s20819_s25 + $0x2b0] sm:$0xfe] }
 0x2da   : > { %13368 = vmatprep.subr.bf16.mxu0 %v19303_v53  ;;  %v644_v53 = vld [vmem:[%s20819_s25 + $0x2f0] sm:$0x1]  ;;  %v945_v56 = vrot.slane %v636_v52, 1 }
 0x2db   : > { %12020 = vmatmul.mubr.bf16.gmra.mrb[4].mxu1 %v1077_v29  ;;  %v946_v58 = vrot.slane %v644_v53, 1  ;;  %v16266_v53 = vld [vmem:[%s20819_s25 + $0x128] sm:$0xff] }
 0x2dc   : > { %12055 = vmatpush1.bf16.msra.mxu1 %v19298_v54  ;;  %13334 = vmatmul.mubr.bf16.gmra.mrb[4].mxu0 %v3060_v25  ;;  %v921_v54 = vrot.slane %v620_v50, 1  ;;  %v660_v25 = vld [vmem:[%s20819_s25 + $0x370] sm:$0x1]  ;;  %v19349_v50 = vld [vmem:[#allocation4 + $0x1aa0] ss:$8 sps:$4 sm:$0xff]  }
 0x2dd   : > { %13369 = vmatpush1.bf16.msra.mxu0 %v19301_v55  ;;  %12056 = vmatprep.subr.bf16.mxu1 %v19306_v63  ;;  %v922_v55 = vrot.slane %v628_v51, 1  ;;  %v3068_v63 = vpack.c.bf16 %v16303_v59, %v16295_v57  ;;  %v970_v29 = vrot.slane %v660_v25, 1  ;;  %v1412_v51 = vrot.slane %v1152_v45, 2  ;;  %v16273_v25 = vld [vmem:[%s20819_s25 + $0x1a0] sm:$0xff] }
 0x2de   : > { %13370 = vmatprep.subr.bf16.mxu0 %v19309_v0  ;;  %13343 = vmatprep.mubr.bf16.mxu0 %v3069_v46  ;;  %v19328_v0 = vld [vmem:[#allocation4 + $0x870] ss:$8 sps:$4 sm:$0xff]   ;;  %v1387_v46 = vrot.slane %v1128_v42, 2 }
 0x2df   : > { %v923_v62 = vsel %vm806_vm0, %v921_v54, %v922_v55  ;;  %12029 = vmatprep.mubr.bf16.mxu1 %v1086_v49  ;;  %v971_v36 = vsel %vm806_vm0, %v969_v28, %v970_v29  ;;  %v19346_v49 = vld [vmem:[#allocation4 + $0x8a0] ss:$8 sps:$4 sm:$0xff]   ;;  %v19354_v55 = vld [vmem:[#allocation4 + $0x8b4] ss:$8 sps:$4 sm:$0xff]  }
 0x2e0   : > { %12057 = vmatpush1.bf16.msra.mxu1 %v19304_v2  ;;  %v947_v2 = vsel %vm806_vm0, %v945_v56, %v946_v58  ;;  %v16274_v54 = vld [vmem:[%s20819_s25 + $0x1a8] sm:$0xff]  ;;  %v19357_v56 = vld [vmem:[#allocation4 + $0x1ab4] ss:$8 sps:$4 sm:$0xff]  }
 0x2e1   : > { %13371 = vmatpush1.bf16.msra.mxu0 %v19307_v3  ;;  %12058 = vmatprep.subr.bf16.mxu1 %v19312_v7  ;;  %v1085_v3 = vpack.c.bf16 %v947_v2, %v923_v62  ;;  %v677_v7 = vld [vmem:[%s20819_s25 + $0x3f8] sm:$0x1]  ;;  %v3055_v58 = vpack.c.bf16 %v16274_v54, %v16266_v53  ;;  %v19360_v62 = vld [vmem:[#allocation4 + $0x8c4] ss:$8 sps:$4 sm:$0xff]   ;;  %v19366_v2 = vld [vmem:[#allocation4 + $0x8d4] ss:$8 sps:$4 sm:$0xff]  }
 0x2e2   : > { %13372 = vmatprep.subr.bf16.mxu0 %v19315_v8  ;;  %v972_v8 = vrot.slane %v653_v4, 1  ;;  %v997_v13 = vrot.slane %v677_v7, 1  ;;  %v19364_v4 = vld [vmem:[#allocation4 + $0x8d0] ss:$8 sps:$4 sm:$0xff]   ;;  %v19375_v7 = vld [vmem:[#allocation4 + $0x1ae4] ss:$8 sps:$4 sm:$0xff]  }
 0x2e3   : > { %12030 = vmatmul.mubr.bf16.gmra.mrb[8].mxu1 %v1085_v3  ;;  %v19369_v3 = vld [vmem:[#allocation4 + $0x1ad4] ss:$8 sps:$4 sm:$0xff]   ;;  %v19382_v28 = vld [vmem:[#allocation4 + $0x900] ss:$8 sps:$4 sm:$0xff]  }
 0x2e4   : > { %12059 = vmatpush1.bf16.msra.mxu1 %v19310_v22  ;;  %13344 = vmatmul.mubr.bf16.gmra.mrb[8].mxu0 %v3068_v63  ;;  %v974_v16 = vsel %vm806_vm0, %v972_v8, %v973_v9  ;;  %v998_v21 = vsel %vm806_vm0, %v996_v10, %v997_v13  ;;  %v3077_v22 = vpack.c.bf16 %v16320_v18, %v16312_v17  ;;  %v19363_v63 = vld [vmem:[#allocation4 + $0x1ac4] ss:$8 sps:$4 sm:$0xff]   ;;  %v1135_v9 = vld [vmem:[%s20819_s25 + $0x40] sm:$0x3]  ;;  %v19378_v18 = vld [vmem:[#allocation4 + $0x8f4] ss:$8 sps:$4 sm:$0xff]  }
 0x2e5   : > { %13373 = vmatpush1.bf16.msra.mxu0 %v19313_v23  ;;  %12060 = vmatprep.subr.bf16.mxu1 %v19318_v26  ;;  %v1094_v23 = vpack.c.bf16 %v998_v21, %v974_v16  ;;  %v668_v26 = vld [vmem:[%s20819_s25 + $0x3b0] sm:$0xfe]  ;;  %v1127_v8 = vld [vmem:[%s20819_s25] sm:$0xfc] }
 0x2e6   : > { %13374 = vmatprep.subr.bf16.mxu0 %v19321_v27  ;;  %v676_v27 = vld [vmem:[%s20819_s25 + $0x3f0] sm:$0x1]  ;;  %v993_v30 = vrot.slane %v668_v26, 1  ;;  %13353 = vmatprep.mubr.bf16.mxu0 %v3077_v22  ;;  %v1143_v10 = vld [vmem:[%s20819_s25 + $0x80] sm:$0xfc] }
 0x2e7   : > { %12039 = vmatprep.mubr.bf16.mxu1 %v1094_v23  ;;  %v994_v32 = vrot.slane %v676_v27, 1  ;;  %v19373_v13 = vld [vmem:[#allocation4 + $0x1ae0] ss:$8 sps:$4 sm:$0xff]   ;;  %v1408_v16 = vrot.slane %v1143_v10, 2  ;;  %v19379_v21 = vld [vmem:[#allocation4 + $0x1af0] ss:$8 sps:$4 sm:$0xff]  }
 0x2e8   : > { %12061 = vmatpush1.bf16.msra.mxu1 %v19316_v37  ;;  %v3076_v37 = vpack.c.bf16 %v16319_v33, %v16311_v31  ;;  %v16265_v22 = vld [vmem:[%s20819_s25 + $0x120] sm:$0xff]  ;;  %v19393_v33 = vld [vmem:[#allocation4 + $0x1b14] ss:$8 sps:$4 sm:$0xff]  }
 0x2e9   : > { %13375 = vmatpush1.bf16.msra.mxu0 %v19319_v38  ;;  %12062 = vmatprep.subr.bf16.mxu1 %v19324_v43  ;;  %v19348_v38 = vld [vmem:[#allocation4 + $0x8a4] ss:$8 sps:$4 sm:$0xff]   ;;  %v995_v40 = vsel %vm806_vm0, %v993_v30, %v994_v32  ;;  %v1136_v43 = vld [vmem:[%s20819_s25 + $0x48] sm:$0x3]  ;;  %v3054_v30 = vpack.c.bf16 %v16273_v25, %v16265_v22  ;;  %v19390_v32 = vld [vmem:[#allocation4 + $0x914] ss:$8 sps:$4 sm:$0xff]  }
 0x2ea   : > { %13376 = vmatprep.subr.bf16.mxu0 %v19327_v44  ;;  %v1093_v41 = vpack.c.bf16 %v995_v40, %v971_v36  ;;  %v1144_v44 = vld [vmem:[%s20819_s25 + $0x88] sm:$0xfc]  ;;  %v19405_v54 = vld [vmem:[#allocation4 + $0x1b34] ss:$8 sps:$4 sm:$0xff]   ;;  %v19412_v25 = vld [vmem:[#allocation4 + $0x950] ss:$8 sps:$4 sm:$0xff]  }
 0x2eb   : > { %v19384_v26 = vld [vmem:[#allocation4 + $0x904] ss:$8 sps:$4 sm:$0xff]   ;;  %v19385_v31 = vld [vmem:[#allocation4 + $0x1b00] ss:$8 sps:$4 sm:$0xff]  }
 0x2ec   : > { %12063 = vmatpush1.bf16.msra.mxu1 %v19322_v47  ;;  %13354 = vmatmul.mubr.bf16.gmra.mrb[12].mxu0 %v3076_v37  ;;  %v1388_v47 = vrot.slane %v1136_v43, 2  ;;  %v19387_v27 = vld [vmem:[#allocation4 + $0x1b04] ss:$8 sps:$4 sm:$0xff]   ;;  %v19409_v10 = vld [vmem:[#allocation4 + $0x1b40] ss:$8 sps:$4 sm:$0xff]  }
 0x2ed   : > { %13377 = vmatpush1.bf16.msra.mxu0 %v19325_v48  ;;  %12064 = vmatprep.subr.bf16.mxu1 %v19330_v60  ;;  %v1411_v48 = vrot.slane %v1144_v44, 2  ;;  %v19352_v60 = vld [vmem:[#allocation4 + $0x8b0] ss:$8 sps:$4 sm:$0xff]   ;;  %v19396_v36 = vld [vmem:[#allocation4 + $0x924] ss:$8 sps:$4 sm:$0xff]  }
 0x2ee   : > { %13378 = vmatprep.subr.bf16.mxu0 %v19333_v61  ;;  %12040 = vmatmul.mubr.bf16.gmra.mrb[12].mxu1 %v1093_v41  ;;  %v1389_v52 = vsel %vm1383_vm1, %v1387_v46, %v1388_v47  ;;  %v19355_v61 = vld [vmem:[#allocation4 + $0x1ab0] ss:$8 sps:$4 sm:$0xff]   ;;  %v19399_v37 = vld [vmem:[#allocation4 + $0x1b24] ss:$8 sps:$4 sm:$0xff]   ;;  %v1184_v41 = vld [vmem:[%s20819_s25 + $0x1c8] sm:$0x3] }
 0x2ef   : > { %v1413_v57 = vsel %vm1383_vm1, %v1411_v48, %v1412_v51  ;;  %13396 = vmatprep.mubr.bf16.mxu0 %v3055_v58  ;;  %v1176_v40 = vld [vmem:[%s20819_s25 + $0x188] sm:$0xfc]  ;;  %v1460_v46 = vrot.slane %v1184_v41, 2  ;;  %v19402_v51 = vld [vmem:[#allocation4 + $0x934] ss:$8 sps:$4 sm:$0xff]   ;;  %v16305_v41 = vld [vmem:[%s20819_s25 + $0x3a0] sm:$0xff] }
 0x2f0   : > { %12065 = vmatpush1.bf16.msra.mxu1 %v19328_v0  ;;  %v1641_v59 = vpack.c.bf16 %v1413_v57, %v1389_v52  ;;  %v19358_v0 = vld [vmem:[#allocation4 + $0x8c0] ss:$8 sps:$4 sm:$0xff]   ;;  %v1459_v45 = vrot.slane %v1176_v40, 2  ;;  %v19400_v58 = vld [vmem:[#allocation4 + $0x930] ss:$8 sps:$4 sm:$0xff]  }
 0x2f1   : > { %13379 = vmatpush1.bf16.msra.mxu0 %v19331_v1  ;;  %12066 = vmatprep.subr.bf16.mxu1 %v19336_v11  ;;  %v19361_v1 = vld [vmem:[#allocation4 + $0x1ac0] ss:$8 sps:$4 sm:$0xff]  }
 0x2f2   : > { %13380 = vmatprep.subr.bf16.mxu0 %v19339_v12  ;;  %12082 = vmatprep.mubr.bf16.mxu1 %v1641_v59  ;;  %v1151_v11 = vld [vmem:[%s20819_s25 + $0xc0] sm:$0x3]  ;;  %v1461_v52 = vsel %vm1383_vm1, %v1459_v45, %v1460_v46  ;;  %v1175_v59 = vld [vmem:[%s20819_s25 + $0x180] sm:$0xfc]  ;;  %v19426_v46 = vld [vmem:[#allocation4 + $0x974] ss:$8 sps:$4 sm:$0xff]  }
 0x2f3   : > { %v19370_v12 = vld [vmem:[#allocation4 + $0x8e0] ss:$8 sps:$4 sm:$0xff]   ;;  %v1409_v17 = vrot.slane %v1151_v11, 2 }
 0x2f4   : > { %12067 = vmatpush1.bf16.msra.mxu1 %v19334_v14  ;;  %v1384_v14 = vrot.slane %v1127_v8, 2  ;;  %v19394_v44 = vld [vmem:[#allocation4 + $0x920] ss:$8 sps:$4 sm:$0xff]  }
 0x2f5   : > { %13381 = vmatpush1.bf16.msra.mxu0 %v19337_v15  ;;  %12068 = vmatprep.subr.bf16.mxu1 %v19342_v19  ;;  %v1385_v15 = vrot.slane %v1135_v9, 2  ;;  %v19381_v19 = vld [vmem:[#allocation4 + $0x1af4] ss:$8 sps:$4 sm:$0xff]   ;;  %v1410_v24 = vsel %vm1383_vm1, %v1408_v16, %v1409_v17  ;;  %v19397_v47 = vld [vmem:[#allocation4 + $0x1b20] ss:$8 sps:$4 sm:$0xff]  }
 0x2f6   : > { %13382 = vmatprep.subr.bf16.mxu0 %v19345_v20  ;;  %v19376_v20 = vld [vmem:[#allocation4 + $0x8f0] ss:$8 sps:$4 sm:$0xff]   ;;  %v1167_v57 = vld [vmem:[%s20819_s25 + $0x140] sm:$0x3] }
 0x2f7   : > { %v1386_v23 = vsel %vm1383_vm1, %v1384_v14, %v1385_v15  ;;  %v19406_v9 = vld [vmem:[#allocation4 + $0x940] ss:$8 sps:$4 sm:$0xff]  }
 0x2f8   : > { %12069 = vmatpush1.bf16.msra.mxu1 %v19340_v34  ;;  %v1640_v29 = vpack.c.bf16 %v1410_v24, %v1386_v23  ;;  %v19388_v34 = vld [vmem:[#allocation4 + $0x910] ss:$8 sps:$4 sm:$0xff]   ;;  %v1208_v14 = vld [vmem:[%s20819_s25 + $0x288] sm:$0xfc]  ;;  %v1216_v15 = vld [vmem:[%s20819_s25 + $0x2c8] sm:$0x3] }
 0x2f9   : > { %13383 = vmatpush1.bf16.msra.mxu0 %v19343_v35  ;;  %12070 = vmatprep.subr.bf16.mxu1 %v19348_v38  ;;  %v19391_v35 = vld [vmem:[#allocation4 + $0x1b10] ss:$8 sps:$4 sm:$0xff]   ;;  %v1160_v38 = vld [vmem:[%s20819_s25 + $0x108] sm:$0xfc]  ;;  %v16297_v40 = vld [vmem:[%s20819_s25 + $0x320] sm:$0xff] }
 0x2fa   : > { %13384 = vmatprep.subr.bf16.mxu0 %v19351_v39  ;;  %v1168_v39 = vld [vmem:[%s20819_s25 + $0x148] sm:$0x3]  ;;  %v1435_v42 = vrot.slane %v1160_v38, 2  ;;  %v3070_v45 = vpack.c.bf16 %v16305_v41, %v16297_v40 }
 0x2fb   : > { %v1436_v43 = vrot.slane %v1168_v39, 2  ;;  %v16298_v23 = vld [vmem:[%s20819_s25 + $0x328] sm:$0xff] }
 0x2fc   : > { %12071 = vmatpush1.bf16.msra.mxu1 %v19346_v49  ;;  %v16282_v49 = vld [vmem:[%s20819_s25 + $0x228] sm:$0xff] }
 0x2fd   : > { %13385 = vmatpush1.bf16.msra.mxu0 %v19349_v50  ;;  %12072 = vmatprep.subr.bf16.mxu1 %v19354_v55  ;;  %v1437_v48 = vsel %vm1383_vm1, %v1435_v42, %v1436_v43  ;;  %v16290_v50 = vld [vmem:[%s20819_s25 + $0x2a8] sm:$0xff] }
 0x2fe   : > { %13386 = vmatprep.subr.bf16.mxu0 %v19357_v56  ;;  %v3063_v53 = vpack.c.bf16 %v16290_v50, %v16282_v49  ;;  %v1649_v55 = vpack.c.bf16 %v1461_v52, %v1437_v48  ;;  %v1159_v56 = vld [vmem:[%s20819_s25 + $0x100] sm:$0xfc]  ;;  %v16306_v24 = vld [vmem:[%s20819_s25 + $0x3a8] sm:$0xff]  ;;  %v19429_v48 = vld [vmem:[#allocation4 + $0x1b74] ss:$8 sps:$4 sm:$0xff]  }
 0x2ff   : > { %v19418_v42 = vld [vmem:[#allocation4 + $0x960] ss:$8 sps:$4 sm:$0xff]  }
 0x300   : > { %12073 = vmatpush1.bf16.msra.mxu1 %v19352_v60  ;;  %v1183_v60 = vld [vmem:[%s20819_s25 + $0x1c0] sm:$0x3]  ;;  %v1224_v50 = vld [vmem:[%s20819_s25 + $0x308] sm:$0xfc] }
 0x301   : > { %13387 = vmatpush1.bf16.msra.mxu0 %v19355_v61  ;;  %12074 = vmatprep.subr.bf16.mxu1 %v19360_v62  ;;  %v1432_v61 = vrot.slane %v1159_v56, 2  ;;  %v1433_v62 = vrot.slane %v1167_v57, 2  ;;  %v19421_v43 = vld [vmem:[#allocation4 + $0x1b60] ss:$8 sps:$4 sm:$0xff]   ;;  %v19424_v56 = vld [vmem:[#allocation4 + $0x970] ss:$8 sps:$4 sm:$0xff]  }
 0x302   : > { %13388 = vmatprep.subr.bf16.mxu0 %v19363_v63  ;;  %v1456_v63 = vrot.slane %v1175_v59, 2  ;;  %v1240_v52 = vld [vmem:[%s20819_s25 + $0x388] sm:$0xfc]  ;;  %v19427_v59 = vld [vmem:[#allocation4 + $0x1b70] ss:$8 sps:$4 sm:$0xff]  }
 0x303   : > { %v1555_v57 = vrot.slane %v1240_v52, 2  ;;  %v19442_v40 = vld [vmem:[#allocation4 + $0x9a0] ss:$8 sps:$4 sm:$0xff]   ;;  %v19460_v52 = vld [vmem:[#allocation4 + $0x9d0] ss:$8 sps:$4 sm:$0xff]  }
 0x304   : > { %12075 = vmatpush1.bf16.msra.mxu1 %v19358_v0  ;;  %v1457_v0 = vrot.slane %v1183_v60, 2  ;;  %v19445_v41 = vld [vmem:[#allocation4 + $0x1ba0] ss:$8 sps:$4 sm:$0xff]  }
 0x305   : > { %13389 = vmatpush1.bf16.msra.mxu0 %v19361_v1  ;;  %12076 = vmatprep.subr.bf16.mxu1 %v19366_v2  ;;  %v16281_v1 = vld [vmem:[%s20819_s25 + $0x220] sm:$0xff] }
 0x306   : > { %13390 = vmatprep.subr.bf16.mxu0 %v19369_v3  ;;  %v16289_v2 = vld [vmem:[%s20819_s25 + $0x2a0] sm:$0xff]  ;;  %v19403_v3 = vld [vmem:[#allocation4 + $0x1b30] ss:$8 sps:$4 sm:$0xff]   ;;  %v1458_v8 = vsel %vm1383_vm1, %v1456_v63, %v1457_v0 }
 0x307   : > { %v19432_v63 = vld [vmem:[#allocation4 + $0x984] ss:$8 sps:$4 sm:$0xff]  }
 0x308   : > { %12077 = vmatpush1.bf16.msra.mxu1 %v19364_v4  ;;  %v19408_v4 = vld [vmem:[#allocation4 + $0x944] ss:$8 sps:$4 sm:$0xff]  }
 0x309   : > { %13391 = vmatpush1.bf16.msra.mxu0 %v19367_v5  ;;  %12078 = vmatprep.subr.bf16.mxu1 %v19372_v6  ;;  %v1434_v5 = vsel %vm1383_vm1, %v1432_v61, %v1433_v62  ;;  %v3062_v6 = vpack.c.bf16 %v16289_v2, %v16281_v1  ;;  %v16314_v61 = vld [vmem:[%s20819_s25 + $0x428] sm:$0xff] }
 0x30a   : > { %13392 = vmatprep.subr.bf16.mxu0 %v19375_v7  ;;  %v19411_v7 = vld [vmem:[#allocation4 + $0x1b44] ss:$8 sps:$4 sm:$0xff]   ;;  %v1648_v11 = vpack.c.bf16 %v1458_v8, %v1434_v5  ;;  %v1231_v5 = vld [vmem:[%s20819_s25 + $0x340] sm:$0x3] }
 0x30b   : > { %v16322_v62 = vld [vmem:[%s20819_s25 + $0x4a8] sm:$0xff]  ;;  %v1247_v8 = vld [vmem:[%s20819_s25 + $0x3c0] sm:$0x3] }
 0x30c   : > { %12079 = vmatpush1.bf16.msra.mxu1 %v19370_v12  ;;  %v1192_v12 = vld [vmem:[%s20819_s25 + $0x208] sm:$0xfc]  ;;  %v3079_v1 = vpack.c.bf16 %v16322_v62, %v16314_v61 }
 0x30d   : > { %13393 = vmatpush1.bf16.msra.mxu0 %v19373_v13  ;;  %12080 = vmatprep.subr.bf16.mxu1 %v19378_v18  ;;  %v1200_v13 = vld [vmem:[%s20819_s25 + $0x248] sm:$0x3]  ;;  %v1483_v16 = vrot.slane %v1192_v12, 2  ;;  %v19414_v18 = vld [vmem:[#allocation4 + $0x954] ss:$8 sps:$4 sm:$0xff]   ;;  %v1553_v12 = vrot.slane %v1247_v8, 2 }
 0x30e   : > { %13394 = vmatprep.subr.bf16.mxu0 %v19381_v19  ;;  %v1484_v17 = vrot.slane %v1200_v13, 2  ;;  %v1507_v19 = vrot.slane %v1208_v14, 2  ;;  %v19435_v2 = vld [vmem:[#allocation4 + $0x1b84] ss:$8 sps:$4 sm:$0xff]   ;;  %v19469_v61 = vld [vmem:[#allocation4 + $0x1be0] ss:$8 sps:$4 sm:$0xff]  }
 0x30f   : > { %v16313_v13 = vld [vmem:[%s20819_s25 + $0x420] sm:$0xff] }
 0x310   : > { %12081 = vmatpush1.bf16.msra.mxu1 %v19376_v20  ;;  %v1508_v20 = vrot.slane %v1216_v15, 2  ;;  %v1485_v22 = vsel %vm1383_vm1, %v1483_v16, %v1484_v17  ;;  %v16321_v14 = vld [vmem:[%s20819_s25 + $0x4a0] sm:$0xff]  ;;  %v19438_v16 = vld [vmem:[#allocation4 + $0x994] ss:$8 sps:$4 sm:$0xff]  }
 0x311   : > { %13395 = vmatpush1.bf16.msra.mxu0 %v19379_v21  ;;  %12123 = vmatprep.subr.bf16.mxu1 %v19384_v26  ;;  %v19417_v21 = vld [vmem:[#allocation4 + $0x1b54] ss:$8 sps:$4 sm:$0xff]   ;;  %v19415_v26 = vld [vmem:[#allocation4 + $0x1b50] ss:$8 sps:$4 sm:$0xff]   ;;  %v19433_v15 = vld [vmem:[#allocation4 + $0x1b80] ss:$8 sps:$4 sm:$0xff]  }
 0x312   : > { %13437 = vmatprep.subr.bf16.mxu0 %v19387_v27  ;;  %v1509_v27 = vsel %vm1383_vm1, %v1507_v19, %v1508_v20  ;;  %v19441_v19 = vld [vmem:[#allocation4 + $0x1b94] ss:$8 sps:$4 sm:$0xff]  }
 0x313   : > { %12083 = vmatmul.mubr.bf16.vlgmr.msra.gmra.mrb[0].mxu1 %v1640_v29  ;;  %v19420_v29 = vld [vmem:[#allocation4 + $0x964] ss:$8 sps:$4 sm:$0xff]  }
 0x314   : > { %13397 = vmatmul.mubr.bf16.vlgmr.msra.gmra.mrb[0].mxu0 %v3054_v30  ;;  %12124 = vmatpush1.bf16.msra.mxu1 %v19382_v28  ;;  %v3071_v28 = vpack.c.bf16 %v16306_v24, %v16298_v23  ;;  %v19423_v30 = vld [vmem:[#allocation4 + $0x1b64] ss:$8 sps:$4 sm:$0xff]   ;;  %v1130_v24 = vld [vmem:[%s20819_s25 + $0x18] sm:$0xfc] }
 0x315   : > { %13438 = vmatpush1.bf16.msra.mxu0 %v19385_v31  ;;  %12125 = vmatprep.subr.bf16.mxu1 %v19390_v32  ;;  %v1657_v31 = vpack.c.bf16 %v1509_v27, %v1485_v22  ;;  %v1191_v32 = vld [vmem:[%s20819_s25 + $0x200] sm:$0xfc]  ;;  %v19439_v22 = vld [vmem:[#allocation4 + $0x1b90] ss:$8 sps:$4 sm:$0xff]  }
 0x316   : > { %13439 = vmatprep.subr.bf16.mxu0 %v19393_v33  ;;  %13406 = vmatprep.mubr.bf16.mxu0 %v3063_v53  ;;  %v1199_v33 = vld [vmem:[%s20819_s25 + $0x240] sm:$0x3]  ;;  %v1248_v53 = vld [vmem:[%s20819_s25 + $0x3c8] sm:$0x3]  ;;  %v1154_v27 = vld [vmem:[%s20819_s25 + $0xd8] sm:$0x3] }
 0x317   : > { %12092 = vmatprep.mubr.bf16.mxu1 %v1649_v55 }
 0x318   : > { %12126 = vmatpush1.bf16.msra.mxu1 %v19388_v34  ;;  %v1207_v34 = vld [vmem:[%s20819_s25 + $0x280] sm:$0xfc] }
 0x319   : > { %13440 = vmatpush1.bf16.msra.mxu0 %v19391_v35  ;;  %12127 = vmatprep.subr.bf16.mxu1 %v19396_v36  ;;  %v1215_v35 = vld [vmem:[%s20819_s25 + $0x2c0] sm:$0x3]  ;;  %v1480_v36 = vrot.slane %v1191_v32, 2  ;;  %v1504_v38 = vrot.slane %v1207_v34, 2  ;;  %v1418_v32 = vrot.slane %v1154_v27, 2 }
 0x31a   : > { %13441 = vmatprep.subr.bf16.mxu0 %v19399_v37  ;;  %v1481_v37 = vrot.slane %v1199_v33, 2  ;;  %v1505_v39 = vrot.slane %v1215_v35, 2  ;;  %v19447_v33 = vld [vmem:[#allocation4 + $0x1ba4] ss:$8 sps:$4 sm:$0xff]   ;;  %v16268_v35 = vld [vmem:[%s20819_s25 + $0x138] sm:$0xff] }
 0x31b   : > { %12093 = vmatmul.mubr.bf16.gmra.mrb[4].mxu1 %v1648_v11 }
 0x31c   : > { %12128 = vmatpush1.bf16.msra.mxu1 %v19394_v44  ;;  %13407 = vmatmul.mubr.bf16.gmra.mrb[4].mxu0 %v3062_v6  ;;  %v1482_v44 = vsel %vm1383_vm1, %v1480_v36, %v1481_v37  ;;  %v19430_v6 = vld [vmem:[#allocation4 + $0x980] ss:$8 sps:$4 sm:$0xff]   ;;  %v16276_v36 = vld [vmem:[%s20819_s25 + $0x1b8] sm:$0xff] }
 0x31d   : > { %13442 = vmatpush1.bf16.msra.mxu0 %v19397_v47  ;;  %12129 = vmatprep.subr.bf16.mxu1 %v19402_v51  ;;  %v1506_v47 = vsel %vm1383_vm1, %v1504_v38, %v1505_v39  ;;  %v1232_v51 = vld [vmem:[%s20819_s25 + $0x348] sm:$0x3]  ;;  %v3057_v38 = vpack.c.bf16 %v16276_v36, %v16268_v35 }
 0x31e   : > { %13443 = vmatprep.subr.bf16.mxu0 %v19405_v54  ;;  %12102 = vmatprep.mubr.bf16.mxu1 %v1657_v31  ;;  %v1656_v49 = vpack.c.bf16 %v1506_v47, %v1482_v44  ;;  %v1531_v54 = vrot.slane %v1224_v50, 2  ;;  %v1532_v55 = vrot.slane %v1232_v51, 2  ;;  %v19448_v44 = vld [vmem:[#allocation4 + $0x9b0] ss:$8 sps:$4 sm:$0xff]   ;;  %v19459_v47 = vld [vmem:[#allocation4 + $0x1bc4] ss:$8 sps:$4 sm:$0xff]  }
 0x31f   : > { %13416 = vmatprep.mubr.bf16.mxu0 %v3071_v28  ;;  %v1393_v28 = vrot.slane %v1130_v24, 2  ;;  %v19462_v50 = vld [vmem:[#allocation4 + $0x9d4] ss:$8 sps:$4 sm:$0xff]   ;;  %v19493_v35 = vld [vmem:[#allocation4 + $0x1c20] ss:$8 sps:$4 sm:$0xff]  }
 0x320   : > { %12130 = vmatpush1.bf16.msra.mxu1 %v19400_v58  ;;  %v1556_v58 = vrot.slane %v1248_v53, 2  ;;  %v1533_v60 = vsel %vm1383_vm1, %v1531_v54, %v1532_v55  ;;  %v19465_v51 = vld [vmem:[#allocation4 + $0x1bd4] ss:$8 sps:$4 sm:$0xff]   ;;  %v19463_v53 = vld [vmem:[#allocation4 + $0x1bd0] ss:$8 sps:$4 sm:$0xff]  }
 0x321   : > { %13444 = vmatpush1.bf16.msra.mxu0 %v19403_v3  ;;  %12131 = vmatprep.subr.bf16.mxu1 %v19408_v4  ;;  %v1223_v4 = vld [vmem:[%s20819_s25 + $0x300] sm:$0xfc] }
 0x322   : > { %13445 = vmatprep.subr.bf16.mxu0 %v19411_v7  ;;  %v1557_v0 = vsel %vm1383_vm1, %v1555_v57, %v1556_v58  ;;  %v1239_v7 = vld [vmem:[%s20819_s25 + $0x380] sm:$0xfc]  ;;  %v1137_v57 = vld [vmem:[%s20819_s25 + $0x50] sm:$0x3]  ;;  %v1145_v58 = vld [vmem:[%s20819_s25 + $0x90] sm:$0xfc] }
 0x323   : > { %12103 = vmatmul.mubr.bf16.gmra.mrb[8].mxu1 %v1656_v49  ;;  %v1665_v3 = vpack.c.bf16 %v1557_v0, %v1533_v60  ;;  %v1552_v11 = vrot.slane %v1239_v7, 2  ;;  %v19457_v49 = vld [vmem:[#allocation4 + $0x1bc0] ss:$8 sps:$4 sm:$0xff]   ;;  %v19468_v54 = vld [vmem:[#allocation4 + $0x9e4] ss:$8 sps:$4 sm:$0xff]   ;;  %v1414_v0 = vrot.slane %v1145_v58, 2 }
 0x324   : > { %12132 = vmatpush1.bf16.msra.mxu1 %v19406_v9  ;;  %13417 = vmatmul.mubr.bf16.gmra.mrb[8].mxu0 %v3070_v45  ;;  %v1528_v9 = vrot.slane %v1223_v4, 2  ;;  %v19451_v45 = vld [vmem:[#allocation4 + $0x1bb0] ss:$8 sps:$4 sm:$0xff]   ;;  %v19471_v55 = vld [vmem:[#allocation4 + $0x1be4] ss:$8 sps:$4 sm:$0xff]  }
 0x325   : > { %13446 = vmatpush1.bf16.msra.mxu0 %v19409_v10  ;;  %12133 = vmatprep.subr.bf16.mxu1 %v19414_v18  ;;  %v1529_v10 = vrot.slane %v1231_v5, 2  ;;  %v3078_v18 = vpack.c.bf16 %v16321_v14, %v16313_v13  ;;  %v1554_v20 = vsel %vm1383_vm1, %v1552_v11, %v1553_v12  ;;  %v19466_v60 = vld [vmem:[#allocation4 + $0x9e0] ss:$8 sps:$4 sm:$0xff]   ;;  %v19472_v4 = vld [vmem:[#allocation4 + $0x9f0] ss:$8 sps:$4 sm:$0xff]  }
 0x326   : > { %13447 = vmatprep.subr.bf16.mxu0 %v19417_v21  ;;  %13426 = vmatprep.mubr.bf16.mxu0 %v3079_v1  ;;  %v19436_v21 = vld [vmem:[#allocation4 + $0x990] ss:$8 sps:$4 sm:$0xff]   ;;  %v19483_v11 = vld [vmem:[#allocation4 + $0x1c04] ss:$8 sps:$4 sm:$0xff]   ;;  %v19478_v12 = vld [vmem:[#allocation4 + $0xa00] ss:$8 sps:$4 sm:$0xff]  }
 0x327   : > { %12112 = vmatprep.mubr.bf16.mxu1 %v1665_v3  ;;  %v1530_v17 = vsel %vm1383_vm1, %v1528_v9, %v1529_v10  ;;  %v19477_v3 = vld [vmem:[#allocation4 + $0x1bf4] ss:$8 sps:$4 sm:$0xff]   ;;  %v19475_v5 = vld [vmem:[#allocation4 + $0x1bf0] ss:$8 sps:$4 sm:$0xff]   ;;  %v19480_v10 = vld [vmem:[#allocation4 + $0xa04] ss:$8 sps:$4 sm:$0xff]  }
 0x328   : > { %12134 = vmatpush1.bf16.msra.mxu1 %v19412_v25  ;;  %v1664_v23 = vpack.c.bf16 %v1554_v20, %v1530_v17  ;;  %v1138_v25 = vld [vmem:[%s20819_s25 + $0x58] sm:$0x3]  ;;  %v16275_v9 = vld [vmem:[%s20819_s25 + $0x1b0] sm:$0xff]  ;;  %v1194_v58 = vld [vmem:[%s20819_s25 + $0x218] sm:$0xfc] }
 0x329   : > { %13448 = vmatpush1.bf16.msra.mxu0 %v19415_v26  ;;  %12135 = vmatprep.subr.bf16.mxu1 %v19420_v29  ;;  %v1146_v26 = vld [vmem:[%s20819_s25 + $0x98] sm:$0xfc]  ;;  %v1394_v29 = vrot.slane %v1138_v25, 2 }
 0x32a   : > { %13449 = vmatprep.subr.bf16.mxu0 %v19423_v30  ;;  %v19444_v30 = vld [vmem:[#allocation4 + $0x9a4] ss:$8 sps:$4 sm:$0xff]   ;;  %v1417_v31 = vrot.slane %v1146_v26, 2  ;;  %v19489_v17 = vld [vmem:[#allocation4 + $0x1c14] ss:$8 sps:$4 sm:$0xff]  }
 0x32b   : > { %v1395_v34 = vsel %vm1383_vm1, %v1393_v28, %v1394_v29  ;;  %12113 = vmatmul.mubr.bf16.gmra.mrb[12].mxu1 %v1664_v23  ;;  %v19487_v20 = vld [vmem:[#allocation4 + $0x1c10] ss:$8 sps:$4 sm:$0xff]   ;;  %v19492_v28 = vld [vmem:[#allocation4 + $0xa24] ss:$8 sps:$4 sm:$0xff]  }
 0x32c   : > { %12136 = vmatpush1.bf16.msra.mxu1 %v19418_v42  ;;  %13427 = vmatmul.mubr.bf16.gmra.mrb[12].mxu0 %v3078_v18  ;;  %v1419_v37 = vsel %vm1383_vm1, %v1417_v31, %v1418_v32  ;;  %v19450_v42 = vld [vmem:[#allocation4 + $0x9b4] ss:$8 sps:$4 sm:$0xff]   ;;  %v1186_v23 = vld [vmem:[%s20819_s25 + $0x1d8] sm:$0x3]  ;;  %v19495_v29 = vld [vmem:[#allocation4 + $0x1c24] ss:$8 sps:$4 sm:$0xff]  }
 0x32d   : > { %13450 = vmatpush1.bf16.msra.mxu0 %v19421_v43  ;;  %12137 = vmatprep.subr.bf16.mxu1 %v19426_v46  ;;  %v1643_v39 = vpack.c.bf16 %v1419_v37, %v1395_v34  ;;  %v19453_v43 = vld [vmem:[#allocation4 + $0x1bb4] ss:$8 sps:$4 sm:$0xff]   ;;  %v19456_v46 = vld [vmem:[#allocation4 + $0x9c4] ss:$8 sps:$4 sm:$0xff]   ;;  %v1466_v27 = vrot.slane %v1186_v23, 2 }
 0x32e   : > { %13451 = vmatprep.subr.bf16.mxu0 %v19429_v48  ;;  %13469 = vmatprep.mubr.bf16.mxu0 %v3057_v38  ;;  %v19454_v48 = vld [vmem:[#allocation4 + $0x9c0] ss:$8 sps:$4 sm:$0xff]   ;;  %v1162_v18 = vld [vmem:[%s20819_s25 + $0x118] sm:$0xfc]  ;;  %v1161_v38 = vld [vmem:[%s20819_s25 + $0x110] sm:$0xfc] }
 0x32f   : > { %12155 = vmatprep.mubr.bf16.mxu1 %v1643_v39  ;;  %v1441_v24 = vrot.slane %v1162_v18, 2  ;;  %v19490_v34 = vld [vmem:[#allocation4 + $0xa20] ss:$8 sps:$4 sm:$0xff]   ;;  %v19498_v39 = vld [vmem:[#allocation4 + $0xa34] ss:$8 sps:$4 sm:$0xff]  }
 0x330   : > { %12138 = vmatpush1.bf16.msra.mxu1 %v19424_v56  ;;  %v1129_v56 = vld [vmem:[%s20819_s25 + $0x10] sm:$0xfc] }
 0x331   : > { %13452 = vmatpush1.bf16.msra.mxu0 %v19427_v59  ;;  %12139 = vmatprep.subr.bf16.mxu1 %v19432_v63  ;;  %v1153_v59 = vld [vmem:[%s20819_s25 + $0xd0] sm:$0x3]  ;;  %v1390_v62 = vrot.slane %v1129_v56, 2  ;;  %v1391_v63 = vrot.slane %v1137_v57, 2  ;;  %v19507_v56 = vld [vmem:[#allocation4 + $0x1c44] ss:$8 sps:$4 sm:$0xff]  }
 0x332   : > { %13453 = vmatprep.subr.bf16.mxu0 %v19435_v2  ;;  %v1415_v1 = vrot.slane %v1153_v59, 2  ;;  %v19474_v2 = vld [vmem:[#allocation4 + $0x9f4] ss:$8 sps:$4 sm:$0xff]   ;;  %v1202_v59 = vld [vmem:[%s20819_s25 + $0x258] sm:$0x3] }
 0x333   : > { %v1392_v7 = vsel %vm1383_vm1, %v1390_v62, %v1391_v63  ;;  %v1489_v62 = vrot.slane %v1194_v58, 2  ;;  %v1490_v63 = vrot.slane %v1202_v59, 2  ;;  %v16315_v59 = vld [vmem:[%s20819_s25 + $0x430] sm:$0xff] }
 0x334   : > { %12140 = vmatpush1.bf16.msra.mxu1 %v19430_v6  ;;  %v16267_v6 = vld [vmem:[%s20819_s25 + $0x130] sm:$0xff]  ;;  %v1416_v8 = vsel %vm1383_vm1, %v1414_v0, %v1415_v1 }
 0x335   : > { %13454 = vmatpush1.bf16.msra.mxu0 %v19433_v15  ;;  %12141 = vmatprep.subr.bf16.mxu1 %v19438_v16  ;;  %v1642_v13 = vpack.c.bf16 %v1416_v8, %v1392_v7  ;;  %v3056_v14 = vpack.c.bf16 %v16275_v9, %v16267_v6  ;;  %v19481_v15 = vld [vmem:[#allocation4 + $0x1c00] ss:$8 sps:$4 sm:$0xff]   ;;  %v19486_v16 = vld [vmem:[#allocation4 + $0xa14] ss:$8 sps:$4 sm:$0xff]  }
 0x336   : > { %13455 = vmatprep.subr.bf16.mxu0 %v19441_v19  ;;  %v19484_v19 = vld [vmem:[#allocation4 + $0xa10] ss:$8 sps:$4 sm:$0xff]   ;;  %v19510_v8 = vld [vmem:[#allocation4 + $0xa54] ss:$8 sps:$4 sm:$0xff]  }
 0x337   : > { %v16308_v7 = vld [vmem:[%s20819_s25 + $0x3b8] sm:$0xff] }
 0x338   : > { %12142 = vmatpush1.bf16.msra.mxu1 %v19436_v21  ;;  %v1170_v21 = vld [vmem:[%s20819_s25 + $0x158] sm:$0x3]  ;;  %v19513_v9 = vld [vmem:[#allocation4 + $0x1c54] ss:$8 sps:$4 sm:$0xff]  }
 0x339   : > { %13456 = vmatpush1.bf16.msra.mxu0 %v19439_v22  ;;  %12143 = vmatprep.subr.bf16.mxu1 %v19444_v30  ;;  %v1178_v22 = vld [vmem:[%s20819_s25 + $0x198] sm:$0xfc]  ;;  %v1442_v25 = vrot.slane %v1170_v21, 2  ;;  %v16307_v21 = vld [vmem:[%s20819_s25 + $0x3b0] sm:$0xff] }
 0x33a   : > { %13457 = vmatprep.subr.bf16.mxu0 %v19447_v33  ;;  %v1465_v26 = vrot.slane %v1178_v22, 2  ;;  %v16284_v30 = vld [vmem:[%s20819_s25 + $0x238] sm:$0xff] }
 0x33b   : > { %v1443_v31 = vsel %vm1383_vm1, %v1441_v24, %v1442_v25  ;;  %v16292_v33 = vld [vmem:[%s20819_s25 + $0x2b8] sm:$0xff] }
 0x33c   : > { %12144 = vmatpush1.bf16.msra.mxu1 %v19442_v40  ;;  %v1467_v32 = vsel %vm1383_vm1, %v1465_v26, %v1466_v27  ;;  %v3065_v37 = vpack.c.bf16 %v16292_v33, %v16284_v30  ;;  %v1169_v40 = vld [vmem:[%s20819_s25 + $0x150] sm:$0x3]  ;;  %v19516_v27 = vld [vmem:[#allocation4 + $0xa64] ss:$8 sps:$4 sm:$0xff]   ;;  %v1226_v30 = vld [vmem:[%s20819_s25 + $0x318] sm:$0xfc] }
 0x33d   : > { %13458 = vmatpush1.bf16.msra.mxu0 %v19445_v41  ;;  %12145 = vmatprep.subr.bf16.mxu1 %v19450_v42  ;;  %v1651_v36 = vpack.c.bf16 %v1467_v32, %v1443_v31  ;;  %v1177_v41 = vld [vmem:[%s20819_s25 + $0x190] sm:$0xfc]  ;;  %v1185_v42 = vld [vmem:[%s20819_s25 + $0x1d0] sm:$0x3]  ;;  %v19514_v31 = vld [vmem:[#allocation4 + $0xa60] ss:$8 sps:$4 sm:$0xff]  }
 0x33e   : > { %13459 = vmatprep.subr.bf16.mxu0 %v19453_v43  ;;  %v1438_v43 = vrot.slane %v1161_v38, 2  ;;  %v19508_v22 = vld [vmem:[#allocation4 + $0xa50] ss:$8 sps:$4 sm:$0xff]   ;;  %v19517_v32 = vld [vmem:[#allocation4 + $0x1c60] ss:$8 sps:$4 sm:$0xff]  }
 0x33f   : > { %v19511_v24 = vld [vmem:[#allocation4 + $0x1c50] ss:$8 sps:$4 sm:$0xff]  }
 0x340   : > { %12146 = vmatpush1.bf16.msra.mxu1 %v19448_v44  ;;  %v1439_v44 = vrot.slane %v1169_v40, 2  ;;  %v1234_v33 = vld [vmem:[%s20819_s25 + $0x358] sm:$0x3]  ;;  %v19522_v40 = vld [vmem:[#allocation4 + $0xa74] ss:$8 sps:$4 sm:$0xff]  }
 0x341   : > { %13460 = vmatpush1.bf16.msra.mxu0 %v19451_v45  ;;  %12147 = vmatprep.subr.bf16.mxu1 %v19456_v46  ;;  %v1462_v45 = vrot.slane %v1177_v41, 2  ;;  %v1463_v46 = vrot.slane %v1185_v42, 2  ;;  %v19525_v41 = vld [vmem:[#allocation4 + $0x1c74] ss:$8 sps:$4 sm:$0xff]  }
 0x342   : > { %13461 = vmatprep.subr.bf16.mxu0 %v19459_v47  ;;  %v16283_v47 = vld [vmem:[%s20819_s25 + $0x230] sm:$0xff]  ;;  %v16316_v42 = vld [vmem:[%s20819_s25 + $0x438] sm:$0xff] }
 0x344   : > { %12148 = vmatpush1.bf16.msra.mxu1 %v19454_v48  ;;  %v16291_v48 = vld [vmem:[%s20819_s25 + $0x2b0] sm:$0xff] }
 0x345   : > { %13462 = vmatpush1.bf16.msra.mxu0 %v19457_v49  ;;  %12149 = vmatprep.subr.bf16.mxu1 %v19462_v50  ;;  %v19501_v49 = vld [vmem:[#allocation4 + $0x1c34] ss:$8 sps:$4 sm:$0xff]   ;;  %v3064_v50 = vpack.c.bf16 %v16291_v48, %v16283_v47  ;;  %v19523_v47 = vld [vmem:[#allocation4 + $0x1c70] ss:$8 sps:$4 sm:$0xff]  }
 0x346   : > { %13463 = vmatprep.subr.bf16.mxu0 %v19465_v51  ;;  %v19496_v51 = vld [vmem:[#allocation4 + $0xa30] ss:$8 sps:$4 sm:$0xff]  }
 0x348   : > { %12150 = vmatpush1.bf16.msra.mxu1 %v19460_v52  ;;  %v19499_v52 = vld [vmem:[#allocation4 + $0x1c30] ss:$8 sps:$4 sm:$0xff]  }
 0x349   : > { %13464 = vmatpush1.bf16.msra.mxu0 %v19463_v53  ;;  %12151 = vmatprep.subr.bf16.mxu1 %v19468_v54  ;;  %v1440_v53 = vsel %vm1383_vm1, %v1438_v43, %v1439_v44  ;;  %v1464_v54 = vsel %vm1383_vm1, %v1462_v45, %v1463_v46  ;;  %v16324_v45 = vld [vmem:[%s20819_s25 + $0x4b8] sm:$0xff] }
 0x34a   : > { %13465 = vmatprep.subr.bf16.mxu0 %v19471_v55  ;;  %v19504_v55 = vld [vmem:[#allocation4 + $0xa44] ss:$8 sps:$4 sm:$0xff]   ;;  %v1650_v57 = vpack.c.bf16 %v1464_v54, %v1440_v53  ;;  %v19520_v46 = vld [vmem:[#allocation4 + $0xa70] ss:$8 sps:$4 sm:$0xff]  }
 0x34b   : > { %v1241_v53 = vld [vmem:[%s20819_s25 + $0x390] sm:$0xfc]  ;;  %v1249_v54 = vld [vmem:[%s20819_s25 + $0x3d0] sm:$0x3] }
 0x34c   : > { %12152 = vmatpush1.bf16.msra.mxu1 %v19466_v60  ;;  %v1210_v60 = vld [vmem:[%s20819_s25 + $0x298] sm:$0xfc]  ;;  %v1559_v58 = vrot.slane %v1249_v54, 2  ;;  %v16341_v54 = vld [vmem:[%s20819_s25 + $0x180] sm:$0xfe] }
 0x34d   : > { %13466 = vmatpush1.bf16.msra.mxu0 %v19469_v61  ;;  %12153 = vmatprep.subr.bf16.mxu1 %v19474_v2  ;;  %v1218_v61 = vld [vmem:[%s20819_s25 + $0x2d8] sm:$0x3]  ;;  %v1513_v0 = vrot.slane %v1210_v60, 2  ;;  %v19502_v2 = vld [vmem:[#allocation4 + $0xa40] ss:$8 sps:$4 sm:$0xff]   ;;  %v16323_v60 = vld [vmem:[%s20819_s25 + $0x4b0] sm:$0xff] }
 0x34e   : > { %13467 = vmatprep.subr.bf16.mxu0 %v19477_v3  ;;  %v1514_v1 = vrot.slane %v1218_v61, 2  ;;  %v19505_v3 = vld [vmem:[#allocation4 + $0x1c40] ss:$8 sps:$4 sm:$0xff]   ;;  %v19531_v61 = vld [vmem:[#allocation4 + $0x1c84] ss:$8 sps:$4 sm:$0xff]  }
 0x350   : > { %12154 = vmatpush1.bf16.msra.mxu1 %v19472_v4  ;;  %v16300_v4 = vld [vmem:[%s20819_s25 + $0x338] sm:$0xff]  ;;  %v1515_v6 = vsel %vm1383_vm1, %v1513_v0, %v1514_v1  ;;  %v19529_v0 = vld [vmem:[#allocation4 + $0x1c80] ss:$8 sps:$4 sm:$0xff]  }
 0x351   : > { %13468 = vmatpush1.bf16.msra.mxu0 %v19475_v5  ;;  %12196 = vmatprep.subr.bf16.mxu1 %v19480_v10  ;;  %v1491_v5 = vsel %vm1383_vm1, %v1489_v62, %v1490_v63  ;;  %v3080_v62 = vpack.c.bf16 %v16323_v60, %v16315_v59  ;;  %v19526_v63 = vld [vmem:[#allocation4 + $0xa80] ss:$8 sps:$4 sm:$0xff]  }
 0x352   : > { %13510 = vmatprep.subr.bf16.mxu0 %v19483_v11  ;;  %v1659_v10 = vpack.c.bf16 %v1515_v6, %v1491_v5  ;;  %v3073_v11 = vpack.c.bf16 %v16308_v7, %v16300_v4  ;;  %v19537_v4 = vld [vmem:[#allocation4 + $0x1c94] ss:$8 sps:$4 sm:$0xff]   ;;  %v1132_v6 = vld [vmem:[%s20819_s25 + $0x28] sm:$0xfc]  ;;  %v1140_v7 = vld [vmem:[%s20819_s25 + $0x68] sm:$0x3] }
 0x353   : > { %12156 = vmatmul.mubr.bf16.vlgmr.msra.gmra.mrb[0].mxu1 %v1642_v13  ;;  %v1201_v13 = vld [vmem:[%s20819_s25 + $0x250] sm:$0x3] }
 0x354   : > { %13470 = vmatmul.mubr.bf16.vlgmr.msra.gmra.mrb[0].mxu0 %v3056_v14  ;;  %12197 = vmatpush1.bf16.msra.mxu1 %v19478_v12  ;;  %v1193_v12 = vld [vmem:[%s20819_s25 + $0x210] sm:$0xfc] }
 0x355   : > { %13511 = vmatpush1.bf16.msra.mxu0 %v19481_v15  ;;  %12198 = vmatprep.subr.bf16.mxu1 %v19486_v16  ;;  %v1209_v14 = vld [vmem:[%s20819_s25 + $0x290] sm:$0xfc]  ;;  %v1217_v15 = vld [vmem:[%s20819_s25 + $0x2d0] sm:$0x3]  ;;  %v1486_v16 = vrot.slane %v1193_v12, 2 }
 0x356   : > { %13512 = vmatprep.subr.bf16.mxu0 %v19489_v17  ;;  %12165 = vmatprep.mubr.bf16.mxu1 %v1651_v36  ;;  %v1487_v17 = vrot.slane %v1201_v13, 2  ;;  %v1510_v18 = vrot.slane %v1209_v14, 2  ;;  %v1537_v36 = vrot.slane %v1226_v30, 2  ;;  %v19532_v14 = vld [vmem:[#allocation4 + $0xa90] ss:$8 sps:$4 sm:$0xff]  }
 0x357   : > { %13479 = vmatprep.mubr.bf16.mxu0 %v3065_v37  ;;  %v1538_v37 = vrot.slane %v1234_v33, 2 }
 0x358   : > { %12199 = vmatpush1.bf16.msra.mxu1 %v19484_v19  ;;  %v1511_v19 = vrot.slane %v1217_v15, 2  ;;  %v1488_v25 = vsel %vm1383_vm1, %v1486_v16, %v1487_v17  ;;  %v19535_v15 = vld [vmem:[#allocation4 + $0x1c90] ss:$8 sps:$4 sm:$0xff]   ;;  %v16326_v16 = vld [vmem:[%s20819_s25 + $0x108] sm:$0xfe] }
 0x359   : > { %13513 = vmatpush1.bf16.msra.mxu0 %v19487_v20  ;;  %12200 = vmatprep.subr.bf16.mxu1 %v19492_v28  ;;  %v16299_v20 = vld [vmem:[%s20819_s25 + $0x330] sm:$0xff]  ;;  %v19519_v28 = vld [vmem:[#allocation4 + $0x1c64] ss:$8 sps:$4 sm:$0xff]   ;;  %v1539_v43 = vsel %vm1383_vm1, %v1537_v36, %v1538_v37 }
 0x35a   : > { %13514 = vmatprep.subr.bf16.mxu0 %v19495_v29  ;;  %v3072_v23 = vpack.c.bf16 %v16307_v21, %v16299_v20  ;;  %v1512_v26 = vsel %vm1383_vm1, %v1510_v18, %v1511_v19  ;;  %v16334_v19 = vld [vmem:[%s20819_s25 + $0x148] sm:$0x1]  ;;  %v16342_v20 = vld [vmem:[%s20819_s25 + $0x188] sm:$0xfe]  ;;  %v19544_v36 = vld [vmem:[#allocation4 + $0xab0] ss:$8 sps:$4 sm:$0xff]  }
 0x35b   : > { %12166 = vmatmul.mubr.bf16.gmra.mrb[4].mxu1 %v1650_v57  ;;  %v1658_v29 = vpack.c.bf16 %v1512_v26, %v1488_v25  ;;  %v1558_v57 = vrot.slane %v1241_v53, 2  ;;  %v16350_v21 = vld [vmem:[%s20819_s25 + $0x1c8] sm:$0x1]  ;;  %v3397_v25 = vrot.slane %v16342_v20, 1  ;;  %v19540_v26 = vld [vmem:[#allocation4 + $0xaa4] ss:$8 sps:$4 sm:$0xff]  }
 0x35c   : > { %13480 = vmatmul.mubr.bf16.gmra.mrb[4].mxu0 %v3064_v50  ;;  %12201 = vmatpush1.bf16.msra.mxu1 %v19490_v34  ;;  %v1242_v34 = vld [vmem:[%s20819_s25 + $0x398] sm:$0xfc]  ;;  %v1225_v50 = vld [vmem:[%s20819_s25 + $0x310] sm:$0xfc]  ;;  %v16333_v53 = vld [vmem:[%s20819_s25 + $0x140] sm:$0x1] }
 0x35d   : > { %13515 = vmatpush1.bf16.msra.mxu0 %v19493_v35  ;;  %12202 = vmatprep.subr.bf16.mxu1 %v19498_v39  ;;  %v1250_v35 = vld [vmem:[%s20819_s25 + $0x3d8] sm:$0x3]  ;;  %v1561_v38 = vrot.slane %v1242_v34, 2  ;;  %v19546_v34 = vld [vmem:[#allocation4 + $0xab4] ss:$8 sps:$4 sm:$0xff]  }
 0x35e   : > { %13516 = vmatprep.subr.bf16.mxu0 %v19501_v49  ;;  %12175 = vmatprep.mubr.bf16.mxu1 %v1659_v10  ;;  %v1562_v39 = vrot.slane %v1250_v35, 2  ;;  %v3081_v49 = vpack.c.bf16 %v16324_v45, %v16316_v42  ;;  %v1399_v10 = vrot.slane %v1132_v6, 2  ;;  %v19549_v35 = vld [vmem:[#allocation4 + $0x1cb4] ss:$8 sps:$4 sm:$0xff]   ;;  %v19547_v37 = vld [vmem:[#allocation4 + $0x1cb0] ss:$8 sps:$4 sm:$0xff]  }
 0x35f   : > { %13489 = vmatprep.mubr.bf16.mxu0 %v3073_v11  ;;  %v1400_v11 = vrot.slane %v1140_v7, 2  ;;  %v19558_v42 = vld [vmem:[#allocation4 + $0xad4] ss:$8 sps:$4 sm:$0xff]   ;;  %v19559_v45 = vld [vmem:[#allocation4 + $0x1cd0] ss:$8 sps:$4 sm:$0xff]  }
 0x360   : > { %12203 = vmatpush1.bf16.msra.mxu1 %v19496_v51  ;;  %v1563_v44 = vsel %vm1383_vm1, %v1561_v38, %v1562_v39  ;;  %v19528_v51 = vld [vmem:[#allocation4 + $0xa84] ss:$8 sps:$4 sm:$0xff]   ;;  %v19571_v6 = vld [vmem:[#allocation4 + $0x1cf0] ss:$8 sps:$4 sm:$0xff]  }
 0x361   : > { %13517 = vmatpush1.bf16.msra.mxu0 %v19499_v52  ;;  %12204 = vmatprep.subr.bf16.mxu1 %v19504_v55  ;;  %v1667_v48 = vpack.c.bf16 %v1563_v44, %v1539_v43  ;;  %v1233_v52 = vld [vmem:[%s20819_s25 + $0x350] sm:$0x3]  ;;  %v1534_v55 = vrot.slane %v1225_v50, 2  ;;  %v1401_v17 = vsel %vm1383_vm1, %v1399_v10, %v1400_v11  ;;  %v19552_v38 = vld [vmem:[#allocation4 + $0xac4] ss:$8 sps:$4 sm:$0xff]  }
 0x362   : > { %13518 = vmatprep.subr.bf16.mxu0 %v19507_v56  ;;  %v1535_v56 = vrot.slane %v1233_v52, 2  ;;  %v19555_v39 = vld [vmem:[#allocation4 + $0x1cc4] ss:$8 sps:$4 sm:$0xff]   ;;  %v19561_v43 = vld [vmem:[#allocation4 + $0x1cd4] ss:$8 sps:$4 sm:$0xff]  }
 0x363   : > { %12176 = vmatmul.mubr.bf16.gmra.mrb[8].mxu1 %v1658_v29  ;;  %v19556_v44 = vld [vmem:[#allocation4 + $0xad0] ss:$8 sps:$4 sm:$0xff]   ;;  %v19567_v50 = vld [vmem:[#allocation4 + $0x1ce4] ss:$8 sps:$4 sm:$0xff]  }
 0x364   : > { %12205 = vmatpush1.bf16.msra.mxu1 %v19502_v2  ;;  %13490 = vmatmul.mubr.bf16.gmra.mrb[8].mxu0 %v3072_v23  ;;  %v1536_v1 = vsel %vm1383_vm1, %v1534_v55, %v1535_v56  ;;  %v1560_v2 = vsel %vm1383_vm1, %v1558_v57, %v1559_v58  ;;  %v3373_v23 = vrot.slane %v16326_v16, 1  ;;  %v16325_v52 = vld [vmem:[%s20819_s25 + $0x100] sm:$0xfe]  ;;  %v16349_v55 = vld [vmem:[%s20819_s25 + $0x1c0] sm:$0x1] }
 0x365   : > { %13519 = vmatpush1.bf16.msra.mxu0 %v19505_v3  ;;  %12206 = vmatprep.subr.bf16.mxu1 %v19510_v8  ;;  %v19534_v3 = vld [vmem:[#allocation4 + $0xa94] ss:$8 sps:$4 sm:$0xff]   ;;  %v1666_v5 = vpack.c.bf16 %v1560_v2, %v1536_v1  ;;  %v1148_v8 = vld [vmem:[%s20819_s25 + $0xa8] sm:$0xfc]  ;;  %v3394_v1 = vrot.slane %v16341_v54, 1  ;;  %v3395_v2 = vrot.slane %v16349_v55, 1 }
 0x366   : > { %13520 = vmatprep.subr.bf16.mxu0 %v19513_v9  ;;  %12185 = vmatprep.mubr.bf16.mxu1 %v1667_v48  ;;  %v1156_v9 = vld [vmem:[%s20819_s25 + $0xe8] sm:$0x3]  ;;  %v1423_v12 = vrot.slane %v1148_v8, 2  ;;  %v1147_v48 = vld [vmem:[%s20819_s25 + $0xa0] sm:$0xfc] }
 0x367   : > { %13499 = vmatprep.mubr.bf16.mxu0 %v3081_v49  ;;  %v1424_v13 = vrot.slane %v1156_v9, 2  ;;  %v19564_v49 = vld [vmem:[#allocation4 + $0xae4] ss:$8 sps:$4 sm:$0xff]   ;;  %v19562_v56 = vld [vmem:[#allocation4 + $0xae0] ss:$8 sps:$4 sm:$0xff]   ;;  %v3396_v10 = vsel %vm806_vm0, %v3394_v1, %v3395_v2 }
 0x368   : > { %12207 = vmatpush1.bf16.msra.mxu1 %v19508_v22  ;;  %v19565_v57 = vld [vmem:[#allocation4 + $0x1ce0] ss:$8 sps:$4 sm:$0xff]   ;;  %v19570_v58 = vld [vmem:[#allocation4 + $0xaf4] ss:$8 sps:$4 sm:$0xff]   ;;  %v19576_v7 = vld [vmem:[#allocation4 + $0xb04] ss:$8 sps:$4 sm:$0xff]  }
 0x369   : > { %13521 = vmatpush1.bf16.msra.mxu0 %v19511_v24  ;;  %12208 = vmatprep.subr.bf16.mxu1 %v19516_v27  ;;  %v1425_v18 = vsel %vm1383_vm1, %v1423_v12, %v1424_v13  ;;  %v3374_v24 = vrot.slane %v16334_v19, 1  ;;  %v19543_v27 = vld [vmem:[#allocation4 + $0x1ca4] ss:$8 sps:$4 sm:$0xff]   ;;  %v19574_v12 = vld [vmem:[#allocation4 + $0xb00] ss:$8 sps:$4 sm:$0xff]  }
 0x36a   : > { %13522 = vmatprep.subr.bf16.mxu0 %v19519_v28  ;;  %v1645_v22 = vpack.c.bf16 %v1425_v18, %v1401_v17  ;;  %v3398_v28 = vrot.slane %v16350_v21, 1  ;;  %v19579_v11 = vld [vmem:[#allocation4 + $0x1d04] ss:$8 sps:$4 sm:$0xff]   ;;  %v19577_v13 = vld [vmem:[#allocation4 + $0x1d00] ss:$8 sps:$4 sm:$0xff]  }
 0x36b   : > { %12186 = vmatmul.mubr.bf16.gmra.mrb[12].mxu1 %v1666_v5  ;;  %v3375_v29 = vsel %vm806_vm0, %v3373_v23, %v3374_v24  ;;  %v19582_v16 = vld [vmem:[#allocation4 + $0xb14] ss:$8 sps:$4 sm:$0xff]   ;;  %v1164_v18 = vld [vmem:[%s20819_s25 + $0x128] sm:$0xfc]  ;;  %v1172_v19 = vld [vmem:[%s20819_s25 + $0x168] sm:$0x3] }
 0x36c   : > { %12209 = vmatpush1.bf16.msra.mxu1 %v19514_v31  ;;  %13500 = vmatmul.mubr.bf16.gmra.mrb[12].mxu0 %v3080_v62  ;;  %v3399_v30 = vsel %vm806_vm0, %v3397_v25, %v3398_v28  ;;  %v19538_v31 = vld [vmem:[#allocation4 + $0xaa0] ss:$8 sps:$4 sm:$0xff]   ;;  %v19585_v17 = vld [vmem:[#allocation4 + $0x1d14] ss:$8 sps:$4 sm:$0xff]   ;;  %v19580_v21 = vld [vmem:[#allocation4 + $0xb10] ss:$8 sps:$4 sm:$0xff]  }
 0x36d   : > { %13523 = vmatpush1.bf16.msra.mxu0 %v19517_v32  ;;  %12210 = vmatprep.subr.bf16.mxu1 %v19522_v40  ;;  %v19541_v32 = vld [vmem:[#allocation4 + $0x1ca0] ss:$8 sps:$4 sm:$0xff]   ;;  %v3627_v33 = vpack.c.bf16 %v3399_v30, %v3375_v29  ;;  %v1447_v24 = vrot.slane %v1164_v18, 2  ;;  %v1448_v25 = vrot.slane %v1172_v19, 2  ;;  %v19591_v28 = vld [vmem:[#allocation4 + $0x1d24] ss:$8 sps:$4 sm:$0xff]  }
 0x36e   : > { %13524 = vmatprep.subr.bf16.mxu0 %v19525_v41  ;;  %12228 = vmatprep.mubr.bf16.mxu1 %v1645_v22  ;;  %v19550_v40 = vld [vmem:[#allocation4 + $0xac0] ss:$8 sps:$4 sm:$0xff]   ;;  %v19583_v22 = vld [vmem:[#allocation4 + $0x1d10] ss:$8 sps:$4 sm:$0xff]   ;;  %v19606_v18 = vld [vmem:[#allocation4 + $0xb54] ss:$8 sps:$4 sm:$0xff]  }
 0x36f   : > { %13542 = vmatprep.mubr.bf16.mxu0 %v3627_v33  ;;  %v19553_v41 = vld [vmem:[#allocation4 + $0x1cc0] ss:$8 sps:$4 sm:$0xff]   ;;  %v1449_v30 = vsel %vm1383_vm1, %v1447_v24, %v1448_v25 }
 0x370   : > { %12211 = vmatpush1.bf16.msra.mxu1 %v19520_v46  ;;  %v1131_v46 = vld [vmem:[%s20819_s25 + $0x20] sm:$0xfc]  ;;  %v1180_v20 = vld [vmem:[%s20819_s25 + $0x1a8] sm:$0xfc]  ;;  %v1188_v23 = vld [vmem:[%s20819_s25 + $0x1e8] sm:$0x3] }
 0x371   : > { %13525 = vmatpush1.bf16.msra.mxu0 %v19523_v47  ;;  %12212 = vmatprep.subr.bf16.mxu1 %v19528_v51  ;;  %v1139_v47 = vld [vmem:[%s20819_s25 + $0x60] sm:$0x3]  ;;  %v1396_v59 = vrot.slane %v1131_v46, 2  ;;  %v1472_v29 = vrot.slane %v1188_v23, 2  ;;  %v16374_v33 = vld [vmem:[%s20819_s25 + $0x288] sm:$0xfe] }
 0x372   : > { %13526 = vmatprep.subr.bf16.mxu0 %v19531_v61  ;;  %v1155_v51 = vld [vmem:[%s20819_s25 + $0xe0] sm:$0x3]  ;;  %v1397_v60 = vrot.slane %v1139_v47, 2  ;;  %v1420_v61 = vrot.slane %v1147_v48, 2  ;;  %v1163_v46 = vld [vmem:[%s20819_s25 + $0x120] sm:$0xfc] }
 0x373   : > { %v1421_v62 = vrot.slane %v1155_v51, 2  ;;  %v1171_v47 = vld [vmem:[%s20819_s25 + $0x160] sm:$0x3]  ;;  %v1179_v48 = vld [vmem:[%s20819_s25 + $0x1a0] sm:$0xfc]  ;;  %v1444_v51 = vrot.slane %v1163_v46, 2 }
 0x374   : > { %12213 = vmatpush1.bf16.msra.mxu1 %v19526_v63  ;;  %v3370_v63 = vrot.slane %v16325_v52, 1  ;;  %v1398_v5 = vsel %vm1383_vm1, %v1396_v59, %v1397_v60  ;;  %v1445_v52 = vrot.slane %v1171_v47, 2  ;;  %v16373_v59 = vld [vmem:[%s20819_s25 + $0x280] sm:$0xfe]  ;;  %v16381_v60 = vld [vmem:[%s20819_s25 + $0x2c0] sm:$0x1] }
 0x375   : > { %13527 = vmatpush1.bf16.msra.mxu0 %v19529_v0  ;;  %12214 = vmatprep.subr.bf16.mxu1 %v19534_v3  ;;  %v3371_v0 = vrot.slane %v16333_v53, 1  ;;  %v19573_v3 = vld [vmem:[#allocation4 + $0x1cf4] ss:$8 sps:$4 sm:$0xff]   ;;  %v1422_v8 = vsel %vm1383_vm1, %v1420_v61, %v1421_v62  ;;  %v1468_v53 = vrot.slane %v1179_v48, 2  ;;  %v3442_v2 = vrot.slane %v16373_v59, 1 }
 0x376   : > { %13528 = vmatprep.subr.bf16.mxu0 %v19537_v4  ;;  %v19568_v4 = vld [vmem:[#allocation4 + $0xaf0] ss:$8 sps:$4 sm:$0xff]   ;;  %v16390_v23 = vld [vmem:[%s20819_s25 + $0x308] sm:$0xfe]  ;;  %v16398_v24 = vld [vmem:[%s20819_s25 + $0x348] sm:$0x1] }
 0x377   : > { %v3372_v9 = vsel %vm806_vm0, %v3370_v63, %v3371_v0  ;;  %v19592_v63 = vld [vmem:[#allocation4 + $0xb30] ss:$8 sps:$4 sm:$0xff]   ;;  %v16389_v48 = vld [vmem:[%s20819_s25 + $0x300] sm:$0xfe] }
 0x378   : > { %12215 = vmatpush1.bf16.msra.mxu1 %v19532_v14  ;;  %v1644_v14 = vpack.c.bf16 %v1422_v8, %v1398_v5  ;;  %v19595_v0 = vld [vmem:[#allocation4 + $0x1d30] ss:$8 sps:$4 sm:$0xff]   ;;  %v19613_v59 = vld [vmem:[#allocation4 + $0x1d60] ss:$8 sps:$4 sm:$0xff]  }
 0x379   : > { %13529 = vmatpush1.bf16.msra.mxu0 %v19535_v15  ;;  %12216 = vmatprep.subr.bf16.mxu1 %v19540_v26  ;;  %v3626_v15 = vpack.c.bf16 %v3396_v10, %v3372_v9  ;;  %v1471_v26 = vrot.slane %v1180_v20, 2  ;;  %v1196_v9 = vld [vmem:[%s20819_s25 + $0x228] sm:$0xfc]  ;;  %v1204_v10 = vld [vmem:[%s20819_s25 + $0x268] sm:$0x3] }
 0x37a   : > { %13530 = vmatprep.subr.bf16.mxu0 %v19543_v27  ;;  %v19588_v27 = vld [vmem:[#allocation4 + $0xb24] ss:$8 sps:$4 sm:$0xff]  }
 0x37c   : > { %12217 = vmatpush1.bf16.msra.mxu1 %v19538_v31  ;;  %v16358_v31 = vld [vmem:[%s20819_s25 + $0x208] sm:$0xfe] }
 0x37d   : > { %13531 = vmatpush1.bf16.msra.mxu0 %v19541_v32  ;;  %12218 = vmatprep.subr.bf16.mxu1 %v19546_v34  ;;  %v16366_v32 = vld [vmem:[%s20819_s25 + $0x248] sm:$0x1]  ;;  %v1473_v34 = vsel %vm1383_vm1, %v1471_v26, %v1472_v29  ;;  %v16406_v26 = vld [vmem:[%s20819_s25 + $0x388] sm:$0xfe]  ;;  %v3470_v29 = vrot.slane %v16398_v24, 1 }
 0x37e   : > { %13532 = vmatprep.subr.bf16.mxu0 %v19549_v35  ;;  %v16382_v35 = vld [vmem:[%s20819_s25 + $0x2c8] sm:$0x1] }
 0x380   : > { %12219 = vmatpush1.bf16.msra.mxu1 %v19544_v36  ;;  %v3421_v36 = vrot.slane %v16358_v31, 1  ;;  %v19607_v31 = vld [vmem:[#allocation4 + $0x1d50] ss:$8 sps:$4 sm:$0xff]  }
 0x381   : > { %13533 = vmatpush1.bf16.msra.mxu0 %v19547_v37  ;;  %12220 = vmatprep.subr.bf16.mxu1 %v19552_v38  ;;  %v3422_v37 = vrot.slane %v16366_v32, 1  ;;  %v3445_v38 = vrot.slane %v16374_v33, 1  ;;  %v3493_v33 = vrot.slane %v16406_v26, 1  ;;  %v19630_v26 = vld [vmem:[#allocation4 + $0xb94] ss:$8 sps:$4 sm:$0xff]  }
 0x382   : > { %13534 = vmatprep.subr.bf16.mxu0 %v19555_v39  ;;  %v19586_v39 = vld [vmem:[#allocation4 + $0xb20] ss:$8 sps:$4 sm:$0xff]  }
 0x384   : > { %12221 = vmatpush1.bf16.msra.mxu1 %v19550_v40  ;;  %v19589_v40 = vld [vmem:[#allocation4 + $0x1d20] ss:$8 sps:$4 sm:$0xff]  }
 0x385   : > { %13535 = vmatpush1.bf16.msra.mxu0 %v19553_v41  ;;  %12222 = vmatprep.subr.bf16.mxu1 %v19558_v42  ;;  %v1653_v41 = vpack.c.bf16 %v1473_v34, %v1449_v30  ;;  %v3446_v42 = vrot.slane %v16382_v35, 1  ;;  %v19604_v30 = vld [vmem:[#allocation4 + $0xb50] ss:$8 sps:$4 sm:$0xff]   ;;  %v19612_v35 = vld [vmem:[#allocation4 + $0xb64] ss:$8 sps:$4 sm:$0xff]  }
 0x386   : > { %13536 = vmatprep.subr.bf16.mxu0 %v19561_v43  ;;  %v19594_v43 = vld [vmem:[#allocation4 + $0xb34] ss:$8 sps:$4 sm:$0xff]  }
 0x388   : > { %12223 = vmatpush1.bf16.msra.mxu1 %v19556_v44  ;;  %v19597_v44 = vld [vmem:[#allocation4 + $0x1d34] ss:$8 sps:$4 sm:$0xff]  }
 0x389   : > { %13537 = vmatpush1.bf16.msra.mxu0 %v19559_v45  ;;  %12224 = vmatprep.subr.bf16.mxu1 %v19564_v49  ;;  %v3423_v45 = vsel %vm806_vm0, %v3421_v36, %v3422_v37  ;;  %v3447_v49 = vsel %vm806_vm0, %v3445_v38, %v3446_v42  ;;  %v19615_v36 = vld [vmem:[#allocation4 + $0x1d64] ss:$8 sps:$4 sm:$0xff]   ;;  %v1219_v42 = vld [vmem:[%s20819_s25 + $0x2e0] sm:$0x3] }
 0x38a   : > { %13538 = vmatprep.subr.bf16.mxu0 %v19567_v50  ;;  %v1187_v50 = vld [vmem:[%s20819_s25 + $0x1e0] sm:$0x3]  ;;  %v3635_v54 = vpack.c.bf16 %v3447_v49, %v3423_v45  ;;  %v1195_v38 = vld [vmem:[%s20819_s25 + $0x220] sm:$0xfc]  ;;  %v1517_v47 = vrot.slane %v1219_v42, 2 }
 0x38b   : > { %v1469_v55 = vrot.slane %v1187_v50, 2  ;;  %v16397_v49 = vld [vmem:[%s20819_s25 + $0x340] sm:$0x1] }
 0x38c   : > { %12225 = vmatpush1.bf16.msra.mxu1 %v19562_v56  ;;  %v16357_v56 = vld [vmem:[%s20819_s25 + $0x200] sm:$0xfe] }
 0x38d   : > { %13539 = vmatpush1.bf16.msra.mxu0 %v19565_v57  ;;  %12226 = vmatprep.subr.bf16.mxu1 %v19570_v58  ;;  %v16365_v57 = vld [vmem:[%s20819_s25 + $0x240] sm:$0x1]  ;;  %v1446_v58 = vsel %vm1383_vm1, %v1444_v51, %v1445_v52  ;;  %v3418_v61 = vrot.slane %v16357_v56, 1  ;;  %v1470_v1 = vsel %vm1383_vm1, %v1468_v53, %v1469_v55  ;;  %v16405_v51 = vld [vmem:[%s20819_s25 + $0x380] sm:$0xfe]  ;;  %v3466_v53 = vrot.slane %v16389_v48, 1 }
 0x38e   : > { %13540 = vmatprep.subr.bf16.mxu0 %v19573_v3  ;;  %v3419_v62 = vrot.slane %v16365_v57, 1  ;;  %v3443_v3 = vrot.slane %v16381_v60, 1  ;;  %v1652_v5 = vpack.c.bf16 %v1470_v1, %v1446_v58  ;;  %v16413_v52 = vld [vmem:[%s20819_s25 + $0x3c0] sm:$0x1]  ;;  %v3490_v57 = vrot.slane %v16405_v51, 1 }
 0x38f   : > { %v19610_v55 = vld [vmem:[#allocation4 + $0xb60] ss:$8 sps:$4 sm:$0xff]   ;;  %v3491_v58 = vrot.slane %v16413_v52, 1  ;;  %v19631_v48 = vld [vmem:[#allocation4 + $0x1d90] ss:$8 sps:$4 sm:$0xff]  }
 0x390   : > { %12227 = vmatpush1.bf16.msra.mxu1 %v19568_v4  ;;  %v19600_v4 = vld [vmem:[#allocation4 + $0xb44] ss:$8 sps:$4 sm:$0xff]   ;;  %v3444_v8 = vsel %vm806_vm0, %v3442_v2, %v3443_v3  ;;  %v19616_v2 = vld [vmem:[#allocation4 + $0xb70] ss:$8 sps:$4 sm:$0xff]  }
 0x391   : > { %13541 = vmatpush1.bf16.msra.mxu0 %v19571_v6  ;;  %12269 = vmatprep.subr.bf16.mxu1 %v19576_v7  ;;  %v3420_v6 = vsel %vm806_vm0, %v3418_v61, %v3419_v62  ;;  %v19603_v7 = vld [vmem:[#allocation4 + $0x1d44] ss:$8 sps:$4 sm:$0xff]   ;;  %v19618_v62 = vld [vmem:[#allocation4 + $0xb74] ss:$8 sps:$4 sm:$0xff]   ;;  %v19619_v3 = vld [vmem:[#allocation4 + $0x1d70] ss:$8 sps:$4 sm:$0xff]  }
 0x392   : > { %13583 = vmatprep.subr.bf16.mxu0 %v19579_v11  ;;  %v19598_v11 = vld [vmem:[#allocation4 + $0xb40] ss:$8 sps:$4 sm:$0xff]   ;;  %v19636_v52 = vld [vmem:[#allocation4 + $0xba4] ss:$8 sps:$4 sm:$0xff]  }
 0x393   : > { %12229 = vmatmul.mubr.bf16.vlgmr.msra.gmra.mrb[0].mxu1 %v1644_v14  ;;  %v1212_v14 = vld [vmem:[%s20819_s25 + $0x2a8] sm:$0xfc] }
 0x394   : > { %13543 = vmatmul.mubr.bf16.vlgmr.msra.gmra.mrb[0].mxu0 %v3626_v15  ;;  %12270 = vmatpush1.bf16.msra.mxu1 %v19574_v12  ;;  %v19601_v12 = vld [vmem:[#allocation4 + $0x1d40] ss:$8 sps:$4 sm:$0xff]   ;;  %v1519_v19 = vrot.slane %v1212_v14, 2 }
 0x395   : > { %13584 = vmatpush1.bf16.msra.mxu0 %v19577_v13  ;;  %12271 = vmatprep.subr.bf16.mxu1 %v19582_v16  ;;  %v3634_v13 = vpack.c.bf16 %v3444_v8, %v3420_v6  ;;  %v1220_v15 = vld [vmem:[%s20819_s25 + $0x2e8] sm:$0x3]  ;;  %v1495_v16 = vrot.slane %v1196_v9, 2  ;;  %v1228_v1 = vld [vmem:[%s20819_s25 + $0x328] sm:$0xfc] }
 0x396   : > { %13585 = vmatprep.subr.bf16.mxu0 %v19585_v17  ;;  %12238 = vmatprep.mubr.bf16.mxu1 %v1653_v41  ;;  %v1496_v17 = vrot.slane %v1204_v10, 2  ;;  %v1520_v20 = vrot.slane %v1220_v15, 2  ;;  %v1211_v41 = vld [vmem:[%s20819_s25 + $0x2a0] sm:$0xfc]  ;;  %v1244_v6 = vld [vmem:[%s20819_s25 + $0x3a8] sm:$0xfc] }
 0x397   : > { %13552 = vmatprep.mubr.bf16.mxu0 %v3635_v54  ;;  %v1516_v46 = vrot.slane %v1211_v41, 2  ;;  %v3467_v54 = vrot.slane %v16397_v49, 1  ;;  %v1543_v8 = vrot.slane %v1228_v1, 2  ;;  %v1567_v10 = vrot.slane %v1244_v6, 2  ;;  %v16422_v14 = vld [vmem:[%s20819_s25 + $0x408] sm:$0xfe] }
 0x398   : > { %12272 = vmatpush1.bf16.msra.mxu1 %v19580_v21  ;;  %v19609_v21 = vld [vmem:[#allocation4 + $0x1d54] ss:$8 sps:$4 sm:$0xff]   ;;  %v1521_v25 = vsel %vm1383_vm1, %v1519_v19, %v1520_v20  ;;  %v16446_v19 = vld [vmem:[%s20819_s25 + $0x4c8] sm:$0x1]  ;;  %v16429_v41 = vld [vmem:[%s20819_s25 + $0x440] sm:$0x1] }
 0x399   : > { %13586 = vmatpush1.bf16.msra.mxu0 %v19583_v22  ;;  %12273 = vmatprep.subr.bf16.mxu1 %v19588_v27  ;;  %v1497_v22 = vsel %vm1383_vm1, %v1495_v16, %v1496_v17  ;;  %v16414_v27 = vld [vmem:[%s20819_s25 + $0x3c8] sm:$0x1]  ;;  %v1518_v56 = vsel %vm1383_vm1, %v1516_v46, %v1517_v47  ;;  %v3468_v61 = vsel %vm806_vm0, %v3466_v53, %v3467_v54  ;;  %v3515_v46 = vrot.slane %v16429_v41, 1  ;;  %v19628_v47 = vld [vmem:[#allocation4 + $0xb90] ss:$8 sps:$4 sm:$0xff]  }
 0x39a   : > { %13587 = vmatprep.subr.bf16.mxu0 %v19591_v28  ;;  %v3469_v28 = vrot.slane %v16390_v23, 1  ;;  %v1661_v32 = vpack.c.bf16 %v1521_v25, %v1497_v22  ;;  %v3494_v34 = vrot.slane %v16414_v27, 1  ;;  %v16430_v17 = vld [vmem:[%s20819_s25 + $0x448] sm:$0x1]  ;;  %v3517_v23 = vrot.slane %v16422_v14, 1 }
 0x39b   : > { %12239 = vmatmul.mubr.bf16.gmra.mrb[4].mxu1 %v1652_v5  ;;  %v1236_v5 = vld [vmem:[%s20819_s25 + $0x368] sm:$0x3]  ;;  %v3518_v24 = vrot.slane %v16430_v17, 1  ;;  %v19633_v27 = vld [vmem:[#allocation4 + $0x1d94] ss:$8 sps:$4 sm:$0xff]  }
 0x39c   : > { %12274 = vmatpush1.bf16.msra.mxu1 %v19586_v39  ;;  %13553 = vmatmul.mubr.bf16.gmra.mrb[4].mxu0 %v3634_v13  ;;  %v3471_v37 = vsel %vm806_vm0, %v3469_v28, %v3470_v29  ;;  %v1203_v39 = vld [vmem:[%s20819_s25 + $0x260] sm:$0x3]  ;;  %v1544_v9 = vrot.slane %v1236_v5, 2  ;;  %v19627_v13 = vld [vmem:[#allocation4 + $0x1d84] ss:$8 sps:$4 sm:$0xff]   ;;  %v3542_v28 = vrot.slane %v16446_v19, 1 }
 0x39d   : > { %13588 = vmatpush1.bf16.msra.mxu0 %v19589_v40  ;;  %12275 = vmatprep.subr.bf16.mxu1 %v19594_v43  ;;  %v3495_v40 = vsel %vm806_vm0, %v3493_v33, %v3494_v34  ;;  %v1492_v43 = vrot.slane %v1195_v38, 2  ;;  %v19622_v20 = vld [vmem:[#allocation4 + $0xb80] ss:$8 sps:$4 sm:$0xff]   ;;  %v3519_v29 = vsel %vm806_vm0, %v3517_v23, %v3518_v24  ;;  %v19639_v53 = vld [vmem:[#allocation4 + $0x1da4] ss:$8 sps:$4 sm:$0xff]  }
 0x39e   : > { %13589 = vmatprep.subr.bf16.mxu0 %v19597_v44  ;;  %v1493_v44 = vrot.slane %v1203_v39, 2  ;;  %v3643_v45 = vpack.c.bf16 %v3495_v40, %v3471_v37  ;;  %12248 = vmatprep.mubr.bf16.mxu1 %v1661_v32  ;;  %v1545_v15 = vsel %vm1383_vm1, %v1543_v8, %v1544_v9  ;;  %v1243_v32 = vld [vmem:[%s20819_s25 + $0x3a0] sm:$0xfc]  ;;  %v1251_v34 = vld [vmem:[%s20819_s25 + $0x3e0] sm:$0x3] }
 0x39f   : > { %v1564_v37 = vrot.slane %v1243_v32, 2  ;;  %v1565_v39 = vrot.slane %v1251_v34, 2  ;;  %v16421_v40 = vld [vmem:[%s20819_s25 + $0x400] sm:$0xfe]  ;;  %v16336_v8 = vld [vmem:[%s20819_s25 + $0x158] sm:$0x1] }
 0x3a0   : > { %12276 = vmatpush1.bf16.msra.mxu1 %v19592_v63  ;;  %v1494_v50 = vsel %vm1383_vm1, %v1492_v43, %v1493_v44  ;;  %13562 = vmatprep.mubr.bf16.mxu0 %v3643_v45  ;;  %v19621_v63 = vld [vmem:[#allocation4 + $0x1d74] ss:$8 sps:$4 sm:$0xff]   ;;  %v16437_v43 = vld [vmem:[%s20819_s25 + $0x480] sm:$0xfe]  ;;  %v16445_v44 = vld [vmem:[%s20819_s25 + $0x4c0] sm:$0x1] }
 0x3a1   : > { %13590 = vmatpush1.bf16.msra.mxu0 %v19595_v0  ;;  %12277 = vmatprep.subr.bf16.mxu1 %v19600_v4  ;;  %v1660_v60 = vpack.c.bf16 %v1518_v56, %v1494_v50  ;;  %v3492_v0 = vsel %vm806_vm0, %v3490_v57, %v3491_v58  ;;  %v3514_v45 = vrot.slane %v16421_v40, 1  ;;  %v1566_v49 = vsel %vm1383_vm1, %v1564_v37, %v1565_v39  ;;  %v1134_v56 = vld [vmem:[%s20819_s25 + $0x38] sm:$0xfc]  ;;  %v19634_v57 = vld [vmem:[#allocation4 + $0xba0] ss:$8 sps:$4 sm:$0xff]  }
 0x3a2   : > { %13591 = vmatprep.subr.bf16.mxu0 %v19603_v7  ;;  %v3642_v4 = vpack.c.bf16 %v3492_v0, %v3468_v61  ;;  %v1252_v7 = vld [vmem:[%s20819_s25 + $0x3e8] sm:$0x3]  ;;  %v3538_v50 = vrot.slane %v16437_v43, 1  ;;  %v3539_v51 = vrot.slane %v16445_v44, 1  ;;  %v1150_v61 = vld [vmem:[%s20819_s25 + $0xb8] sm:$0xfc] }
 0x3a3   : > { %12249 = vmatmul.mubr.bf16.gmra.mrb[8].mxu1 %v1660_v60  ;;  %v19637_v58 = vld [vmem:[#allocation4 + $0x1da0] ss:$8 sps:$4 sm:$0xff]   ;;  %v1142_v60 = vld [vmem:[%s20819_s25 + $0x78] sm:$0x3]  ;;  %v1405_v0 = vrot.slane %v1134_v56, 2 }
 0x3a4   : > { %12278 = vmatpush1.bf16.msra.mxu1 %v19598_v11  ;;  %v1568_v11 = vrot.slane %v1252_v7, 2  ;;  %13563 = vmatmul.mubr.bf16.gmra.mrb[8].mxu0 %v3642_v4  ;;  %v1406_v1 = vrot.slane %v1142_v60, 2  ;;  %v19645_v4 = vld [vmem:[#allocation4 + $0x1db4] ss:$8 sps:$4 sm:$0xff]   ;;  %v19640_v17 = vld [vmem:[#allocation4 + $0xbb0] ss:$8 sps:$4 sm:$0xff]  }
 0x3a5   : > { %13592 = vmatpush1.bf16.msra.mxu0 %v19601_v12  ;;  %12279 = vmatprep.subr.bf16.mxu1 %v19606_v18  ;;  %v19624_v12 = vld [vmem:[#allocation4 + $0xb84] ss:$8 sps:$4 sm:$0xff]   ;;  %v16328_v7 = vld [vmem:[%s20819_s25 + $0x118] sm:$0xfe]  ;;  %v19646_v24 = vld [vmem:[#allocation4 + $0xbc0] ss:$8 sps:$4 sm:$0xff]  }
 0x3a6   : > { %13593 = vmatprep.subr.bf16.mxu0 %v19609_v21  ;;  %v1569_v16 = vsel %vm1383_vm1, %v1567_v10, %v1568_v11  ;;  %v16438_v18 = vld [vmem:[%s20819_s25 + $0x488] sm:$0xfe]  ;;  %v1407_v6 = vsel %vm1383_vm1, %v1405_v0, %v1406_v1  ;;  %v16344_v9 = vld [vmem:[%s20819_s25 + $0x198] sm:$0xfe]  ;;  %v16352_v11 = vld [vmem:[%s20819_s25 + $0x1d8] sm:$0x1] }
 0x3a7   : > { %v19625_v21 = vld [vmem:[#allocation4 + $0x1d80] ss:$8 sps:$4 sm:$0xff]   ;;  %v1669_v22 = vpack.c.bf16 %v1569_v16, %v1545_v15  ;;  %v3541_v25 = vrot.slane %v16438_v18, 1  ;;  %v3403_v14 = vrot.slane %v16344_v9, 1  ;;  %v3404_v16 = vrot.slane %v16352_v11, 1 }
 0x3a8   : > { %12280 = vmatpush1.bf16.msra.mxu1 %v19604_v30  ;;  %v1227_v30 = vld [vmem:[%s20819_s25 + $0x320] sm:$0xfc]  ;;  %v19643_v18 = vld [vmem:[#allocation4 + $0x1db0] ss:$8 sps:$4 sm:$0xff]   ;;  %v19678_v0 = vld [vmem:[#allocation4 + $0xc14] ss:$8 sps:$4 sm:$0xff]  }
 0x3a9   : > { %13594 = vmatpush1.bf16.msra.mxu0 %v19607_v31  ;;  %12281 = vmatprep.subr.bf16.mxu1 %v19612_v35  ;;  %v1235_v31 = vld [vmem:[%s20819_s25 + $0x360] sm:$0x3]  ;;  %v3543_v33 = vsel %vm806_vm0, %v3541_v25, %v3542_v28  ;;  %v1540_v35 = vrot.slane %v1227_v30, 2  ;;  %v19652_v28 = vld [vmem:[#allocation4 + $0xbd0] ss:$8 sps:$4 sm:$0xff]  }
 0x3aa   : > { %13595 = vmatprep.subr.bf16.mxu0 %v19615_v36  ;;  %v1541_v36 = vrot.slane %v1235_v31, 2  ;;  %12258 = vmatprep.mubr.bf16.mxu1 %v1669_v22  ;;  %v3651_v38 = vpack.c.bf16 %v3543_v33, %v3519_v29  ;;  %v3405_v22 = vsel %vm806_vm0, %v3403_v14, %v3404_v16  ;;  %v19649_v25 = vld [vmem:[#allocation4 + $0x1dc0] ss:$8 sps:$4 sm:$0xff]   ;;  %v19655_v29 = vld [vmem:[#allocation4 + $0x1dd0] ss:$8 sps:$4 sm:$0xff]  }
 0x3ab   : > { %v1133_v30 = vld [vmem:[%s20819_s25 + $0x30] sm:$0xfc]  ;;  %v1141_v31 = vld [vmem:[%s20819_s25 + $0x70] sm:$0x3]  ;;  %v19660_v34 = vld [vmem:[#allocation4 + $0xbe4] ss:$8 sps:$4 sm:$0xff]  }
 0x3ac   : > { %12282 = vmatpush1.bf16.msra.mxu1 %v19610_v55  ;;  %v1542_v42 = vsel %vm1383_vm1, %v1540_v35, %v1541_v36  ;;  %v3516_v55 = vsel %vm806_vm0, %v3514_v45, %v3515_v46  ;;  %13572 = vmatprep.mubr.bf16.mxu0 %v3651_v38  ;;  %v1149_v32 = vld [vmem:[%s20819_s25 + $0xb0] sm:$0xfc]  ;;  %v1157_v33 = vld [vmem:[%s20819_s25 + $0xf0] sm:$0x3]  ;;  %v19663_v35 = vld [vmem:[#allocation4 + $0x1de4] ss:$8 sps:$4 sm:$0xff]  }
 0x3ad   : > { %13596 = vmatpush1.bf16.msra.mxu0 %v19613_v59  ;;  %12283 = vmatprep.subr.bf16.mxu1 %v19618_v62  ;;  %v1668_v54 = vpack.c.bf16 %v1566_v49, %v1542_v42  ;;  %v3540_v59 = vsel %vm806_vm0, %v3538_v50, %v3539_v51  ;;  %v1158_v62 = vld [vmem:[%s20819_s25 + $0xf8] sm:$0x3]  ;;  %v16327_v36 = vld [vmem:[%s20819_s25 + $0x110] sm:$0xfe]  ;;  %v16335_v37 = vld [vmem:[%s20819_s25 + $0x150] sm:$0x1] }
 0x3ae   : > { %13597 = vmatprep.subr.bf16.mxu0 %v19621_v63  ;;  %v3650_v63 = vpack.c.bf16 %v3540_v59, %v3516_v55  ;;  %v1430_v5 = vrot.slane %v1158_v62, 2  ;;  %v16343_v38 = vld [vmem:[%s20819_s25 + $0x190] sm:$0xfe]  ;;  %v16351_v39 = vld [vmem:[%s20819_s25 + $0x1d0] sm:$0x1]  ;;  %v1402_v42 = vrot.slane %v1133_v30, 2 }
 0x3af   : > { %12259 = vmatmul.mubr.bf16.gmra.mrb[12].mxu1 %v1668_v54  ;;  %v19658_v40 = vld [vmem:[#allocation4 + $0xbe0] ss:$8 sps:$4 sm:$0xff]   ;;  %v1403_v43 = vrot.slane %v1141_v31, 2  ;;  %v1426_v44 = vrot.slane %v1149_v32, 2  ;;  %v1427_v45 = vrot.slane %v1157_v33, 2  ;;  %v3376_v46 = vrot.slane %v16327_v36, 1 }
 0x3b0   : > { %12284 = vmatpush1.bf16.msra.mxu1 %v19616_v2  ;;  %v1429_v2 = vrot.slane %v1150_v61, 2  ;;  %13573 = vmatmul.mubr.bf16.gmra.mrb[12].mxu0 %v3650_v63  ;;  %v19661_v41 = vld [vmem:[#allocation4 + $0x1de0] ss:$8 sps:$4 sm:$0xff]   ;;  %v3401_v49 = vrot.slane %v16351_v39, 1  ;;  %v19666_v50 = vld [vmem:[#allocation4 + $0xbf4] ss:$8 sps:$4 sm:$0xff]  }
 0x3b1   : > { %13598 = vmatpush1.bf16.msra.mxu0 %v19619_v3  ;;  %12285 = vmatprep.subr.bf16.mxu1 %v19624_v12  ;;  %v19642_v3 = vld [vmem:[#allocation4 + $0xbb4] ss:$8 sps:$4 sm:$0xff]   ;;  %v3379_v12 = vrot.slane %v16328_v7, 1  ;;  %v19667_v54 = vld [vmem:[#allocation4 + $0x1df0] ss:$8 sps:$4 sm:$0xff]   ;;  %v1428_v55 = vsel %vm1383_vm1, %v1426_v44, %v1427_v45 }
 0x3b2   : > { %13599 = vmatprep.subr.bf16.mxu0 %v19627_v13  ;;  %v1431_v10 = vsel %vm1383_vm1, %v1429_v2, %v1430_v5  ;;  %v3380_v13 = vrot.slane %v16336_v8, 1  ;;  %v19669_v51 = vld [vmem:[#allocation4 + $0x1df4] ss:$8 sps:$4 sm:$0xff]   ;;  %v19675_v59 = vld [vmem:[#allocation4 + $0x1e04] ss:$8 sps:$4 sm:$0xff]  }
 0x3b3   : > { %v1647_v15 = vpack.c.bf16 %v1431_v10, %v1407_v6  ;;  %v19670_v60 = vld [vmem:[#allocation4 + $0xc00] ss:$8 sps:$4 sm:$0xff]   ;;  %v19681_v1 = vld [vmem:[#allocation4 + $0x1e14] ss:$8 sps:$4 sm:$0xff]   ;;  %v19676_v2 = vld [vmem:[#allocation4 + $0xc10] ss:$8 sps:$4 sm:$0xff]  }
 0x3b4   : > { %12286 = vmatpush1.bf16.msra.mxu1 %v19622_v20  ;;  %v3381_v19 = vsel %vm806_vm0, %v3379_v12, %v3380_v13  ;;  %v19648_v20 = vld [vmem:[#allocation4 + $0xbc4] ss:$8 sps:$4 sm:$0xff]   ;;  %v19673_v63 = vld [vmem:[#allocation4 + $0x1e00] ss:$8 sps:$4 sm:$0xff]   ;;  %v1166_v8 = vld [vmem:[%s20819_s25 + $0x138] sm:$0xfc] }
 0x3b5   : > { %13600 = vmatpush1.bf16.msra.mxu0 %v19625_v21  ;;  %12287 = vmatprep.subr.bf16.mxu1 %v19630_v26  ;;  %v19651_v21 = vld [vmem:[#allocation4 + $0x1dc4] ss:$8 sps:$4 sm:$0xff]   ;;  %v3629_v23 = vpack.c.bf16 %v3405_v22, %v3381_v19  ;;  %v19654_v26 = vld [vmem:[#allocation4 + $0xbd4] ss:$8 sps:$4 sm:$0xff]   ;;  %v19682_v6 = vld [vmem:[#allocation4 + $0xc20] ss:$8 sps:$4 sm:$0xff]  }
 0x3b6   : > { %13601 = vmatprep.subr.bf16.mxu0 %v19633_v27  ;;  %12301 = vmatprep.mubr.bf16.mxu1 %v1647_v15  ;;  %v19657_v27 = vld [vmem:[#allocation4 + $0x1dd4] ss:$8 sps:$4 sm:$0xff]   ;;  %v19687_v5 = vld [vmem:[#allocation4 + $0x1e24] ss:$8 sps:$4 sm:$0xff]   ;;  %v19685_v7 = vld [vmem:[#allocation4 + $0x1e20] ss:$8 sps:$4 sm:$0xff]  }
 0x3b7   : > { %13615 = vmatprep.mubr.bf16.mxu0 %v3629_v23  ;;  %v1174_v9 = vld [vmem:[%s20819_s25 + $0x178] sm:$0x3]  ;;  %v1182_v10 = vld [vmem:[%s20819_s25 + $0x1b8] sm:$0xfc]  ;;  %v1453_v12 = vrot.slane %v1166_v8, 2 }
 0x3b8   : > { %12288 = vmatpush1.bf16.msra.mxu1 %v19628_v47  ;;  %v3377_v47 = vrot.slane %v16335_v37, 1  ;;  %v1190_v11 = vld [vmem:[%s20819_s25 + $0x1f8] sm:$0x3]  ;;  %v1454_v13 = vrot.slane %v1174_v9, 2  ;;  %v1477_v14 = vrot.slane %v1182_v10, 2 }
 0x3b9   : > { %13602 = vmatpush1.bf16.msra.mxu0 %v19631_v48  ;;  %12289 = vmatprep.subr.bf16.mxu1 %v19636_v52  ;;  %v3400_v48 = vrot.slane %v16343_v38, 1  ;;  %v19664_v52 = vld [vmem:[#allocation4 + $0xbf0] ss:$8 sps:$4 sm:$0xff]   ;;  %v19690_v15 = vld [vmem:[#allocation4 + $0xc34] ss:$8 sps:$4 sm:$0xff]  }
 0x3ba   : > { %13603 = vmatprep.subr.bf16.mxu0 %v19639_v53  ;;  %v1404_v53 = vsel %vm1383_vm1, %v1402_v42, %v1403_v43  ;;  %v3378_v56 = vsel %vm806_vm0, %v3376_v46, %v3377_v47  ;;  %v19693_v16 = vld [vmem:[#allocation4 + $0x1e34] ss:$8 sps:$4 sm:$0xff]   ;;  %v19691_v19 = vld [vmem:[#allocation4 + $0x1e30] ss:$8 sps:$4 sm:$0xff]   ;;  %v19699_v30 = vld [vmem:[#allocation4 + $0x1e44] ss:$8 sps:$4 sm:$0xff]  }
 0x3bb   : > { %v1646_v61 = vpack.c.bf16 %v1428_v55, %v1404_v53  ;;  %v16368_v22 = vld [vmem:[%s20819_s25 + $0x258] sm:$0x1]  ;;  %v16376_v23 = vld [vmem:[%s20819_s25 + $0x298] sm:$0xfe]  ;;  %v1181_v36 = vld [vmem:[%s20819_s25 + $0x1b0] sm:$0xfc] }
 0x3bc   : > { %12290 = vmatpush1.bf16.msra.mxu1 %v19634_v57  ;;  %v3402_v57 = vsel %vm806_vm0, %v3400_v48, %v3401_v49  ;;  %v19694_v37 = vld [vmem:[#allocation4 + $0xc40] ss:$8 sps:$4 sm:$0xff]   ;;  %v1474_v43 = vrot.slane %v1181_v36, 2  ;;  %v16359_v46 = vld [vmem:[%s20819_s25 + $0x210] sm:$0xfe] }
 0x3bd   : > { %13604 = vmatpush1.bf16.msra.mxu0 %v19637_v58  ;;  %12291 = vmatprep.subr.bf16.mxu1 %v19642_v3  ;;  %v19672_v58 = vld [vmem:[#allocation4 + $0xc04] ss:$8 sps:$4 sm:$0xff]   ;;  %v3628_v62 = vpack.c.bf16 %v3402_v57, %v3378_v56  ;;  %v19679_v3 = vld [vmem:[#allocation4 + $0x1e10] ss:$8 sps:$4 sm:$0xff]   ;;  %v19697_v38 = vld [vmem:[#allocation4 + $0x1e40] ss:$8 sps:$4 sm:$0xff]  }
 0x3be   : > { %13605 = vmatprep.subr.bf16.mxu0 %v19645_v4  ;;  %v19684_v4 = vld [vmem:[#allocation4 + $0xc24] ss:$8 sps:$4 sm:$0xff]   ;;  %v16367_v47 = vld [vmem:[%s20819_s25 + $0x250] sm:$0x1]  ;;  %v16375_v49 = vld [vmem:[%s20819_s25 + $0x290] sm:$0xfe] }
 0x3bf   : > { %v19702_v53 = vld [vmem:[#allocation4 + $0xc54] ss:$8 sps:$4 sm:$0xff]   ;;  %v3448_v56 = vrot.slane %v16375_v49, 1  ;;  %v19706_v10 = vld [vmem:[#allocation4 + $0xc60] ss:$8 sps:$4 sm:$0xff]  }
 0x3c0   : > { %12292 = vmatpush1.bf16.msra.mxu1 %v19640_v17  ;;  %v1478_v17 = vrot.slane %v1190_v11, 2  ;;  %v19709_v11 = vld [vmem:[#allocation4 + $0x1e60] ss:$8 sps:$4 sm:$0xff]  }
 0x3c1   : > { %13606 = vmatpush1.bf16.msra.mxu0 %v19643_v18  ;;  %12293 = vmatprep.subr.bf16.mxu1 %v19648_v20  ;;  %v19688_v18 = vld [vmem:[#allocation4 + $0xc30] ss:$8 sps:$4 sm:$0xff]   ;;  %v1455_v20 = vsel %vm1383_vm1, %v1453_v12, %v1454_v13 }
 0x3c2   : > { %13607 = vmatprep.subr.bf16.mxu0 %v19651_v21  ;;  %v16360_v21 = vld [vmem:[%s20819_s25 + $0x218] sm:$0xfe] }
 0x3c3   : > { %v16392_v13 = vld [vmem:[%s20819_s25 + $0x318] sm:$0xfe] }
 0x3c4   : > { %12294 = vmatpush1.bf16.msra.mxu1 %v19646_v24  ;;  %v1479_v24 = vsel %vm1383_vm1, %v1477_v14, %v1478_v17  ;;  %v16400_v14 = vld [vmem:[%s20819_s25 + $0x358] sm:$0x1] }
 0x3c5   : > { %13608 = vmatpush1.bf16.msra.mxu0 %v19649_v25  ;;  %12295 = vmatprep.subr.bf16.mxu1 %v19654_v26  ;;  %v16384_v25 = vld [vmem:[%s20819_s25 + $0x2d8] sm:$0x1]  ;;  %v3427_v26 = vrot.slane %v16360_v21, 1  ;;  %v1655_v31 = vpack.c.bf16 %v1479_v24, %v1455_v20  ;;  %v19714_v20 = vld [vmem:[#allocation4 + $0xc74] ss:$8 sps:$4 sm:$0xff]  }
 0x3c6   : > { %13609 = vmatprep.subr.bf16.mxu0 %v19657_v27  ;;  %v3428_v27 = vrot.slane %v16368_v22, 1  ;;  %v3452_v32 = vrot.slane %v16384_v25, 1  ;;  %v16416_v17 = vld [vmem:[%s20819_s25 + $0x3d8] sm:$0x1]  ;;  %v19717_v24 = vld [vmem:[#allocation4 + $0x1e74] ss:$8 sps:$4 sm:$0xff]  }
 0x3c8   : > { %12296 = vmatpush1.bf16.msra.mxu1 %v19652_v28  ;;  %v3451_v28 = vrot.slane %v16376_v23, 1  ;;  %v3429_v33 = vsel %vm806_vm0, %v3427_v26, %v3428_v27  ;;  %v3500_v23 = vrot.slane %v16416_v17, 1  ;;  %v1197_v26 = vld [vmem:[%s20819_s25 + $0x230] sm:$0xfc]  ;;  %v1205_v27 = vld [vmem:[%s20819_s25 + $0x270] sm:$0x3] }
 0x3c9   : > { %13610 = vmatpush1.bf16.msra.mxu0 %v19655_v29  ;;  %12297 = vmatprep.subr.bf16.mxu1 %v19660_v34  ;;  %v19696_v29 = vld [vmem:[#allocation4 + $0xc44] ss:$8 sps:$4 sm:$0xff]   ;;  %v1165_v34 = vld [vmem:[%s20819_s25 + $0x130] sm:$0xfc]  ;;  %v19730_v17 = vld [vmem:[#allocation4 + $0xca0] ss:$8 sps:$4 sm:$0xff]  }
 0x3ca   : > { %13611 = vmatprep.subr.bf16.mxu0 %v19663_v35  ;;  %v1173_v35 = vld [vmem:[%s20819_s25 + $0x170] sm:$0x3]  ;;  %v3453_v39 = vsel %vm806_vm0, %v3451_v28, %v3452_v32 }
 0x3cb   : > { %v1451_v42 = vrot.slane %v1173_v35, 2  ;;  %v3637_v44 = vpack.c.bf16 %v3453_v39, %v3429_v33  ;;  %v19712_v28 = vld [vmem:[#allocation4 + $0xc70] ss:$8 sps:$4 sm:$0xff]   ;;  %v1498_v33 = vrot.slane %v1197_v26, 2  ;;  %v19720_v35 = vld [vmem:[#allocation4 + $0xc84] ss:$8 sps:$4 sm:$0xff]  }
 0x3cc   : > { %12298 = vmatpush1.bf16.msra.mxu1 %v19658_v40  ;;  %v1189_v40 = vld [vmem:[%s20819_s25 + $0x1f0] sm:$0x3] }
 0x3cd   : > { %13612 = vmatpush1.bf16.msra.mxu0 %v19661_v41  ;;  %12299 = vmatprep.subr.bf16.mxu1 %v19666_v50  ;;  %v1450_v41 = vrot.slane %v1165_v34, 2  ;;  %v1475_v45 = vrot.slane %v1189_v40, 2  ;;  %v16383_v50 = vld [vmem:[%s20819_s25 + $0x2d0] sm:$0x1]  ;;  %v1499_v34 = vrot.slane %v1205_v27, 2 }
 0x3ce   : > { %13613 = vmatprep.subr.bf16.mxu0 %v19669_v51  ;;  %v3424_v51 = vrot.slane %v16359_v46, 1  ;;  %v3449_v57 = vrot.slane %v16383_v50, 1  ;;  %v1221_v32 = vld [vmem:[%s20819_s25 + $0x2f0] sm:$0x3]  ;;  %v19723_v46 = vld [vmem:[#allocation4 + $0x1e84] ss:$8 sps:$4 sm:$0xff]  }
 0x3cf   : > { %v1452_v48 = vsel %vm1383_vm1, %v1450_v41, %v1451_v42  ;;  %v1476_v55 = vsel %vm1383_vm1, %v1474_v43, %v1475_v45  ;;  %v16391_v39 = vld [vmem:[%s20819_s25 + $0x310] sm:$0xfe]  ;;  %v16399_v40 = vld [vmem:[%s20819_s25 + $0x350] sm:$0x1]  ;;  %v1500_v41 = vsel %vm1383_vm1, %v1498_v33, %v1499_v34  ;;  %v19718_v50 = vld [vmem:[#allocation4 + $0xc80] ss:$8 sps:$4 sm:$0xff]  }
 0x3d0   : > { %12300 = vmatpush1.bf16.msra.mxu1 %v19664_v52  ;;  %v3425_v52 = vrot.slane %v16367_v47, 1  ;;  %v16407_v42 = vld [vmem:[%s20819_s25 + $0x390] sm:$0xfe]  ;;  %v16415_v43 = vld [vmem:[%s20819_s25 + $0x3d0] sm:$0x1]  ;;  %v3473_v45 = vrot.slane %v16399_v40, 1 }
 0x3d1   : > { %13614 = vmatpush1.bf16.msra.mxu0 %v19667_v54  ;;  %12342 = vmatprep.subr.bf16.mxu1 %v19672_v58  ;;  %v19705_v54 = vld [vmem:[#allocation4 + $0x1e54] ss:$8 sps:$4 sm:$0xff]   ;;  %v19700_v58 = vld [vmem:[#allocation4 + $0xc50] ss:$8 sps:$4 sm:$0xff]   ;;  %v3497_v49 = vrot.slane %v16415_v43, 1 }
 0x3d2   : > { %13656 = vmatprep.subr.bf16.mxu0 %v19675_v59  ;;  %v19703_v59 = vld [vmem:[#allocation4 + $0x1e50] ss:$8 sps:$4 sm:$0xff]  }
 0x3d3   : > { %12302 = vmatmul.mubr.bf16.vlgmr.msra.gmra.mrb[0].mxu1 %v1646_v61  ;;  %v3426_v61 = vsel %vm806_vm0, %v3424_v51, %v3425_v52  ;;  %v19721_v51 = vld [vmem:[#allocation4 + $0x1e80] ss:$8 sps:$4 sm:$0xff]   ;;  %v1253_v26 = vld [vmem:[%s20819_s25 + $0x3f0] sm:$0x3] }
 0x3d4   : > { %13616 = vmatmul.mubr.bf16.vlgmr.msra.gmra.mrb[0].mxu0 %v3628_v62  ;;  %12343 = vmatpush1.bf16.msra.mxu1 %v19670_v60  ;;  %v1654_v60 = vpack.c.bf16 %v1476_v55, %v1452_v48  ;;  %v19708_v62 = vld [vmem:[#allocation4 + $0xc64] ss:$8 sps:$4 sm:$0xff]   ;;  %v3496_v48 = vrot.slane %v16407_v42, 1  ;;  %v19729_v55 = vld [vmem:[#allocation4 + $0x1e94] ss:$8 sps:$4 sm:$0xff]  }
 0x3d5   : > { %13657 = vmatpush1.bf16.msra.mxu0 %v19673_v63  ;;  %12344 = vmatprep.subr.bf16.mxu1 %v19678_v0  ;;  %v3450_v63 = vsel %vm806_vm0, %v3448_v56, %v3449_v57  ;;  %v1198_v0 = vld [vmem:[%s20819_s25 + $0x238] sm:$0xfc]  ;;  %v16431_v33 = vld [vmem:[%s20819_s25 + $0x450] sm:$0x1] }
 0x3d6   : > { %13658 = vmatprep.subr.bf16.mxu0 %v19681_v1  ;;  %12311 = vmatprep.mubr.bf16.mxu1 %v1655_v31  ;;  %v1206_v1 = vld [vmem:[%s20819_s25 + $0x278] sm:$0x3]  ;;  %v1213_v31 = vld [vmem:[%s20819_s25 + $0x2b0] sm:$0xfc]  ;;  %v3498_v56 = vsel %vm806_vm0, %v3496_v48, %v3497_v49  ;;  %v1230_v57 = vld [vmem:[%s20819_s25 + $0x338] sm:$0xfc] }
 0x3d7   : > { %13625 = vmatprep.mubr.bf16.mxu0 %v3637_v44  ;;  %v3472_v44 = vrot.slane %v16391_v39, 1  ;;  %v19736_v42 = vld [vmem:[#allocation4 + $0xcb0] ss:$8 sps:$4 sm:$0xff]   ;;  %v15950_v48 = vld [vmem:[%s20819_s25 + $0x108] sm:$0xff] }
 0x3d8   : > { %12345 = vmatpush1.bf16.msra.mxu1 %v19676_v2  ;;  %v3636_v2 = vpack.c.bf16 %v3450_v63, %v3426_v61  ;;  %v1254_v61 = vld [vmem:[%s20819_s25 + $0x3f8] sm:$0x3]  ;;  %v19744_v49 = vld [vmem:[#allocation4 + $0xcc4] ss:$8 sps:$4 sm:$0xff]  }
 0x3d9   : > { %13659 = vmatpush1.bf16.msra.mxu0 %v19679_v3  ;;  %12346 = vmatprep.subr.bf16.mxu1 %v19684_v4  ;;  %v1214_v3 = vld [vmem:[%s20819_s25 + $0x2b8] sm:$0xfc]  ;;  %v1222_v4 = vld [vmem:[%s20819_s25 + $0x2f8] sm:$0x3] }
 0x3da   : > { %13660 = vmatprep.subr.bf16.mxu0 %v19687_v5  ;;  %v1501_v5 = vrot.slane %v1198_v0, 2  ;;  %v1525_v8 = vrot.slane %v1214_v3, 2  ;;  %v1526_v9 = vrot.slane %v1222_v4, 2  ;;  %v19727_v3 = vld [vmem:[#allocation4 + $0x1e90] ss:$8 sps:$4 sm:$0xff]  }
 0x3db   : > { %12312 = vmatmul.mubr.bf16.gmra.mrb[4].mxu1 %v1654_v60  ;;  %v1246_v60 = vld [vmem:[%s20819_s25 + $0x3b8] sm:$0xfc] }
 0x3dc   : > { %12347 = vmatpush1.bf16.msra.mxu1 %v19682_v6  ;;  %v1502_v6 = vrot.slane %v1206_v1, 2  ;;  %13626 = vmatmul.mubr.bf16.gmra.mrb[4].mxu0 %v3636_v2  ;;  %v1573_v0 = vrot.slane %v1246_v60, 2  ;;  %v1574_v1 = vrot.slane %v1254_v61, 2  ;;  %v19724_v2 = vld [vmem:[#allocation4 + $0xc90] ss:$8 sps:$4 sm:$0xff]  }
 0x3dd   : > { %13661 = vmatpush1.bf16.msra.mxu0 %v19685_v7  ;;  %12348 = vmatprep.subr.bf16.mxu1 %v19690_v15  ;;  %v19711_v7 = vld [vmem:[#allocation4 + $0x1e64] ss:$8 sps:$4 sm:$0xff]   ;;  %v1527_v15 = vsel %vm1383_vm1, %v1525_v8, %v1526_v9  ;;  %v16424_v4 = vld [vmem:[%s20819_s25 + $0x418] sm:$0xfe]  ;;  %v16448_v9 = vld [vmem:[%s20819_s25 + $0x4d8] sm:$0x1] }
 0x3de   : > { %13662 = vmatprep.subr.bf16.mxu0 %v19693_v16  ;;  %v1503_v12 = vsel %vm1383_vm1, %v1501_v5, %v1502_v6  ;;  %v16408_v16 = vld [vmem:[%s20819_s25 + $0x398] sm:$0xfe]  ;;  %v1575_v6 = vsel %vm1383_vm1, %v1573_v0, %v1574_v1  ;;  %v19742_v61 = vld [vmem:[#allocation4 + $0xcc0] ss:$8 sps:$4 sm:$0xff]  }
 0x3df   : > { %v1663_v21 = vpack.c.bf16 %v1527_v15, %v1503_v12  ;;  %v3499_v22 = vrot.slane %v16408_v16, 1  ;;  %v16440_v8 = vld [vmem:[%s20819_s25 + $0x498] sm:$0xfe]  ;;  %v19735_v15 = vld [vmem:[#allocation4 + $0x1ea4] ss:$8 sps:$4 sm:$0xff]   ;;  %v3548_v16 = vrot.slane %v16448_v9, 1 }
 0x3e0   : > { %12349 = vmatpush1.bf16.msra.mxu1 %v19688_v18  ;;  %v3475_v18 = vrot.slane %v16392_v13, 1  ;;  %v3547_v13 = vrot.slane %v16440_v8, 1  ;;  %v19739_v43 = vld [vmem:[#allocation4 + $0x1eb0] ss:$8 sps:$4 sm:$0xff]   ;;  %v19753_v0 = vld [vmem:[#allocation4 + $0x1ed4] ss:$8 sps:$4 sm:$0xff]  }
 0x3e1   : > { %13663 = vmatpush1.bf16.msra.mxu0 %v19691_v19  ;;  %12350 = vmatprep.subr.bf16.mxu1 %v19696_v29  ;;  %v3476_v19 = vrot.slane %v16400_v14, 1  ;;  %v19715_v29 = vld [vmem:[#allocation4 + $0x1e70] ss:$8 sps:$4 sm:$0xff]   ;;  %v19732_v14 = vld [vmem:[#allocation4 + $0xca4] ss:$8 sps:$4 sm:$0xff]  }
 0x3e2   : > { %13664 = vmatprep.subr.bf16.mxu0 %v19699_v30  ;;  %12321 = vmatprep.mubr.bf16.mxu1 %v1663_v21  ;;  %v3501_v30 = vsel %vm806_vm0, %v3499_v22, %v3500_v23  ;;  %v1237_v21 = vld [vmem:[%s20819_s25 + $0x370] sm:$0x3]  ;;  %v1245_v22 = vld [vmem:[%s20819_s25 + $0x3b0] sm:$0xfc]  ;;  %v16329_v8 = vld [vmem:[%s20819_s25 + $0x120] sm:$0xfe] }
 0x3e3   : > { %v3477_v25 = vsel %vm806_vm0, %v3475_v18, %v3476_v19  ;;  %v19733_v18 = vld [vmem:[#allocation4 + $0x1ea0] ss:$8 sps:$4 sm:$0xff]   ;;  %v19738_v23 = vld [vmem:[#allocation4 + $0xcb4] ss:$8 sps:$4 sm:$0xff]  }
 0x3e4   : > { %12351 = vmatpush1.bf16.msra.mxu1 %v19694_v37  ;;  %v3645_v36 = vpack.c.bf16 %v3501_v30, %v3477_v25  ;;  %v1522_v37 = vrot.slane %v1213_v31, 2  ;;  %v3549_v25 = vsel %vm806_vm0, %v3547_v13, %v3548_v16  ;;  %v1571_v31 = vrot.slane %v1253_v26, 2  ;;  %v16337_v9 = vld [vmem:[%s20819_s25 + $0x160] sm:$0x1]  ;;  %v19768_v26 = vld [vmem:[#allocation4 + $0xd04] ss:$8 sps:$4 sm:$0xff]  }
 0x3e5   : > { %13665 = vmatpush1.bf16.msra.mxu0 %v19697_v38  ;;  %12352 = vmatprep.subr.bf16.mxu1 %v19702_v53  ;;  %v1523_v38 = vrot.slane %v1221_v32, 2  ;;  %v3474_v53 = vsel %vm806_vm0, %v3472_v44, %v3473_v45  ;;  %v16423_v32 = vld [vmem:[%s20819_s25 + $0x410] sm:$0xfe]  ;;  %v19757_v13 = vld [vmem:[#allocation4 + $0x1ee0] ss:$8 sps:$4 sm:$0xff]  }
 0x3e6   : > { %13666 = vmatprep.subr.bf16.mxu0 %v19705_v54  ;;  %13635 = vmatprep.mubr.bf16.mxu0 %v3645_v36  ;;  %v19726_v54 = vld [vmem:[#allocation4 + $0xc94] ss:$8 sps:$4 sm:$0xff]   ;;  %v16447_v36 = vld [vmem:[%s20819_s25 + $0x4d0] sm:$0x1] }
 0x3e7   : > { %v1524_v47 = vsel %vm1383_vm1, %v1522_v37, %v1523_v38  ;;  %v3520_v37 = vrot.slane %v16423_v32, 1  ;;  %v3521_v38 = vrot.slane %v16431_v33, 1  ;;  %v19774_v32 = vld [vmem:[#allocation4 + $0xd14] ss:$8 sps:$4 sm:$0xff]  }
 0x3e8   : > { %12353 = vmatpush1.bf16.msra.mxu1 %v19700_v58  ;;  %v1662_v52 = vpack.c.bf16 %v1524_v47, %v1500_v41  ;;  %v3644_v58 = vpack.c.bf16 %v3498_v56, %v3474_v53  ;;  %v3545_v41 = vrot.slane %v16447_v36, 1  ;;  %v16330_v53 = vld [vmem:[%s20819_s25 + $0x128] sm:$0xfe]  ;;  %v16354_v56 = vld [vmem:[%s20819_s25 + $0x1e8] sm:$0x1] }
 0x3e9   : > { %13667 = vmatpush1.bf16.msra.mxu0 %v19703_v59  ;;  %12354 = vmatprep.subr.bf16.mxu1 %v19708_v62  ;;  %v1238_v59 = vld [vmem:[%s20819_s25 + $0x378] sm:$0x3]  ;;  %v1549_v62 = vrot.slane %v1230_v57, 2  ;;  %v3522_v45 = vsel %vm806_vm0, %v3520_v37, %v3521_v38  ;;  %v3385_v57 = vrot.slane %v16330_v53, 1  ;;  %v3410_v60 = vrot.slane %v16354_v56, 1 }
 0x3ea   : > { %13668 = vmatprep.subr.bf16.mxu0 %v19711_v7  ;;  %v1550_v63 = vrot.slane %v1238_v59, 2  ;;  %12322 = vmatmul.mubr.bf16.gmra.mrb[8].mxu1 %v1662_v52  ;;  %v16432_v7 = vld [vmem:[%s20819_s25 + $0x458] sm:$0x1]  ;;  %v19777_v33 = vld [vmem:[#allocation4 + $0x1f14] ss:$8 sps:$4 sm:$0xff]  }
 0x3eb   : > { %13636 = vmatmul.mubr.bf16.gmra.mrb[8].mxu0 %v3644_v58  ;;  %v3524_v12 = vrot.slane %v16432_v7, 1  ;;  %v19759_v7 = vld [vmem:[#allocation4 + $0x1ee4] ss:$8 sps:$4 sm:$0xff]   ;;  %v19778_v38 = vld [vmem:[#allocation4 + $0xd20] ss:$8 sps:$4 sm:$0xff]  }
 0x3ec   : > { %12355 = vmatpush1.bf16.msra.mxu1 %v19706_v10  ;;  %v1551_v5 = vsel %vm1383_vm1, %v1549_v62, %v1550_v63  ;;  %v19745_v62 = vld [vmem:[#allocation4 + $0x1ec0] ss:$8 sps:$4 sm:$0xff]   ;;  %v19750_v63 = vld [vmem:[#allocation4 + $0xcd4] ss:$8 sps:$4 sm:$0xff]   ;;  %v19780_v36 = vld [vmem:[#allocation4 + $0xd24] ss:$8 sps:$4 sm:$0xff]  }
 0x3ed   : > { %13669 = vmatpush1.bf16.msra.mxu0 %v19709_v11  ;;  %12356 = vmatprep.subr.bf16.mxu1 %v19714_v20  ;;  %v1671_v10 = vpack.c.bf16 %v1575_v6, %v1551_v5  ;;  %v3523_v11 = vrot.slane %v16424_v4, 1  ;;  %v1229_v20 = vld [vmem:[%s20819_s25 + $0x330] sm:$0xfc]  ;;  %v19756_v6 = vld [vmem:[#allocation4 + $0xce4] ss:$8 sps:$4 sm:$0xff]  }
 0x3ee   : > { %13670 = vmatprep.subr.bf16.mxu0 %v19717_v24  ;;  %v19741_v24 = vld [vmem:[#allocation4 + $0x1eb4] ss:$8 sps:$4 sm:$0xff]   ;;  %v1546_v27 = vrot.slane %v1229_v20, 2  ;;  %v19751_v4 = vld [vmem:[#allocation4 + $0x1ed0] ss:$8 sps:$4 sm:$0xff]  }
 0x3ef   : > { %12331 = vmatprep.mubr.bf16.mxu1 %v1671_v10  ;;  %v3525_v19 = vsel %vm806_vm0, %v3523_v11, %v3524_v12  ;;  %v16345_v10 = vld [vmem:[%s20819_s25 + $0x1a0] sm:$0xfe]  ;;  %v16353_v11 = vld [vmem:[%s20819_s25 + $0x1e0] sm:$0x1]  ;;  %v19760_v20 = vld [vmem:[#allocation4 + $0xcf0] ss:$8 sps:$4 sm:$0xff]  }
 0x3f0   : > { %12357 = vmatpush1.bf16.msra.mxu1 %v19712_v28  ;;  %v1547_v28 = vrot.slane %v1237_v21, 2  ;;  %v3653_v30 = vpack.c.bf16 %v3549_v25, %v3525_v19  ;;  %v19754_v12 = vld [vmem:[#allocation4 + $0xce0] ss:$8 sps:$4 sm:$0xff]   ;;  %v3406_v16 = vrot.slane %v16345_v10, 1  ;;  %v19765_v19 = vld [vmem:[#allocation4 + $0x1ef4] ss:$8 sps:$4 sm:$0xff]  }
 0x3f1   : > { %13671 = vmatpush1.bf16.msra.mxu0 %v19715_v29  ;;  %12358 = vmatprep.subr.bf16.mxu1 %v19720_v35  ;;  %v1570_v29 = vrot.slane %v1245_v22, 2  ;;  %v16439_v35 = vld [vmem:[%s20819_s25 + $0x490] sm:$0xfe]  ;;  %v15941_v22 = vld [vmem:[%s20819_s25 + $0x80] sm:$0xff] }
 0x3f2   : > { %13672 = vmatprep.subr.bf16.mxu0 %v19723_v46  ;;  %v1548_v34 = vsel %vm1383_vm1, %v1546_v27, %v1547_v28  ;;  %13645 = vmatprep.mubr.bf16.mxu0 %v3653_v30  ;;  %v3544_v40 = vrot.slane %v16439_v35, 1  ;;  %v15942_v46 = vld [vmem:[%s20819_s25 + $0x88] sm:$0xff]  ;;  %v19763_v21 = vld [vmem:[#allocation4 + $0x1ef0] ss:$8 sps:$4 sm:$0xff]  }
 0x3f3   : > { %v1572_v39 = vsel %vm1383_vm1, %v1570_v29, %v1571_v31  ;;  %v1770_v52 = vpack.c.bf16 %v15950_v48, %v15942_v46  ;;  %v19771_v27 = vld [vmem:[#allocation4 + $0x1f04] ss:$8 sps:$4 sm:$0xff]   ;;  %v19766_v28 = vld [vmem:[#allocation4 + $0xd00] ss:$8 sps:$4 sm:$0xff]   ;;  %v19775_v35 = vld [vmem:[#allocation4 + $0x1f10] ss:$8 sps:$4 sm:$0xff]  }
 0x3f4   : > { %12359 = vmatpush1.bf16.msra.mxu1 %v19718_v50  ;;  %v1670_v44 = vpack.c.bf16 %v1572_v39, %v1548_v34  ;;  %v3546_v47 = vsel %vm806_vm0, %v3544_v40, %v3545_v41  ;;  %v19747_v50 = vld [vmem:[#allocation4 + $0x1ec4] ss:$8 sps:$4 sm:$0xff]   ;;  %v19769_v31 = vld [vmem:[#allocation4 + $0x1f00] ss:$8 sps:$4 sm:$0xff]   ;;  %v19772_v34 = vld [vmem:[#allocation4 + $0xd10] ss:$8 sps:$4 sm:$0xff]  }
 0x3f5   : > { %13673 = vmatpush1.bf16.msra.mxu0 %v19721_v51  ;;  %12360 = vmatprep.subr.bf16.mxu1 %v19726_v54  ;;  %v3652_v51 = vpack.c.bf16 %v3546_v47, %v3522_v45  ;;  %v16338_v54 = vld [vmem:[%s20819_s25 + $0x168] sm:$0x1]  ;;  %v19783_v37 = vld [vmem:[#allocation4 + $0x1f24] ss:$8 sps:$4 sm:$0xff]   ;;  %v19786_v40 = vld [vmem:[#allocation4 + $0xd34] ss:$8 sps:$4 sm:$0xff]  }
 0x3f6   : > { %13674 = vmatprep.subr.bf16.mxu0 %v19729_v55  ;;  %12332 = vmatmul.mubr.bf16.gmra.mrb[12].mxu1 %v1670_v44  ;;  %v16346_v55 = vld [vmem:[%s20819_s25 + $0x1a8] sm:$0xfe]  ;;  %v3386_v58 = vrot.slane %v16338_v54, 1  ;;  %v19789_v41 = vld [vmem:[#allocation4 + $0x1f34] ss:$8 sps:$4 sm:$0xff]  }
 0x3f7   : > { %13646 = vmatmul.mubr.bf16.gmra.mrb[12].mxu0 %v3652_v51  ;;  %12374 = vmatprep.mubr.bf16.mxu1 %v1770_v52  ;;  %v3409_v59 = vrot.slane %v16346_v55, 1  ;;  %v19781_v39 = vld [vmem:[#allocation4 + $0x1f20] ss:$8 sps:$4 sm:$0xff]   ;;  %v19792_v46 = vld [vmem:[#allocation4 + $0xd44] ss:$8 sps:$4 sm:$0xff]  }
 0x3f8   : > { %12361 = vmatpush1.bf16.msra.mxu1 %v19724_v2  ;;  %v3387_v1 = vsel %vm806_vm0, %v3385_v57, %v3386_v58  ;;  %v15958_v44 = vld [vmem:[%s20819_s25 + $0x188] sm:$0xff]  ;;  %v19798_v58 = vld [vmem:[#allocation4 + $0xd54] ss:$8 sps:$4 sm:$0xff]   ;;  %v19796_v10 = vld [vmem:[#allocation4 + $0xd50] ss:$8 sps:$4 sm:$0xff]  }
 0x3f9   : > { %13675 = vmatpush1.bf16.msra.mxu0 %v19727_v3  ;;  %12362 = vmatprep.subr.bf16.mxu1 %v19732_v14  ;;  %v3411_v2 = vsel %vm806_vm0, %v3409_v59, %v3410_v60  ;;  %v19748_v3 = vld [vmem:[#allocation4 + $0xcd0] ss:$8 sps:$4 sm:$0xff]   ;;  %v3382_v14 = vrot.slane %v16329_v8, 1  ;;  %v15966_v45 = vld [vmem:[%s20819_s25 + $0x208] sm:$0xff]  ;;  %v19801_v59 = vld [vmem:[#allocation4 + $0x1f54] ss:$8 sps:$4 sm:$0xff]  }
 0x3fa   : > { %13676 = vmatprep.subr.bf16.mxu0 %v19735_v15  ;;  %v3631_v5 = vpack.c.bf16 %v3411_v2, %v3387_v1  ;;  %v3383_v15 = vrot.slane %v16337_v9, 1  ;;  %v19795_v47 = vld [vmem:[#allocation4 + $0x1f44] ss:$8 sps:$4 sm:$0xff]   ;;  %v1778_v48 = vpack.c.bf16 %v15966_v45, %v15958_v44  ;;  %v19790_v52 = vld [vmem:[#allocation4 + $0xd40] ss:$8 sps:$4 sm:$0xff]  }
 0x3fb   : > { %v16378_v51 = vld [vmem:[%s20819_s25 + $0x2a8] sm:$0xfe]  ;;  %v16386_v54 = vld [vmem:[%s20819_s25 + $0x2e8] sm:$0x1]  ;;  %v16417_v44 = vld [vmem:[%s20819_s25 + $0x3e0] sm:$0x1] }
 0x3fc   : > { %12363 = vmatpush1.bf16.msra.mxu1 %v19730_v17  ;;  %13688 = vmatprep.mubr.bf16.mxu0 %v3631_v5  ;;  %v3407_v17 = vrot.slane %v16353_v11, 1  ;;  %v19793_v53 = vld [vmem:[#allocation4 + $0x1f40] ss:$8 sps:$4 sm:$0xff]   ;;  %v3457_v57 = vrot.slane %v16378_v51, 1  ;;  %v3458_v60 = vrot.slane %v16386_v54, 1 }
 0x3fd   : > { %13677 = vmatpush1.bf16.msra.mxu0 %v19733_v18  ;;  %12364 = vmatprep.subr.bf16.mxu1 %v19738_v23  ;;  %v19762_v18 = vld [vmem:[#allocation4 + $0xcf4] ss:$8 sps:$4 sm:$0xff]   ;;  %v15949_v23 = vld [vmem:[%s20819_s25 + $0x100] sm:$0xff]  ;;  %v19799_v11 = vld [vmem:[#allocation4 + $0x1f50] ss:$8 sps:$4 sm:$0xff]  }
 0x3fe   : > { %13678 = vmatprep.subr.bf16.mxu0 %v19741_v24  ;;  %v3384_v24 = vsel %vm806_vm0, %v3382_v14, %v3383_v15  ;;  %v3408_v25 = vsel %vm806_vm0, %v3406_v16, %v3407_v17  ;;  %v1769_v29 = vpack.c.bf16 %v15949_v23, %v15941_v22  ;;  %v3459_v1 = vsel %vm806_vm0, %v3457_v57, %v3458_v60  ;;  %v16385_v5 = vld [vmem:[%s20819_s25 + $0x2e0] sm:$0x1]  ;;  %v19807_v14 = vld [vmem:[#allocation4 + $0x1f64] ss:$8 sps:$4 sm:$0xff]  }
 0x3ff   : > { %v3630_v30 = vpack.c.bf16 %v3408_v25, %v3384_v24  ;;  %v15974_v16 = vld [vmem:[%s20819_s25 + $0x288] sm:$0xff] }
 0x400   : > { %12365 = vmatpush1.bf16.msra.mxu1 %v19736_v42  ;;  %v19784_v42 = vld [vmem:[#allocation4 + $0xd30] ss:$8 sps:$4 sm:$0xff]   ;;  %v16394_v23 = vld [vmem:[%s20819_s25 + $0x328] sm:$0xfe]  ;;  %v16402_v24 = vld [vmem:[%s20819_s25 + $0x368] sm:$0x1] }
 0x401   : > { %13679 = vmatpush1.bf16.msra.mxu0 %v19739_v43  ;;  %12366 = vmatprep.subr.bf16.mxu1 %v19744_v49  ;;  %v19787_v43 = vld [vmem:[#allocation4 + $0x1f30] ss:$8 sps:$4 sm:$0xff]   ;;  %v16362_v49 = vld [vmem:[%s20819_s25 + $0x228] sm:$0xfe] }
 0x402   : > { %13680 = vmatprep.subr.bf16.mxu0 %v19747_v50  ;;  %v16370_v50 = vld [vmem:[%s20819_s25 + $0x268] sm:$0x1]  ;;  %v3433_v55 = vrot.slane %v16362_v49, 1  ;;  %v16410_v25 = vld [vmem:[%s20819_s25 + $0x3a8] sm:$0xfe]  ;;  %v3503_v49 = vrot.slane %v16417_v44, 1 }
 0x403   : > { %v3434_v56 = vrot.slane %v16370_v50, 1  ;;  %v19819_v50 = vld [vmem:[#allocation4 + $0x1f84] ss:$8 sps:$4 sm:$0xff]  }
 0x404   : > { %12367 = vmatpush1.bf16.msra.mxu1 %v19742_v61  ;;  %v15998_v57 = vld [vmem:[%s20819_s25 + $0x408] sm:$0xff] }
 0x405   : > { %13681 = vmatpush1.bf16.msra.mxu0 %v19745_v62  ;;  %12368 = vmatprep.subr.bf16.mxu1 %v19750_v63  ;;  %v3435_v61 = vsel %vm806_vm0, %v3433_v55, %v3434_v56  ;;  %v15957_v62 = vld [vmem:[%s20819_s25 + $0x180] sm:$0xff]  ;;  %v15990_v55 = vld [vmem:[%s20819_s25 + $0x388] sm:$0xff] }
 0x406   : > { %13682 = vmatprep.subr.bf16.mxu0 %v19753_v0  ;;  %v15965_v63 = vld [vmem:[%s20819_s25 + $0x200] sm:$0xff]  ;;  %v1794_v60 = vpack.c.bf16 %v15998_v57, %v15990_v55  ;;  %v16339_v57 = vld [vmem:[%s20819_s25 + $0x170] sm:$0x1] }
 0x407   : > { %v16361_v0 = vld [vmem:[%s20819_s25 + $0x220] sm:$0xfe]  ;;  %v1777_v2 = vpack.c.bf16 %v15965_v63, %v15957_v62  ;;  %v16434_v62 = vld [vmem:[%s20819_s25 + $0x468] sm:$0x1]  ;;  %v16442_v63 = vld [vmem:[%s20819_s25 + $0x4a8] sm:$0xfe] }
 0x408   : > { %12369 = vmatpush1.bf16.msra.mxu1 %v19748_v3  ;;  %v16369_v3 = vld [vmem:[%s20819_s25 + $0x260] sm:$0x1]  ;;  %v19843_v44 = vld [vmem:[#allocation4 + $0x1fc4] ss:$8 sps:$4 sm:$0xff]  }
 0x409   : > { %13683 = vmatpush1.bf16.msra.mxu0 %v19751_v4  ;;  %12370 = vmatprep.subr.bf16.mxu1 %v19756_v6  ;;  %v16377_v4 = vld [vmem:[%s20819_s25 + $0x2a0] sm:$0xfe]  ;;  %v3639_v6 = vpack.c.bf16 %v3459_v1, %v3435_v61  ;;  %v3431_v8 = vrot.slane %v16369_v3, 1  ;;  %v16426_v61 = vld [vmem:[%s20819_s25 + $0x428] sm:$0xfe] }
 0x40a   : > { %13684 = vmatprep.subr.bf16.mxu0 %v19759_v7  ;;  %v3430_v7 = vrot.slane %v16361_v0, 1  ;;  %v3454_v9 = vrot.slane %v16377_v4, 1  ;;  %v16450_v0 = vld [vmem:[%s20819_s25 + $0x4e8] sm:$0x1]  ;;  %v19820_v1 = vld [vmem:[#allocation4 + $0xd90] ss:$8 sps:$4 sm:$0xff]  }
 0x40b   : > { %v3529_v3 = vrot.slane %v16426_v61, 1  ;;  %v3530_v4 = vrot.slane %v16434_v62, 1  ;;  %v19855_v55 = vld [vmem:[#allocation4 + $0x1fe4] ss:$8 sps:$4 sm:$0xff]   ;;  %v19853_v61 = vld [vmem:[#allocation4 + $0x1fe0] ss:$8 sps:$4 sm:$0xff]  }
 0x40c   : > { %12371 = vmatpush1.bf16.msra.mxu1 %v19754_v12  ;;  %v3455_v12 = vrot.slane %v16385_v5, 1  ;;  %v3432_v15 = vsel %vm806_vm0, %v3430_v7, %v3431_v8  ;;  %v3553_v5 = vrot.slane %v16442_v63, 1  ;;  %v19828_v7 = vld [vmem:[#allocation4 + $0xda4] ss:$8 sps:$4 sm:$0xff]   ;;  %v19858_v62 = vld [vmem:[#allocation4 + $0xdf4] ss:$8 sps:$4 sm:$0xff]  }
 0x40d   : > { %13685 = vmatpush1.bf16.msra.mxu0 %v19757_v13  ;;  %12372 = vmatprep.subr.bf16.mxu1 %v19762_v18  ;;  %v19804_v13 = vld [vmem:[#allocation4 + $0xd64] ss:$8 sps:$4 sm:$0xff]  }
 0x40e   : > { %13686 = vmatprep.subr.bf16.mxu0 %v19765_v19  ;;  %v3456_v17 = vsel %vm806_vm0, %v3454_v9, %v3455_v12  ;;  %v15982_v18 = vld [vmem:[%s20819_s25 + $0x308] sm:$0xff]  ;;  %v15989_v9 = vld [vmem:[%s20819_s25 + $0x380] sm:$0xff] }
 0x40f   : > { %v19802_v19 = vld [vmem:[#allocation4 + $0xd60] ss:$8 sps:$4 sm:$0xff]   ;;  %v1786_v22 = vpack.c.bf16 %v15982_v18, %v15974_v16  ;;  %v19831_v8 = vld [vmem:[#allocation4 + $0x1fa4] ss:$8 sps:$4 sm:$0xff]  }
 0x410   : > { %12373 = vmatpush1.bf16.msra.mxu1 %v19760_v20  ;;  %v19805_v20 = vld [vmem:[#allocation4 + $0x1f60] ss:$8 sps:$4 sm:$0xff]  }
 0x411   : > { %13687 = vmatpush1.bf16.msra.mxu0 %v19763_v21  ;;  %12415 = vmatprep.subr.bf16.mxu1 %v19768_v26  ;;  %v3638_v21 = vpack.c.bf16 %v3456_v17, %v3432_v15  ;;  %v16418_v26 = vld [vmem:[%s20819_s25 + $0x3e8] sm:$0x1]  ;;  %v15997_v12 = vld [vmem:[%s20819_s25 + $0x400] sm:$0xff] }
 0x412   : > { %13729 = vmatprep.subr.bf16.mxu0 %v19771_v27  ;;  %v3481_v27 = vrot.slane %v16394_v23, 1  ;;  %v1793_v16 = vpack.c.bf16 %v15997_v12, %v15989_v9  ;;  %v16441_v17 = vld [vmem:[%s20819_s25 + $0x4a0] sm:$0xfe]  ;;  %v16449_v18 = vld [vmem:[%s20819_s25 + $0x4e0] sm:$0x1] }
 0x413   : > { %12375 = vmatmul.mubr.bf16.vlgmr.msra.gmra.mrb[0].mxu1 %v1769_v29  ;;  %v3505_v29 = vrot.slane %v16410_v25, 1  ;;  %v3551_v23 = vrot.slane %v16449_v18, 1  ;;  %v19862_v12 = vld [vmem:[#allocation4 + $0xe00] ss:$8 sps:$4 sm:$0xff]   ;;  %v19868_v18 = vld [vmem:[#allocation4 + $0xe10] ss:$8 sps:$4 sm:$0xff]  }
 0x414   : > { %13689 = vmatmul.mubr.bf16.vlgmr.msra.gmra.mrb[0].mxu0 %v3630_v30  ;;  %12416 = vmatpush1.bf16.msra.mxu1 %v19766_v28  ;;  %v3482_v28 = vrot.slane %v16402_v24, 1  ;;  %v3506_v30 = vrot.slane %v16418_v26, 1  ;;  %v19829_v24 = vld [vmem:[#allocation4 + $0x1fa0] ss:$8 sps:$4 sm:$0xff]   ;;  %v19834_v26 = vld [vmem:[#allocation4 + $0xdb4] ss:$8 sps:$4 sm:$0xff]  }
 0x415   : > { %13730 = vmatpush1.bf16.msra.mxu0 %v19769_v31  ;;  %12417 = vmatprep.subr.bf16.mxu1 %v19774_v32  ;;  %v19810_v31 = vld [vmem:[#allocation4 + $0xd74] ss:$8 sps:$4 sm:$0xff]  }
 0x416   : > { %13731 = vmatprep.subr.bf16.mxu0 %v19777_v33  ;;  %12384 = vmatprep.mubr.bf16.mxu1 %v1778_v48  ;;  %v19813_v32 = vld [vmem:[#allocation4 + $0x1f74] ss:$8 sps:$4 sm:$0xff]   ;;  %v15973_v33 = vld [vmem:[%s20819_s25 + $0x280] sm:$0xff] }
 0x417   : > { %13698 = vmatprep.mubr.bf16.mxu0 %v3639_v6  ;;  %v3554_v6 = vrot.slane %v16450_v0, 1  ;;  %v3389_v0 = vrot.slane %v16339_v57, 1  ;;  %v19894_v57 = vld [vmem:[#allocation4 + $0xe54] ss:$8 sps:$4 sm:$0xff]  }
 0x418   : > { %12418 = vmatpush1.bf16.msra.mxu1 %v19772_v34  ;;  %v19808_v34 = vld [vmem:[#allocation4 + $0xd70] ss:$8 sps:$4 sm:$0xff]  }
 0x419   : > { %13732 = vmatpush1.bf16.msra.mxu0 %v19775_v35  ;;  %12419 = vmatprep.subr.bf16.mxu1 %v19780_v36  ;;  %v19811_v35 = vld [vmem:[#allocation4 + $0x1f70] ss:$8 sps:$4 sm:$0xff]   ;;  %v3483_v36 = vsel %vm806_vm0, %v3481_v27, %v3482_v28  ;;  %v19837_v27 = vld [vmem:[#allocation4 + $0x1fb4] ss:$8 sps:$4 sm:$0xff]  }
 0x41a   : > { %13733 = vmatprep.subr.bf16.mxu0 %v19783_v37  ;;  %v3507_v37 = vsel %vm806_vm0, %v3505_v29, %v3506_v30  ;;  %v15944_v29 = vld [vmem:[%s20819_s25 + $0x98] sm:$0xff] }
 0x41b   : > { %12385 = vmatmul.mubr.bf16.gmra.mrb[4].mxu1 %v1777_v2  ;;  %v19823_v2 = vld [vmem:[#allocation4 + $0x1f90] ss:$8 sps:$4 sm:$0xff]  }
 0x41c   : > { %12420 = vmatpush1.bf16.msra.mxu1 %v19778_v38  ;;  %13699 = vmatmul.mubr.bf16.gmra.mrb[4].mxu0 %v3638_v21  ;;  %v15981_v38 = vld [vmem:[%s20819_s25 + $0x300] sm:$0xff] }
 0x41d   : > { %13734 = vmatpush1.bf16.msra.mxu0 %v19781_v39  ;;  %12421 = vmatprep.subr.bf16.mxu1 %v19786_v40  ;;  %v16393_v39 = vld [vmem:[%s20819_s25 + $0x320] sm:$0xfe]  ;;  %v16401_v40 = vld [vmem:[%s20819_s25 + $0x360] sm:$0x1] }
 0x41e   : > { %13735 = vmatprep.subr.bf16.mxu0 %v19789_v41  ;;  %12394 = vmatprep.mubr.bf16.mxu1 %v1786_v22  ;;  %v3647_v41 = vpack.c.bf16 %v3507_v37, %v3483_v36  ;;  %v3478_v45 = vrot.slane %v16393_v39, 1  ;;  %v19826_v21 = vld [vmem:[#allocation4 + $0xda0] ss:$8 sps:$4 sm:$0xff]   ;;  %v3550_v22 = vrot.slane %v16441_v17, 1  ;;  %v16340_v36 = vld [vmem:[%s20819_s25 + $0x178] sm:$0x1] }
 0x41f   : > { %v16348_v37 = vld [vmem:[%s20819_s25 + $0x1b8] sm:$0xfe] }
 0x420   : > { %12422 = vmatpush1.bf16.msra.mxu1 %v19784_v42  ;;  %v1785_v42 = vpack.c.bf16 %v15981_v38, %v15973_v33  ;;  %13708 = vmatprep.mubr.bf16.mxu0 %v3647_v41  ;;  %v3552_v28 = vsel %vm806_vm0, %v3550_v22, %v3551_v23  ;;  %v19835_v33 = vld [vmem:[#allocation4 + $0x1fb0] ss:$8 sps:$4 sm:$0xff]   ;;  %v3415_v41 = vrot.slane %v16348_v37, 1  ;;  %v19873_v17 = vld [vmem:[#allocation4 + $0x2014] ss:$8 sps:$4 sm:$0xff]  }
 0x421   : > { %13736 = vmatpush1.bf16.msra.mxu0 %v19787_v43  ;;  %12423 = vmatprep.subr.bf16.mxu1 %v19792_v46  ;;  %v16409_v43 = vld [vmem:[%s20819_s25 + $0x3a0] sm:$0xfe]  ;;  %v3479_v46 = vrot.slane %v16401_v40, 1  ;;  %v16356_v38 = vld [vmem:[%s20819_s25 + $0x1f8] sm:$0x1]  ;;  %v3392_v40 = vrot.slane %v16340_v36, 1 }
 0x422   : > { %13737 = vmatprep.subr.bf16.mxu0 %v19795_v47  ;;  %v19816_v47 = vld [vmem:[#allocation4 + $0xd84] ss:$8 sps:$4 sm:$0xff]   ;;  %v3502_v48 = vrot.slane %v16409_v43, 1  ;;  %v19874_v22 = vld [vmem:[#allocation4 + $0xe20] ss:$8 sps:$4 sm:$0xff]  }
 0x423   : > { %v3480_v51 = vsel %vm806_vm0, %v3478_v45, %v3479_v46  ;;  %12395 = vmatmul.mubr.bf16.gmra.mrb[8].mxu1 %v1785_v42  ;;  %v3416_v42 = vrot.slane %v16356_v38, 1  ;;  %v19840_v43 = vld [vmem:[#allocation4 + $0xdc4] ss:$8 sps:$4 sm:$0xff]   ;;  %v19877_v23 = vld [vmem:[#allocation4 + $0x2020] ss:$8 sps:$4 sm:$0xff]  }
 0x424   : > { %12424 = vmatpush1.bf16.msra.mxu1 %v19790_v52  ;;  %v19814_v52 = vld [vmem:[#allocation4 + $0xd80] ss:$8 sps:$4 sm:$0xff]   ;;  %v3504_v54 = vsel %vm806_vm0, %v3502_v48, %v3503_v49  ;;  %12404 = vmatprep.mubr.bf16.mxu1 %v1794_v60  ;;  %v19888_v38 = vld [vmem:[#allocation4 + $0xe44] ss:$8 sps:$4 sm:$0xff]  }
 0x425   : > { %13738 = vmatpush1.bf16.msra.mxu0 %v19793_v53  ;;  %12425 = vmatprep.subr.bf16.mxu1 %v19798_v58  ;;  %v19817_v53 = vld [vmem:[#allocation4 + $0x1f80] ss:$8 sps:$4 sm:$0xff]   ;;  %v3646_v56 = vpack.c.bf16 %v3504_v54, %v3480_v51  ;;  %v19822_v58 = vld [vmem:[#allocation4 + $0xd94] ss:$8 sps:$4 sm:$0xff]   ;;  %v3417_v46 = vsel %vm806_vm0, %v3415_v41, %v3416_v42  ;;  %v19852_v54 = vld [vmem:[#allocation4 + $0xde4] ss:$8 sps:$4 sm:$0xff]  }
 0x426   : > { %13739 = vmatprep.subr.bf16.mxu0 %v19801_v59  ;;  %v19825_v59 = vld [vmem:[#allocation4 + $0x1f94] ss:$8 sps:$4 sm:$0xff]   ;;  %v19841_v48 = vld [vmem:[#allocation4 + $0x1fc0] ss:$8 sps:$4 sm:$0xff]  }
 0x427   : > { %13709 = vmatmul.mubr.bf16.gmra.mrb[8].mxu0 %v3646_v56  ;;  %v19849_v51 = vld [vmem:[#allocation4 + $0x1fd4] ss:$8 sps:$4 sm:$0xff]   ;;  %v19850_v60 = vld [vmem:[#allocation4 + $0xde0] ss:$8 sps:$4 sm:$0xff]  }
 0x428   : > { %12426 = vmatpush1.bf16.msra.mxu1 %v19796_v10  ;;  %v3531_v10 = vsel %vm806_vm0, %v3529_v3, %v3530_v4  ;;  %v16331_v56 = vld [vmem:[%s20819_s25 + $0x130] sm:$0xfe] }
 0x429   : > { %13740 = vmatpush1.bf16.msra.mxu0 %v19799_v11  ;;  %12427 = vmatprep.subr.bf16.mxu1 %v19804_v13  ;;  %v3555_v11 = vsel %vm806_vm0, %v3553_v5, %v3554_v6  ;;  %v16425_v13 = vld [vmem:[%s20819_s25 + $0x420] sm:$0xfe]  ;;  %v3388_v63 = vrot.slane %v16331_v56, 1  ;;  %v19861_v3 = vld [vmem:[#allocation4 + $0x1ff4] ss:$8 sps:$4 sm:$0xff]  }
 0x42a   : > { %13741 = vmatprep.subr.bf16.mxu0 %v19807_v14  ;;  %v16433_v14 = vld [vmem:[%s20819_s25 + $0x460] sm:$0x1]  ;;  %v3655_v15 = vpack.c.bf16 %v3555_v11, %v3531_v10  ;;  %v19856_v4 = vld [vmem:[#allocation4 + $0xdf0] ss:$8 sps:$4 sm:$0xff]   ;;  %v19864_v6 = vld [vmem:[#allocation4 + $0xe04] ss:$8 sps:$4 sm:$0xff]  }
 0x42b   : > { %12405 = vmatmul.mubr.bf16.gmra.mrb[12].mxu1 %v1793_v16  ;;  %v19859_v5 = vld [vmem:[#allocation4 + $0x1ff0] ss:$8 sps:$4 sm:$0xff]   ;;  %v3390_v9 = vsel %vm806_vm0, %v3388_v63, %v3389_v0  ;;  %v19867_v11 = vld [vmem:[#allocation4 + $0x2004] ss:$8 sps:$4 sm:$0xff]   ;;  %v19870_v16 = vld [vmem:[#allocation4 + $0xe14] ss:$8 sps:$4 sm:$0xff]  }
 0x42c   : > { %12428 = vmatpush1.bf16.msra.mxu1 %v19802_v19  ;;  %v3526_v19 = vrot.slane %v16425_v13, 1  ;;  %13718 = vmatprep.mubr.bf16.mxu0 %v3655_v15  ;;  %v19865_v13 = vld [vmem:[#allocation4 + $0x2000] ss:$8 sps:$4 sm:$0xff]   ;;  %v15959_v42 = vld [vmem:[%s20819_s25 + $0x190] sm:$0xff]  ;;  %v15984_v0 = vld [vmem:[%s20819_s25 + $0x318] sm:$0xff] }
 0x42d   : > { %13742 = vmatpush1.bf16.msra.mxu0 %v19805_v20  ;;  %12429 = vmatprep.subr.bf16.mxu1 %v19810_v31  ;;  %v3527_v20 = vrot.slane %v16433_v14, 1  ;;  %v15952_v31 = vld [vmem:[%s20819_s25 + $0x118] sm:$0xff] }
 0x42e   : > { %13743 = vmatprep.subr.bf16.mxu0 %v19813_v32  ;;  %v19832_v32 = vld [vmem:[#allocation4 + $0xdb0] ss:$8 sps:$4 sm:$0xff]  }
 0x42f   : > { %v3528_v25 = vsel %vm806_vm0, %v3526_v19, %v3527_v20  ;;  %v19871_v19 = vld [vmem:[#allocation4 + $0x2010] ss:$8 sps:$4 sm:$0xff]   ;;  %v19876_v20 = vld [vmem:[#allocation4 + $0xe24] ss:$8 sps:$4 sm:$0xff]  }
 0x430   : > { %12430 = vmatpush1.bf16.msra.mxu1 %v19808_v34  ;;  %v3654_v30 = vpack.c.bf16 %v3552_v28, %v3528_v25  ;;  %v1772_v34 = vpack.c.bf16 %v15952_v31, %v15944_v29  ;;  %v15968_v25 = vld [vmem:[%s20819_s25 + $0x218] sm:$0xff] }
 0x431   : > { %13744 = vmatpush1.bf16.msra.mxu0 %v19811_v35  ;;  %12431 = vmatprep.subr.bf16.mxu1 %v19816_v47  ;;  %v16332_v35 = vld [vmem:[%s20819_s25 + $0x138] sm:$0xfe]  ;;  %v19838_v47 = vld [vmem:[#allocation4 + $0xdc0] ss:$8 sps:$4 sm:$0xff]  }
 0x432   : > { %13745 = vmatprep.subr.bf16.mxu0 %v19819_v50  ;;  %13719 = vmatmul.mubr.bf16.gmra.mrb[12].mxu0 %v3654_v30  ;;  %v3391_v39 = vrot.slane %v16332_v35, 1  ;;  %v19846_v50 = vld [vmem:[#allocation4 + $0xdd4] ss:$8 sps:$4 sm:$0xff]   ;;  %v19880_v29 = vld [vmem:[#allocation4 + $0xe30] ss:$8 sps:$4 sm:$0xff]  }
 0x433   : > { %12447 = vmatprep.mubr.bf16.mxu1 %v1772_v34  ;;  %v19883_v30 = vld [vmem:[#allocation4 + $0x2030] ss:$8 sps:$4 sm:$0xff]  }
 0x434   : > { %12432 = vmatpush1.bf16.msra.mxu1 %v19814_v52  ;;  %v3393_v45 = vsel %vm806_vm0, %v3391_v39, %v3392_v40  ;;  %v19844_v52 = vld [vmem:[#allocation4 + $0xdd0] ss:$8 sps:$4 sm:$0xff]   ;;  %v19891_v39 = vld [vmem:[#allocation4 + $0x2044] ss:$8 sps:$4 sm:$0xff]  }
 0x435   : > { %13746 = vmatpush1.bf16.msra.mxu0 %v19817_v53  ;;  %12433 = vmatprep.subr.bf16.mxu1 %v19822_v58  ;;  %v3633_v49 = vpack.c.bf16 %v3417_v46, %v3393_v45  ;;  %v19847_v53 = vld [vmem:[#allocation4 + $0x1fd0] ss:$8 sps:$4 sm:$0xff]  }
 0x436   : > { %13747 = vmatprep.subr.bf16.mxu0 %v19825_v59  ;;  %v16347_v58 = vld [vmem:[%s20819_s25 + $0x1b0] sm:$0xfe]  ;;  %v16355_v59 = vld [vmem:[%s20819_s25 + $0x1f0] sm:$0x1]  ;;  %v16364_v31 = vld [vmem:[%s20819_s25 + $0x238] sm:$0xfe] }
 0x437   : > { %13761 = vmatprep.mubr.bf16.mxu0 %v3633_v49  ;;  %v16388_v34 = vld [vmem:[%s20819_s25 + $0x2f8] sm:$0x1]  ;;  %v3439_v35 = vrot.slane %v16364_v31, 1  ;;  %v16387_v49 = vld [vmem:[%s20819_s25 + $0x2f0] sm:$0x1] }
 0x438   : > { %12434 = vmatpush1.bf16.msra.mxu1 %v19820_v1  ;;  %v3412_v1 = vrot.slane %v16347_v58, 1  ;;  %v3464_v40 = vrot.slane %v16388_v34, 1  ;;  %v3461_v56 = vrot.slane %v16387_v49, 1  ;;  %v19897_v58 = vld [vmem:[#allocation4 + $0x2054] ss:$8 sps:$4 sm:$0xff]  }
 0x439   : > { %13748 = vmatpush1.bf16.msra.mxu0 %v19823_v2  ;;  %12435 = vmatprep.subr.bf16.mxu1 %v19828_v7  ;;  %v3413_v2 = vrot.slane %v16355_v59, 1  ;;  %v15943_v7 = vld [vmem:[%s20819_s25 + $0x90] sm:$0xff] }
 0x43a   : > { %13749 = vmatprep.subr.bf16.mxu0 %v19831_v8  ;;  %v15951_v8 = vld [vmem:[%s20819_s25 + $0x110] sm:$0xff] }
 0x43b   : > { %v3414_v10 = vsel %vm806_vm0, %v3412_v1, %v3413_v2  ;;  %v1771_v14 = vpack.c.bf16 %v15951_v8, %v15943_v7  ;;  %v19900_v1 = vld [vmem:[#allocation4 + $0xe64] ss:$8 sps:$4 sm:$0xff]   ;;  %v16412_v7 = vld [vmem:[%s20819_s25 + $0x3b8] sm:$0xfe]  ;;  %v16420_v8 = vld [vmem:[%s20819_s25 + $0x3f8] sm:$0x1] }
 0x43c   : > { %12436 = vmatpush1.bf16.msra.mxu1 %v19826_v21  ;;  %v3632_v15 = vpack.c.bf16 %v3414_v10, %v3390_v9  ;;  %v19879_v21 = vld [vmem:[#allocation4 + $0x2024] ss:$8 sps:$4 sm:$0xff]  }
 0x43d   : > { %13750 = vmatpush1.bf16.msra.mxu0 %v19829_v24  ;;  %12437 = vmatprep.subr.bf16.mxu1 %v19834_v26  ;;  %v15960_v24 = vld [vmem:[%s20819_s25 + $0x198] sm:$0xff]  ;;  %v19903_v2 = vld [vmem:[#allocation4 + $0x2064] ss:$8 sps:$4 sm:$0xff]  }
 0x43e   : > { %13751 = vmatprep.subr.bf16.mxu0 %v19837_v27  ;;  %v19882_v26 = vld [vmem:[#allocation4 + $0xe34] ss:$8 sps:$4 sm:$0xff]   ;;  %v1780_v28 = vpack.c.bf16 %v15968_v25, %v15960_v24  ;;  %v16419_v25 = vld [vmem:[%s20819_s25 + $0x3f0] sm:$0x1] }
 0x43f   : > { %v19885_v27 = vld [vmem:[#allocation4 + $0x2034] ss:$8 sps:$4 sm:$0xff]  }
 0x440   : > { %12438 = vmatpush1.bf16.msra.mxu1 %v19832_v32  ;;  %v16372_v32 = vld [vmem:[%s20819_s25 + $0x278] sm:$0x1]  ;;  %v16411_v24 = vld [vmem:[%s20819_s25 + $0x3b0] sm:$0xfe] }
 0x441   : > { %13752 = vmatpush1.bf16.msra.mxu0 %v19835_v33  ;;  %12439 = vmatprep.subr.bf16.mxu1 %v19840_v43  ;;  %v16380_v33 = vld [vmem:[%s20819_s25 + $0x2b8] sm:$0xfe]  ;;  %v3440_v36 = vrot.slane %v16372_v32, 1  ;;  %v15967_v43 = vld [vmem:[%s20819_s25 + $0x210] sm:$0xff] }
 0x442   : > { %13753 = vmatprep.subr.bf16.mxu0 %v19843_v44  ;;  %v3463_v37 = vrot.slane %v16380_v33, 1  ;;  %v16363_v44 = vld [vmem:[%s20819_s25 + $0x230] sm:$0xfe]  ;;  %v1779_v46 = vpack.c.bf16 %v15967_v43, %v15959_v42  ;;  %v19910_v42 = vld [vmem:[#allocation4 + $0xe80] ss:$8 sps:$4 sm:$0xff]  }
 0x443   : > { %v3441_v41 = vsel %vm806_vm0, %v3439_v35, %v3440_v36  ;;  %v19904_v32 = vld [vmem:[#allocation4 + $0xe70] ss:$8 sps:$4 sm:$0xff]   ;;  %v19913_v43 = vld [vmem:[#allocation4 + $0x2080] ss:$8 sps:$4 sm:$0xff]  }
 0x444   : > { %12440 = vmatpush1.bf16.msra.mxu1 %v19838_v47  ;;  %v3465_v45 = vsel %vm806_vm0, %v3463_v37, %v3464_v40  ;;  %v16371_v47 = vld [vmem:[%s20819_s25 + $0x270] sm:$0x1]  ;;  %v15992_v35 = vld [vmem:[%s20819_s25 + $0x398] sm:$0xff] }
 0x445   : > { %13754 = vmatpush1.bf16.msra.mxu0 %v19841_v48  ;;  %12441 = vmatprep.subr.bf16.mxu1 %v19846_v50  ;;  %v16379_v48 = vld [vmem:[%s20819_s25 + $0x2b0] sm:$0xfe]  ;;  %v3641_v50 = vpack.c.bf16 %v3465_v45, %v3441_v41  ;;  %v16000_v37 = vld [vmem:[%s20819_s25 + $0x418] sm:$0xff] }
 0x446   : > { %13755 = vmatprep.subr.bf16.mxu0 %v19849_v51  ;;  %v3436_v51 = vrot.slane %v16363_v44, 1  ;;  %v19907_v33 = vld [vmem:[#allocation4 + $0x2070] ss:$8 sps:$4 sm:$0xff]   ;;  %v1796_v40 = vpack.c.bf16 %v16000_v37, %v15992_v35  ;;  %v19945_v35 = vld [vmem:[#allocation4 + $0x20d4] ss:$8 sps:$4 sm:$0xff]  }
 0x447   : > { %v16428_v41 = vld [vmem:[%s20819_s25 + $0x438] sm:$0xfe]  ;;  %v16436_v44 = vld [vmem:[%s20819_s25 + $0x478] sm:$0x1] }
 0x448   : > { %12442 = vmatpush1.bf16.msra.mxu1 %v19844_v52  ;;  %v3437_v52 = vrot.slane %v16371_v47, 1  ;;  %v16444_v45 = vld [vmem:[%s20819_s25 + $0x4b8] sm:$0xfe]  ;;  %v3535_v47 = vrot.slane %v16428_v41, 1  ;;  %v16461_v41 = vld [vmem:[%s20819_s25 + $0x140] sm:$0x3] }
 0x449   : > { %13756 = vmatpush1.bf16.msra.mxu0 %v19847_v53  ;;  %12443 = vmatprep.subr.bf16.mxu1 %v19852_v54  ;;  %v3460_v53 = vrot.slane %v16379_v48, 1  ;;  %v19886_v54 = vld [vmem:[#allocation4 + $0xe40] ss:$8 sps:$4 sm:$0xff]   ;;  %v3536_v48 = vrot.slane %v16436_v44, 1  ;;  %v3559_v49 = vrot.slane %v16444_v45, 1 }
 0x44a   : > { %13757 = vmatprep.subr.bf16.mxu0 %v19855_v55  ;;  %v19889_v55 = vld [vmem:[#allocation4 + $0x2040] ss:$8 sps:$4 sm:$0xff]   ;;  %v3438_v59 = vsel %vm806_vm0, %v3436_v51, %v3437_v52  ;;  %v19918_v51 = vld [vmem:[#allocation4 + $0xe94] ss:$8 sps:$4 sm:$0xff]   ;;  %v19943_v37 = vld [vmem:[#allocation4 + $0x20d0] ss:$8 sps:$4 sm:$0xff]  }
 0x44b   : > { %v3462_v63 = vsel %vm806_vm0, %v3460_v53, %v3461_v56  ;;  %v19921_v52 = vld [vmem:[#allocation4 + $0x2094] ss:$8 sps:$4 sm:$0xff]   ;;  %v19946_v44 = vld [vmem:[#allocation4 + $0xee0] ss:$8 sps:$4 sm:$0xff]  }
 0x44c   : > { %12444 = vmatpush1.bf16.msra.mxu1 %v19850_v60  ;;  %v15976_v60 = vld [vmem:[%s20819_s25 + $0x298] sm:$0xff]  ;;  %v15991_v53 = vld [vmem:[%s20819_s25 + $0x390] sm:$0xff]  ;;  %v19949_v45 = vld [vmem:[#allocation4 + $0x20e0] ss:$8 sps:$4 sm:$0xff]  }
 0x44d   : > { %13758 = vmatpush1.bf16.msra.mxu0 %v19853_v61  ;;  %12445 = vmatprep.subr.bf16.mxu1 %v19858_v62  ;;  %v19892_v61 = vld [vmem:[#allocation4 + $0xe50] ss:$8 sps:$4 sm:$0xff]  }
 0x44e   : > { %13759 = vmatprep.subr.bf16.mxu0 %v19861_v3  ;;  %v19895_v62 = vld [vmem:[#allocation4 + $0x2050] ss:$8 sps:$4 sm:$0xff]   ;;  %v3640_v3 = vpack.c.bf16 %v3462_v63, %v3438_v59 }
 0x44f   : > { %v15999_v56 = vld [vmem:[%s20819_s25 + $0x410] sm:$0xff] }
 0x450   : > { %12446 = vmatpush1.bf16.msra.mxu1 %v19856_v4  ;;  %v1788_v4 = vpack.c.bf16 %v15984_v0, %v15976_v60  ;;  %v1795_v60 = vpack.c.bf16 %v15999_v56, %v15991_v53  ;;  %v19955_v53 = vld [vmem:[#allocation4 + $0x20f0] ss:$8 sps:$4 sm:$0xff]   ;;  %v15953_v56 = vld [vmem:[%s20819_s25 + $0x120] sm:$0xff] }
 0x451   : > { %13760 = vmatpush1.bf16.msra.mxu0 %v19859_v5  ;;  %12488 = vmatprep.subr.bf16.mxu1 %v19864_v6  ;;  %v16396_v5 = vld [vmem:[%s20819_s25 + $0x338] sm:$0xfe]  ;;  %v16404_v6 = vld [vmem:[%s20819_s25 + $0x378] sm:$0x1] }
 0x452   : > { %13802 = vmatprep.subr.bf16.mxu0 %v19867_v11  ;;  %v3487_v9 = vrot.slane %v16396_v5, 1  ;;  %v3488_v10 = vrot.slane %v16404_v6, 1  ;;  %v3511_v11 = vrot.slane %v16412_v7, 1  ;;  %v19924_v6 = vld [vmem:[#allocation4 + $0xea4] ss:$8 sps:$4 sm:$0xff]  }
 0x453   : > { %12448 = vmatmul.mubr.bf16.vlgmr.msra.gmra.mrb[0].mxu1 %v1771_v14  ;;  %v19901_v14 = vld [vmem:[#allocation4 + $0x2060] ss:$8 sps:$4 sm:$0xff]   ;;  %v19927_v7 = vld [vmem:[#allocation4 + $0x20a4] ss:$8 sps:$4 sm:$0xff]  }
 0x454   : > { %13762 = vmatmul.mubr.bf16.vlgmr.msra.gmra.mrb[0].mxu0 %v3632_v15  ;;  %12489 = vmatpush1.bf16.msra.mxu1 %v19862_v12  ;;  %v3512_v12 = vrot.slane %v16420_v8, 1  ;;  %v15975_v15 = vld [vmem:[%s20819_s25 + $0x290] sm:$0xff] }
 0x455   : > { %13803 = vmatpush1.bf16.msra.mxu0 %v19865_v13  ;;  %12490 = vmatprep.subr.bf16.mxu1 %v19870_v16  ;;  %v19898_v13 = vld [vmem:[#allocation4 + $0xe60] ss:$8 sps:$4 sm:$0xff]   ;;  %v19906_v16 = vld [vmem:[#allocation4 + $0xe74] ss:$8 sps:$4 sm:$0xff]  }
 0x456   : > { %13804 = vmatprep.subr.bf16.mxu0 %v19873_v17  ;;  %12457 = vmatprep.mubr.bf16.mxu1 %v1780_v28  ;;  %v3489_v17 = vsel %vm806_vm0, %v3487_v9, %v3488_v10  ;;  %v19909_v28 = vld [vmem:[#allocation4 + $0x2074] ss:$8 sps:$4 sm:$0xff]   ;;  %v15946_v9 = vld [vmem:[%s20819_s25 + $0xa8] sm:$0xff] }
 0x457   : > { %13771 = vmatprep.mubr.bf16.mxu0 %v3641_v50  ;;  %v19922_v10 = vld [vmem:[#allocation4 + $0xea0] ss:$8 sps:$4 sm:$0xff]  }
 0x458   : > { %12491 = vmatpush1.bf16.msra.mxu1 %v19868_v18  ;;  %v3513_v18 = vsel %vm806_vm0, %v3511_v11, %v3512_v12  ;;  %v19925_v11 = vld [vmem:[#allocation4 + $0x20a0] ss:$8 sps:$4 sm:$0xff]  }
 0x459   : > { %13805 = vmatpush1.bf16.msra.mxu0 %v19871_v19  ;;  %12492 = vmatprep.subr.bf16.mxu1 %v19876_v20  ;;  %v15983_v19 = vld [vmem:[%s20819_s25 + $0x310] sm:$0xff] }
 0x45a   : > { %13806 = vmatprep.subr.bf16.mxu0 %v19879_v21  ;;  %v16395_v20 = vld [vmem:[%s20819_s25 + $0x330] sm:$0xfe]  ;;  %v16403_v21 = vld [vmem:[%s20819_s25 + $0x370] sm:$0x1] }
 0x45b   : > { %12458 = vmatmul.mubr.bf16.gmra.mrb[4].mxu1 %v1779_v46  ;;  %v16452_v46 = vld [vmem:[%s20819_s25 + $0x4f8] sm:$0x1] }
 0x45c   : > { %12493 = vmatpush1.bf16.msra.mxu1 %v19874_v22  ;;  %13772 = vmatmul.mubr.bf16.gmra.mrb[4].mxu0 %v3640_v3  ;;  %v3649_v22 = vpack.c.bf16 %v3513_v18, %v3489_v17  ;;  %v3560_v50 = vrot.slane %v16452_v46, 1  ;;  %v16454_v17 = vld [vmem:[%s20819_s25 + $0x108] sm:$0xfc]  ;;  %v16462_v18 = vld [vmem:[%s20819_s25 + $0x148] sm:$0x3] }
 0x45d   : > { %13807 = vmatpush1.bf16.msra.mxu0 %v19877_v23  ;;  %12494 = vmatprep.subr.bf16.mxu1 %v19882_v26  ;;  %v1787_v23 = vpack.c.bf16 %v15983_v19, %v15975_v15  ;;  %v3484_v26 = vrot.slane %v16395_v20, 1  ;;  %v19933_v15 = vld [vmem:[#allocation4 + $0x20b4] ss:$8 sps:$4 sm:$0xff]   ;;  %v16470_v19 = vld [vmem:[%s20819_s25 + $0x188] sm:$0xfc] }
 0x45e   : > { %13808 = vmatprep.subr.bf16.mxu0 %v19885_v27  ;;  %12467 = vmatprep.mubr.bf16.mxu1 %v1788_v4  ;;  %v3485_v27 = vrot.slane %v16403_v21, 1  ;;  %v19919_v4 = vld [vmem:[#allocation4 + $0x2090] ss:$8 sps:$4 sm:$0xff]   ;;  %v16478_v20 = vld [vmem:[%s20819_s25 + $0x1c8] sm:$0x3]  ;;  %v3949_v21 = vrot.slane %v16454_v17, 2 }
 0x45f   : > { %13781 = vmatprep.mubr.bf16.mxu0 %v3649_v22  ;;  %v3950_v22 = vrot.slane %v16462_v18, 2  ;;  %v19954_v46 = vld [vmem:[#allocation4 + $0xef4] ss:$8 sps:$4 sm:$0xff]  }
 0x460   : > { %12495 = vmatpush1.bf16.msra.mxu1 %v19880_v29  ;;  %v3508_v29 = vrot.slane %v16411_v24, 1  ;;  %v3486_v31 = vsel %vm806_vm0, %v3484_v26, %v3485_v27  ;;  %v3974_v24 = vrot.slane %v16478_v20, 2  ;;  %v19928_v27 = vld [vmem:[#allocation4 + $0xeb0] ss:$8 sps:$4 sm:$0xff]   ;;  %v19978_v18 = vld [vmem:[#allocation4 + $0xf34] ss:$8 sps:$4 sm:$0xff]  }
 0x461   : > { %13809 = vmatpush1.bf16.msra.mxu0 %v19883_v30  ;;  %12496 = vmatprep.subr.bf16.mxu1 %v19888_v38  ;;  %v3509_v30 = vrot.slane %v16419_v25, 1  ;;  %v19912_v38 = vld [vmem:[#allocation4 + $0xe84] ss:$8 sps:$4 sm:$0xff]   ;;  %v3951_v25 = vsel %vm1383_vm1, %v3949_v21, %v3950_v22  ;;  %v19976_v21 = vld [vmem:[#allocation4 + $0xf30] ss:$8 sps:$4 sm:$0xff]  }
 0x462   : > { %13810 = vmatprep.subr.bf16.mxu0 %v19891_v39  ;;  %v19915_v39 = vld [vmem:[#allocation4 + $0x2084] ss:$8 sps:$4 sm:$0xff]   ;;  %v19979_v22 = vld [vmem:[#allocation4 + $0x2130] ss:$8 sps:$4 sm:$0xff]  }
 0x463   : > { %12468 = vmatmul.mubr.bf16.gmra.mrb[8].mxu1 %v1787_v23  ;;  %v3510_v34 = vsel %vm806_vm0, %v3508_v29, %v3509_v30  ;;  %v3973_v23 = vrot.slane %v16470_v19, 2  ;;  %v19936_v29 = vld [vmem:[#allocation4 + $0xec4] ss:$8 sps:$4 sm:$0xff]   ;;  %v19981_v19 = vld [vmem:[#allocation4 + $0x2134] ss:$8 sps:$4 sm:$0xff]  }
 0x464   : > { %12497 = vmatpush1.bf16.msra.mxu1 %v19886_v54  ;;  %v3648_v36 = vpack.c.bf16 %v3510_v34, %v3486_v31  ;;  %12477 = vmatprep.mubr.bf16.mxu1 %v1796_v40  ;;  %v3537_v54 = vsel %vm806_vm0, %v3535_v47, %v3536_v48  ;;  %v19939_v31 = vld [vmem:[#allocation4 + $0x20c4] ss:$8 sps:$4 sm:$0xff]   ;;  %v19942_v34 = vld [vmem:[#allocation4 + $0xed4] ss:$8 sps:$4 sm:$0xff]   ;;  %v3947_v48 = vrot.slane %v16461_v41, 2 }
 0x465   : > { %13811 = vmatpush1.bf16.msra.mxu0 %v19889_v55  ;;  %12498 = vmatprep.subr.bf16.mxu1 %v19894_v57  ;;  %v3561_v55 = vsel %vm806_vm0, %v3559_v49, %v3560_v50  ;;  %v16427_v57 = vld [vmem:[%s20819_s25 + $0x430] sm:$0xfe]  ;;  %v3975_v26 = vsel %vm1383_vm1, %v3973_v23, %v3974_v24  ;;  %v16453_v40 = vld [vmem:[%s20819_s25 + $0x100] sm:$0xfc] }
 0x466   : > { %13812 = vmatprep.subr.bf16.mxu0 %v19897_v58  ;;  %13782 = vmatmul.mubr.bf16.gmra.mrb[8].mxu0 %v3648_v36  ;;  %v16435_v58 = vld [vmem:[%s20819_s25 + $0x470] sm:$0x1]  ;;  %v3657_v59 = vpack.c.bf16 %v3561_v55, %v3537_v54  ;;  %v3532_v63 = vrot.slane %v16427_v57, 1  ;;  %v4203_v30 = vpack.c.bf16 %v3975_v26, %v3951_v25  ;;  %v3946_v47 = vrot.slane %v16453_v40, 2  ;;  %v19960_v54 = vld [vmem:[#allocation4 + $0xf04] ss:$8 sps:$4 sm:$0xff]  }
 0x467   : > { %v3533_v0 = vrot.slane %v16435_v58, 1  ;;  %v19940_v36 = vld [vmem:[#allocation4 + $0xed0] ss:$8 sps:$4 sm:$0xff]   ;;  %v15945_v55 = vld [vmem:[%s20819_s25 + $0xa0] sm:$0xff] }
 0x468   : > { %12499 = vmatpush1.bf16.msra.mxu1 %v19892_v61  ;;  %v16443_v61 = vld [vmem:[%s20819_s25 + $0x4b0] sm:$0xfe]  ;;  %13791 = vmatprep.mubr.bf16.mxu0 %v3657_v59  ;;  %v3948_v57 = vsel %vm1383_vm1, %v3946_v47, %v3947_v48  ;;  %v19963_v59 = vld [vmem:[#allocation4 + $0x2104] ss:$8 sps:$4 sm:$0xff]   ;;  %v19985_v40 = vld [vmem:[#allocation4 + $0x2140] ss:$8 sps:$4 sm:$0xff]  }
 0x469   : > { %13813 = vmatpush1.bf16.msra.mxu0 %v19895_v62  ;;  %12500 = vmatprep.subr.bf16.mxu1 %v19900_v1  ;;  %v16451_v62 = vld [vmem:[%s20819_s25 + $0x4f0] sm:$0x1]  ;;  %v3534_v5 = vsel %vm806_vm0, %v3532_v63, %v3533_v0  ;;  %v19961_v63 = vld [vmem:[#allocation4 + $0x2100] ss:$8 sps:$4 sm:$0xff]   ;;  %v19966_v0 = vld [vmem:[#allocation4 + $0xf14] ss:$8 sps:$4 sm:$0xff]  }
 0x46a   : > { %13814 = vmatprep.subr.bf16.mxu0 %v19903_v2  ;;  %v19916_v1 = vld [vmem:[#allocation4 + $0xe90] ss:$8 sps:$4 sm:$0xff]   ;;  %v3556_v2 = vrot.slane %v16443_v61, 1  ;;  %v3557_v3 = vrot.slane %v16451_v62, 1  ;;  %v1773_v61 = vpack.c.bf16 %v15953_v56, %v15945_v55  ;;  %v15961_v24 = vld [vmem:[%s20819_s25 + $0x1a0] sm:$0xff] }
 0x46b   : > { %12478 = vmatmul.mubr.bf16.gmra.mrb[12].mxu1 %v1795_v60  ;;  %v19958_v60 = vld [vmem:[#allocation4 + $0xf00] ss:$8 sps:$4 sm:$0xff]  }
 0x46c   : > { %12501 = vmatpush1.bf16.msra.mxu1 %v19898_v13  ;;  %v3558_v8 = vsel %vm806_vm0, %v3556_v2, %v3557_v3  ;;  %v15954_v13 = vld [vmem:[%s20819_s25 + $0x128] sm:$0xff]  ;;  %v19964_v2 = vld [vmem:[#allocation4 + $0xf10] ss:$8 sps:$4 sm:$0xff]   ;;  %v15969_v25 = vld [vmem:[%s20819_s25 + $0x220] sm:$0xff] }
 0x46d   : > { %13815 = vmatpush1.bf16.msra.mxu0 %v19901_v14  ;;  %12502 = vmatprep.subr.bf16.mxu1 %v19906_v16  ;;  %v3656_v12 = vpack.c.bf16 %v3558_v8, %v3534_v5  ;;  %v19930_v14 = vld [vmem:[#allocation4 + $0xeb4] ss:$8 sps:$4 sm:$0xff]   ;;  %v1774_v16 = vpack.c.bf16 %v15954_v13, %v15946_v9  ;;  %v19967_v3 = vld [vmem:[#allocation4 + $0x2110] ss:$8 sps:$4 sm:$0xff]   ;;  %v19975_v5 = vld [vmem:[#allocation4 + $0x2124] ss:$8 sps:$4 sm:$0xff]  }
 0x46e   : > { %13816 = vmatprep.subr.bf16.mxu0 %v19909_v28  ;;  %v19931_v28 = vld [vmem:[#allocation4 + $0x20b0] ss:$8 sps:$4 sm:$0xff]   ;;  %v19970_v8 = vld [vmem:[#allocation4 + $0xf20] ss:$8 sps:$4 sm:$0xff]  }
 0x46f   : > { %13792 = vmatmul.mubr.bf16.gmra.mrb[12].mxu0 %v3656_v12  ;;  %12520 = vmatprep.mubr.bf16.mxu1 %v1774_v16  ;;  %v19973_v9 = vld [vmem:[#allocation4 + $0x2120] ss:$8 sps:$4 sm:$0xff]  }
 0x470   : > { %12503 = vmatpush1.bf16.msra.mxu1 %v19904_v32  ;;  %13834 = vmatprep.mubr.bf16.mxu0 %v4203_v30  ;;  %v19934_v32 = vld [vmem:[#allocation4 + $0xec0] ss:$8 sps:$4 sm:$0xff]  }
 0x471   : > { %13817 = vmatpush1.bf16.msra.mxu0 %v19907_v33  ;;  %12504 = vmatprep.subr.bf16.mxu1 %v19912_v38  ;;  %v19937_v33 = vld [vmem:[#allocation4 + $0x20c0] ss:$8 sps:$4 sm:$0xff]   ;;  %v19948_v38 = vld [vmem:[#allocation4 + $0xee4] ss:$8 sps:$4 sm:$0xff]  }
 0x472   : > { %13818 = vmatprep.subr.bf16.mxu0 %v19915_v39  ;;  %v19951_v39 = vld [vmem:[#allocation4 + $0x20e4] ss:$8 sps:$4 sm:$0xff]   ;;  %v16494_v12 = vld [vmem:[%s20819_s25 + $0x248] sm:$0x3] }
 0x473   : > { %v16502_v13 = vld [vmem:[%s20819_s25 + $0x288] sm:$0xfc]  ;;  %v3998_v16 = vrot.slane %v16494_v12, 2  ;;  %v16485_v26 = vld [vmem:[%s20819_s25 + $0x200] sm:$0xfc] }
 0x474   : > { %12505 = vmatpush1.bf16.msra.mxu1 %v19910_v42  ;;  %v16469_v42 = vld [vmem:[%s20819_s25 + $0x180] sm:$0xfc]  ;;  %v4021_v17 = vrot.slane %v16502_v13, 2 }
 0x475   : > { %13819 = vmatpush1.bf16.msra.mxu0 %v19913_v43  ;;  %12506 = vmatprep.subr.bf16.mxu1 %v19918_v51  ;;  %v16477_v43 = vld [vmem:[%s20819_s25 + $0x1c0] sm:$0x3]  ;;  %v3970_v49 = vrot.slane %v16469_v42, 2  ;;  %v19957_v51 = vld [vmem:[#allocation4 + $0x20f4] ss:$8 sps:$4 sm:$0xff]   ;;  %v15978_v42 = vld [vmem:[%s20819_s25 + $0x2a8] sm:$0xff] }
 0x476   : > { %13820 = vmatprep.subr.bf16.mxu0 %v19921_v52  ;;  %v3971_v50 = vrot.slane %v16477_v43, 2  ;;  %v19952_v52 = vld [vmem:[#allocation4 + $0xef0] ss:$8 sps:$4 sm:$0xff]   ;;  %v16501_v30 = vld [vmem:[%s20819_s25 + $0x280] sm:$0xfc] }
 0x477   : > { %v19997_v12 = vld [vmem:[#allocation4 + $0x2160] ss:$8 sps:$4 sm:$0xff]  }
 0x478   : > { %12507 = vmatpush1.bf16.msra.mxu1 %v19916_v1  ;;  %v3972_v58 = vsel %vm1383_vm1, %v3970_v49, %v3971_v50  ;;  %v19969_v1 = vld [vmem:[#allocation4 + $0x2114] ss:$8 sps:$4 sm:$0xff]   ;;  %v16518_v49 = vld [vmem:[%s20819_s25 + $0x308] sm:$0xfc]  ;;  %v16526_v50 = vld [vmem:[%s20819_s25 + $0x348] sm:$0x3] }
 0x479   : > { %13821 = vmatpush1.bf16.msra.mxu0 %v19919_v4  ;;  %12508 = vmatprep.subr.bf16.mxu1 %v19924_v6  ;;  %v4202_v62 = vpack.c.bf16 %v3972_v58, %v3948_v57  ;;  %v19972_v4 = vld [vmem:[#allocation4 + $0xf24] ss:$8 sps:$4 sm:$0xff]   ;;  %v4045_v55 = vrot.slane %v16518_v49, 2  ;;  %v4046_v56 = vrot.slane %v16526_v50, 2  ;;  %v20017_v50 = vld [vmem:[#allocation4 + $0x2194] ss:$8 sps:$4 sm:$0xff]  }
 0x47a   : > { %13822 = vmatprep.subr.bf16.mxu0 %v19927_v7  ;;  %v15962_v6 = vld [vmem:[%s20819_s25 + $0x1a8] sm:$0xff] }
 0x47b   : > { %v15970_v7 = vld [vmem:[%s20819_s25 + $0x228] sm:$0xff] }
 0x47c   : > { %12509 = vmatpush1.bf16.msra.mxu1 %v19922_v10  ;;  %v1782_v10 = vpack.c.bf16 %v15970_v7, %v15962_v6  ;;  %v16541_v6 = vld [vmem:[%s20819_s25 + $0x3c0] sm:$0x3] }
 0x47d   : > { %13823 = vmatpush1.bf16.msra.mxu0 %v19925_v11  ;;  %12510 = vmatprep.subr.bf16.mxu1 %v19930_v14  ;;  %v16486_v11 = vld [vmem:[%s20819_s25 + $0x208] sm:$0xfc]  ;;  %v16510_v14 = vld [vmem:[%s20819_s25 + $0x2c8] sm:$0x3] }
 0x47e   : > { %13824 = vmatprep.subr.bf16.mxu0 %v19933_v15  ;;  %v3997_v15 = vrot.slane %v16486_v11, 2  ;;  %v4022_v20 = vrot.slane %v16510_v14, 2  ;;  %v4067_v11 = vrot.slane %v16541_v6, 2  ;;  %v20002_v14 = vld [vmem:[#allocation4 + $0xf74] ss:$8 sps:$4 sm:$0xff]  }
 0x47f   : > { %v20021_v6 = vld [vmem:[#allocation4 + $0x21a0] ss:$8 sps:$4 sm:$0xff]  }
 0x480   : > { %12511 = vmatpush1.bf16.msra.mxu1 %v19928_v27  ;;  %v3999_v23 = vsel %vm1383_vm1, %v3997_v15, %v3998_v16  ;;  %v4023_v27 = vsel %vm1383_vm1, %v4021_v17, %v4022_v20  ;;  %v20005_v15 = vld [vmem:[#allocation4 + $0x2174] ss:$8 sps:$4 sm:$0xff]   ;;  %v15994_v17 = vld [vmem:[%s20819_s25 + $0x3a8] sm:$0xff]  ;;  %v20000_v20 = vld [vmem:[#allocation4 + $0xf70] ss:$8 sps:$4 sm:$0xff]  }
 0x481   : > { %13825 = vmatpush1.bf16.msra.mxu0 %v19931_v28  ;;  %12512 = vmatprep.subr.bf16.mxu1 %v19936_v29  ;;  %v1781_v28 = vpack.c.bf16 %v15969_v25, %v15961_v24  ;;  %v16493_v29 = vld [vmem:[%s20819_s25 + $0x240] sm:$0x3]  ;;  %v16558_v24 = vld [vmem:[%s20819_s25 + $0x448] sm:$0x3]  ;;  %v16566_v25 = vld [vmem:[%s20819_s25 + $0x488] sm:$0xfc] }
 0x482   : > { %13826 = vmatprep.subr.bf16.mxu0 %v19939_v31  ;;  %v16509_v31 = vld [vmem:[%s20819_s25 + $0x2c0] sm:$0x3] }
 0x484   : > { %12513 = vmatpush1.bf16.msra.mxu1 %v19934_v32  ;;  %v4211_v32 = vpack.c.bf16 %v4023_v27, %v3999_v23  ;;  %v16550_v23 = vld [vmem:[%s20819_s25 + $0x408] sm:$0xfc] }
 0x485   : > { %13827 = vmatpush1.bf16.msra.mxu0 %v19937_v33  ;;  %12514 = vmatprep.subr.bf16.mxu1 %v19942_v34  ;;  %v3994_v33 = vrot.slane %v16485_v26, 2  ;;  %v3995_v34 = vrot.slane %v16493_v29, 2  ;;  %v16574_v26 = vld [vmem:[%s20819_s25 + $0x4c8] sm:$0x3]  ;;  %v4093_v27 = vrot.slane %v16550_v23, 2  ;;  %v4117_v29 = vrot.slane %v16566_v25, 2 }
 0x486   : > { %13828 = vmatprep.subr.bf16.mxu0 %v19945_v35  ;;  %v4018_v35 = vrot.slane %v16501_v30, 2  ;;  %v4118_v30 = vrot.slane %v16574_v26, 2  ;;  %v20047_v23 = vld [vmem:[#allocation4 + $0x21e4] ss:$8 sps:$4 sm:$0xff]   ;;  %v16463_v25 = vld [vmem:[%s20819_s25 + $0x150] sm:$0x3] }
 0x487   : > { %v3996_v41 = vsel %vm1383_vm1, %v3994_v33, %v3995_v34  ;;  %v15993_v33 = vld [vmem:[%s20819_s25 + $0x3a0] sm:$0xff]  ;;  %v16471_v26 = vld [vmem:[%s20819_s25 + $0x190] sm:$0xfc] }
 0x488   : > { %12515 = vmatpush1.bf16.msra.mxu1 %v19940_v36  ;;  %v19984_v36 = vld [vmem:[#allocation4 + $0xf44] ss:$8 sps:$4 sm:$0xff]   ;;  %v20006_v34 = vld [vmem:[#allocation4 + $0xf80] ss:$8 sps:$4 sm:$0xff]  }
 0x489   : > { %13829 = vmatpush1.bf16.msra.mxu0 %v19943_v37  ;;  %12516 = vmatprep.subr.bf16.mxu1 %v19948_v38  ;;  %v19987_v37 = vld [vmem:[#allocation4 + $0x2144] ss:$8 sps:$4 sm:$0xff]   ;;  %v4019_v38 = vrot.slane %v16509_v31, 2 }
 0x48a   : > { %13830 = vmatprep.subr.bf16.mxu0 %v19951_v39  ;;  %v19982_v39 = vld [vmem:[#allocation4 + $0xf40] ss:$8 sps:$4 sm:$0xff]   ;;  %v20008_v31 = vld [vmem:[#allocation4 + $0xf84] ss:$8 sps:$4 sm:$0xff]  }
 0x48b   : > { %v4020_v43 = vsel %vm1383_vm1, %v4018_v35, %v4019_v38  ;;  %v20009_v35 = vld [vmem:[#allocation4 + $0x2180] ss:$8 sps:$4 sm:$0xff]  }
 0x48c   : > { %12517 = vmatpush1.bf16.msra.mxu1 %v19946_v44  ;;  %v15986_v44 = vld [vmem:[%s20819_s25 + $0x328] sm:$0xff]  ;;  %v4210_v47 = vpack.c.bf16 %v4020_v43, %v3996_v41  ;;  %v16001_v38 = vld [vmem:[%s20819_s25 + $0x420] sm:$0xff] }
 0x48d   : > { %13831 = vmatpush1.bf16.msra.mxu0 %v19949_v45  ;;  %12518 = vmatprep.subr.bf16.mxu1 %v19954_v46  ;;  %v19990_v45 = vld [vmem:[#allocation4 + $0xf54] ss:$8 sps:$4 sm:$0xff]   ;;  %v1790_v48 = vpack.c.bf16 %v15986_v44, %v15978_v42  ;;  %v1797_v42 = vpack.c.bf16 %v16001_v38, %v15993_v33  ;;  %v16565_v43 = vld [vmem:[%s20819_s25 + $0x480] sm:$0xfc]  ;;  %v16573_v44 = vld [vmem:[%s20819_s25 + $0x4c0] sm:$0x3] }
 0x48e   : > { %13832 = vmatprep.subr.bf16.mxu0 %v19957_v51  ;;  %v19993_v46 = vld [vmem:[#allocation4 + $0x2154] ss:$8 sps:$4 sm:$0xff]   ;;  %v16534_v51 = vld [vmem:[%s20819_s25 + $0x388] sm:$0xfc]  ;;  %v4115_v49 = vrot.slane %v16573_v44, 2 }
 0x48f   : > { %v4069_v57 = vrot.slane %v16534_v51, 2  ;;  %v15947_v38 = vld [vmem:[%s20819_s25 + $0xb0] sm:$0xff] }
 0x490   : > { %12519 = vmatpush1.bf16.msra.mxu1 %v19952_v52  ;;  %v16542_v52 = vld [vmem:[%s20819_s25 + $0x3c8] sm:$0x3] }
 0x491   : > { %13833 = vmatpush1.bf16.msra.mxu0 %v19955_v53  ;;  %12561 = vmatprep.subr.bf16.mxu1 %v19960_v54  ;;  %v19988_v53 = vld [vmem:[#allocation4 + $0xf50] ss:$8 sps:$4 sm:$0xff]   ;;  %v4070_v58 = vrot.slane %v16542_v52, 2 }
 0x492   : > { %13875 = vmatprep.subr.bf16.mxu0 %v19963_v59  ;;  %v19991_v54 = vld [vmem:[#allocation4 + $0x2150] ss:$8 sps:$4 sm:$0xff]   ;;  %v19996_v59 = vld [vmem:[#allocation4 + $0xf64] ss:$8 sps:$4 sm:$0xff]  }
 0x493   : > { %12521 = vmatmul.mubr.bf16.vlgmr.msra.gmra.mrb[0].mxu1 %v1773_v61  ;;  %v15977_v61 = vld [vmem:[%s20819_s25 + $0x2a0] sm:$0xff]  ;;  %v20012_v52 = vld [vmem:[#allocation4 + $0xf90] ss:$8 sps:$4 sm:$0xff]  }
 0x494   : > { %13835 = vmatmul.mubr.bf16.vlgmr.msra.gmra.mrb[0].mxu0 %v4202_v62  ;;  %12562 = vmatpush1.bf16.msra.mxu1 %v19958_v60  ;;  %v19999_v60 = vld [vmem:[#allocation4 + $0x2164] ss:$8 sps:$4 sm:$0xff]   ;;  %v4047_v62 = vsel %vm1383_vm1, %v4045_v55, %v4046_v56  ;;  %v15948_v55 = vld [vmem:[%s20819_s25 + $0xb8] sm:$0xff] }
 0x495   : > { %13876 = vmatpush1.bf16.msra.mxu0 %v19961_v63  ;;  %12563 = vmatprep.subr.bf16.mxu1 %v19966_v0  ;;  %v4071_v63 = vsel %vm1383_vm1, %v4069_v57, %v4070_v58  ;;  %v15985_v0 = vld [vmem:[%s20819_s25 + $0x320] sm:$0xff]  ;;  %v15956_v57 = vld [vmem:[%s20819_s25 + $0x138] sm:$0xff] }
 0x496   : > { %13877 = vmatprep.subr.bf16.mxu0 %v19969_v1  ;;  %12530 = vmatprep.mubr.bf16.mxu1 %v1782_v10  ;;  %v16517_v1 = vld [vmem:[%s20819_s25 + $0x300] sm:$0xfc] }
 0x497   : > { %13844 = vmatprep.mubr.bf16.mxu0 %v4211_v32  ;;  %v4042_v7 = vrot.slane %v16517_v1, 2  ;;  %v20011_v32 = vld [vmem:[#allocation4 + $0x2184] ss:$8 sps:$4 sm:$0xff]  }
 0x498   : > { %12564 = vmatpush1.bf16.msra.mxu1 %v19964_v2  ;;  %v16525_v2 = vld [vmem:[%s20819_s25 + $0x340] sm:$0x3]  ;;  %v20020_v58 = vld [vmem:[#allocation4 + $0xfa4] ss:$8 sps:$4 sm:$0xff]  }
 0x499   : > { %13878 = vmatpush1.bf16.msra.mxu0 %v19967_v3  ;;  %12565 = vmatprep.subr.bf16.mxu1 %v19972_v4  ;;  %v4219_v3 = vpack.c.bf16 %v4071_v63, %v4047_v62  ;;  %v1789_v4 = vpack.c.bf16 %v15985_v0, %v15977_v61  ;;  %v16456_v61 = vld [vmem:[%s20819_s25 + $0x118] sm:$0xfc]  ;;  %v16464_v62 = vld [vmem:[%s20819_s25 + $0x158] sm:$0x3] }
 0x49a   : > { %13879 = vmatprep.subr.bf16.mxu0 %v19975_v5  ;;  %v16533_v5 = vld [vmem:[%s20819_s25 + $0x380] sm:$0xfc]  ;;  %v16472_v63 = vld [vmem:[%s20819_s25 + $0x198] sm:$0xfc]  ;;  %v16480_v0 = vld [vmem:[%s20819_s25 + $0x1d8] sm:$0x3] }
 0x49b   : > { %12531 = vmatmul.mubr.bf16.gmra.mrb[4].mxu1 %v1781_v28  ;;  %v4066_v10 = vrot.slane %v16533_v5, 2  ;;  %v4094_v28 = vrot.slane %v16558_v24, 2  ;;  %v3955_v1 = vrot.slane %v16456_v61, 2  ;;  %v20018_v5 = vld [vmem:[#allocation4 + $0xfa0] ss:$8 sps:$4 sm:$0xff]  }
 0x49c   : > { %12566 = vmatpush1.bf16.msra.mxu1 %v19970_v8  ;;  %13845 = vmatmul.mubr.bf16.gmra.mrb[4].mxu0 %v4210_v47  ;;  %v4043_v8 = vrot.slane %v16525_v2, 2  ;;  %v20014_v47 = vld [vmem:[#allocation4 + $0xf94] ss:$8 sps:$4 sm:$0xff]   ;;  %v3956_v2 = vrot.slane %v16464_v62, 2 }
 0x49d   : > { %13880 = vmatpush1.bf16.msra.mxu0 %v19973_v9  ;;  %12567 = vmatprep.subr.bf16.mxu1 %v19978_v18  ;;  %v19994_v9 = vld [vmem:[#allocation4 + $0xf60] ss:$8 sps:$4 sm:$0xff]   ;;  %v4068_v16 = vsel %vm1383_vm1, %v4066_v10, %v4067_v11  ;;  %v20029_v10 = vld [vmem:[#allocation4 + $0x21b4] ss:$8 sps:$4 sm:$0xff]  }
 0x49e   : > { %13881 = vmatprep.subr.bf16.mxu0 %v19981_v19  ;;  %12540 = vmatprep.mubr.bf16.mxu1 %v1790_v48  ;;  %v4044_v13 = vsel %vm1383_vm1, %v4042_v7, %v4043_v8  ;;  %v16002_v19 = vld [vmem:[%s20819_s25 + $0x428] sm:$0xff]  ;;  %v4114_v48 = vrot.slane %v16565_v43, 2  ;;  %v3957_v7 = vsel %vm1383_vm1, %v3955_v1, %v3956_v2  ;;  %v16455_v24 = vld [vmem:[%s20819_s25 + $0x110] sm:$0xfc] }
 0x49f   : > { %13854 = vmatprep.mubr.bf16.mxu0 %v4219_v3  ;;  %v4218_v18 = vpack.c.bf16 %v4068_v16, %v4044_v13  ;;  %v3979_v3 = vrot.slane %v16472_v63, 2  ;;  %v20027_v13 = vld [vmem:[#allocation4 + $0x21b0] ss:$8 sps:$4 sm:$0xff]   ;;  %v20030_v16 = vld [vmem:[#allocation4 + $0xfc0] ss:$8 sps:$4 sm:$0xff]  }
 0x4a0   : > { %12568 = vmatpush1.bf16.msra.mxu1 %v19976_v21  ;;  %v20003_v21 = vld [vmem:[#allocation4 + $0x2170] ss:$8 sps:$4 sm:$0xff]   ;;  %v20059_v43 = vld [vmem:[#allocation4 + $0x2204] ss:$8 sps:$4 sm:$0xff]   ;;  %v20069_v1 = vld [vmem:[#allocation4 + $0x2220] ss:$8 sps:$4 sm:$0xff]  }
 0x4a1   : > { %13882 = vmatpush1.bf16.msra.mxu0 %v19979_v22  ;;  %12569 = vmatprep.subr.bf16.mxu1 %v19984_v36  ;;  %v1798_v22 = vpack.c.bf16 %v16002_v19, %v15994_v17  ;;  %v4095_v36 = vsel %vm1383_vm1, %v4093_v27, %v4094_v28  ;;  %v20033_v17 = vld [vmem:[#allocation4 + $0x21c0] ss:$8 sps:$4 sm:$0xff]   ;;  %v20041_v19 = vld [vmem:[#allocation4 + $0x21d4] ss:$8 sps:$4 sm:$0xff]   ;;  %v16479_v27 = vld [vmem:[%s20819_s25 + $0x1d0] sm:$0x3] }
 0x4a2   : > { %13883 = vmatprep.subr.bf16.mxu0 %v19987_v37  ;;  %v4119_v37 = vsel %vm1383_vm1, %v4117_v29, %v4118_v30  ;;  %v20042_v28 = vld [vmem:[#allocation4 + $0xfe0] ss:$8 sps:$4 sm:$0xff]   ;;  %v3952_v30 = vrot.slane %v16455_v24, 2  ;;  %v3977_v33 = vrot.slane %v16479_v27, 2  ;;  %v15988_v24 = vld [vmem:[%s20819_s25 + $0x338] sm:$0xff] }
 0x4a3   : > { %12541 = vmatmul.mubr.bf16.gmra.mrb[8].mxu1 %v1789_v4  ;;  %v4227_v41 = vpack.c.bf16 %v4119_v37, %v4095_v36  ;;  %v3980_v4 = vrot.slane %v16480_v0, 2  ;;  %v20045_v29 = vld [vmem:[#allocation4 + $0x21e0] ss:$8 sps:$4 sm:$0xff]   ;;  %v20048_v36 = vld [vmem:[#allocation4 + $0xff0] ss:$8 sps:$4 sm:$0xff]  }
 0x4a4   : > { %12570 = vmatpush1.bf16.msra.mxu1 %v19982_v39  ;;  %13855 = vmatmul.mubr.bf16.gmra.mrb[8].mxu0 %v4218_v18  ;;  %v16549_v39 = vld [vmem:[%s20819_s25 + $0x400] sm:$0xfc]  ;;  %v20038_v18 = vld [vmem:[#allocation4 + $0xfd4] ss:$8 sps:$4 sm:$0xff]   ;;  %v20051_v37 = vld [vmem:[#allocation4 + $0x21f0] ss:$8 sps:$4 sm:$0xff]  }
 0x4a5   : > { %13884 = vmatpush1.bf16.msra.mxu0 %v19985_v40  ;;  %12571 = vmatprep.subr.bf16.mxu1 %v19990_v45  ;;  %v16557_v40 = vld [vmem:[%s20819_s25 + $0x440] sm:$0x3]  ;;  %v4090_v45 = vrot.slane %v16549_v39, 2  ;;  %v3981_v8 = vsel %vm1383_vm1, %v3979_v3, %v3980_v4  ;;  %v15955_v39 = vld [vmem:[%s20819_s25 + $0x130] sm:$0xff] }
 0x4a6   : > { %13885 = vmatprep.subr.bf16.mxu0 %v19993_v46  ;;  %12550 = vmatprep.mubr.bf16.mxu1 %v1798_v22  ;;  %v4091_v46 = vrot.slane %v16557_v40, 2  ;;  %v4205_v11 = vpack.c.bf16 %v3981_v8, %v3957_v7  ;;  %v20044_v22 = vld [vmem:[#allocation4 + $0xfe4] ss:$8 sps:$4 sm:$0xff]   ;;  %v1775_v44 = vpack.c.bf16 %v15955_v39, %v15947_v38  ;;  %v20066_v0 = vld [vmem:[#allocation4 + $0x1020] ss:$8 sps:$4 sm:$0xff]   ;;  %v15971_v7 = vld [vmem:[%s20819_s25 + $0x230] sm:$0xff] }
 0x4a7   : > { %13864 = vmatprep.mubr.bf16.mxu0 %v4227_v41  ;;  %v20074_v3 = vld [vmem:[#allocation4 + $0x1034] ss:$8 sps:$4 sm:$0xff]  }
 0x4a8   : > { %12572 = vmatpush1.bf16.msra.mxu1 %v19988_v53  ;;  %v4092_v51 = vsel %vm1383_vm1, %v4090_v45, %v4091_v46  ;;  %v20015_v53 = vld [vmem:[#allocation4 + $0x2190] ss:$8 sps:$4 sm:$0xff]   ;;  %v20054_v46 = vld [vmem:[#allocation4 + $0x1000] ss:$8 sps:$4 sm:$0xff]   ;;  %v20077_v4 = vld [vmem:[#allocation4 + $0x2234] ss:$8 sps:$4 sm:$0xff]  }
 0x4a9   : > { %13886 = vmatpush1.bf16.msra.mxu0 %v19991_v54  ;;  %12573 = vmatprep.subr.bf16.mxu1 %v19996_v59  ;;  %v4116_v54 = vsel %vm1383_vm1, %v4114_v48, %v4115_v49  ;;  %v20023_v59 = vld [vmem:[#allocation4 + $0x21a4] ss:$8 sps:$4 sm:$0xff]   ;;  %v20062_v48 = vld [vmem:[#allocation4 + $0x1014] ss:$8 sps:$4 sm:$0xff]  }
 0x4aa   : > { %13887 = vmatprep.subr.bf16.mxu0 %v19999_v60  ;;  %v4226_v56 = vpack.c.bf16 %v4116_v54, %v4092_v51  ;;  %v1776_v60 = vpack.c.bf16 %v15956_v57, %v15948_v55  ;;  %v20065_v49 = vld [vmem:[#allocation4 + $0x2214] ss:$8 sps:$4 sm:$0xff]   ;;  %v20063_v51 = vld [vmem:[#allocation4 + $0x2210] ss:$8 sps:$4 sm:$0xff]   ;;  %v20068_v54 = vld [vmem:[#allocation4 + $0x1024] ss:$8 sps:$4 sm:$0xff]  }
 0x4ab   : > { %12551 = vmatmul.mubr.bf16.gmra.mrb[12].mxu1 %v1797_v42  ;;  %v20056_v42 = vld [vmem:[#allocation4 + $0x1004] ss:$8 sps:$4 sm:$0xff]   ;;  %v16488_v57 = vld [vmem:[%s20819_s25 + $0x218] sm:$0xfc]  ;;  %v16487_v8 = vld [vmem:[%s20819_s25 + $0x210] sm:$0xfc] }
 0x4ac   : > { %12574 = vmatpush1.bf16.msra.mxu1 %v19994_v9  ;;  %13865 = vmatmul.mubr.bf16.gmra.mrb[12].mxu0 %v4226_v56  ;;  %v20026_v9 = vld [vmem:[#allocation4 + $0xfb4] ss:$8 sps:$4 sm:$0xff]   ;;  %v20071_v55 = vld [vmem:[#allocation4 + $0x2224] ss:$8 sps:$4 sm:$0xff]   ;;  %v4003_v61 = vrot.slane %v16488_v57, 2 }
 0x4ad   : > { %13888 = vmatpush1.bf16.msra.mxu0 %v19997_v12  ;;  %12575 = vmatprep.subr.bf16.mxu1 %v20002_v14  ;;  %v20024_v12 = vld [vmem:[#allocation4 + $0xfb0] ss:$8 sps:$4 sm:$0xff]   ;;  %v20032_v14 = vld [vmem:[#allocation4 + $0xfc4] ss:$8 sps:$4 sm:$0xff]   ;;  %v20086_v39 = vld [vmem:[#allocation4 + $0x1054] ss:$8 sps:$4 sm:$0xff]  }
 0x4ae   : > { %13889 = vmatprep.subr.bf16.mxu0 %v20005_v15  ;;  %12593 = vmatprep.mubr.bf16.mxu1 %v1776_v60  ;;  %v20035_v15 = vld [vmem:[#allocation4 + $0x21c4] ss:$8 sps:$4 sm:$0xff]   ;;  %v16512_v60 = vld [vmem:[%s20819_s25 + $0x2d8] sm:$0x3] }
 0x4af   : > { %13907 = vmatprep.mubr.bf16.mxu0 %v4205_v11  ;;  %v4028_v2 = vrot.slane %v16512_v60, 2  ;;  %v16495_v11 = vld [vmem:[%s20819_s25 + $0x250] sm:$0x3] }
 0x4b0   : > { %12576 = vmatpush1.bf16.msra.mxu1 %v20000_v20  ;;  %v20036_v20 = vld [vmem:[#allocation4 + $0xfd0] ss:$8 sps:$4 sm:$0xff]  }
 0x4b1   : > { %13890 = vmatpush1.bf16.msra.mxu0 %v20003_v21  ;;  %12577 = vmatprep.subr.bf16.mxu1 %v20008_v31  ;;  %v20039_v21 = vld [vmem:[#allocation4 + $0x21d0] ss:$8 sps:$4 sm:$0xff]   ;;  %v3953_v31 = vrot.slane %v16463_v25, 2  ;;  %v20080_v25 = vld [vmem:[#allocation4 + $0x1044] ss:$8 sps:$4 sm:$0xff]  }
 0x4b2   : > { %13891 = vmatprep.subr.bf16.mxu0 %v20011_v32  ;;  %v3976_v32 = vrot.slane %v16471_v26, 2  ;;  %v20083_v26 = vld [vmem:[#allocation4 + $0x2244] ss:$8 sps:$4 sm:$0xff]  }
 0x4b3   : > { %v3954_v40 = vsel %vm1383_vm1, %v3952_v30, %v3953_v31  ;;  %v20078_v30 = vld [vmem:[#allocation4 + $0x1040] ss:$8 sps:$4 sm:$0xff]  }
 0x4b4   : > { %12578 = vmatpush1.bf16.msra.mxu1 %v20006_v34  ;;  %v20050_v34 = vld [vmem:[#allocation4 + $0xff4] ss:$8 sps:$4 sm:$0xff]   ;;  %v3978_v41 = vsel %vm1383_vm1, %v3976_v32, %v3977_v33  ;;  %v20081_v31 = vld [vmem:[#allocation4 + $0x2240] ss:$8 sps:$4 sm:$0xff]   ;;  %v16528_v32 = vld [vmem:[%s20819_s25 + $0x358] sm:$0x3] }
 0x4b5   : > { %13892 = vmatpush1.bf16.msra.mxu0 %v20009_v35  ;;  %12579 = vmatprep.subr.bf16.mxu1 %v20014_v47  ;;  %v20053_v35 = vld [vmem:[#allocation4 + $0x21f4] ss:$8 sps:$4 sm:$0xff]   ;;  %v4204_v45 = vpack.c.bf16 %v3978_v41, %v3954_v40  ;;  %v20057_v47 = vld [vmem:[#allocation4 + $0x2200] ss:$8 sps:$4 sm:$0xff]  }
 0x4b6   : > { %13893 = vmatprep.subr.bf16.mxu0 %v20017_v50  ;;  %v20060_v50 = vld [vmem:[#allocation4 + $0x1010] ss:$8 sps:$4 sm:$0xff]   ;;  %v20089_v40 = vld [vmem:[#allocation4 + $0x2254] ss:$8 sps:$4 sm:$0xff]  }
 0x4b7   : > { %v16536_v33 = vld [vmem:[%s20819_s25 + $0x398] sm:$0xfc]  ;;  %v15979_v41 = vld [vmem:[%s20819_s25 + $0x2b0] sm:$0xff] }
 0x4b8   : > { %12580 = vmatpush1.bf16.msra.mxu1 %v20012_v52  ;;  %v15964_v52 = vld [vmem:[%s20819_s25 + $0x1b8] sm:$0xff] }
 0x4b9   : > { %13894 = vmatpush1.bf16.msra.mxu0 %v20015_v53  ;;  %12581 = vmatprep.subr.bf16.mxu1 %v20020_v58  ;;  %v15972_v53 = vld [vmem:[%s20819_s25 + $0x238] sm:$0xff] }
 0x4ba   : > { %13895 = vmatprep.subr.bf16.mxu0 %v20023_v59  ;;  %v1784_v56 = vpack.c.bf16 %v15972_v53, %v15964_v52  ;;  %v16496_v58 = vld [vmem:[%s20819_s25 + $0x258] sm:$0x3]  ;;  %v16504_v59 = vld [vmem:[%s20819_s25 + $0x298] sm:$0xfc] }
 0x4bb   : > { %v4004_v62 = vrot.slane %v16496_v58, 2  ;;  %v4027_v63 = vrot.slane %v16504_v59, 2  ;;  %v20084_v53 = vld [vmem:[#allocation4 + $0x1050] ss:$8 sps:$4 sm:$0xff]   ;;  %v20092_v58 = vld [vmem:[#allocation4 + $0x1064] ss:$8 sps:$4 sm:$0xff]  }
 0x4bc   : > { %12582 = vmatpush1.bf16.msra.mxu1 %v20018_v5  ;;  %v20095_v59 = vld [vmem:[#allocation4 + $0x2264] ss:$8 sps:$4 sm:$0xff]  }
 0x4bd   : > { %13896 = vmatpush1.bf16.msra.mxu0 %v20021_v6  ;;  %12583 = vmatprep.subr.bf16.mxu1 %v20026_v9  ;;  %v4005_v5 = vsel %vm1383_vm1, %v4003_v61, %v4004_v62  ;;  %v15963_v6 = vld [vmem:[%s20819_s25 + $0x1b0] sm:$0xff]  ;;  %v4029_v9 = vsel %vm1383_vm1, %v4027_v63, %v4028_v2  ;;  %v15996_v61 = vld [vmem:[%s20819_s25 + $0x3b8] sm:$0xff]  ;;  %v20090_v62 = vld [vmem:[#allocation4 + $0x1060] ss:$8 sps:$4 sm:$0xff]  }
 0x4be   : > { %13897 = vmatprep.subr.bf16.mxu0 %v20029_v10  ;;  %v1783_v10 = vpack.c.bf16 %v15971_v7, %v15963_v6  ;;  %v20093_v63 = vld [vmem:[#allocation4 + $0x2260] ss:$8 sps:$4 sm:$0xff]   ;;  %v20098_v2 = vld [vmem:[#allocation4 + $0x1074] ss:$8 sps:$4 sm:$0xff]   ;;  %v16560_v6 = vld [vmem:[%s20819_s25 + $0x458] sm:$0x3] }
 0x4bf   : > { %v16568_v7 = vld [vmem:[%s20819_s25 + $0x498] sm:$0xfc] }
 0x4c0   : > { %12584 = vmatpush1.bf16.msra.mxu1 %v20024_v12  ;;  %v16503_v12 = vld [vmem:[%s20819_s25 + $0x290] sm:$0xfc] }
 0x4c1   : > { %13898 = vmatpush1.bf16.msra.mxu0 %v20027_v13  ;;  %12585 = vmatprep.subr.bf16.mxu1 %v20032_v14  ;;  %v16511_v13 = vld [vmem:[%s20819_s25 + $0x2d0] sm:$0x3]  ;;  %v4213_v14 = vpack.c.bf16 %v4029_v9, %v4005_v5  ;;  %v16552_v5 = vld [vmem:[%s20819_s25 + $0x418] sm:$0xfc] }
 0x4c2   : > { %13899 = vmatprep.subr.bf16.mxu0 %v20035_v15  ;;  %v4000_v15 = vrot.slane %v16487_v8, 2  ;;  %v16576_v8 = vld [vmem:[%s20819_s25 + $0x4d8] sm:$0x3]  ;;  %v4099_v9 = vrot.slane %v16552_v5, 2 }
 0x4c3   : > { %v20123_v5 = vld [vmem:[#allocation4 + $0x22b0] ss:$8 sps:$4 sm:$0xff]  }
 0x4c4   : > { %12586 = vmatpush1.bf16.msra.mxu1 %v20030_v16  ;;  %v4001_v16 = vrot.slane %v16495_v11, 2  ;;  %v4123_v11 = vrot.slane %v16568_v7, 2  ;;  %v20131_v7 = vld [vmem:[#allocation4 + $0x22c4] ss:$8 sps:$4 sm:$0xff]  }
 0x4c5   : > { %13900 = vmatpush1.bf16.msra.mxu0 %v20033_v17  ;;  %12587 = vmatprep.subr.bf16.mxu1 %v20038_v18  ;;  %v4024_v17 = vrot.slane %v16503_v12, 2  ;;  %v4025_v18 = vrot.slane %v16511_v13, 2  ;;  %v4124_v12 = vrot.slane %v16576_v8, 2  ;;  %v20096_v13 = vld [vmem:[#allocation4 + $0x1070] ss:$8 sps:$4 sm:$0xff]  }
 0x4c6   : > { %13901 = vmatprep.subr.bf16.mxu0 %v20041_v19  ;;  %v20072_v19 = vld [vmem:[#allocation4 + $0x1030] ss:$8 sps:$4 sm:$0xff]   ;;  %v20126_v8 = vld [vmem:[#allocation4 + $0x10c0] ss:$8 sps:$4 sm:$0xff]  }
 0x4c8   : > { %12588 = vmatpush1.bf16.msra.mxu1 %v20036_v20  ;;  %v20075_v20 = vld [vmem:[#allocation4 + $0x2230] ss:$8 sps:$4 sm:$0xff]  }
 0x4c9   : > { %13902 = vmatpush1.bf16.msra.mxu0 %v20039_v21  ;;  %12589 = vmatprep.subr.bf16.mxu1 %v20044_v22  ;;  %v4002_v21 = vsel %vm1383_vm1, %v4000_v15, %v4001_v16  ;;  %v15980_v22 = vld [vmem:[%s20819_s25 + $0x2b8] sm:$0xff]  ;;  %v15995_v15 = vld [vmem:[%s20819_s25 + $0x3b0] sm:$0xff]  ;;  %v20104_v16 = vld [vmem:[#allocation4 + $0x1084] ss:$8 sps:$4 sm:$0xff]  }
 0x4ca   : > { %13903 = vmatprep.subr.bf16.mxu0 %v20047_v23  ;;  %v4026_v23 = vsel %vm1383_vm1, %v4024_v17, %v4025_v18  ;;  %v4125_v18 = vsel %vm1383_vm1, %v4123_v11, %v4124_v12  ;;  %v20137_v11 = vld [vmem:[#allocation4 + $0x22d4] ss:$8 sps:$4 sm:$0xff]   ;;  %v20132_v12 = vld [vmem:[#allocation4 + $0x10d0] ss:$8 sps:$4 sm:$0xff]  }
 0x4cb   : > { %v4212_v27 = vpack.c.bf16 %v4026_v23, %v4002_v21  ;;  %v16559_v21 = vld [vmem:[%s20819_s25 + $0x450] sm:$0x3] }
 0x4cc   : > { %12590 = vmatpush1.bf16.msra.mxu1 %v20042_v28  ;;  %v1792_v28 = vpack.c.bf16 %v15988_v24, %v15980_v22  ;;  %v16567_v24 = vld [vmem:[%s20819_s25 + $0x490] sm:$0xfc] }
 0x4cd   : > { %13904 = vmatpush1.bf16.msra.mxu0 %v20045_v29  ;;  %12591 = vmatprep.subr.bf16.mxu1 %v20050_v34  ;;  %v16520_v29 = vld [vmem:[%s20819_s25 + $0x318] sm:$0xfc]  ;;  %v16544_v34 = vld [vmem:[%s20819_s25 + $0x3d8] sm:$0x3] }
 0x4ce   : > { %13905 = vmatprep.subr.bf16.mxu0 %v20053_v35  ;;  %v4051_v35 = vrot.slane %v16520_v29, 2  ;;  %v4076_v38 = vrot.slane %v16544_v34, 2  ;;  %v4120_v29 = vrot.slane %v16567_v24, 2  ;;  %v20110_v34 = vld [vmem:[#allocation4 + $0x1094] ss:$8 sps:$4 sm:$0xff]  }
 0x4cf   : > { %v20138_v24 = vld [vmem:[#allocation4 + $0x10e0] ss:$8 sps:$4 sm:$0xff]  }
 0x4d0   : > { %12592 = vmatpush1.bf16.msra.mxu1 %v20048_v36  ;;  %v4052_v36 = vrot.slane %v16528_v32, 2  ;;  %v20105_v32 = vld [vmem:[#allocation4 + $0x2280] ss:$8 sps:$4 sm:$0xff]  }
 0x4d1   : > { %13906 = vmatpush1.bf16.msra.mxu0 %v20051_v37  ;;  %12634 = vmatprep.subr.bf16.mxu1 %v20056_v42  ;;  %v4075_v37 = vrot.slane %v16536_v33, 2 }
 0x4d2   : > { %13948 = vmatprep.subr.bf16.mxu0 %v20059_v43  ;;  %v4053_v42 = vsel %vm1383_vm1, %v4051_v35, %v4052_v36  ;;  %v20113_v35 = vld [vmem:[#allocation4 + $0x2294] ss:$8 sps:$4 sm:$0xff]  }
 0x4d3   : > { %12594 = vmatmul.mubr.bf16.vlgmr.msra.gmra.mrb[0].mxu1 %v1775_v44  ;;  %v4077_v43 = vsel %vm1383_vm1, %v4075_v37, %v4076_v38  ;;  %v15987_v44 = vld [vmem:[%s20819_s25 + $0x330] sm:$0xff]  ;;  %v16006_v37 = vld [vmem:[%s20819_s25 + $0x88] sm:$0xfe] }
 0x4d4   : > { %13908 = vmatmul.mubr.bf16.vlgmr.msra.gmra.mrb[0].mxu0 %v4204_v45  ;;  %12635 = vmatpush1.bf16.msra.mxu1 %v20054_v46  ;;  %v16519_v45 = vld [vmem:[%s20819_s25 + $0x310] sm:$0xfc]  ;;  %v16527_v46 = vld [vmem:[%s20819_s25 + $0x350] sm:$0x3] }
 0x4d5   : > { %13949 = vmatpush1.bf16.msra.mxu0 %v20057_v47  ;;  %12636 = vmatprep.subr.bf16.mxu1 %v20062_v48  ;;  %v4221_v47 = vpack.c.bf16 %v4077_v43, %v4053_v42  ;;  %v1791_v48 = vpack.c.bf16 %v15987_v44, %v15979_v41  ;;  %v4049_v52 = vrot.slane %v16527_v46, 2  ;;  %v16030_v41 = vld [vmem:[%s20819_s25 + $0x148] sm:$0x1]  ;;  %v2092_v42 = vrot.slane %v16006_v37, 1  ;;  %v20108_v46 = vld [vmem:[#allocation4 + $0x1090] ss:$8 sps:$4 sm:$0xff]  }
 0x4d6   : > { %13950 = vmatprep.subr.bf16.mxu0 %v20065_v49  ;;  %12603 = vmatprep.mubr.bf16.mxu1 %v1784_v56  ;;  %v16535_v49 = vld [vmem:[%s20819_s25 + $0x390] sm:$0xfc] }
 0x4d7   : > { %13917 = vmatprep.mubr.bf16.mxu0 %v4213_v14  ;;  %v20087_v56 = vld [vmem:[#allocation4 + $0x2250] ss:$8 sps:$4 sm:$0xff]  }
 0x4d8   : > { %12637 = vmatpush1.bf16.msra.mxu1 %v20060_v50  ;;  %v16543_v50 = vld [vmem:[%s20819_s25 + $0x3d0] sm:$0x3] }
 0x4d9   : > { %13951 = vmatpush1.bf16.msra.mxu0 %v20063_v51  ;;  %12638 = vmatprep.subr.bf16.mxu1 %v20068_v54  ;;  %v4048_v51 = vrot.slane %v16519_v45, 2  ;;  %v4072_v54 = vrot.slane %v16535_v49, 2  ;;  %v20099_v14 = vld [vmem:[#allocation4 + $0x2270] ss:$8 sps:$4 sm:$0xff]   ;;  %v2117_v45 = vrot.slane %v16030_v41, 1 }
 0x4da   : > { %13952 = vmatprep.subr.bf16.mxu0 %v20071_v55  ;;  %v4073_v55 = vrot.slane %v16543_v50, 2 }
 0x4db   : > { %12604 = vmatmul.mubr.bf16.gmra.mrb[4].mxu1 %v1783_v10  ;;  %v4050_v57 = vsel %vm1383_vm1, %v4048_v51, %v4049_v52  ;;  %v4100_v10 = vrot.slane %v16560_v6, 2  ;;  %v16466_v51 = vld [vmem:[%s20819_s25 + $0x168] sm:$0x3]  ;;  %v16474_v52 = vld [vmem:[%s20819_s25 + $0x1a8] sm:$0xfc] }
 0x4dc   : > { %12639 = vmatpush1.bf16.msra.mxu1 %v20066_v0  ;;  %13918 = vmatmul.mubr.bf16.gmra.mrb[4].mxu0 %v4212_v27  ;;  %v4074_v60 = vsel %vm1383_vm1, %v4072_v54, %v4073_v55  ;;  %v4097_v27 = vrot.slane %v16559_v21, 2  ;;  %v20128_v6 = vld [vmem:[#allocation4 + $0x10c4] ss:$8 sps:$4 sm:$0xff]   ;;  %v16465_v21 = vld [vmem:[%s20819_s25 + $0x160] sm:$0x3] }
 0x4dd   : > { %13953 = vmatpush1.bf16.msra.mxu0 %v20069_v1  ;;  %12640 = vmatprep.subr.bf16.mxu1 %v20074_v3  ;;  %v4220_v0 = vpack.c.bf16 %v4074_v60, %v4050_v57  ;;  %v16004_v1 = vld [vmem:[%s20819_s25 + $0x438] sm:$0xff]  ;;  %v4101_v17 = vsel %vm1383_vm1, %v4099_v9, %v4100_v10  ;;  %v3985_v57 = vrot.slane %v16474_v52, 2  ;;  %v20129_v9 = vld [vmem:[#allocation4 + $0x22c0] ss:$8 sps:$4 sm:$0xff]  }
 0x4de   : > { %13954 = vmatprep.subr.bf16.mxu0 %v20077_v4  ;;  %12613 = vmatprep.mubr.bf16.mxu1 %v1792_v28  ;;  %v20101_v3 = vld [vmem:[#allocation4 + $0x2274] ss:$8 sps:$4 sm:$0xff]   ;;  %v1800_v4 = vpack.c.bf16 %v16004_v1, %v15996_v61  ;;  %v4229_v22 = vpack.c.bf16 %v4125_v18, %v4101_v17  ;;  %v20107_v28 = vld [vmem:[#allocation4 + $0x2284] ss:$8 sps:$4 sm:$0xff]  }
 0x4df   : > { %13927 = vmatprep.mubr.bf16.mxu0 %v4221_v47  ;;  %v20111_v47 = vld [vmem:[#allocation4 + $0x2290] ss:$8 sps:$4 sm:$0xff]   ;;  %v20134_v10 = vld [vmem:[#allocation4 + $0x10d4] ss:$8 sps:$4 sm:$0xff]   ;;  %v20140_v17 = vld [vmem:[#allocation4 + $0x10e4] ss:$8 sps:$4 sm:$0xff]  }
 0x4e0   : > { %12641 = vmatpush1.bf16.msra.mxu1 %v20072_v19  ;;  %v16003_v19 = vld [vmem:[%s20819_s25 + $0x430] sm:$0xff]  ;;  %v20143_v18 = vld [vmem:[#allocation4 + $0x22e4] ss:$8 sps:$4 sm:$0xff]  }
 0x4e1   : > { %13955 = vmatpush1.bf16.msra.mxu0 %v20075_v20  ;;  %12642 = vmatprep.subr.bf16.mxu1 %v20080_v25  ;;  %v16551_v20 = vld [vmem:[%s20819_s25 + $0x410] sm:$0xfc]  ;;  %v1799_v23 = vpack.c.bf16 %v16003_v19, %v15995_v15  ;;  %v16575_v25 = vld [vmem:[%s20819_s25 + $0x4d0] sm:$0x3]  ;;  %v16013_v15 = vld [vmem:[%s20819_s25 + $0xc0] sm:$0x1] }
 0x4e2   : > { %13956 = vmatprep.subr.bf16.mxu0 %v20083_v26  ;;  %v4096_v26 = vrot.slane %v16551_v20, 2  ;;  %v16029_v19 = vld [vmem:[%s20819_s25 + $0x140] sm:$0x1]  ;;  %v16457_v20 = vld [vmem:[%s20819_s25 + $0x120] sm:$0xfc] }
 0x4e3   : > { %12614 = vmatmul.mubr.bf16.gmra.mrb[8].mxu1 %v1791_v48  ;;  %v16458_v48 = vld [vmem:[%s20819_s25 + $0x128] sm:$0xfc] }
 0x4e4   : > { %12643 = vmatpush1.bf16.msra.mxu1 %v20078_v30  ;;  %13928 = vmatmul.mubr.bf16.gmra.mrb[8].mxu0 %v4220_v0  ;;  %v4121_v30 = vrot.slane %v16575_v25, 2  ;;  %v4098_v33 = vsel %vm1383_vm1, %v4096_v26, %v4097_v27  ;;  %v3961_v55 = vrot.slane %v16458_v48, 2  ;;  %v20117_v0 = vld [vmem:[#allocation4 + $0x22a0] ss:$8 sps:$4 sm:$0xff]   ;;  %v20146_v26 = vld [vmem:[#allocation4 + $0x10f4] ss:$8 sps:$4 sm:$0xff]  }
 0x4e5   : > { %13957 = vmatpush1.bf16.msra.mxu0 %v20081_v31  ;;  %12644 = vmatprep.subr.bf16.mxu1 %v20086_v39  ;;  %v20102_v31 = vld [vmem:[#allocation4 + $0x1080] ss:$8 sps:$4 sm:$0xff]   ;;  %v20158_v48 = vld [vmem:[#allocation4 + $0x1114] ss:$8 sps:$4 sm:$0xff]  }
 0x4e6   : > { %13958 = vmatprep.subr.bf16.mxu0 %v20089_v40  ;;  %12623 = vmatprep.mubr.bf16.mxu1 %v1800_v4  ;;  %v4122_v36 = vsel %vm1383_vm1, %v4120_v29, %v4121_v30  ;;  %v16014_v39 = vld [vmem:[%s20819_s25 + $0xc8] sm:$0x1]  ;;  %v16022_v40 = vld [vmem:[%s20819_s25 + $0x108] sm:$0xfe]  ;;  %v20120_v4 = vld [vmem:[#allocation4 + $0x10b0] ss:$8 sps:$4 sm:$0xff]  }
 0x4e7   : > { %13937 = vmatprep.mubr.bf16.mxu0 %v4229_v22  ;;  %v4228_v38 = vpack.c.bf16 %v4122_v36, %v4098_v33  ;;  %v2093_v43 = vrot.slane %v16014_v39, 1  ;;  %v2116_v44 = vrot.slane %v16022_v40, 1  ;;  %v16473_v22 = vld [vmem:[%s20819_s25 + $0x1a0] sm:$0xfc]  ;;  %v2114_v30 = vrot.slane %v16029_v19, 1 }
 0x4e8   : > { %12645 = vmatpush1.bf16.msra.mxu1 %v20084_v53  ;;  %v16482_v53 = vld [vmem:[%s20819_s25 + $0x1e8] sm:$0x3]  ;;  %v3982_v33 = vrot.slane %v16473_v22, 2  ;;  %v20144_v36 = vld [vmem:[#allocation4 + $0x10f0] ss:$8 sps:$4 sm:$0xff]  }
 0x4e9   : > { %13959 = vmatpush1.bf16.msra.mxu0 %v20087_v56  ;;  %12646 = vmatprep.subr.bf16.mxu1 %v20092_v58  ;;  %v2094_v49 = vsel %vm806_vm0, %v2092_v42, %v2093_v43  ;;  %v2118_v50 = vsel %vm806_vm0, %v2116_v44, %v2117_v45  ;;  %v3962_v56 = vrot.slane %v16466_v51, 2  ;;  %v20116_v58 = vld [vmem:[#allocation4 + $0x10a4] ss:$8 sps:$4 sm:$0xff]   ;;  %v3986_v60 = vrot.slane %v16482_v53, 2  ;;  %v20141_v25 = vld [vmem:[#allocation4 + $0x22e0] ss:$8 sps:$4 sm:$0xff]  }
 0x4ea   : > { %13960 = vmatprep.subr.bf16.mxu0 %v20095_v59  ;;  %v2346_v54 = vpack.c.bf16 %v2118_v50, %v2094_v49  ;;  %v20119_v59 = vld [vmem:[#allocation4 + $0x22a4] ss:$8 sps:$4 sm:$0xff]   ;;  %v20150_v44 = vld [vmem:[#allocation4 + $0x1100] ss:$8 sps:$4 sm:$0xff]   ;;  %v20161_v49 = vld [vmem:[#allocation4 + $0x2314] ss:$8 sps:$4 sm:$0xff]  }
 0x4eb   : > { %12624 = vmatmul.mubr.bf16.gmra.mrb[12].mxu1 %v1799_v23  ;;  %v3963_v61 = vsel %vm1383_vm1, %v3961_v55, %v3962_v56  ;;  %v16481_v23 = vld [vmem:[%s20819_s25 + $0x1e0] sm:$0x3]  ;;  %v20152_v39 = vld [vmem:[#allocation4 + $0x1104] ss:$8 sps:$4 sm:$0xff]   ;;  %v16046_v51 = vld [vmem:[%s20819_s25 + $0x1c8] sm:$0x1] }
 0x4ec   : > { %12647 = vmatpush1.bf16.msra.mxu1 %v20090_v62  ;;  %13938 = vmatmul.mubr.bf16.gmra.mrb[12].mxu0 %v4228_v38  ;;  %v3987_v62 = vsel %vm1383_vm1, %v3985_v57, %v3986_v60  ;;  %v20147_v38 = vld [vmem:[#allocation4 + $0x22f0] ss:$8 sps:$4 sm:$0xff]   ;;  %v20155_v43 = vld [vmem:[#allocation4 + $0x2304] ss:$8 sps:$4 sm:$0xff]   ;;  %v20153_v45 = vld [vmem:[#allocation4 + $0x2300] ss:$8 sps:$4 sm:$0xff]  }
 0x4ed   : > { %13961 = vmatpush1.bf16.msra.mxu0 %v20093_v63  ;;  %12648 = vmatprep.subr.bf16.mxu1 %v20098_v2  ;;  %v20114_v63 = vld [vmem:[#allocation4 + $0x10a0] ss:$8 sps:$4 sm:$0xff]   ;;  %v4207_v1 = vpack.c.bf16 %v3987_v62, %v3963_v61  ;;  %v20122_v2 = vld [vmem:[#allocation4 + $0x10b4] ss:$8 sps:$4 sm:$0xff]   ;;  %v20156_v53 = vld [vmem:[#allocation4 + $0x1110] ss:$8 sps:$4 sm:$0xff]  }
 0x4ee   : > { %13962 = vmatprep.subr.bf16.mxu0 %v20101_v3  ;;  %12666 = vmatprep.mubr.bf16.mxu1 %v2346_v54  ;;  %v20125_v3 = vld [vmem:[#allocation4 + $0x22b4] ss:$8 sps:$4 sm:$0xff]   ;;  %v16038_v50 = vld [vmem:[%s20819_s25 + $0x188] sm:$0xfe]  ;;  %v20159_v54 = vld [vmem:[#allocation4 + $0x2310] ss:$8 sps:$4 sm:$0xff]  }
 0x4ef   : > { %13980 = vmatprep.mubr.bf16.mxu0 %v4207_v1  ;;  %v16054_v52 = vld [vmem:[%s20819_s25 + $0x208] sm:$0xfe]  ;;  %v16062_v55 = vld [vmem:[%s20819_s25 + $0x248] sm:$0x1]  ;;  %v2140_v56 = vrot.slane %v16038_v50, 1  ;;  %v2141_v57 = vrot.slane %v16046_v51, 1 }
 0x4f0   : > { %12649 = vmatpush1.bf16.msra.mxu1 %v20096_v13  ;;  %v20135_v13 = vld [vmem:[#allocation4 + $0x22d0] ss:$8 sps:$4 sm:$0xff]   ;;  %v20167_v60 = vld [vmem:[#allocation4 + $0x2324] ss:$8 sps:$4 sm:$0xff]   ;;  %v2165_v61 = vrot.slane %v16062_v55, 1 }
 0x4f1   : > { %13963 = vmatpush1.bf16.msra.mxu0 %v20099_v14  ;;  %12650 = vmatprep.subr.bf16.mxu1 %v20104_v16  ;;  %v16005_v14 = vld [vmem:[%s20819_s25 + $0x80] sm:$0xfe]  ;;  %v16490_v62 = vld [vmem:[%s20819_s25 + $0x228] sm:$0xfc]  ;;  %v20173_v19 = vld [vmem:[#allocation4 + $0x2334] ss:$8 sps:$4 sm:$0xff]  }
 0x4f2   : > { %13964 = vmatprep.subr.bf16.mxu0 %v20107_v28  ;;  %v16021_v16 = vld [vmem:[%s20819_s25 + $0x100] sm:$0xfe]  ;;  %v2089_v27 = vrot.slane %v16005_v14, 1  ;;  %v2090_v28 = vrot.slane %v16013_v15, 1  ;;  %v16506_v1 = vld [vmem:[%s20819_s25 + $0x2a8] sm:$0xfc] }
 0x4f3   : > { %v2113_v29 = vrot.slane %v16021_v16, 1  ;;  %v16053_v14 = vld [vmem:[%s20819_s25 + $0x200] sm:$0xfe]  ;;  %v16061_v15 = vld [vmem:[%s20819_s25 + $0x240] sm:$0x1] }
 0x4f4   : > { %12651 = vmatpush1.bf16.msra.mxu1 %v20102_v31  ;;  %v3958_v31 = vrot.slane %v16457_v20, 2  ;;  %v2091_v37 = vsel %vm806_vm0, %v2089_v27, %v2090_v28  ;;  %v2162_v22 = vrot.slane %v16061_v15, 1  ;;  %v16505_v27 = vld [vmem:[%s20819_s25 + $0x2a0] sm:$0xfc]  ;;  %v16530_v55 = vld [vmem:[%s20819_s25 + $0x368] sm:$0x3] }
 0x4f5   : > { %13965 = vmatpush1.bf16.msra.mxu0 %v20105_v32  ;;  %12652 = vmatprep.subr.bf16.mxu1 %v20110_v34  ;;  %v3959_v32 = vrot.slane %v16465_v21, 2  ;;  %v3983_v34 = vrot.slane %v16481_v23, 2  ;;  %v2115_v40 = vsel %vm806_vm0, %v2113_v29, %v2114_v30  ;;  %v2161_v21 = vrot.slane %v16053_v14, 1  ;;  %v16513_v29 = vld [vmem:[%s20819_s25 + $0x2e0] sm:$0x3] }
 0x4f6   : > { %13966 = vmatprep.subr.bf16.mxu0 %v20113_v35  ;;  %v20149_v35 = vld [vmem:[#allocation4 + $0x22f4] ss:$8 sps:$4 sm:$0xff]  }
 0x4f7   : > { %v3960_v41 = vsel %vm1383_vm1, %v3958_v31, %v3959_v32  ;;  %v3984_v42 = vsel %vm1383_vm1, %v3982_v33, %v3983_v34  ;;  %v2163_v28 = vsel %vm806_vm0, %v2161_v21, %v2162_v22  ;;  %v4030_v32 = vrot.slane %v16505_v27, 2  ;;  %v16545_v21 = vld [vmem:[%s20819_s25 + $0x3e0] sm:$0x3] }
 0x4f8   : > { %12653 = vmatpush1.bf16.msra.mxu1 %v20108_v46  ;;  %v2345_v46 = vpack.c.bf16 %v2115_v40, %v2091_v37  ;;  %v4031_v34 = vrot.slane %v16513_v29, 2  ;;  %v20171_v37 = vld [vmem:[#allocation4 + $0x2330] ss:$8 sps:$4 sm:$0xff]   ;;  %v20179_v40 = vld [vmem:[#allocation4 + $0x2344] ss:$8 sps:$4 sm:$0xff]  }
 0x4f9   : > { %13967 = vmatpush1.bf16.msra.mxu0 %v20111_v47  ;;  %12654 = vmatprep.subr.bf16.mxu1 %v20116_v58  ;;  %v4206_v47 = vpack.c.bf16 %v3984_v42, %v3960_v41  ;;  %v2164_v58 = vrot.slane %v16054_v52, 1  ;;  %v16070_v42 = vld [vmem:[%s20819_s25 + $0x288] sm:$0xfe] }
 0x4fa   : > { %13968 = vmatprep.subr.bf16.mxu0 %v20119_v59  ;;  %v20164_v59 = vld [vmem:[#allocation4 + $0x1124] ss:$8 sps:$4 sm:$0xff]   ;;  %v2188_v50 = vrot.slane %v16070_v42, 1  ;;  %v20186_v27 = vld [vmem:[#allocation4 + $0x1160] ss:$8 sps:$4 sm:$0xff]  }
 0x4fc   : > { %12655 = vmatpush1.bf16.msra.mxu1 %v20114_v63  ;;  %v16498_v63 = vld [vmem:[%s20819_s25 + $0x268] sm:$0x3] }
 0x4fd   : > { %13969 = vmatpush1.bf16.msra.mxu0 %v20117_v0  ;;  %12656 = vmatprep.subr.bf16.mxu1 %v20122_v2  ;;  %v2142_v0 = vsel %vm806_vm0, %v2140_v56, %v2141_v57  ;;  %v16514_v2 = vld [vmem:[%s20819_s25 + $0x2e8] sm:$0x3]  ;;  %v16538_v56 = vld [vmem:[%s20819_s25 + $0x3a8] sm:$0xfc] }
 0x4fe   : > { %13970 = vmatprep.subr.bf16.mxu0 %v20125_v3  ;;  %v4009_v3 = vrot.slane %v16490_v62, 2  ;;  %v16546_v57 = vld [vmem:[%s20819_s25 + $0x3e8] sm:$0x3]  ;;  %v16069_v62 = vld [vmem:[%s20819_s25 + $0x280] sm:$0xfe] }
 0x500   : > { %12657 = vmatpush1.bf16.msra.mxu1 %v20120_v4  ;;  %v4010_v4 = vrot.slane %v16498_v63, 2  ;;  %v16077_v63 = vld [vmem:[%s20819_s25 + $0x2c0] sm:$0x1] }
 0x501   : > { %13971 = vmatpush1.bf16.msra.mxu0 %v20123_v5  ;;  %12658 = vmatprep.subr.bf16.mxu1 %v20128_v6  ;;  %v2166_v5 = vsel %vm806_vm0, %v2164_v58, %v2165_v61  ;;  %v4033_v6 = vrot.slane %v16506_v1, 2  ;;  %v4058_v61 = vrot.slane %v16530_v55, 2  ;;  %v20183_v1 = vld [vmem:[#allocation4 + $0x2350] ss:$8 sps:$4 sm:$0xff]  }
 0x502   : > { %13972 = vmatprep.subr.bf16.mxu0 %v20131_v7  ;;  %v4034_v7 = vrot.slane %v16514_v2, 2 }
 0x504   : > { %12659 = vmatpush1.bf16.msra.mxu1 %v20126_v8  ;;  %v16037_v8 = vld [vmem:[%s20819_s25 + $0x180] sm:$0xfe]  ;;  %v4035_v20 = vsel %vm1383_vm1, %v4033_v6, %v4034_v7  ;;  %v16093_v6 = vld [vmem:[%s20819_s25 + $0x340] sm:$0x1] }
 0x505   : > { %13973 = vmatpush1.bf16.msra.mxu0 %v20129_v9  ;;  %12660 = vmatprep.subr.bf16.mxu1 %v20134_v10  ;;  %v16045_v9 = vld [vmem:[%s20819_s25 + $0x1c0] sm:$0x1]  ;;  %v2137_v16 = vrot.slane %v16037_v8, 1  ;;  %v2185_v8 = vrot.slane %v16069_v62, 1  ;;  %v2210_v14 = vrot.slane %v16093_v6, 1 }
 0x506   : > { %13974 = vmatprep.subr.bf16.mxu0 %v20137_v11  ;;  %v20162_v10 = vld [vmem:[#allocation4 + $0x1120] ss:$8 sps:$4 sm:$0xff]  }
 0x507   : > { %v20165_v11 = vld [vmem:[#allocation4 + $0x2320] ss:$8 sps:$4 sm:$0xff]  }
 0x508   : > { %12661 = vmatpush1.bf16.msra.mxu1 %v20132_v12  ;;  %v2354_v12 = vpack.c.bf16 %v2166_v5, %v2142_v0  ;;  %v20180_v0 = vld [vmem:[#allocation4 + $0x1150] ss:$8 sps:$4 sm:$0xff]   ;;  %v16085_v5 = vld [vmem:[%s20819_s25 + $0x300] sm:$0xfe] }
 0x509   : > { %13975 = vmatpush1.bf16.msra.mxu0 %v20135_v13  ;;  %12662 = vmatprep.subr.bf16.mxu1 %v20140_v17  ;;  %v4011_v13 = vsel %vm1383_vm1, %v4009_v3, %v4010_v4  ;;  %v2138_v17 = vrot.slane %v16045_v9, 1  ;;  %v4081_v3 = vrot.slane %v16538_v56, 2  ;;  %v4082_v4 = vrot.slane %v16546_v57, 2  ;;  %v16117_v62 = vld [vmem:[%s20819_s25 + $0x400] sm:$0xfe] }
 0x50a   : > { %13976 = vmatprep.subr.bf16.mxu0 %v20143_v18  ;;  %v20170_v18 = vld [vmem:[#allocation4 + $0x1134] ss:$8 sps:$4 sm:$0xff]   ;;  %v4215_v23 = vpack.c.bf16 %v4035_v20, %v4011_v13  ;;  %v2186_v9 = vrot.slane %v16077_v63, 1  ;;  %v16125_v63 = vld [vmem:[%s20819_s25 + $0x440] sm:$0x1] }
 0x50b   : > { %v4083_v13 = vsel %vm1383_vm1, %v4081_v3, %v4082_v4  ;;  %v20209_v3 = vld [vmem:[#allocation4 + $0x2394] ss:$8 sps:$4 sm:$0xff]   ;;  %v2258_v6 = vrot.slane %v16125_v63, 1  ;;  %v16467_v63 = vld [vmem:[%s20819_s25 + $0x170] sm:$0x3] }
 0x50c   : > { %12663 = vmatpush1.bf16.msra.mxu1 %v20138_v24  ;;  %v2139_v24 = vsel %vm806_vm0, %v2137_v16, %v2138_v17  ;;  %v2187_v16 = vsel %vm806_vm0, %v2185_v8, %v2186_v9  ;;  %v16521_v17 = vld [vmem:[%s20819_s25 + $0x320] sm:$0xfc] }
 0x50d   : > { %13977 = vmatpush1.bf16.msra.mxu0 %v20141_v25  ;;  %12664 = vmatprep.subr.bf16.mxu1 %v20146_v26  ;;  %v16489_v25 = vld [vmem:[%s20819_s25 + $0x220] sm:$0xfc]  ;;  %v16497_v26 = vld [vmem:[%s20819_s25 + $0x260] sm:$0x3]  ;;  %v2353_v33 = vpack.c.bf16 %v2163_v28, %v2139_v24  ;;  %v4054_v22 = vrot.slane %v16521_v17, 2 }
 0x50e   : > { %13978 = vmatprep.subr.bf16.mxu0 %v20149_v35  ;;  %v4006_v30 = vrot.slane %v16489_v25, 2  ;;  %v4007_v31 = vrot.slane %v16497_v26, 2  ;;  %v20168_v35 = vld [vmem:[#allocation4 + $0x1130] ss:$8 sps:$4 sm:$0xff]   ;;  %v4079_v26 = vrot.slane %v16545_v21, 2 }
 0x50f   : > { %v20189_v28 = vld [vmem:[#allocation4 + $0x2360] ss:$8 sps:$4 sm:$0xff]   ;;  %v20204_v17 = vld [vmem:[#allocation4 + $0x1190] ss:$8 sps:$4 sm:$0xff]   ;;  %v20212_v21 = vld [vmem:[#allocation4 + $0x11a4] ss:$8 sps:$4 sm:$0xff]  }
 0x510   : > { %12665 = vmatpush1.bf16.msra.mxu1 %v20144_v36  ;;  %v4008_v36 = vsel %vm1383_vm1, %v4006_v30, %v4007_v31  ;;  %v20194_v30 = vld [vmem:[#allocation4 + $0x1174] ss:$8 sps:$4 sm:$0xff]   ;;  %v16553_v9 = vld [vmem:[%s20819_s25 + $0x420] sm:$0xfc] }
 0x511   : > { %13979 = vmatpush1.bf16.msra.mxu0 %v20147_v38  ;;  %12707 = vmatprep.subr.bf16.mxu1 %v20152_v39  ;;  %v4032_v38 = vsel %vm1383_vm1, %v4030_v32, %v4031_v34  ;;  %v20176_v39 = vld [vmem:[#allocation4 + $0x1144] ss:$8 sps:$4 sm:$0xff]   ;;  %v20197_v31 = vld [vmem:[#allocation4 + $0x2374] ss:$8 sps:$4 sm:$0xff]   ;;  %v20195_v34 = vld [vmem:[#allocation4 + $0x2370] ss:$8 sps:$4 sm:$0xff]  }
 0x512   : > { %14021 = vmatprep.subr.bf16.mxu0 %v20155_v43  ;;  %v4214_v41 = vpack.c.bf16 %v4032_v38, %v4008_v36  ;;  %v20174_v43 = vld [vmem:[#allocation4 + $0x1140] ss:$8 sps:$4 sm:$0xff]  }
 0x513   : > { %12667 = vmatmul.mubr.bf16.vlgmr.msra.gmra.mrb[0].mxu1 %v2345_v46  ;;  %v16086_v46 = vld [vmem:[%s20819_s25 + $0x308] sm:$0xfe] }
 0x514   : > { %13981 = vmatmul.mubr.bf16.vlgmr.msra.gmra.mrb[0].mxu0 %v4206_v47  ;;  %12708 = vmatpush1.bf16.msra.mxu1 %v20150_v44  ;;  %v20177_v44 = vld [vmem:[#allocation4 + $0x2340] ss:$8 sps:$4 sm:$0xff]   ;;  %v2212_v52 = vrot.slane %v16086_v46, 1 }
 0x515   : > { %14022 = vmatpush1.bf16.msra.mxu0 %v20153_v45  ;;  %12709 = vmatprep.subr.bf16.mxu1 %v20158_v48  ;;  %v16078_v45 = vld [vmem:[%s20819_s25 + $0x2c8] sm:$0x1]  ;;  %v20182_v48 = vld [vmem:[#allocation4 + $0x1154] ss:$8 sps:$4 sm:$0xff]   ;;  %v16102_v36 = vld [vmem:[%s20819_s25 + $0x388] sm:$0xfe] }
 0x516   : > { %14023 = vmatprep.subr.bf16.mxu0 %v20161_v49  ;;  %12676 = vmatprep.mubr.bf16.mxu1 %v2354_v12  ;;  %v16094_v47 = vld [vmem:[%s20819_s25 + $0x348] sm:$0x1]  ;;  %v20185_v49 = vld [vmem:[#allocation4 + $0x2354] ss:$8 sps:$4 sm:$0xff]   ;;  %v2189_v51 = vrot.slane %v16078_v45, 1  ;;  %v2236_v42 = vrot.slane %v16102_v36, 1 }
 0x517   : > { %13990 = vmatprep.mubr.bf16.mxu0 %v4215_v23  ;;  %v20191_v12 = vld [vmem:[#allocation4 + $0x2364] ss:$8 sps:$4 sm:$0xff]  }
 0x518   : > { %12710 = vmatpush1.bf16.msra.mxu1 %v20156_v53  ;;  %v2213_v53 = vrot.slane %v16094_v47, 1  ;;  %v2190_v58 = vsel %vm806_vm0, %v2188_v50, %v2189_v51  ;;  %v16118_v38 = vld [vmem:[%s20819_s25 + $0x408] sm:$0xfe] }
 0x519   : > { %14024 = vmatpush1.bf16.msra.mxu0 %v20159_v54  ;;  %12711 = vmatprep.subr.bf16.mxu1 %v20164_v59  ;;  %v16522_v54 = vld [vmem:[%s20819_s25 + $0x328] sm:$0xfc]  ;;  %v16562_v47 = vld [vmem:[%s20819_s25 + $0x468] sm:$0x3] }
 0x51a   : > { %14025 = vmatprep.subr.bf16.mxu0 %v20167_v60  ;;  %v2214_v59 = vsel %vm806_vm0, %v2212_v52, %v2213_v53  ;;  %v4057_v60 = vrot.slane %v16522_v54, 2  ;;  %v16554_v46 = vld [vmem:[%s20819_s25 + $0x428] sm:$0xfc]  ;;  %v16578_v50 = vld [vmem:[%s20819_s25 + $0x4e8] sm:$0x3]  ;;  %v4106_v52 = vrot.slane %v16562_v47, 2 }
 0x51b   : > { %12677 = vmatmul.mubr.bf16.gmra.mrb[4].mxu1 %v2353_v33  ;;  %v2362_v2 = vpack.c.bf16 %v2214_v59, %v2190_v58  ;;  %v20192_v33 = vld [vmem:[#allocation4 + $0x1170] ss:$8 sps:$4 sm:$0xff]   ;;  %v4105_v51 = vrot.slane %v16554_v46, 2  ;;  %v20198_v53 = vld [vmem:[#allocation4 + $0x1180] ss:$8 sps:$4 sm:$0xff]   ;;  %v4130_v57 = vrot.slane %v16578_v50, 2 }
 0x51c   : > { %12712 = vmatpush1.bf16.msra.mxu1 %v20162_v10  ;;  %13991 = vmatmul.mubr.bf16.gmra.mrb[4].mxu0 %v4214_v41  ;;  %v4059_v7 = vsel %vm1383_vm1, %v4057_v60, %v4058_v61  ;;  %v2209_v10 = vrot.slane %v16085_v5, 1  ;;  %v16126_v41 = vld [vmem:[%s20819_s25 + $0x448] sm:$0x1]  ;;  %v16101_v58 = vld [vmem:[%s20819_s25 + $0x380] sm:$0xfe]  ;;  %v2257_v5 = vrot.slane %v16117_v62, 1 }
 0x51d   : > { %14026 = vmatpush1.bf16.msra.mxu0 %v20165_v11  ;;  %12713 = vmatprep.subr.bf16.mxu1 %v20170_v18  ;;  %v20188_v11 = vld [vmem:[#allocation4 + $0x1164] ss:$8 sps:$4 sm:$0xff]   ;;  %v4223_v15 = vpack.c.bf16 %v4083_v13, %v4059_v7  ;;  %v16529_v18 = vld [vmem:[%s20819_s25 + $0x360] sm:$0x3]  ;;  %v2261_v45 = vrot.slane %v16126_v41, 1  ;;  %v4107_v61 = vsel %vm1383_vm1, %v4105_v51, %v4106_v52 }
 0x51e   : > { %14027 = vmatprep.subr.bf16.mxu0 %v20173_v19  ;;  %v16537_v19 = vld [vmem:[%s20819_s25 + $0x3a0] sm:$0xfc]  ;;  %12686 = vmatprep.mubr.bf16.mxu1 %v2362_v2  ;;  %v2211_v20 = vsel %vm806_vm0, %v2209_v10, %v2210_v14  ;;  %v4055_v23 = vrot.slane %v16529_v18, 2  ;;  %v16109_v59 = vld [vmem:[%s20819_s25 + $0x3c0] sm:$0x1]  ;;  %v4102_v14 = vrot.slane %v16553_v9, 2 }
 0x51f   : > { %v4078_v24 = vrot.slane %v16537_v19, 2  ;;  %14000 = vmatprep.mubr.bf16.mxu0 %v4223_v15  ;;  %v2361_v25 = vpack.c.bf16 %v2211_v20, %v2187_v16  ;;  %v20201_v54 = vld [vmem:[#allocation4 + $0x2380] ss:$8 sps:$4 sm:$0xff]   ;;  %v20206_v2 = vld [vmem:[#allocation4 + $0x1194] ss:$8 sps:$4 sm:$0xff]  }
 0x520   : > { %12714 = vmatpush1.bf16.msra.mxu1 %v20168_v35  ;;  %v4056_v29 = vsel %vm1383_vm1, %v4054_v22, %v4055_v23  ;;  %v16561_v10 = vld [vmem:[%s20819_s25 + $0x460] sm:$0x3]  ;;  %v20207_v18 = vld [vmem:[#allocation4 + $0x2390] ss:$8 sps:$4 sm:$0xff]   ;;  %v20215_v23 = vld [vmem:[#allocation4 + $0x23a4] ss:$8 sps:$4 sm:$0xff]  }
 0x521   : > { %14028 = vmatpush1.bf16.msra.mxu0 %v20171_v37  ;;  %12715 = vmatprep.subr.bf16.mxu1 %v20176_v39  ;;  %v4080_v32 = vsel %vm1383_vm1, %v4078_v24, %v4079_v26  ;;  %v16110_v37 = vld [vmem:[%s20819_s25 + $0x3c8] sm:$0x1]  ;;  %v20200_v39 = vld [vmem:[#allocation4 + $0x1184] ss:$8 sps:$4 sm:$0xff]   ;;  %v16577_v13 = vld [vmem:[%s20819_s25 + $0x4e0] sm:$0x3] }
 0x522   : > { %14029 = vmatprep.subr.bf16.mxu0 %v20179_v40  ;;  %v4222_v35 = vpack.c.bf16 %v4080_v32, %v4056_v29  ;;  %v20203_v40 = vld [vmem:[#allocation4 + $0x2384] ss:$8 sps:$4 sm:$0xff]   ;;  %v4103_v15 = vrot.slane %v16561_v10, 2  ;;  %v4127_v20 = vrot.slane %v16577_v13, 2  ;;  %v20213_v26 = vld [vmem:[#allocation4 + $0x23a0] ss:$8 sps:$4 sm:$0xff]  }
 0x523   : > { %12687 = vmatmul.mubr.bf16.gmra.mrb[8].mxu1 %v2361_v25  ;;  %v20210_v25 = vld [vmem:[#allocation4 + $0x11a0] ss:$8 sps:$4 sm:$0xff]   ;;  %v20218_v29 = vld [vmem:[#allocation4 + $0x11b4] ss:$8 sps:$4 sm:$0xff]   ;;  %v16484_v41 = vld [vmem:[%s20819_s25 + $0x1f8] sm:$0x3] }
 0x524   : > { %12716 = vmatpush1.bf16.msra.mxu1 %v20174_v43  ;;  %v2237_v43 = vrot.slane %v16110_v37, 1  ;;  %14001 = vmatmul.mubr.bf16.gmra.mrb[8].mxu0 %v4222_v35  ;;  %v4104_v22 = vsel %vm1383_vm1, %v4102_v14, %v4103_v15  ;;  %v16024_v32 = vld [vmem:[%s20819_s25 + $0x118] sm:$0xfe]  ;;  %v20224_v52 = vld [vmem:[#allocation4 + $0x11c4] ss:$8 sps:$4 sm:$0xff]  }
 0x525   : > { %14030 = vmatpush1.bf16.msra.mxu0 %v20177_v44  ;;  %12717 = vmatprep.subr.bf16.mxu1 %v20182_v48  ;;  %v2260_v44 = vrot.slane %v16118_v38, 1  ;;  %v2122_v36 = vrot.slane %v16024_v32, 1  ;;  %v16460_v38 = vld [vmem:[%s20819_s25 + $0x138] sm:$0xfc]  ;;  %v16459_v62 = vld [vmem:[%s20819_s25 + $0x130] sm:$0xfc] }
 0x526   : > { %14031 = vmatprep.subr.bf16.mxu0 %v20185_v49  ;;  %v2238_v48 = vsel %vm806_vm0, %v2236_v42, %v2237_v43  ;;  %v16570_v49 = vld [vmem:[%s20819_s25 + $0x4a8] sm:$0xfc]  ;;  %v20219_v50 = vld [vmem:[#allocation4 + $0x23b0] ss:$8 sps:$4 sm:$0xff]  }
 0x527   : > { %v2262_v55 = vsel %vm806_vm0, %v2260_v44, %v2261_v45  ;;  %v4129_v56 = vrot.slane %v16570_v49, 2  ;;  %v3967_v44 = vrot.slane %v16460_v38, 2  ;;  %v20216_v49 = vld [vmem:[#allocation4 + $0x11b0] ss:$8 sps:$4 sm:$0xff]   ;;  %v20236_v15 = vld [vmem:[#allocation4 + $0x11e4] ss:$8 sps:$4 sm:$0xff]  }
 0x528   : > { %12718 = vmatpush1.bf16.msra.mxu1 %v20180_v0  ;;  %v2370_v60 = vpack.c.bf16 %v2262_v55, %v2238_v48  ;;  %v2233_v0 = vrot.slane %v16101_v58, 1  ;;  %v3992_v48 = vrot.slane %v16484_v41, 2  ;;  %v16007_v55 = vld [vmem:[%s20819_s25 + $0x90] sm:$0xfe]  ;;  %v16048_v14 = vld [vmem:[%s20819_s25 + $0x1d8] sm:$0x1] }
 0x529   : > { %14032 = vmatpush1.bf16.msra.mxu0 %v20183_v1  ;;  %12719 = vmatprep.subr.bf16.mxu1 %v20188_v11  ;;  %v2234_v1 = vrot.slane %v16109_v59, 1  ;;  %v4131_v4 = vsel %vm1383_vm1, %v4129_v56, %v4130_v57  ;;  %v16569_v11 = vld [vmem:[%s20819_s25 + $0x4a0] sm:$0xfc]  ;;  %v16015_v59 = vld [vmem:[%s20819_s25 + $0xd0] sm:$0x1]  ;;  %v2147_v32 = vrot.slane %v16048_v14, 1 }
 0x52a   : > { %14033 = vmatprep.subr.bf16.mxu0 %v20191_v12  ;;  %v4231_v7 = vpack.c.bf16 %v4131_v4, %v4107_v61  ;;  %12696 = vmatprep.mubr.bf16.mxu1 %v2370_v60  ;;  %v2259_v12 = vsel %vm806_vm0, %v2257_v5, %v2258_v6  ;;  %v4126_v16 = vrot.slane %v16569_v11, 2  ;;  %v20222_v56 = vld [vmem:[#allocation4 + $0x11c0] ss:$8 sps:$4 sm:$0xff]   ;;  %v16023_v60 = vld [vmem:[%s20819_s25 + $0x110] sm:$0xfe]  ;;  %v2095_v5 = vrot.slane %v16007_v55, 1 }
 0x52b   : > { %v2235_v8 = vsel %vm806_vm0, %v2233_v0, %v2234_v1  ;;  %v20225_v57 = vld [vmem:[#allocation4 + $0x23c0] ss:$8 sps:$4 sm:$0xff]   ;;  %v16031_v61 = vld [vmem:[%s20819_s25 + $0x150] sm:$0x1]  ;;  %v16475_v0 = vld [vmem:[%s20819_s25 + $0x1b0] sm:$0xfc] }
 0x52c   : > { %12720 = vmatpush1.bf16.msra.mxu1 %v20186_v27  ;;  %14010 = vmatprep.mubr.bf16.mxu0 %v4231_v7  ;;  %v2369_v19 = vpack.c.bf16 %v2259_v12, %v2235_v8  ;;  %v4128_v24 = vsel %vm1383_vm1, %v4126_v16, %v4127_v20  ;;  %v20230_v1 = vld [vmem:[#allocation4 + $0x11d4] ss:$8 sps:$4 sm:$0xff]   ;;  %v2096_v6 = vrot.slane %v16015_v59, 1  ;;  %v2119_v7 = vrot.slane %v16023_v60, 1  ;;  %v20228_v8 = vld [vmem:[#allocation4 + $0x11d0] ss:$8 sps:$4 sm:$0xff]  }
 0x52d   : > { %14034 = vmatpush1.bf16.msra.mxu0 %v20189_v28  ;;  %12721 = vmatprep.subr.bf16.mxu1 %v20194_v30  ;;  %v4230_v27 = vpack.c.bf16 %v4128_v24, %v4104_v22  ;;  %v16008_v28 = vld [vmem:[%s20819_s25 + $0x98] sm:$0xfe]  ;;  %v2120_v10 = vrot.slane %v16031_v61, 1  ;;  %v3964_v11 = vrot.slane %v16459_v62, 2  ;;  %v3965_v12 = vrot.slane %v16467_v63, 2 }
 0x52e   : > { %14035 = vmatprep.subr.bf16.mxu0 %v20197_v31  ;;  %12697 = vmatmul.mubr.bf16.gmra.mrb[12].mxu1 %v2369_v19  ;;  %v20221_v30 = vld [vmem:[#allocation4 + $0x23b4] ss:$8 sps:$4 sm:$0xff]   ;;  %v16016_v31 = vld [vmem:[%s20819_s25 + $0xd8] sm:$0x1]  ;;  %v3988_v13 = vrot.slane %v16475_v0, 2  ;;  %v22100_v24 = vsel %vm806_vm0, %v2095_v5, %v2096_v6 }
 0x52f   : > { %v2099_v35 = vrot.slane %v16016_v31, 1  ;;  %14011 = vmatmul.mubr.bf16.gmra.mrb[12].mxu0 %v4230_v27  ;;  %v20233_v4 = vld [vmem:[#allocation4 + $0x23d4] ss:$8 sps:$4 sm:$0xff]   ;;  %v20231_v9 = vld [vmem:[#allocation4 + $0x23d0] ss:$8 sps:$4 sm:$0xff]   ;;  %v22113_v31 = vsel %vm1383_vm1, %v3964_v11, %v3965_v12 }
 0x530   : > { %12722 = vmatpush1.bf16.msra.mxu1 %v20192_v33  ;;  %v16032_v33 = vld [vmem:[%s20819_s25 + $0x158] sm:$0x1]  ;;  %v20239_v16 = vld [vmem:[#allocation4 + $0x23e4] ss:$8 sps:$4 sm:$0xff]   ;;  %v22107_v27 = vld [vmem:[%s20819_s25 + $0x1d0] sm:$0x1] }
 0x531   : > { %14036 = vmatpush1.bf16.msra.mxu0 %v20195_v34  ;;  %12723 = vmatprep.subr.bf16.mxu1 %v20200_v39  ;;  %v2098_v34 = vrot.slane %v16008_v28, 1  ;;  %v2123_v37 = vrot.slane %v16032_v33, 1  ;;  %v16468_v39 = vld [vmem:[%s20819_s25 + $0x178] sm:$0x3]  ;;  %v20234_v28 = vld [vmem:[#allocation4 + $0x11e0] ss:$8 sps:$4 sm:$0xff]  }
 0x532   : > { %14037 = vmatprep.subr.bf16.mxu0 %v20203_v40  ;;  %v16476_v40 = vld [vmem:[%s20819_s25 + $0x1b8] sm:$0xfc]  ;;  %v3968_v45 = vrot.slane %v16468_v39, 2  ;;  %v16064_v19 = vld [vmem:[%s20819_s25 + $0x258] sm:$0x1] }
 0x533   : > { %v2100_v42 = vsel %vm806_vm0, %v2098_v34, %v2099_v35  ;;  %v2124_v43 = vsel %vm806_vm0, %v2122_v36, %v2123_v37  ;;  %v3991_v47 = vrot.slane %v16476_v40, 2  ;;  %v16500_v22 = vld [vmem:[%s20819_s25 + $0x278] sm:$0x3]  ;;  %v22116_v34 = vld [vmem:[%s20819_s25 + $0x210] sm:$0xfe]  ;;  %v2171_v39 = vrot.slane %v16064_v19, 1 }
 0x534   : > { %12724 = vmatpush1.bf16.msra.mxu1 %v20198_v53  ;;  %v2348_v46 = vpack.c.bf16 %v2124_v43, %v2100_v42  ;;  %v3969_v51 = vsel %vm1383_vm1, %v3967_v44, %v3968_v45  ;;  %v20227_v53 = vld [vmem:[#allocation4 + $0x23c4] ss:$8 sps:$4 sm:$0xff]   ;;  %v22119_v35 = vld [vmem:[%s20819_s25 + $0x250] sm:$0x1]  ;;  %v20242_v36 = vld [vmem:[#allocation4 + $0x11f4] ss:$8 sps:$4 sm:$0xff]  }
 0x535   : > { %14038 = vmatpush1.bf16.msra.mxu0 %v20201_v54  ;;  %12725 = vmatprep.subr.bf16.mxu1 %v20206_v2  ;;  %v3993_v54 = vsel %vm1383_vm1, %v3991_v47, %v3992_v48  ;;  %v16483_v2 = vld [vmem:[%s20819_s25 + $0x1f0] sm:$0x3]  ;;  %v20245_v37 = vld [vmem:[#allocation4 + $0x23f4] ss:$8 sps:$4 sm:$0xff]   ;;  %v4016_v41 = vrot.slane %v16500_v22, 2  ;;  %v2144_v45 = vrot.slane %v22107_v27, 1 }
 0x536   : > { %14039 = vmatprep.subr.bf16.mxu0 %v20209_v3  ;;  %12739 = vmatprep.mubr.bf16.mxu1 %v2348_v46  ;;  %v4209_v58 = vpack.c.bf16 %v3993_v54, %v3969_v51  ;;  %v22090_v3 = vld [vmem:[%s20819_s25 + $0x198] sm:$0xfe]  ;;  %v16491_v46 = vld [vmem:[%s20819_s25 + $0x230] sm:$0xfc]  ;;  %v2167_v47 = vrot.slane %v22116_v34, 1  ;;  %v2168_v48 = vrot.slane %v22119_v35, 1 }
 0x537   : > { %v2146_v20 = vrot.slane %v22090_v3, 1  ;;  %v20240_v51 = vld [vmem:[#allocation4 + $0x11f0] ss:$8 sps:$4 sm:$0xff]  }
 0x538   : > { %12726 = vmatpush1.bf16.msra.mxu1 %v20204_v17  ;;  %14053 = vmatprep.mubr.bf16.mxu0 %v4209_v58  ;;  %v3989_v17 = vrot.slane %v16483_v2, 2  ;;  %v16072_v54 = vld [vmem:[%s20819_s25 + $0x298] sm:$0xfe]  ;;  %v16080_v55 = vld [vmem:[%s20819_s25 + $0x2d8] sm:$0x1] }
 0x539   : > { %14040 = vmatpush1.bf16.msra.mxu0 %v20207_v18  ;;  %12727 = vmatprep.subr.bf16.mxu1 %v20212_v21  ;;  %v16056_v18 = vld [vmem:[%s20819_s25 + $0x218] sm:$0xfe]  ;;  %v2148_v58 = vsel %vm806_vm0, %v2146_v20, %v2147_v32  ;;  %v16096_v60 = vld [vmem:[%s20819_s25 + $0x358] sm:$0x1]  ;;  %v16079_v19 = vld [vmem:[%s20819_s25 + $0x2d0] sm:$0x1] }
 0x53a   : > { %14041 = vmatprep.subr.bf16.mxu0 %v20215_v23  ;;  %v16492_v21 = vld [vmem:[%s20819_s25 + $0x238] sm:$0xfc]  ;;  %v2170_v33 = vrot.slane %v16056_v18, 1  ;;  %v22122_v38 = vsel %vm1383_vm1, %v3988_v13, %v3989_v17  ;;  %v16548_v3 = vld [vmem:[%s20819_s25 + $0x3f8] sm:$0x3]  ;;  %v2219_v11 = vrot.slane %v16096_v60, 1 }
 0x53b   : > { %v16508_v23 = vld [vmem:[%s20819_s25 + $0x2b8] sm:$0xfc]  ;;  %v4015_v40 = vrot.slane %v16492_v21, 2  ;;  %v16087_v20 = vld [vmem:[%s20819_s25 + $0x310] sm:$0xfe]  ;;  %v2192_v32 = vrot.slane %v16079_v19, 1 }
 0x53c   : > { %12728 = vmatpush1.bf16.msra.mxu1 %v20210_v25  ;;  %v16516_v25 = vld [vmem:[%s20819_s25 + $0x2f8] sm:$0x3]  ;;  %v4039_v42 = vrot.slane %v16508_v23, 2  ;;  %v16524_v61 = vld [vmem:[%s20819_s25 + $0x338] sm:$0xfc]  ;;  %v2172_v62 = vsel %vm806_vm0, %v2170_v33, %v2171_v39  ;;  %v2215_v33 = vrot.slane %v16087_v20, 1 }
 0x53d   : > { %14042 = vmatpush1.bf16.msra.mxu0 %v20213_v26  ;;  %12729 = vmatprep.subr.bf16.mxu1 %v20218_v29  ;;  %v22104_v26 = vld [vmem:[%s20819_s25 + $0x190] sm:$0xfe]  ;;  %v20237_v29 = vld [vmem:[#allocation4 + $0x23e0] ss:$8 sps:$4 sm:$0xff]   ;;  %v4040_v43 = vrot.slane %v16516_v25, 2  ;;  %v4017_v63 = vsel %vm1383_vm1, %v4015_v40, %v4016_v41  ;;  %v4063_v12 = vrot.slane %v16524_v61, 2  ;;  %v2356_v17 = vpack.c.bf16 %v2172_v62, %v2148_v58 }
 0x53e   : > { %14043 = vmatprep.subr.bf16.mxu0 %v20221_v30  ;;  %v22110_v30 = vsel %vm806_vm0, %v2119_v7, %v2120_v10  ;;  %v2143_v44 = vrot.slane %v22104_v26, 1  ;;  %v16088_v59 = vld [vmem:[%s20819_s25 + $0x318] sm:$0xfe]  ;;  %v16095_v21 = vld [vmem:[%s20819_s25 + $0x350] sm:$0x1] }
 0x53f   : > { %v4041_v0 = vsel %vm1383_vm1, %v4039_v42, %v4040_v43  ;;  %v16540_v2 = vld [vmem:[%s20819_s25 + $0x3b8] sm:$0xfc]  ;;  %v2218_v10 = vrot.slane %v16088_v59, 1  ;;  %v16523_v23 = vld [vmem:[%s20819_s25 + $0x330] sm:$0xfc]  ;;  %v2216_v34 = vrot.slane %v16095_v21, 1 }
 0x540   : > { %12730 = vmatpush1.bf16.msra.mxu1 %v20216_v49  ;;  %v16499_v49 = vld [vmem:[%s20819_s25 + $0x270] sm:$0x3]  ;;  %v4087_v14 = vrot.slane %v16540_v2, 2  ;;  %v4217_v18 = vpack.c.bf16 %v4041_v0, %v4017_v63  ;;  %v2145_v22 = vsel %vm806_vm0, %v2143_v44, %v2144_v45  ;;  %v16104_v35 = vld [vmem:[%s20819_s25 + $0x398] sm:$0xfe]  ;;  %v4060_v42 = vrot.slane %v16523_v23, 2 }
 0x541   : > { %14044 = vmatpush1.bf16.msra.mxu0 %v20219_v50  ;;  %12731 = vmatprep.subr.bf16.mxu1 %v20224_v52  ;;  %v16507_v50 = vld [vmem:[%s20819_s25 + $0x2b0] sm:$0xfc]  ;;  %v4013_v5 = vrot.slane %v16499_v49, 2  ;;  %v16112_v39 = vld [vmem:[%s20819_s25 + $0x3d8] sm:$0x1]  ;;  %v2217_v63 = vsel %vm806_vm0, %v2215_v33, %v2216_v34  ;;  %v15585_v33 = vld [vmem:[%s22826_s6 + $0x88] sm:$0xff] }
 0x542   : > { %14045 = vmatprep.subr.bf16.mxu0 %v20227_v53  ;;  %v20243_v52 = vld [vmem:[#allocation4 + $0x23f0] ss:$8 sps:$4 sm:$0xff]   ;;  %v4036_v6 = vrot.slane %v16507_v50, 2  ;;  %v20534_v34 = vmov 0.0  }
 0x543   : > { %v16515_v53 = vld [vmem:[%s20819_s25 + $0x2f0] sm:$0x3]  ;;  %v16120_v40 = vld [vmem:[%s20819_s25 + $0x418] sm:$0xfe]  ;;  %v16128_v41 = vld [vmem:[%s20819_s25 + $0x458] sm:$0x1] }
 0x544   : > { %12732 = vmatpush1.bf16.msra.mxu1 %v20222_v56  ;;  %v2347_v56 = vpack.c.bf16 %v22110_v30, %v22100_v24  ;;  %v4037_v7 = vrot.slane %v16515_v53, 2  ;;  %v2169_v24 = vsel %vm806_vm0, %v2167_v47, %v2168_v48  ;;  %v16547_v30 = vld [vmem:[%s20819_s25 + $0x3f0] sm:$0x3]  ;;  %v16564_v49 = vld [vmem:[%s20819_s25 + $0x478] sm:$0x3]  ;;  %v2243_v53 = vrot.slane %v16112_v39, 1 }
 0x545   : > { %14046 = vmatpush1.bf16.msra.mxu0 %v20225_v57  ;;  %12733 = vmatprep.subr.bf16.mxu1 %v20230_v1  ;;  %v4208_v57 = vpack.c.bf16 %v22122_v38, %v22113_v31  ;;  %v16532_v1 = vld [vmem:[%s20819_s25 + $0x378] sm:$0x3]  ;;  %v4085_v45 = vrot.slane %v16547_v30, 2  ;;  %v2355_v47 = vpack.c.bf16 %v2169_v24, %v2145_v22  ;;  %v16572_v50 = vld [vmem:[%s20819_s25 + $0x4b8] sm:$0xfc]  ;;  %v4112_v59 = vrot.slane %v16564_v49, 2 }
 0x546   : > { %14047 = vmatprep.subr.bf16.mxu0 %v20233_v4  ;;  %v4012_v4 = vrot.slane %v16491_v46, 2  ;;  %v4064_v13 = vrot.slane %v16532_v1, 2  ;;  %v4038_v26 = vsel %vm1383_vm1, %v4036_v6, %v4037_v7  ;;  %v16556_v46 = vld [vmem:[%s20819_s25 + $0x438] sm:$0xfc]  ;;  %v4135_v60 = vrot.slane %v16572_v50, 2  ;;  %14202 = vst [vmem:[#allocation3 + $0x20] sm:$0xff] %v20534_v34 }
 0x547   : > { %v4111_v58 = vrot.slane %v16556_v46, 2  ;;  %v16119_v6 = vld [vmem:[%s20819_s25 + $0x410] sm:$0xfe]  ;;  %v16127_v7 = vld [vmem:[%s20819_s25 + $0x450] sm:$0x1]  ;;  %14198 = vst [vmem:[#allocation3] sm:$0xff] %v20534_v34 }
 0x548   : > { %12734 = vmatpush1.bf16.msra.mxu1 %v20228_v8  ;;  %v2194_v8 = vrot.slane %v16072_v54, 1  ;;  %v4014_v25 = vsel %vm1383_vm1, %v4012_v4, %v4013_v5  ;;  %v2266_v54 = vrot.slane %v16120_v40, 1  ;;  %v16103_v4 = vld [vmem:[%s20819_s25 + $0x390] sm:$0xfe]  ;;  %v16111_v5 = vld [vmem:[%s20819_s25 + $0x3d0] sm:$0x1] }
 0x549   : > { %14048 = vmatpush1.bf16.msra.mxu0 %v20231_v9  ;;  %12735 = vmatprep.subr.bf16.mxu1 %v20236_v15  ;;  %v2195_v9 = vrot.slane %v16080_v55, 1  ;;  %v4088_v15 = vrot.slane %v16548_v3, 2  ;;  %v4216_v48 = vpack.c.bf16 %v4038_v26, %v4014_v25  ;;  %v2267_v55 = vrot.slane %v16128_v41, 1  ;;  %14204 = vst [vmem:[#allocation3 + $0x30] sm:$0x3] %v20534_v34  ;;  %14199 = vst [vmem:[#allocation3 + $0x8] sm:$0xff] %v20534_v34 }
 0x54a   : > { %14049 = vmatprep.subr.bf16.mxu0 %v20239_v16  ;;  %v16071_v16 = vld [vmem:[%s20819_s25 + $0x290] sm:$0xfe]  ;;  %v2263_v19 = vrot.slane %v16119_v6, 1  ;;  %v2264_v20 = vrot.slane %v16127_v7, 1  ;;  %14200 = vst [vmem:[#allocation3 + $0x10] sm:$0x3] %v20534_v34 }
 0x54b   : > { %v2196_v27 = vsel %vm806_vm0, %v2194_v8, %v2195_v9  ;;  %v2191_v31 = vrot.slane %v16071_v16, 1  ;;  %v4089_v38 = vsel %vm1383_vm1, %v4087_v14, %v4088_v15  ;;  %v2268_v3 = vsel %vm806_vm0, %v2266_v54, %v2267_v55  ;;  %v16555_v8 = vld [vmem:[%s20819_s25 + $0x430] sm:$0xfc]  ;;  %14201 = vst [vmem:[#allocation3 + $0x18] sm:$0x3] %v20534_v34  ;;  %14203 = vst [vmem:[#allocation3 + $0x28] sm:$0xff] %v20534_v34 }
 0x54c   : > { %12736 = vmatpush1.bf16.msra.mxu1 %v20234_v28  ;;  %v16531_v28 = vld [vmem:[%s20819_s25 + $0x370] sm:$0x3]  ;;  %v4113_v9 = vsel %vm1383_vm1, %v4111_v58, %v4112_v59  ;;  %v4108_v21 = vrot.slane %v16555_v8, 2  ;;  %14205 = vst [vmem:[#allocation3 + $0x38] sm:$0x3] %v20534_v34  ;;  %14206 = vst [vmem:[#allocation3 + $0x40] sm:$0xff] %v20534_v34 }
 0x54d   : > { %14050 = vmatpush1.bf16.msra.mxu0 %v20237_v29  ;;  %12737 = vmatprep.subr.bf16.mxu1 %v20242_v36  ;;  %v16539_v29 = vld [vmem:[%s20819_s25 + $0x3b0] sm:$0xfc]  ;;  %v2220_v36 = vsel %vm806_vm0, %v2218_v10, %v2219_v11  ;;  %v4061_v43 = vrot.slane %v16531_v28, 2  ;;  %v2193_v62 = vsel %vm806_vm0, %v2191_v31, %v2192_v32  ;;  %v16563_v11 = vld [vmem:[%s20819_s25 + $0x470] sm:$0x3]  ;;  %v15584_v32 = vld [vmem:[%s22826_s6 + $0x80] sm:$0xff] }
 0x54e   : > { %14051 = vmatprep.subr.bf16.mxu0 %v20245_v37  ;;  %v4065_v37 = vsel %vm1383_vm1, %v4063_v12, %v4064_v13  ;;  %v4084_v44 = vrot.slane %v16539_v29, 2  ;;  %v16571_v12 = vld [vmem:[%s20819_s25 + $0x4b0] sm:$0xfc]  ;;  %v16579_v13 = vld [vmem:[%s20819_s25 + $0x4f0] sm:$0x3]  ;;  %v2363_v14 = vpack.c.bf16 %v2217_v63, %v2193_v62  ;;  %v4109_v23 = vrot.slane %v16563_v11, 2 }
 0x54f   : > { %v4062_v0 = vsel %vm1383_vm1, %v4060_v42, %v4061_v43  ;;  %v4132_v24 = vrot.slane %v16571_v12, 2  ;;  %v4133_v25 = vrot.slane %v16579_v13, 2  ;;  %14207 = vst [vmem:[#allocation3 + $0x48] sm:$0xff] %v20534_v34  ;;  %14208 = vst [vmem:[#allocation3 + $0x50] sm:$0x3] %v20534_v34  ;;  %v15586_v39 = vld [vmem:[%s22826_s6 + $0x90] sm:$0xff] }
 0x550   : > { %12738 = vmatpush1.bf16.msra.mxu1 %v20240_v51  ;;  %v16580_v51 = vld [vmem:[%s20819_s25 + $0x4f8] sm:$0x3]  ;;  %v4086_v1 = vsel %vm1383_vm1, %v4084_v44, %v4085_v45  ;;  %v4110_v28 = vsel %vm1383_vm1, %v4108_v21, %v4109_v23  ;;  %14209 = vst [vmem:[#allocation3 + $0x58] sm:$0x3] %v20534_v34  ;;  %14210 = vst [vmem:[#allocation3 + $0x60] sm:$0xff] %v20534_v34  ;;  %v15570_v42 = vld [vmem:[%s22826_s6 + $0x10] sm:$0xff] }
 0x551   : > { %14052 = vmatpush1.bf16.msra.mxu0 %v20243_v52  ;;  %v2242_v52 = vrot.slane %v16104_v35, 1  ;;  %v4136_v61 = vrot.slane %v16580_v51, 2  ;;  %v4224_v15 = vpack.c.bf16 %v4086_v1, %v4062_v0  ;;  %v4134_v29 = vsel %vm1383_vm1, %v4132_v24, %v4133_v25  ;;  %14211 = vst [vmem:[#allocation3 + $0x68] sm:$0xff] %v20534_v34  ;;  %14212 = vst [vmem:[#allocation3 + $0x70] sm:$0x3] %v20534_v34  ;;  %v15587_v40 = vld [vmem:[%s22826_s6 + $0x98] sm:$0xff] }
 0x552   : > { %v4232_v31 = vpack.c.bf16 %v4134_v29, %v4110_v28  ;;  %14213 = vst [vmem:[#allocation3 + $0x78] sm:$0x3] %v20534_v34  ;;  %14214 = vst [vmem:[#allocation3 + $0x80] sm:$0xff] %v20534_v34  ;;  %v17794_v35 = vpack.c.bf16 %v15585_v33, %v15584_v32  ;;  %v17798_v41 = vpack.c.bf16 %v15587_v40, %v15586_v39  ;;  %v15571_v43 = vld [vmem:[%s22826_s6 + $0x18] sm:$0xff]  ;;  %v15588_v45 = vld [vmem:[%s22826_s6 + $0xa0] sm:$0xff]  ;;  %s15798_s25 = sshll.u32 %s416_s17, 4  ;;  %s22780_s25 = int_to_ptr.vmem [resolvable:$true] %s15798_s25 }
 0x553   : > { %12740 = vmatmul.mubr.bf16.vlgmr.msra.gmra.mrb[0].mxu1 %v2347_v56  ;;  %v2364_v56 = vpack.c.bf16 %v2220_v36, %v2196_v27  ;;  %v2244_v2 = vsel %vm806_vm0, %v2242_v52, %v2243_v53  ;;  %v4137_v10 = vsel %vm1383_vm1, %v4135_v60, %v4136_v61  ;;  %v2265_v27 = vsel %vm806_vm0, %v2263_v19, %v2264_v20  ;;  %v15568_v36 = vld [vmem:[%s22826_s6] sm:$0xff]  ;;  %v15589_v46 = vld [vmem:[%s22826_s6 + $0xa8] sm:$0xff]  ;;  %v15590_v51 = vld [vmem:[%s22826_s6 + $0xb0] sm:$0xff]  ;;  %s20443_s22 = scalar_lea.vmem %s22780_s25, 16  ;;  %p20450_p13 = scmp.lt.s32.totalorder %s22780_s25, %s20448_s29 }
 0x554   : > { %14054 = vmatmul.mubr.bf16.vlgmr.msra.gmra.mrb[0].mxu0 %v4208_v57  ;;  %12749 = vmatprep.mubr.bf16.mxu1 %v2356_v17  ;;  %v4225_v57 = vpack.c.bf16 %v4089_v38, %v4065_v37  ;;  %v2372_v16 = vpack.c.bf16 %v2268_v3, %v2244_v2  ;;  %v2239_v17 = vrot.slane %v16103_v4, 1  ;;  %v4233_v22 = vpack.c.bf16 %v4137_v10, %v4113_v9  ;;  %v15569_v37 = vld [vmem:[%s22826_s6 + $0x8] sm:$0xff]  ;;  %v15591_v52 = vld [vmem:[%s22826_s6 + $0xb8] sm:$0xff]  ;;  %v15574_v54 = vld [vmem:[%s22826_s6 + $0x30] sm:$0xff]  ;;  %p20444_p4 = scmp.ne.s32.totalorder %s22780_s25, %s20443_s22  ;;  %p20451_p1 = scmp.lt.s32.totalorder %s20449_s23, %s20443_s22 }
 0x555   : > { %14063 = vmatprep.mubr.bf16.mxu0 %v4217_v18  ;;  %v2240_v18 = vrot.slane %v16111_v5, 1  ;;  %14215 = vst [vmem:[#allocation3 + $0x88] sm:$0xff] %v20534_v34  ;;  %14216 = vst [vmem:[#allocation3 + $0x90] sm:$0x3] %v20534_v34  ;;  %v17796_v38 = vpack.c.bf16 %v15569_v37, %v15568_v36  ;;  %17795 = vmatprep.subr.bf16.mxu0 %v17794_v35  ;;  %v17800_v44 = vpack.c.bf16 %v15571_v43, %v15570_v42  ;;  %v15573_v49 = vld [vmem:[%s22826_s6 + $0x28] sm:$0xff]  ;;  %v15575_v55 = vld [vmem:[%s22826_s6 + $0x38] sm:$0xff] }
 0x556   : > { %14217 = vst [vmem:[#allocation3 + $0x98] sm:$0x3] %v20534_v34  ;;  %14218 = vst [vmem:[#allocation3 + $0xa0] sm:$0xff] %v20534_v34  ;;  %17826 = vmatprep.subr.bf16.mxu1 %v17794_v35  ;;  %v17806_v53 = vpack.c.bf16 %v15591_v52, %v15590_v51  ;;  %v15593_v58 = vld [vmem:[%s22826_s6 + $0xc8] sm:$0xff]  ;;  %v15576_v60 = vld [vmem:[%s22826_s6 + $0x40] sm:$0xff]  ;;  %p20445_p8 = pnand %p20444_p4, %p22857_p7  ;;  %p20452_p0 = por %p20451_p1, %p20450_p13 }
 0x557   : > { %v2241_v26 = vsel %vm806_vm0, %v2239_v17, %v2240_v18  ;;  %14219 = vst [vmem:[#allocation3 + $0xa8] sm:$0xff] %v20534_v34  ;;  %14220 = vst [vmem:[#allocation3 + $0xb0] sm:$0x3] %v20534_v34  ;;  %17797 = vmatpush3.bf16.msra.mxu0 %v17796_v38  ;;  %17834 = vmatpush3.bf16.msra.mxu1 %v17796_v38  ;;  %v15577_v61 = vld [vmem:[%s22826_s6 + $0x48] sm:$0xff]  ;;  %v15594_v63 = vld [vmem:[%s22826_s6 + $0xd0] sm:$0xff]  ;;  %v14096_v17 = vlaneseq }
 0x558   : > { %v2371_v30 = vpack.c.bf16 %v2265_v27, %v2241_v26  ;;  %14221 = vst [vmem:[#allocation3 + $0xb8] sm:$0x3] %v20534_v34  ;;  %14222 = vst [vmem:[#allocation3 + $0xc0] sm:$0xff] %v20534_v34  ;;  %17799 = vmatprep.subr.bf16.mxu0 %v17798_v41  ;;  %17827 = vmatprep.subr.bf16.mxu1 %v17798_v41  ;;  %v17812_v62 = vpack.c.bf16 %v15577_v61, %v15576_v60  ;;  %v15595_v0 = vld [vmem:[%s22826_s6 + $0xd8] sm:$0xff]  ;;  %v15578_v2 = vld [vmem:[%s22826_s6 + $0x50] sm:$0xff]  ;;  %p20446_p11 = pneg %p20445_p8 }
 0x559   : > { %14223 = vst [vmem:[#allocation3 + $0xc8] sm:$0xff] %v20534_v34  ;;  %14224 = vst [vmem:[#allocation3 + $0xd0] sm:$0x3] %v20534_v34  ;;  %v17814_v1 = vpack.c.bf16 %v15595_v0, %v15594_v63  ;;  %v15579_v3 = vld [vmem:[%s22826_s6 + $0x58] sm:$0xff]  ;;  %v15596_v5 = vld [vmem:[%s22826_s6 + $0xe0] sm:$0xff]  ;;  %v14097_v18 = vshrl.u32 %v14096_v17, 7 }
 0x55a   : > { %14225 = vst [vmem:[#allocation3 + $0xd8] sm:$0x3] %v20534_v34  ;;  %14226 = vst [vmem:[#allocation3 + $0xe0] sm:$0xff] %v20534_v34  ;;  %v17816_v4 = vpack.c.bf16 %v15579_v3, %v15578_v2  ;;  %v15597_v6 = vld [vmem:[%s22826_s6 + $0xe8] sm:$0xff]  ;;  %v15580_v8 = vld [vmem:[%s22826_s6 + $0x60] sm:$0xff]  ;;  %p20453_p6 = pnand %p20452_p0, %p20446_p11 }
 0x55b   : > { %12750 = vmatmul.mubr.bf16.gmra.mrb[4].mxu1 %v2355_v47  ;;  %14227 = vst [vmem:[#allocation3 + $0xe8] sm:$0xff] %v20534_v34  ;;  %14228 = vst [vmem:[#allocation3 + $0xf0] sm:$0x3] %v20534_v34  ;;  %17801 = vmatpush3.bf16.msra.mxu0 %v17800_v44  ;;  %v17802_v47 = vpack.c.bf16 %v15589_v46, %v15588_v45  ;;  %v17818_v7 = vpack.c.bf16 %v15597_v6, %v15596_v5  ;;  %v15581_v9 = vld [vmem:[%s22826_s6 + $0x68] sm:$0xff]  ;;  %v15598_v11 = vld [vmem:[%s22826_s6 + $0xf0] sm:$0xff]  ;;  %v22288_v25 = vsub.s32 1, %v14097_v18 }
 0x55c   : > { %14064 = vmatmul.mubr.bf16.gmra.mrb[4].mxu0 %v4216_v48  ;;  %12759 = vmatprep.mubr.bf16.mxu1 %v2364_v56  ;;  %14229 = vst [vmem:[#allocation3 + $0xf8] sm:$0x3] %v20534_v34  ;;  %14230 = vst [vmem:[#allocation3 + $0x100] sm:$0xff] %v20534_v34  ;;  %v15572_v48 = vld [vmem:[%s22826_s6 + $0x20] sm:$0xff]  ;;  %v17808_v56 = vpack.c.bf16 %v15575_v55, %v15574_v54  ;;  %v17820_v10 = vpack.c.bf16 %v15581_v9, %v15580_v8  ;;  %v15599_v12 = vld [vmem:[%s22826_s6 + $0xf8] sm:$0xff]  ;;  %v22302_v39 = vsub.s32 0, %v14097_v18 }
 0x55d   : > { %14073 = vmatprep.mubr.bf16.mxu0 %v4225_v57  ;;  %14231 = vst [vmem:[#allocation3 + $0x108] sm:$0xff] %v20534_v34  ;;  %14232 = vst [vmem:[#allocation3 + $0x110] sm:$0x3] %v20534_v34  ;;  %17835 = vmatpush3.bf16.msra.mxu1 %v17800_v44  ;;  %v17804_v50 = vpack.c.bf16 %v15573_v49, %v15572_v48  ;;  %v15592_v57 = vld [vmem:[%s22826_s6 + $0xc0] sm:$0xff]  ;;  %v17822_v13 = vpack.c.bf16 %v15599_v12, %v15598_v11  ;;  %v14380_v19 = vld [vmem:[#allocation3 + $0x8] sm:$0xfe] }
 0x55e   : > { %14233 = vst [vmem:[#allocation3 + $0x118] sm:$0x3] %v20534_v34  ;;  %14234 = vst [vmem:[#allocation3 + $0x120] sm:$0xff] %v20534_v34  ;;  %17803 = vmatprep.subr.bf16.mxu0 %v17802_v47  ;;  %17828 = vmatprep.subr.bf16.mxu1 %v17802_v47  ;;  %v17810_v59 = vpack.c.bf16 %v15593_v58, %v15592_v57  ;;  %v14382_v20 = vld [vmem:[#allocation3 + $0x18] sm:$0x1] }
 0x55f   : > { %14235 = vst [vmem:[#allocation3 + $0x128] sm:$0xff] %v20534_v34  ;;  %14236 = vst [vmem:[#allocation3 + $0x130] sm:$0x3] %v20534_v34  ;;  %17805 = vmatpush3.bf16.msra.mxu0 %v17804_v50  ;;  %v14335_v21 = vld [vmem:[#allocation10] sm:$0x3]  ;;  %v14447_v23 = vrot.slane %v14382_v20, 1 }
 0x560   : > { %14237 = vst [vmem:[#allocation3 + $0x138] sm:$0x3] %v20534_v34  ;;  %17807 = vmatprep.subr.bf16.mxu0 %v17806_v53  ;;  %v14508_v24 = vld [vmem:[#allocation10 + $0x2] sm:$0x3]  ;;  %v14553_v26 = vld [vmem:[#allocation3 + $0x8] sm:$0xfc]  ;;  %v22291_v28 = vrot.slane %v14335_v21, %v22288_v25  ;;  %v22316_v57 = vrot.slane %v14335_v21, %v22302_v39 }
 0x561   : > { %17836 = vmatpush3.bf16.msra.mxu1 %v17804_v50  ;;  %v14555_v27 = vld [vmem:[#allocation3 + $0x18] sm:$0x3]  ;;  %v22294_v29 = vrot.slane %v14508_v24, %v22288_v25  ;;  %v14681_v33 = vld [vmem:[#allocation10 + $0x4] sm:$0x3]  ;;  %v14379_v37 = vld [vmem:[#allocation3] sm:$0xfe]  ;;  %v22319_v58 = vrot.slane %v14508_v24, %v22302_v39 }
 0x562   : > { %17829 = vmatprep.subr.bf16.mxu1 %v17806_v53  ;;  %v14620_v32 = vrot.slane %v14555_v27, 2  ;;  %v14348_v34 = vmul.f32 0.0, %v22291_v28  ;;  %v22300_v36 = vrot.slane %v14681_v33, %v22288_v25  ;;  %v14381_v38 = vld [vmem:[#allocation3 + $0x10] sm:$0x1]  ;;  %v14094_v41 = vld [vmem:[#allocation7] sm:$0x3]  ;;  %v22325_v0 = vrot.slane %v14681_v33, %v22302_v39 }
 0x563   : > { %12760 = vmatmul.mubr.bf16.gmra.mrb[8].mxu1 %v2363_v14  ;;  %17809 = vmatpush3.bf16.msra.mxu0 %v17808_v56  ;;  %v15582_v14 = vld [vmem:[%s22826_s6 + $0x70] sm:$0xff]  ;;  %v14552_v42 = vld [vmem:[#allocation3] sm:$0xfc]  ;;  %v14443_v45 = vrot.slane %v14379_v37, 1  ;;  %v14444_v46 = vrot.slane %v14381_v38, 1  ;;  %v22307_v49 = vrot.slane %v14094_v41, %v22302_v39  ;;  %v14347_v18 = vmul.f32 0.0, %v22316_v57 }
 0x564   : > { %14074 = vmatmul.mubr.bf16.gmra.mrb[8].mxu0 %v4224_v15  ;;  %12769 = vmatprep.mubr.bf16.mxu1 %v2372_v16  ;;  %v15583_v15 = vld [vmem:[%s22826_s6 + $0x78] sm:$0xff]  ;;  %v14554_v43 = vld [vmem:[#allocation3 + $0x10] sm:$0x3]  ;;  %v14122_v44 = vld [vmem:[#allocation9] sm:$0x3]  ;;  %v14616_v51 = vrot.slane %v14552_v42, 2 }
 0x565   : > { %14083 = vmatprep.mubr.bf16.mxu0 %v4233_v22  ;;  %17837 = vmatpush3.bf16.msra.mxu1 %v17808_v56  ;;  %v17824_v16 = vpack.c.bf16 %v15583_v15, %v15582_v14  ;;  %v14446_v22 = vrot.slane %v14380_v19, 1  ;;  %v14742_v50 = vld [vmem:[#allocation10 + $0x6] sm:$0x3]  ;;  %v14617_v52 = vrot.slane %v14554_v43, 2  ;;  %v22310_v55 = vrot.slane %v14122_v44, %v22302_v39  ;;  %v15088_v8 = vld [vmem:[#allocation10 + $0xa] sm:$0x3] }
 0x566   : > { %17811 = vmatprep.subr.bf16.mxu0 %v17810_v59  ;;  %17830 = vmatprep.subr.bf16.mxu1 %v17810_v59  ;;  %v22313_v56 = vrot.slane %v14094_v41, %v22288_v25  ;;  %v14915_v59 = vld [vmem:[#allocation10 + $0x8] sm:$0x3]  ;;  %v22322_v63 = vrot.slane %v14122_v44, %v22288_v25  ;;  %v22331_v6 = vrot.slane %v14742_v50, %v22302_v39  ;;  %v15150_v14 = vld [vmem:[#allocation10 + $0xc] sm:$0x3] }
 0x567   : > { %17813 = vmatpush3.bf16.msra.mxu0 %v17812_v62  ;;  %v14618_v15 = vsel %vm1383_vm1, %v14616_v51, %v14617_v52  ;;  %v22355_v27 = vrot.slane %v15150_v14, %v22302_v39  ;;  %v22360_v33 = vrot.slane %v15088_v8, %v22288_v25 }
 0x568   : > { %17815 = vmatprep.subr.bf16.mxu0 %v17814_v1 }
 0x569   : > { %17838 = vmatpush3.bf16.msra.mxu1 %v17812_v62 }
 0x56a   : > { %17831 = vmatprep.subr.bf16.mxu1 %v17814_v1  ;;  %v14445_v1 = vsel %vm806_vm0, %v14443_v45, %v14444_v46 }
 0x56b   : > { %12770 = vmatmul.mubr.bf16.gmra.mrb[12].mxu1 %v2371_v30  ;;  %17817 = vmatpush3.bf16.msra.mxu0 %v17816_v4  ;;  %v14448_v30 = vsel %vm806_vm0, %v14446_v22, %v14447_v23  ;;  %v14520_v19 = vmul.f32 %v22319_v58, %v14445_v1  ;;  %v22347_v22 = vrot.slane %v14915_v59, %v22288_v25 }
 0x56c   : > { %14084 = vmatmul.mubr.bf16.gmra.mrb[12].mxu0 %v4232_v31  ;;  %17819 = vmatprep.subr.bf16.mxu0 %v17818_v7  ;;  %v14619_v31 = vrot.slane %v14553_v26, 2  ;;  %v14521_v35 = vmul.f32 %v22294_v29, %v14448_v30  ;;  %v22350_v23 = vrot.slane %v15088_v8, %v22302_v39  ;;  %v14693_v30 = vmul.f32 %v22325_v0, %v14618_v15 }
 0x56d   : > { %17839 = vmatpush3.bf16.msra.mxu1 %v17816_v4 }
 0x56e   : > { %17832 = vmatprep.subr.bf16.mxu1 %v17818_v7  ;;  %v14621_v40 = vsel %vm1383_vm1, %v14619_v31, %v14620_v32  ;;  %v14537_v47 = vadd.f32 %v14521_v35, %v14348_v34  ;;  %v22334_v7 = vrot.slane %v14742_v50, %v22288_v25 }
 0x56f   : > { %17821 = vmatpush3.bf16.msra.mxu0 %v17820_v10  ;;  %v14694_v48 = vmul.f32 %v22300_v36, %v14621_v40  ;;  %v14536_v40 = vadd.f32 %v14520_v19, %v14347_v18 }
 0x570   : > { %17823 = vmatprep.subr.bf16.mxu0 %v17822_v13 }
 0x571   : > { %17840 = vmatpush3.bf16.msra.mxu1 %v17820_v10  ;;  %v22328_v5 = vadd.f32 %v14694_v48, %v14537_v47  ;;  %v22374_v18 = vadd.f32 %v14693_v30, %v14536_v40 }
 0x572   : > { %17833 = vmatprep.subr.bf16.mxu1 %v17822_v13  ;;  %v22338_v13 = vrot.slane %v14915_v59, %v22302_v39 }
 0x573   : > { %17825 = vmatpush3.bf16.msra.mxu0 %v17824_v16 }
 0x575   : > { %17841 = vmatpush3.bf16.msra.mxu1 %v17824_v16 }
 0x626   : > { %v12741_v53 = vpop.f32.mrb[0].mxu1 }
 0x627   : > { %v14055_v54 = vpop.f32.mrb[0].mxu0  ;;  %v12743_v61 = vpop.f32.mrb[1].mxu1 }
 0x628   : > { %v17842_v60 = vadd.f32 %v14055_v54, %v12741_v53  ;;  %v14057_v62 = vpop.f32.mrb[1].mxu0  ;;  %v12745_v3 = vpop.f32.mrb[2].mxu1 }
 0x629   : > { %v17843_v2 = vadd.f32 %v14057_v62, %v12743_v61  ;;  %v14059_v4 = vpop.f32.mrb[2].mxu0  ;;  %v12747_v11 = vpop.f32.mrb[3].mxu1  ;;  %v15323_v62 = vld [vmem:[#allocation10 + $0xe] sm:$0x3] }
 0x62a   : > { %v14106_v9 = vmul.f32 %v17842_v60, %v22307_v49  ;;  %v17844_v10 = vadd.f32 %v14059_v4, %v12745_v3  ;;  %v14061_v12 = vpop.f32.mrb[3].mxu0 }
 0x62b   : > { %v14107_v16 = vmul.f32 %v17843_v2, %v22313_v56  ;;  %v17845_v17 = vadd.f32 %v14061_v12, %v12747_v11  ;;  %v22367_v11 = vrot.slane %v15150_v14, %v22288_v25  ;;  %v15496_v12 = vld [vmem:[#allocation10 + $0x10] sm:$0x3]  ;;  %v22378_v14 = vrot.slane %v15323_v62, %v22288_v25 }
 0x62c   : > { %v14134_v20 = vadd.f32 %v22310_v55, %v14106_v9  ;;  %v14108_v21 = vmul.f32 %v17844_v10, %v22307_v49  ;;  %v22386_v30 = vrot.slane %v15496_v12, %v22288_v25 }
 0x62d   : > { %v14135_v24 = vadd.f32 %v22322_v63, %v14107_v16  ;;  %v14109_v26 = vmul.f32 %v17845_v17, %v22313_v56  ;;  %v22372_v17 = vrot.slane %v15323_v62, %v22302_v39 }
 0x62e   : > { %vm14150_vm2 = vcmp.gt.f32.partialorder %v14134_v20, 0.0  ;;  %v14166_v31 = vmul.f32 0.01, %v14134_v20  ;;  %v14136_v32 = vadd.f32 %v22310_v55, %v14108_v21  ;;  %v12751_v37 = vpop.f32.mrb[4].mxu1 }
 0x62f   : > { %vm14151_vm3 = vcmp.gt.f32.partialorder %v14135_v24, 0.0  ;;  %v14167_v34 = vmul.f32 0.01, %v14135_v24  ;;  %v14137_v35 = vadd.f32 %v22322_v63, %v14109_v26  ;;  %v14065_v38 = vpop.f32.mrb[4].mxu0  ;;  %v12753_v44 = vpop.f32.mrb[5].mxu1 }
 0x630   : > { %v14182_v41 = vsel %vm14150_vm2, %v14134_v20, %v14166_v31  ;;  %vm14152_vm4 = vcmp.gt.f32.partialorder %v14136_v32, 0.0  ;;  %v14168_v42 = vmul.f32 0.01, %v14136_v32  ;;  %v17846_v43 = vadd.f32 %v14065_v38, %v12751_v37  ;;  %v14067_v45 = vpop.f32.mrb[5].mxu0  ;;  %v12755_v50 = vpop.f32.mrb[6].mxu1 }
 0x631   : > { %v14254_v46 = vrot.slane %v14182_v41, 7  ;;  %v14183_v47 = vsel %vm14151_vm3, %v14135_v24, %v14167_v34  ;;  %vm14153_vm5 = vcmp.gt.f32.partialorder %v14137_v35, 0.0  ;;  %v14169_v48 = vmul.f32 0.01, %v14137_v35  ;;  %v14069_v51 = vpop.f32.mrb[6].mxu0  ;;  %v12757_v60 = vpop.f32.mrb[7].mxu1 }
 0x632   : > { %v14255_v52 = vrot.slane %v14183_v47, 7  ;;  %v14184_v53 = vsel %vm14152_vm4, %v14136_v32, %v14168_v42  ;;  %v14110_v54 = vmul.f32 %v17846_v43, %v22307_v49  ;;  %v17847_v59 = vadd.f32 %v14067_v45, %v12753_v44  ;;  %v14071_v61 = vpop.f32.mrb[7].mxu0  ;;  %v22388_v34 = vld [vmem:[#allocation12] sm:$0x3] }
 0x633   : > { %14287 = vst [vmem:[#allocation3 + $0x20] sm:$0xfe] %v14254_v46  ;;  %14289 = vst [vmem:[#allocation3 + $0x30] sm:$0x1] %v14254_v46  ;;  %v14256_v1 = vrot.slane %v14184_v53, 7  ;;  %v14185_v2 = vsel %vm14153_vm5, %v14137_v35, %v14169_v48  ;;  %v17848_v3 = vadd.f32 %v14069_v51, %v12755_v50  ;;  %v17849_v4 = vadd.f32 %v14071_v61, %v12757_v60 }
 0x634   : > { %14288 = vst [vmem:[#allocation3 + $0x28] sm:$0xfe] %v14255_v52  ;;  %14290 = vst [vmem:[#allocation3 + $0x38] sm:$0x1] %v14255_v52  ;;  %v14257_v8 = vrot.slane %v14185_v2, 7  ;;  %v14138_v9 = vadd.f32 %v22310_v55, %v14110_v54  ;;  %v14111_v10 = vmul.f32 %v17847_v59, %v22313_v56  ;;  %v22383_v32 = vrot.slane %v15496_v12, %v22302_v39 }
 0x635   : > { %14291 = vst [vmem:[#allocation3 + $0x40] sm:$0xfe] %v14256_v1  ;;  %14293 = vst [vmem:[#allocation3 + $0x50] sm:$0x1] %v14256_v1  ;;  %v14112_v15 = vmul.f32 %v17848_v3, %v22307_v49  ;;  %v14113_v16 = vmul.f32 %v17849_v4, %v22313_v56  ;;  %v22397_v62 = vrot.slane %v22388_v34, %v22302_v39 }
 0x636   : > { %14292 = vst [vmem:[#allocation3 + $0x48] sm:$0xfe] %v14257_v8  ;;  %14294 = vst [vmem:[#allocation3 + $0x58] sm:$0x1] %v14257_v8  ;;  %vm14154_vm6 = vcmp.gt.f32.partialorder %v14138_v9, 0.0  ;;  %v14139_v20 = vadd.f32 %v22322_v63, %v14111_v10  ;;  %v12761_v26 = vpop.f32.mrb[8].mxu1 }
 0x637   : > { %v14170_v19 = vmul.f32 0.01, %v14138_v9  ;;  %v14140_v21 = vadd.f32 %v22310_v55, %v14112_v15  ;;  %v14141_v24 = vadd.f32 %v22322_v63, %v14113_v16  ;;  %v14075_v31 = vpop.f32.mrb[8].mxu0  ;;  %v12763_v40 = vpop.f32.mrb[9].mxu1 }
 0x638   : > { %vm14155_vm7 = vcmp.gt.f32.partialorder %v14139_v20, 0.0  ;;  %v14171_v37 = vmul.f32 0.01, %v14139_v20  ;;  %v17850_v38 = vadd.f32 %v14075_v31, %v12761_v26  ;;  %v14077_v41 = vpop.f32.mrb[9].mxu0  ;;  %v12765_v44 = vpop.f32.mrb[10].mxu1 }
 0x639   : > { %v14186_v35 = vsel %vm14154_vm6, %v14138_v9, %v14170_v19  ;;  %vm14156_vm8 = vcmp.gt.f32.partialorder %v14140_v21, 0.0  ;;  %v14172_v43 = vmul.f32 0.01, %v14140_v21  ;;  %vm14157_vm9 = vcmp.gt.f32.partialorder %v14141_v24, 0.0  ;;  %v14079_v50 = vpop.f32.mrb[10].mxu0  ;;  %v12767_v51 = vpop.f32.mrb[11].mxu1 }
 0x63a   : > { %v14258_v42 = vrot.slane %v14186_v35, 7  ;;  %v14187_v45 = vsel %vm14155_vm7, %v14139_v20, %v14171_v37  ;;  %v14173_v46 = vmul.f32 0.01, %v14141_v24  ;;  %v14114_v47 = vmul.f32 %v17850_v38, %v22307_v49  ;;  %v14081_v59 = vpop.f32.mrb[11].mxu0 }
 0x63b   : > { %v17851_v48 = vadd.f32 %v14077_v41, %v12763_v40  ;;  %v14259_v52 = vrot.slane %v14187_v45, 7  ;;  %v14188_v53 = vsel %vm14156_vm8, %v14140_v21, %v14172_v43  ;;  %v17852_v54 = vadd.f32 %v14079_v50, %v12765_v44  ;;  %v22391_v60 = vld [vmem:[#allocation3 + $0x28] sm:$0xff]  ;;  %v14789_v8 = vld [vmem:[#allocation3 + $0x38] sm:$0x1] }
 0x63c   : > { %14295 = vst [vmem:[#allocation3 + $0x60] sm:$0xfe] %v14258_v42  ;;  %14297 = vst [vmem:[#allocation3 + $0x70] sm:$0x1] %v14258_v42  ;;  %v22393_v61 = vld [vmem:[#allocation3 + $0x28] sm:$0xfe]  ;;  %v14189_v2 = vsel %vm14157_vm9, %v14141_v24, %v14173_v46  ;;  %v14142_v3 = vadd.f32 %v22310_v55, %v14114_v47  ;;  %v17853_v12 = vadd.f32 %v14081_v59, %v12767_v51 }
 0x63d   : > { %v14260_v1 = vrot.slane %v14188_v53, 7  ;;  %v14115_v4 = vmul.f32 %v17851_v48, %v22313_v56  ;;  %14296 = vst [vmem:[#allocation3 + $0x68] sm:$0xfe] %v14259_v52  ;;  %14298 = vst [vmem:[#allocation3 + $0x78] sm:$0x1] %v14259_v52  ;;  %v14261_v9 = vrot.slane %v14189_v2, 7  ;;  %v14116_v10 = vmul.f32 %v17852_v54, %v22307_v49 }
 0x63e   : > { %v14755_v15 = vmul.f32 %v22334_v7, %v22391_v60  ;;  %vm14158_vm10 = vcmp.gt.f32.partialorder %v14142_v3, 0.0  ;;  %v14174_v39 = vmul.f32 0.01, %v14142_v3  ;;  %v14853_v19 = vrot.slane %v22393_v61, 1  ;;  %v12771_v24 = vpop.f32.mrb[12].mxu1 }
 0x63f   : > { %14299 = vst [vmem:[#allocation3 + $0x80] sm:$0xfe] %v14260_v1  ;;  %14301 = vst [vmem:[#allocation3 + $0x90] sm:$0x1] %v14260_v1  ;;  %v14143_v16 = vadd.f32 %v22322_v63, %v14115_v4  ;;  %v14144_v20 = vadd.f32 %v22310_v55, %v14116_v10  ;;  %v14117_v21 = vmul.f32 %v17853_v12, %v22313_v56  ;;  %v14085_v26 = vpop.f32.mrb[12].mxu0  ;;  %v14854_v35 = vrot.slane %v14789_v8, 1 }
 0x640   : > { %14300 = vst [vmem:[#allocation3 + $0x88] sm:$0xfe] %v14261_v9  ;;  %14302 = vst [vmem:[#allocation3 + $0x98] sm:$0x1] %v14261_v9  ;;  %v22410_v31 = vadd.f32 %v14755_v15, %v22328_v5  ;;  %v14190_v37 = vsel %vm14158_vm10, %v14142_v3, %v14174_v39  ;;  %v17854_v40 = vadd.f32 %v14085_v26, %v12771_v24  ;;  %v12773_v41 = vpop.f32.mrb[13].mxu1  ;;  %v14087_v42 = vpop.f32.mrb[13].mxu0 }
 0x641   : > { %vm14159_vm11 = vcmp.gt.f32.partialorder %v14143_v16, 0.0  ;;  %v14175_v38 = vmul.f32 0.01, %v14143_v16  ;;  %v14262_v43 = vrot.slane %v14190_v37, 7  ;;  %vm14160_vm12 = vcmp.gt.f32.partialorder %v14144_v20, 0.0  ;;  %v12775_v46 = vpop.f32.mrb[14].mxu1 }
 0x642   : > { %v14176_v44 = vmul.f32 0.01, %v14144_v20  ;;  %v14145_v45 = vadd.f32 %v22322_v63, %v14117_v21  ;;  %v14089_v47 = vpop.f32.mrb[14].mxu0  ;;  %v14118_v50 = vmul.f32 %v17854_v40, %v22307_v49  ;;  %v17855_v51 = vadd.f32 %v14087_v42, %v12773_v41  ;;  %v12777_v52 = vpop.f32.mrb[15].mxu1  ;;  %v14960_v54 = vld [vmem:[#allocation3 + $0x28] sm:$0xfc] }
 0x643   : > { %v14191_v48 = vsel %vm14159_vm11, %v14143_v16, %v14175_v38  ;;  %v17856_v5 = vadd.f32 %v14089_v47, %v12775_v46  ;;  %v14091_v53 = vpop.f32.mrb[15].mxu0  ;;  %14303 = vst [vmem:[#allocation3 + $0xa0] sm:$0xfe] %v14262_v43  ;;  %14305 = vst [vmem:[#allocation3 + $0xb0] sm:$0x1] %v14262_v43  ;;  %v14855_v15 = vsel %vm806_vm0, %v14853_v19, %v14854_v35  ;;  %v15026_v39 = vrot.slane %v14960_v54, 2 }
 0x644   : > { %v14263_v59 = vrot.slane %v14191_v48, 7  ;;  %v14192_v61 = vsel %vm14160_vm12, %v14144_v20, %v14176_v44  ;;  %vm14161_vm13 = vcmp.gt.f32.partialorder %v14145_v45, 0.0  ;;  %v14177_v1 = vmul.f32 0.01, %v14145_v45  ;;  %v14962_v9 = vld [vmem:[#allocation3 + $0x38] sm:$0x3] }
 0x645   : > { %v14264_v2 = vrot.slane %v14192_v61, 7  ;;  %v14146_v3 = vadd.f32 %v22310_v55, %v14118_v50  ;;  %v14119_v4 = vmul.f32 %v17855_v51, %v22313_v56  ;;  %v14120_v8 = vmul.f32 %v17856_v5, %v22307_v49  ;;  %v22418_v16 = vld [vmem:[#allocation3 + $0x20] sm:$0xff]  ;;  %v15195_v40 = vld [vmem:[#allocation3 + $0x48] sm:$0xfe]  ;;  %v15197_v41 = vld [vmem:[#allocation3 + $0x58] sm:$0x1] }
 0x646   : > { %14304 = vst [vmem:[#allocation3 + $0xa8] sm:$0xfe] %v14263_v59  ;;  %14306 = vst [vmem:[#allocation3 + $0xb8] sm:$0x1] %v14263_v59  ;;  %v14193_v10 = vsel %vm14161_vm13, %v14145_v45, %v14177_v1  ;;  %v17857_v12 = vadd.f32 %v14091_v53, %v12777_v52  ;;  %v14928_v37 = vmul.f32 %v22347_v22, %v14855_v15  ;;  %v15027_v38 = vrot.slane %v14962_v9, 2  ;;  %v22429_v50 = vld [vmem:[#allocation3 + $0x48] sm:$0xff] }
 0x647   : > { %14307 = vst [vmem:[#allocation3 + $0xc0] sm:$0xfe] %v14264_v2  ;;  %14309 = vst [vmem:[#allocation3 + $0xd0] sm:$0x1] %v14264_v2  ;;  %v14265_v20 = vrot.slane %v14193_v10, 7  ;;  %vm14162_vm14 = vcmp.gt.f32.partialorder %v14146_v3, 0.0  ;;  %v14147_v24 = vadd.f32 %v22322_v63, %v14119_v4  ;;  %v14148_v26 = vadd.f32 %v22310_v55, %v14120_v8 }
 0x648   : > { %v14178_v21 = vmul.f32 0.01, %v14146_v3  ;;  %v14121_v49 = vmul.f32 %v17857_v12, %v22313_v56  ;;  %v15368_v42 = vld [vmem:[#allocation3 + $0x48] sm:$0xfc]  ;;  %v14754_v43 = vmul.f32 %v22331_v6, %v22418_v16  ;;  %v15370_v56 = vld [vmem:[#allocation3 + $0x58] sm:$0x3]  ;;  %v14944_v47 = vadd.f32 %v14928_v37, %v22410_v31 }
 0x649   : > { %14308 = vst [vmem:[#allocation3 + $0xc8] sm:$0xfe] %v14265_v20  ;;  %14310 = vst [vmem:[#allocation3 + $0xd8] sm:$0x1] %v14265_v20  ;;  %vm14163_vm15 = vcmp.gt.f32.partialorder %v14147_v24, 0.0  ;;  %vm14164_vm2 = vcmp.gt.f32.partialorder %v14148_v26, 0.0  ;;  %v15028_v48 = vsel %vm1383_vm1, %v15026_v39, %v15027_v38  ;;  %v15163_v8 = vmul.f32 %v22367_v11, %v22429_v50 }
 0x64a   : > { %v14194_v19 = vsel %vm14162_vm14, %v14146_v3, %v14178_v21  ;;  %v14179_v35 = vmul.f32 0.01, %v14147_v24  ;;  %v14180_v45 = vmul.f32 0.01, %v14148_v26  ;;  %v14149_v55 = vadd.f32 %v22322_v63, %v14121_v49  ;;  %v14786_v5 = vld [vmem:[#allocation3 + $0x20] sm:$0xfe] }
 0x64b   : > { %v14266_v44 = vrot.slane %v14194_v19, 7  ;;  %v15261_v51 = vrot.slane %v15195_v40, 1  ;;  %v14788_v52 = vld [vmem:[#allocation3 + $0x30] sm:$0x1]  ;;  %v14959_v61 = vld [vmem:[#allocation3 + $0x20] sm:$0xfc]  ;;  %v15101_v63 = vmul.f32 %v22360_v33, %v15028_v48  ;;  %v14770_v49 = vadd.f32 %v14754_v43, %v22374_v18 }
 0x64c   : > { %v14195_v46 = vsel %vm14163_vm15, %v14147_v24, %v14179_v35  ;;  %v14196_v54 = vsel %vm14164_vm2, %v14148_v26, %v14180_v45  ;;  %vm14165_vm3 = vcmp.gt.f32.partialorder %v14149_v55, 0.0  ;;  %v14181_v59 = vmul.f32 0.01, %v14149_v55  ;;  %v14961_v31 = vld [vmem:[#allocation3 + $0x30] sm:$0x3]  ;;  %v22445_v43 = vld [vmem:[#allocation3 + $0x40] sm:$0xff] }
 0x64d   : > { %14311 = vst [vmem:[#allocation3 + $0xe0] sm:$0xfe] %v14266_v44  ;;  %14313 = vst [vmem:[#allocation3 + $0xf0] sm:$0x1] %v14266_v44  ;;  %v14267_v53 = vrot.slane %v14195_v46, 7  ;;  %v14268_v1 = vrot.slane %v14196_v54, 7  ;;  %v15117_v15 = vadd.f32 %v15101_v63, %v14944_v47 }
 0x64e   : > { %v15262_v2 = vrot.slane %v15197_v41, 1  ;;  %v15434_v3 = vrot.slane %v15368_v42, 2  ;;  %v14197_v4 = vsel %vm14165_vm3, %v14149_v55, %v14181_v59  ;;  %v15435_v9 = vrot.slane %v15370_v56, 2  ;;  %v15194_v21 = vld [vmem:[#allocation3 + $0x40] sm:$0xfe] }
 0x64f   : > { %14312 = vst [vmem:[#allocation3 + $0xe8] sm:$0xfe] %v14267_v53  ;;  %14314 = vst [vmem:[#allocation3 + $0xf8] sm:$0x1] %v14267_v53  ;;  %v14850_v10 = vrot.slane %v14786_v5, 1  ;;  %v14269_v12 = vrot.slane %v14197_v4, 7  ;;  %v15179_v19 = vadd.f32 %v15163_v8, %v15117_v15  ;;  %v22440_v42 = vrot.slane %v22388_v34, %v22288_v25 }
 0x650   : > { %14315 = vst [vmem:[#allocation3 + $0x100] sm:$0xfe] %v14268_v1  ;;  %14317 = vst [vmem:[#allocation3 + $0x110] sm:$0x1] %v14268_v1  ;;  %v15263_v39 = vsel %vm806_vm0, %v15261_v51, %v15262_v2  ;;  %v14851_v20 = vrot.slane %v14788_v52, 1  ;;  %v15436_v26 = vsel %vm1383_vm1, %v15434_v3, %v15435_v9  ;;  %v15023_v37 = vrot.slane %v14959_v61, 2 }
 0x651   : > { %v15196_v24 = vld [vmem:[#allocation3 + $0x50] sm:$0x1]  ;;  %v15024_v38 = vrot.slane %v14961_v31, 2  ;;  %v15367_v40 = vld [vmem:[#allocation3 + $0x40] sm:$0xfc]  ;;  %v15336_v35 = vmul.f32 %v22378_v14, %v15263_v39  ;;  %v15258_v56 = vrot.slane %v15194_v21, 1  ;;  %v15509_v51 = vmul.f32 %v22386_v30, %v15436_v26 }
 0x652   : > { %v15369_v41 = vld [vmem:[#allocation3 + $0x50] sm:$0x3]  ;;  %14316 = vst [vmem:[#allocation3 + $0x108] sm:$0xfe] %v14269_v12  ;;  %14318 = vst [vmem:[#allocation3 + $0x118] sm:$0x1] %v14269_v12  ;;  %v14852_v44 = vsel %vm806_vm0, %v14850_v10, %v14851_v20  ;;  %v15162_v2 = vmul.f32 %v22355_v27, %v22445_v43  ;;  %v14350_v3 = vmul.f32 %v22391_v60, %v22291_v28 }
 0x653   : > { %v14384_v45 = vld [vmem:[#allocation3 + $0x28] sm:$0xfe]  ;;  %v14927_v55 = vmul.f32 %v22338_v13, %v14852_v44  ;;  %v15025_v18 = vsel %vm1383_vm1, %v15023_v37, %v15024_v38  ;;  %v15259_v46 = vrot.slane %v15196_v24, 1  ;;  %v14386_v47 = vld [vmem:[#allocation3 + $0x38] sm:$0x1]  ;;  %v15352_v48 = vadd.f32 %v15336_v35, %v15179_v19 }
 0x654   : > { %v15431_v5 = vrot.slane %v15367_v40, 2  ;;  %v15432_v52 = vrot.slane %v15369_v41, 2  ;;  %v14557_v53 = vld [vmem:[#allocation3 + $0x28] sm:$0xfc]  ;;  %v14559_v25 = vld [vmem:[#allocation3 + $0x38] sm:$0x3]  ;;  %v15100_v54 = vmul.f32 %v22350_v23, %v15025_v18 }
 0x655   : > { %v14943_v34 = vadd.f32 %v14927_v55, %v14770_v49  ;;  %v15260_v59 = vsel %vm806_vm0, %v15258_v56, %v15259_v46  ;;  %v14452_v61 = vrot.slane %v14384_v45, 1  ;;  %v14791_v1 = vld [vmem:[#allocation3 + $0x48] sm:$0xfe]  ;;  %v15525_v63 = vadd.f32 %v15509_v51, %v15352_v48  ;;  %v14793_v4 = vld [vmem:[#allocation3 + $0x58] sm:$0x1] }
 0x656   : > { %v14453_v31 = vrot.slane %v14386_v47, 1  ;;  %v15433_v9 = vsel %vm1383_vm1, %v15431_v5, %v15432_v52  ;;  %v14625_v10 = vrot.slane %v14557_v53, 2  ;;  %v14626_v12 = vrot.slane %v14559_v25, 2  ;;  %v14964_v15 = vld [vmem:[#allocation3 + $0x48] sm:$0xfc] }
 0x657   : > { %v15116_v8 = vadd.f32 %v15100_v54, %v14943_v34  ;;  %v14966_v39 = vld [vmem:[#allocation3 + $0x58] sm:$0x3]  ;;  %v15553_v20 = vadd.f32 %v22440_v42, %v15525_v63  ;;  %v15335_v21 = vmul.f32 %v22372_v17, %v15260_v59  ;;  %v14859_v26 = vrot.slane %v14791_v1, 1  ;;  %v15199_v49 = vld [vmem:[#allocation3 + $0x68] sm:$0xfe] }
 0x658   : > { %v14454_v24 = vsel %vm806_vm0, %v14452_v61, %v14453_v31  ;;  %v14627_v38 = vsel %vm1383_vm1, %v14625_v10, %v14626_v12  ;;  %v14860_v40 = vrot.slane %v14793_v4, 1  ;;  %v15201_v41 = vld [vmem:[#allocation3 + $0x78] sm:$0x1]  ;;  %v15508_v19 = vmul.f32 %v22383_v32, %v15433_v9  ;;  %v15372_v55 = vld [vmem:[#allocation3 + $0x68] sm:$0xfc] }
 0x659   : > { %v15178_v37 = vadd.f32 %v15162_v2, %v15116_v8  ;;  %v14523_v60 = vmul.f32 %v22294_v29, %v14454_v24  ;;  %15664 = vmatprep.mubr.f32.mxu0 %v15553_v20  ;;  %v14696_v35 = vmul.f32 %v22300_v36, %v14627_v38  ;;  %v15032_v44 = vrot.slane %v14964_v15, 2  ;;  %v15374_v18 = vld [vmem:[#allocation3 + $0x78] sm:$0x3]  ;;  %v22463_v48 = vld [vmem:[#allocation3 + $0x68] sm:$0xff]  ;;  %v14383_v5 = vld [vmem:[#allocation3 + $0x20] sm:$0xfe] }
 0x65a   : > { %v15033_v45 = vrot.slane %v14966_v39, 2  ;;  %v14861_v47 = vsel %vm806_vm0, %v14859_v26, %v14860_v40  ;;  %v15267_v51 = vrot.slane %v15199_v49, 1  ;;  %v14385_v52 = vld [vmem:[#allocation3 + $0x30] sm:$0x1]  ;;  %v14757_v53 = vmul.f32 %v22429_v50, %v22334_v7  ;;  %v14556_v63 = vld [vmem:[#allocation3 + $0x20] sm:$0xfc] }
 0x65b   : > { %v15351_v56 = vadd.f32 %v15335_v21, %v15178_v37  ;;  %v14539_v46 = vadd.f32 %v14523_v60, %v14350_v3  ;;  %v15268_v34 = vrot.slane %v15201_v41, 1  ;;  %v15440_v61 = vrot.slane %v15372_v55, 2  ;;  %v14558_v2 = vld [vmem:[#allocation3 + $0x30] sm:$0x3]  ;;  %v14790_v9 = vld [vmem:[#allocation3 + $0x40] sm:$0xfe] }
 0x65c   : > { %v15034_v25 = vsel %vm1383_vm1, %v15032_v44, %v15033_v45  ;;  %v15441_v1 = vrot.slane %v15374_v18, 2  ;;  %v14930_v3 = vmul.f32 %v22347_v22, %v14861_v47  ;;  %v15165_v31 = vmul.f32 %v22367_v11, %v22463_v48  ;;  %v14792_v20 = vld [vmem:[#allocation3 + $0x50] sm:$0x1]  ;;  %v14963_v21 = vld [vmem:[#allocation3 + $0x40] sm:$0xfc] }
 0x65d   : > { %v15524_v54 = vadd.f32 %v15508_v19, %v15351_v56  ;;  %v14712_v59 = vadd.f32 %v14696_v35, %v14539_v46  ;;  %v14449_v4 = vrot.slane %v14383_v5, 1  ;;  %v14450_v8 = vrot.slane %v14385_v52, 1  ;;  %v14965_v24 = vld [vmem:[#allocation3 + $0x50] sm:$0x3]  ;;  %v15198_v35 = vld [vmem:[#allocation3 + $0x60] sm:$0xfe] }
 0x65e   : > { %v15103_v15 = vmul.f32 %v22360_v33, %v15034_v25  ;;  %v15269_v39 = vsel %vm806_vm0, %v15267_v51, %v15268_v34  ;;  %v14349_v26 = vmul.f32 %v22418_v16, %v22316_v57  ;;  %v14622_v37 = vrot.slane %v14556_v63, 2  ;;  %v15200_v44 = vld [vmem:[#allocation3 + $0x70] sm:$0x1]  ;;  %v22482_v5 = vld [vmem:[#allocation3 + $0x60] sm:$0xff] }
 0x65f   : > { %v15552_v10 = vadd.f32 %v22397_v62, %v15524_v54  ;;  %v14773_v12 = vadd.f32 %v14757_v53, %v14712_v59  ;;  %v14451_v49 = vsel %vm806_vm0, %v14449_v4, %v14450_v8  ;;  %v14623_v60 = vrot.slane %v14558_v2, 2  ;;  %v15371_v52 = vld [vmem:[#allocation3 + $0x60] sm:$0xfc]  ;;  %v15373_v59 = vld [vmem:[#allocation3 + $0x70] sm:$0x3] }
 0x660   : > { %v15442_v40 = vsel %vm1383_vm1, %v15440_v61, %v15441_v1  ;;  %v14522_v41 = vmul.f32 %v22319_v58, %v14451_v49  ;;  %v14856_v19 = vrot.slane %v14790_v9, 1  ;;  %v14857_v55 = vrot.slane %v14792_v20, 1  ;;  %v14388_v61 = vld [vmem:[#allocation3 + $0x48] sm:$0xfe]  ;;  %v14390_v4 = vld [vmem:[#allocation3 + $0x58] sm:$0x1] }
 0x661   : > { %15665 = vmatmul.mubr.f32.vlgmr.msra.gmra.mrb[16].mxu0 %v15552_v10  ;;  %v14946_v38 = vadd.f32 %v14930_v3, %v14773_v12  ;;  %v14624_v45 = vsel %vm1383_vm1, %v14622_v37, %v14623_v60  ;;  %v15029_v18 = vrot.slane %v14963_v21, 2  ;;  %v15030_v56 = vrot.slane %v14965_v24, 2  ;;  %v14561_v8 = vld [vmem:[#allocation3 + $0x48] sm:$0xfc]  ;;  %v14563_v9 = vld [vmem:[#allocation3 + $0x58] sm:$0x3] }
 0x662   : > { %v15338_v16 = vmul.f32 %v22378_v14, %v15269_v39  ;;  %v14538_v47 = vadd.f32 %v14522_v41, %v14349_v26  ;;  %v14695_v51 = vmul.f32 %v22325_v0, %v14624_v45  ;;  %v15511_v53 = vmul.f32 %v22386_v30, %v15442_v40  ;;  %v14795_v26 = vld [vmem:[#allocation3 + $0x68] sm:$0xfe]  ;;  %v14797_v49 = vld [vmem:[#allocation3 + $0x78] sm:$0x1] }
 0x663   : > { %v15119_v46 = vadd.f32 %v15103_v15, %v14946_v38  ;;  %v14858_v25 = vsel %vm806_vm0, %v14856_v19, %v14857_v55  ;;  %v15264_v34 = vrot.slane %v15198_v35, 1  ;;  %v15265_v54 = vrot.slane %v15200_v44, 1  ;;  %v14968_v45 = vld [vmem:[#allocation3 + $0x68] sm:$0xfc]  ;;  %v14970_v55 = vld [vmem:[#allocation3 + $0x78] sm:$0x3] }
 0x664   : > { %v14711_v63 = vadd.f32 %v14695_v51, %v14538_v47  ;;  %v14756_v2 = vmul.f32 %v22445_v43, %v22331_v6  ;;  %v15031_v3 = vsel %vm1383_vm1, %v15029_v18, %v15030_v56  ;;  %v14929_v10 = vmul.f32 %v22338_v13, %v14858_v25  ;;  %v15203_v47 = vld [vmem:[#allocation3 + $0x88] sm:$0xfe] }
 0x665   : > { %v15181_v1 = vadd.f32 %v15165_v31, %v15119_v46  ;;  %v15164_v12 = vmul.f32 %v22355_v27, %v22482_v5  ;;  %v15266_v15 = vsel %vm806_vm0, %v15264_v34, %v15265_v54  ;;  %v15437_v39 = vrot.slane %v15371_v52, 2  ;;  %v15205_v34 = vld [vmem:[#allocation3 + $0x98] sm:$0x1]  ;;  %v15376_v54 = vld [vmem:[#allocation3 + $0x88] sm:$0xfc] }
 0x666   : > { %v14772_v21 = vadd.f32 %v14756_v2, %v14711_v63  ;;  %v15438_v31 = vrot.slane %v15373_v59, 2  ;;  %v14458_v24 = vrot.slane %v14388_v61, 1  ;;  %v15102_v37 = vmul.f32 %v22350_v23, %v15031_v3  ;;  %v15378_v59 = vld [vmem:[#allocation3 + $0x98] sm:$0x3] }
 0x667   : > { %v15354_v20 = vadd.f32 %v15338_v16, %v15181_v1  ;;  %v14459_v60 = vrot.slane %v14390_v4, 1  ;;  %v14631_v38 = vrot.slane %v14561_v8, 2  ;;  %v14632_v40 = vrot.slane %v14563_v9, 2  ;;  %v22506_v8 = vld [vmem:[#allocation3 + $0x88] sm:$0xff] }
 0x668   : > { %v14945_v19 = vadd.f32 %v14929_v10, %v14772_v21  ;;  %v15337_v35 = vmul.f32 %v22372_v17, %v15266_v15  ;;  %v14352_v44 = vmul.f32 %v22429_v50, %v22291_v28  ;;  %v14865_v46 = vrot.slane %v14795_v26, 1  ;;  %v14387_v10 = vld [vmem:[#allocation3 + $0x40] sm:$0xfe]  ;;  %v14389_v15 = vld [vmem:[#allocation3 + $0x50] sm:$0x1] }
 0x669   : > { %v15527_v41 = vadd.f32 %v15511_v53, %v15354_v20  ;;  %v14460_v18 = vsel %vm806_vm0, %v14458_v24, %v14459_v60  ;;  %v14633_v56 = vsel %vm1383_vm1, %v14631_v38, %v14632_v40  ;;  %v14866_v16 = vrot.slane %v14797_v49, 1  ;;  %v14562_v60 = vld [vmem:[#allocation3 + $0x50] sm:$0x3] }
 0x66a   : > { %v15118_v52 = vadd.f32 %v15102_v37, %v14945_v19  ;;  %v15439_v53 = vsel %vm1383_vm1, %v15437_v39, %v15438_v31  ;;  %v14525_v25 = vmul.f32 %v22294_v29, %v14460_v18  ;;  %v14759_v50 = vmul.f32 %v22463_v48, %v22334_v7 }
 0x66b   : > { %v15555_v51 = vadd.f32 %v22440_v42, %v15527_v41  ;;  %v14867_v61 = vsel %vm806_vm0, %v14865_v46, %v14866_v16  ;;  %v15038_v1 = vrot.slane %v14968_v45, 2  ;;  %v15039_v63 = vrot.slane %v14970_v55, 2  ;;  %v14967_v46 = vld [vmem:[#allocation3 + $0x60] sm:$0xfc]  ;;  %v14969_v16 = vld [vmem:[#allocation3 + $0x70] sm:$0x3] }
 0x66c   : > { %v15180_v2 = vadd.f32 %v15164_v12, %v15118_v52  ;;  %v14541_v3 = vadd.f32 %v14525_v25, %v14352_v44  ;;  %v14698_v4 = vmul.f32 %v22300_v36, %v14633_v56  ;;  %v15273_v9 = vrot.slane %v15203_v47, 1  ;;  %v14560_v12 = vld [vmem:[#allocation3 + $0x40] sm:$0xfc]  ;;  %v14796_v56 = vld [vmem:[#allocation3 + $0x70] sm:$0x1] }
 0x66d   : > { %15669 = vmatprep.mubr.f32.mxu0 %v15555_v51  ;;  %v15040_v39 = vsel %vm1383_vm1, %v15038_v1, %v15039_v63  ;;  %v15274_v20 = vrot.slane %v15205_v34, 1  ;;  %v15446_v21 = vrot.slane %v15376_v54, 2  ;;  %v15447_v31 = vrot.slane %v15378_v59, 2  ;;  %v14794_v44 = vld [vmem:[#allocation3 + $0x60] sm:$0xfe] }
 0x66e   : > { %v15353_v24 = vadd.f32 %v15337_v35, %v15180_v2  ;;  %v15510_v26 = vmul.f32 %v22383_v32, %v15439_v53  ;;  %v14714_v49 = vadd.f32 %v14698_v4, %v14541_v3  ;;  %v14932_v37 = vmul.f32 %v22347_v22, %v14867_v61  ;;  %v15204_v61 = vld [vmem:[#allocation3 + $0x90] sm:$0x1] }
 0x66f   : > { %v15105_v38 = vmul.f32 %v22360_v33, %v15040_v39  ;;  %v15167_v40 = vmul.f32 %v22367_v11, %v22506_v8  ;;  %v14455_v41 = vrot.slane %v14387_v10, 1  ;;  %v14456_v19 = vrot.slane %v14389_v15, 1  ;;  %v22525_v15 = vld [vmem:[#allocation3 + $0x80] sm:$0xff] }
 0x670   : > { %v15526_v45 = vadd.f32 %v15510_v26, %v15353_v24  ;;  %v14775_v55 = vadd.f32 %v14759_v50, %v14714_v49  ;;  %v15275_v18 = vsel %vm806_vm0, %v15273_v9, %v15274_v20  ;;  %v14351_v35 = vmul.f32 %v22445_v43, %v22316_v57  ;;  %v15202_v50 = vld [vmem:[#allocation3 + $0x80] sm:$0xfe]  ;;  %v15377_v20 = vld [vmem:[#allocation3 + $0x90] sm:$0x3]  ;;  %v14392_v49 = vld [vmem:[#allocation3 + $0x68] sm:$0xfe] }
 0x671   : > { %v15448_v47 = vsel %vm1383_vm1, %v15446_v21, %v15447_v31  ;;  %v14457_v51 = vsel %vm806_vm0, %v14455_v41, %v14456_v19  ;;  %v14628_v52 = vrot.slane %v14560_v12, 2  ;;  %v14629_v53 = vrot.slane %v14562_v60, 2  ;;  %v15375_v39 = vld [vmem:[#allocation3 + $0x80] sm:$0xfc]  ;;  %v14394_v41 = vld [vmem:[#allocation3 + $0x78] sm:$0x1] }
 0x672   : > { %v15554_v25 = vadd.f32 %v22397_v62, %v15526_v45  ;;  %v14948_v34 = vadd.f32 %v14932_v37, %v14775_v55  ;;  %v14524_v54 = vmul.f32 %v22319_v58, %v14457_v51  ;;  %v14862_v59 = vrot.slane %v14794_v44, 1  ;;  %v14565_v19 = vld [vmem:[#allocation3 + $0x68] sm:$0xfc]  ;;  %v14567_v44 = vld [vmem:[#allocation3 + $0x78] sm:$0x3] }
 0x673   : > { %v14630_v1 = vsel %vm1383_vm1, %v14628_v52, %v14629_v53  ;;  %v14863_v43 = vrot.slane %v14796_v56, 1  ;;  %v15035_v63 = vrot.slane %v14967_v46, 2  ;;  %v15036_v2 = vrot.slane %v14969_v16, 2  ;;  %v14799_v52 = vld [vmem:[#allocation3 + $0x88] sm:$0xfe] }
 0x674   : > { %15670 = vmatmul.mubr.f32.gmra.mrb[18].mxu0 %v15554_v25  ;;  %v15121_v3 = vadd.f32 %v15105_v38, %v14948_v34  ;;  %v14540_v4 = vadd.f32 %v14524_v54, %v14351_v35  ;;  %v14697_v9 = vmul.f32 %v22325_v0, %v14630_v1  ;;  %v14758_v10 = vmul.f32 %v22482_v5, %v22331_v6  ;;  %v14972_v1 = vld [vmem:[#allocation3 + $0x88] sm:$0xfc] }
 0x675   : > { %v14864_v21 = vsel %vm806_vm0, %v14862_v59, %v14863_v43  ;;  %v15037_v31 = vsel %vm1383_vm1, %v15035_v63, %v15036_v2  ;;  %v15270_v24 = vrot.slane %v15202_v50, 1  ;;  %v15271_v26 = vrot.slane %v15204_v61, 1  ;;  %v14974_v43 = vld [vmem:[#allocation3 + $0x98] sm:$0x3] }
 0x676   : > { %v15183_v37 = vadd.f32 %v15167_v40, %v15121_v3  ;;  %v15340_v12 = vmul.f32 %v22378_v14, %v15275_v18  ;;  %v14713_v60 = vadd.f32 %v14697_v9, %v14540_v4  ;;  %v14931_v38 = vmul.f32 %v22338_v13, %v14864_v21  ;;  %v14801_v18 = vld [vmem:[#allocation3 + $0x98] sm:$0x1]  ;;  %v15207_v9 = vld [vmem:[#allocation3 + $0xa8] sm:$0xfe] }
 0x677   : > { %v15513_v45 = vmul.f32 %v22386_v30, %v15448_v47  ;;  %v15166_v55 = vmul.f32 %v22355_v27, %v22525_v15  ;;  %v15443_v35 = vrot.slane %v15375_v39, 2  ;;  %v15444_v56 = vrot.slane %v15377_v20, 2 }
 0x678   : > { %v15356_v46 = vadd.f32 %v15340_v12, %v15183_v37  ;;  %v14774_v16 = vadd.f32 %v14758_v10, %v14713_v60  ;;  %v15104_v51 = vmul.f32 %v22350_v23, %v15037_v31  ;;  %v14464_v40 = vrot.slane %v14392_v49, 1  ;;  %v15209_v31 = vld [vmem:[#allocation3 + $0xb8] sm:$0x1]  ;;  %v22546_v60 = vld [vmem:[#allocation3 + $0xa8] sm:$0xff] }
 0x679   : > { %v15272_v53 = vsel %vm806_vm0, %v15270_v24, %v15271_v26  ;;  %v14465_v25 = vrot.slane %v14394_v41, 1  ;;  %v14637_v34 = vrot.slane %v14565_v19, 2  ;;  %v14638_v54 = vrot.slane %v14567_v44, 2  ;;  %v15380_v24 = vld [vmem:[#allocation3 + $0xa8] sm:$0xfc] }
 0x67a   : > { %v15529_v59 = vadd.f32 %v15513_v45, %v15356_v46  ;;  %v14947_v50 = vadd.f32 %v14931_v38, %v14774_v16  ;;  %v15445_v47 = vsel %vm1383_vm1, %v15443_v35, %v15444_v56  ;;  %v14354_v61 = vmul.f32 %v22463_v48, %v22291_v28  ;;  %v15382_v26 = vld [vmem:[#allocation3 + $0xb8] sm:$0x3]  ;;  %v14391_v45 = vld [vmem:[#allocation3 + $0x60] sm:$0xfe]  ;;  %v14393_v35 = vld [vmem:[#allocation3 + $0x70] sm:$0x1] }
 0x67b   : > { %v14466_v63 = vsel %vm806_vm0, %v14464_v40, %v14465_v25  ;;  %v14639_v2 = vsel %vm1383_vm1, %v14637_v34, %v14638_v54  ;;  %v14871_v3 = vrot.slane %v14799_v52, 1  ;;  %v14872_v4 = vrot.slane %v14801_v18, 1  ;;  %v14566_v25 = vld [vmem:[#allocation3 + $0x70] sm:$0x3] }
 0x67c   : > { %v15557_v10 = vadd.f32 %v22440_v42, %v15529_v59  ;;  %v15120_v39 = vadd.f32 %v15104_v51, %v14947_v50  ;;  %v15339_v20 = vmul.f32 %v22372_v17, %v15272_v53  ;;  %v14527_v21 = vmul.f32 %v22294_v29, %v14466_v63 }
 0x67d   : > { %v15512_v48 = vmul.f32 %v22383_v32, %v15445_v47  ;;  %v14700_v49 = vmul.f32 %v22300_v36, %v14639_v2  ;;  %v15044_v37 = vrot.slane %v14972_v1, 2  ;;  %v15045_v12 = vrot.slane %v14974_v43, 2  ;;  %v14798_v47 = vld [vmem:[#allocation3 + $0x80] sm:$0xfe]  ;;  %v14800_v2 = vld [vmem:[#allocation3 + $0x90] sm:$0x1] }
 0x67e   : > { %15674 = vmatprep.mubr.f32.mxu0 %v15557_v10  ;;  %v15182_v38 = vadd.f32 %v15166_v55, %v15120_v39  ;;  %v14543_v41 = vadd.f32 %v14527_v21, %v14354_v61  ;;  %v14873_v19 = vsel %vm806_vm0, %v14871_v3, %v14872_v4  ;;  %v15279_v44 = vrot.slane %v15207_v9, 1  ;;  %v14564_v55 = vld [vmem:[#allocation3 + $0x60] sm:$0xfc]  ;;  %v14973_v4 = vld [vmem:[#allocation3 + $0x90] sm:$0x3] }
 0x67f   : > { %v15046_v56 = vsel %vm1383_vm1, %v15044_v37, %v15045_v12  ;;  %v15280_v46 = vrot.slane %v15209_v31, 1  ;;  %v15452_v16 = vrot.slane %v15380_v24, 2  ;;  %v15453_v51 = vrot.slane %v15382_v26, 2  ;;  %v14971_v3 = vld [vmem:[#allocation3 + $0x80] sm:$0xfc] }
 0x680   : > { %v15355_v40 = vadd.f32 %v15339_v20, %v15182_v38  ;;  %v14716_v52 = vadd.f32 %v14700_v49, %v14543_v41  ;;  %v14761_v18 = vmul.f32 %v22506_v8, %v22334_v7  ;;  %v15169_v53 = vmul.f32 %v22367_v11, %v22546_v60  ;;  %v15208_v49 = vld [vmem:[#allocation3 + $0xb0] sm:$0x1] }
 0x681   : > { %v14934_v34 = vmul.f32 %v22347_v22, %v14873_v19  ;;  %v15107_v54 = vmul.f32 %v22360_v33, %v15046_v56  ;;  %v14461_v59 = vrot.slane %v14391_v45, 1  ;;  %v14462_v50 = vrot.slane %v14393_v35, 1  ;;  %v22566_v35 = vld [vmem:[#allocation3 + $0xa0] sm:$0xff] }
 0x682   : > { %v15528_v61 = vadd.f32 %v15512_v48, %v15355_v40  ;;  %v14777_v1 = vadd.f32 %v14761_v18, %v14716_v52  ;;  %v15281_v43 = vsel %vm806_vm0, %v15279_v44, %v15280_v46  ;;  %v14353_v63 = vmul.f32 %v22482_v5, %v22316_v57  ;;  %v15206_v48 = vld [vmem:[#allocation3 + $0xa0] sm:$0xfe]  ;;  %v15381_v52 = vld [vmem:[#allocation3 + $0xb0] sm:$0x3]  ;;  %v14396_v18 = vld [vmem:[#allocation3 + $0x88] sm:$0xfe] }
 0x683   : > { %v15454_v9 = vsel %vm1383_vm1, %v15452_v16, %v15453_v51  ;;  %v14463_v10 = vsel %vm806_vm0, %v14461_v59, %v14462_v50  ;;  %v14634_v39 = vrot.slane %v14564_v55, 2  ;;  %v14635_v20 = vrot.slane %v14566_v25, 2  ;;  %v15379_v56 = vld [vmem:[#allocation3 + $0xa0] sm:$0xfc]  ;;  %v14398_v59 = vld [vmem:[#allocation3 + $0x98] sm:$0x1] }
 0x684   : > { %v15556_v21 = vadd.f32 %v22397_v62, %v15528_v61  ;;  %v14950_v31 = vadd.f32 %v14934_v34, %v14777_v1  ;;  %v14526_v24 = vmul.f32 %v22319_v58, %v14463_v10  ;;  %v14868_v26 = vrot.slane %v14798_v47, 1  ;;  %v14569_v50 = vld [vmem:[#allocation3 + $0x88] sm:$0xfc]  ;;  %v14571_v47 = vld [vmem:[#allocation3 + $0x98] sm:$0x3] }
 0x685   : > { %v14636_v37 = vsel %vm1383_vm1, %v14634_v39, %v14635_v20  ;;  %v14869_v5 = vrot.slane %v14800_v2, 1  ;;  %v15041_v12 = vrot.slane %v14971_v3, 2  ;;  %v15042_v38 = vrot.slane %v14973_v4, 2  ;;  %v14805_v10 = vld [vmem:[#allocation3 + $0xb8] sm:$0x1] }
 0x686   : > { %15675 = vmatmul.mubr.f32.gmra.mrb[20].mxu0 %v15556_v21  ;;  %v15123_v41 = vadd.f32 %v15107_v54, %v14950_v31  ;;  %v15342_v19 = vmul.f32 %v22378_v14, %v15281_v43  ;;  %v14542_v44 = vadd.f32 %v14526_v24, %v14353_v63  ;;  %v14699_v45 = vmul.f32 %v22325_v0, %v14636_v37  ;;  %v14976_v37 = vld [vmem:[#allocation3 + $0xa8] sm:$0xfc] }
 0x687   : > { %v15515_v46 = vmul.f32 %v22386_v30, %v15454_v9  ;;  %v14870_v16 = vsel %vm806_vm0, %v14868_v26, %v14869_v5  ;;  %v15276_v51 = vrot.slane %v15206_v48, 1  ;;  %v15277_v40 = vrot.slane %v15208_v49, 1  ;;  %v14803_v9 = vld [vmem:[#allocation3 + $0xa8] sm:$0xfe]  ;;  %v14978_v5 = vld [vmem:[#allocation3 + $0xb8] sm:$0x3] }
 0x688   : > { %v15185_v55 = vadd.f32 %v15169_v53, %v15123_v41  ;;  %v14715_v25 = vadd.f32 %v14699_v45, %v14542_v44  ;;  %v14760_v34 = vmul.f32 %v22525_v15, %v22331_v6  ;;  %v15043_v54 = vsel %vm1383_vm1, %v15041_v12, %v15042_v38  ;;  %v15211_v44 = vld [vmem:[#allocation3 + $0xc8] sm:$0xfe] }
 0x689   : > { %v14933_v61 = vmul.f32 %v22338_v13, %v14870_v16  ;;  %v15168_v1 = vmul.f32 %v22355_v27, %v22566_v35  ;;  %v15278_v43 = vsel %vm806_vm0, %v15276_v51, %v15277_v40  ;;  %v15449_v63 = vrot.slane %v15379_v56, 2  ;;  %v15213_v51 = vld [vmem:[#allocation3 + $0xd8] sm:$0x1]  ;;  %v15384_v40 = vld [vmem:[#allocation3 + $0xc8] sm:$0xfc] }
 0x68a   : > { %v15358_v2 = vadd.f32 %v15342_v19, %v15185_v55  ;;  %v14776_v3 = vadd.f32 %v14760_v34, %v14715_v25  ;;  %v15450_v53 = vrot.slane %v15381_v52, 2  ;;  %v14470_v4 = vrot.slane %v14396_v18, 1  ;;  %v15386_v52 = vld [vmem:[#allocation3 + $0xd8] sm:$0x3] }
 0x68b   : > { %v15106_v39 = vmul.f32 %v22350_v23, %v15043_v54  ;;  %v14471_v20 = vrot.slane %v14398_v59, 1  ;;  %v14643_v21 = vrot.slane %v14569_v50, 2  ;;  %v14644_v31 = vrot.slane %v14571_v47, 2  ;;  %v22590_v50 = vld [vmem:[#allocation3 + $0xc8] sm:$0xff] }
 0x68c   : > { %v15531_v24 = vadd.f32 %v15515_v46, %v15358_v2  ;;  %v14949_v26 = vadd.f32 %v14933_v61, %v14776_v3  ;;  %v15341_v48 = vmul.f32 %v22372_v17, %v15278_v43  ;;  %v14356_v49 = vmul.f32 %v22506_v8, %v22291_v28  ;;  %v14395_v61 = vld [vmem:[#allocation3 + $0x80] sm:$0xfe]  ;;  %v14397_v43 = vld [vmem:[#allocation3 + $0x90] sm:$0x1] }
 0x68d   : > { %v14472_v12 = vsel %vm806_vm0, %v14470_v4, %v14471_v20  ;;  %v14645_v38 = vsel %vm1383_vm1, %v14643_v21, %v14644_v31  ;;  %v14877_v41 = vrot.slane %v14803_v9, 1  ;;  %v14878_v19 = vrot.slane %v14805_v10, 1  ;;  %v14570_v20 = vld [vmem:[#allocation3 + $0x90] sm:$0x3] }
 0x68e   : > { %v15559_v45 = vadd.f32 %v22440_v42, %v15531_v24  ;;  %v15122_v56 = vadd.f32 %v15106_v39, %v14949_v26  ;;  %v15451_v46 = vsel %vm1383_vm1, %v15449_v63, %v15450_v53  ;;  %v14529_v16 = vmul.f32 %v22294_v29, %v14472_v12 }
 0x68f   : > { %v14763_v8 = vmul.f32 %v22546_v60, %v22334_v7  ;;  %v14879_v18 = vsel %vm806_vm0, %v14877_v41, %v14878_v19  ;;  %v15050_v55 = vrot.slane %v14976_v37, 2  ;;  %v15051_v25 = vrot.slane %v14978_v5, 2  ;;  %v14975_v41 = vld [vmem:[#allocation3 + $0xa0] sm:$0xfc]  ;;  %v14977_v19 = vld [vmem:[#allocation3 + $0xb0] sm:$0x3] }
 0x690   : > { %15679 = vmatprep.mubr.f32.mxu0 %v15559_v45  ;;  %v15184_v34 = vadd.f32 %v15168_v1, %v15122_v56  ;;  %v14545_v54 = vadd.f32 %v14529_v16, %v14356_v49  ;;  %v14702_v59 = vmul.f32 %v22300_v36, %v14645_v38  ;;  %v15285_v47 = vrot.slane %v15211_v44, 1  ;;  %v14568_v1 = vld [vmem:[#allocation3 + $0x80] sm:$0xfc]  ;;  %v14804_v38 = vld [vmem:[#allocation3 + $0xb0] sm:$0x1] }
 0x691   : > { %v15052_v63 = vsel %vm1383_vm1, %v15050_v55, %v15051_v25  ;;  %v15286_v2 = vrot.slane %v15213_v51, 1  ;;  %v15458_v3 = vrot.slane %v15384_v40, 2  ;;  %v15459_v53 = vrot.slane %v15386_v52, 2  ;;  %v14802_v49 = vld [vmem:[#allocation3 + $0xa0] sm:$0xfe] }
 0x692   : > { %v15357_v4 = vadd.f32 %v15341_v48, %v15184_v34  ;;  %v15514_v9 = vmul.f32 %v22383_v32, %v15451_v46  ;;  %v14718_v10 = vadd.f32 %v14702_v59, %v14545_v54  ;;  %v14936_v39 = vmul.f32 %v22347_v22, %v14879_v18  ;;  %v15212_v18 = vld [vmem:[#allocation3 + $0xd0] sm:$0x1] }
 0x693   : > { %v15109_v21 = vmul.f32 %v22360_v33, %v15052_v63  ;;  %v15171_v31 = vmul.f32 %v22367_v11, %v22590_v50  ;;  %v14467_v24 = vrot.slane %v14395_v61, 1  ;;  %v14468_v26 = vrot.slane %v14397_v43, 1  ;;  %v22609_v43 = vld [vmem:[#allocation3 + $0xc0] sm:$0xff] }
 0x694   : > { %v15530_v37 = vadd.f32 %v15514_v9, %v15357_v4  ;;  %v14779_v5 = vadd.f32 %v14763_v8, %v14718_v10  ;;  %v15287_v12 = vsel %vm806_vm0, %v15285_v47, %v15286_v2  ;;  %v14355_v48 = vmul.f32 %v22525_v15, %v22316_v57  ;;  %v15210_v8 = vld [vmem:[#allocation3 + $0xc0] sm:$0xfe]  ;;  %v15385_v2 = vld [vmem:[#allocation3 + $0xd0] sm:$0x3]  ;;  %v14400_v10 = vld [vmem:[#allocation3 + $0xa8] sm:$0xfe] }
 0x695   : > { %v15460_v44 = vsel %vm1383_vm1, %v15458_v3, %v15459_v53  ;;  %v14469_v45 = vsel %vm806_vm0, %v14467_v24, %v14468_v26  ;;  %v14640_v56 = vrot.slane %v14568_v1, 2  ;;  %v14641_v46 = vrot.slane %v14570_v20, 2  ;;  %v15383_v63 = vld [vmem:[#allocation3 + $0xc0] sm:$0xfc]  ;;  %v14402_v24 = vld [vmem:[#allocation3 + $0xb8] sm:$0x1] }
 0x696   : > { %v15558_v16 = vadd.f32 %v22397_v62, %v15530_v37  ;;  %v14952_v51 = vadd.f32 %v14936_v39, %v14779_v5  ;;  %v14528_v40 = vmul.f32 %v22319_v58, %v14469_v45  ;;  %v14874_v52 = vrot.slane %v14802_v49, 1  ;;  %v14573_v26 = vld [vmem:[#allocation3 + $0xa8] sm:$0xfc]  ;;  %v14575_v49 = vld [vmem:[#allocation3 + $0xb8] sm:$0x3] }
 0x697   : > { %v14642_v55 = vsel %vm1383_vm1, %v14640_v56, %v14641_v46  ;;  %v14875_v15 = vrot.slane %v14804_v38, 1  ;;  %v15047_v25 = vrot.slane %v14975_v41, 2  ;;  %v15048_v34 = vrot.slane %v14977_v19, 2  ;;  %v14807_v56 = vld [vmem:[#allocation3 + $0xc8] sm:$0xfe] }
 0x698   : > { %15680 = vmatmul.mubr.f32.gmra.mrb[22].mxu0 %v15558_v16  ;;  %v15125_v54 = vadd.f32 %v15109_v21, %v14952_v51  ;;  %v14544_v59 = vadd.f32 %v14528_v40, %v14355_v48  ;;  %v14701_v47 = vmul.f32 %v22325_v0, %v14642_v55  ;;  %v14762_v61 = vmul.f32 %v22566_v35, %v22331_v6  ;;  %v14980_v55 = vld [vmem:[#allocation3 + $0xc8] sm:$0xfc] }
 0x699   : > { %v14876_v3 = vsel %vm806_vm0, %v14874_v52, %v14875_v15  ;;  %v15049_v53 = vsel %vm1383_vm1, %v15047_v25, %v15048_v34  ;;  %v15282_v4 = vrot.slane %v15210_v8, 1  ;;  %v15283_v9 = vrot.slane %v15212_v18, 1  ;;  %v14982_v15 = vld [vmem:[#allocation3 + $0xd8] sm:$0x3] }
 0x69a   : > { %v15187_v39 = vadd.f32 %v15171_v31, %v15125_v54  ;;  %v15344_v1 = vmul.f32 %v22378_v14, %v15287_v12  ;;  %v14717_v20 = vadd.f32 %v14701_v47, %v14544_v59  ;;  %v14935_v21 = vmul.f32 %v22338_v13, %v14876_v3  ;;  %v14809_v12 = vld [vmem:[#allocation3 + $0xd8] sm:$0x1]  ;;  %v15215_v47 = vld [vmem:[#allocation3 + $0xe8] sm:$0xfe] }
 0x69b   : > { %v15517_v37 = vmul.f32 %v22386_v30, %v15460_v44  ;;  %v15170_v5 = vmul.f32 %v22355_v27, %v22609_v43  ;;  %v15455_v48 = vrot.slane %v15383_v63, 2  ;;  %v15456_v38 = vrot.slane %v15385_v2, 2 }
 0x69c   : > { %v15360_v41 = vadd.f32 %v15344_v1, %v15187_v39  ;;  %v14778_v19 = vadd.f32 %v14762_v61, %v14717_v20  ;;  %v15108_v45 = vmul.f32 %v22350_v23, %v15049_v53  ;;  %v14476_v31 = vrot.slane %v14400_v10, 1  ;;  %v15217_v53 = vld [vmem:[#allocation3 + $0xf8] sm:$0x1]  ;;  %v22630_v20 = vld [vmem:[#allocation3 + $0xe8] sm:$0xff] }
 0x69d   : > { %v15284_v46 = vsel %vm806_vm0, %v15282_v4, %v15283_v9  ;;  %v14477_v16 = vrot.slane %v14402_v24, 1  ;;  %v14649_v51 = vrot.slane %v14573_v26, 2  ;;  %v14650_v40 = vrot.slane %v14575_v49, 2  ;;  %v15388_v4 = vld [vmem:[#allocation3 + $0xe8] sm:$0xfc] }
 0x69e   : > { %v15533_v52 = vadd.f32 %v15517_v37, %v15360_v41  ;;  %v14951_v8 = vadd.f32 %v14935_v21, %v14778_v19  ;;  %v15457_v44 = vsel %vm1383_vm1, %v15455_v48, %v15456_v38  ;;  %v14358_v18 = vmul.f32 %v22546_v60, %v22291_v28  ;;  %v15390_v9 = vld [vmem:[#allocation3 + $0xf8] sm:$0x3]  ;;  %v14399_v37 = vld [vmem:[#allocation3 + $0xa0] sm:$0xfe]  ;;  %v14401_v48 = vld [vmem:[#allocation3 + $0xb0] sm:$0x1] }
 0x69f   : > { %v14478_v25 = vsel %vm806_vm0, %v14476_v31, %v14477_v16  ;;  %v14651_v34 = vsel %vm1383_vm1, %v14649_v51, %v14650_v40  ;;  %v14883_v54 = vrot.slane %v14807_v56, 1  ;;  %v14884_v59 = vrot.slane %v14809_v12, 1  ;;  %v14574_v16 = vld [vmem:[#allocation3 + $0xb0] sm:$0x3] }
 0x6a0   : > { %v15561_v61 = vadd.f32 %v22440_v42, %v15533_v52  ;;  %v15124_v63 = vadd.f32 %v15108_v45, %v14951_v8  ;;  %v15343_v2 = vmul.f32 %v22372_v17, %v15284_v46  ;;  %v14531_v3 = vmul.f32 %v22294_v29, %v14478_v25 }
 0x6a1   : > { %v15516_v60 = vmul.f32 %v22383_v32, %v15457_v44  ;;  %v14704_v10 = vmul.f32 %v22300_v36, %v14651_v34  ;;  %v15056_v39 = vrot.slane %v14980_v55, 2  ;;  %v15057_v1 = vrot.slane %v14982_v15, 2  ;;  %v14806_v44 = vld [vmem:[#allocation3 + $0xc0] sm:$0xfe]  ;;  %v14808_v34 = vld [vmem:[#allocation3 + $0xd0] sm:$0x1] }
 0x6a2   : > { %15684 = vmatprep.mubr.f32.mxu1 %v15561_v61  ;;  %v15186_v21 = vadd.f32 %v15170_v5, %v15124_v63  ;;  %v14547_v24 = vadd.f32 %v14531_v3, %v14358_v18  ;;  %v14885_v26 = vsel %vm806_vm0, %v14883_v54, %v14884_v59  ;;  %v15291_v49 = vrot.slane %v15215_v47, 1  ;;  %v14572_v5 = vld [vmem:[#allocation3 + $0xa0] sm:$0xfc]  ;;  %v14981_v59 = vld [vmem:[#allocation3 + $0xd0] sm:$0x3] }
 0x6a3   : > { %v15058_v38 = vsel %vm1383_vm1, %v15056_v39, %v15057_v1  ;;  %v15292_v41 = vrot.slane %v15217_v53, 1  ;;  %v15464_v19 = vrot.slane %v15388_v4, 2  ;;  %v15465_v45 = vrot.slane %v15390_v9, 2  ;;  %v14979_v54 = vld [vmem:[#allocation3 + $0xc0] sm:$0xfc] }
 0x6a4   : > { %v15359_v31 = vadd.f32 %v15343_v2, %v15186_v21  ;;  %v14720_v56 = vadd.f32 %v14704_v10, %v14547_v24  ;;  %v14765_v12 = vmul.f32 %v22590_v50, %v22334_v7  ;;  %v15173_v46 = vmul.f32 %v22367_v11, %v22630_v20  ;;  %v15216_v10 = vld [vmem:[#allocation3 + $0xf0] sm:$0x1] }
 0x6a5   : > { %v14938_v51 = vmul.f32 %v22347_v22, %v14885_v26  ;;  %v15111_v40 = vmul.f32 %v22360_v33, %v15058_v38  ;;  %v14473_v52 = vrot.slane %v14399_v37, 1  ;;  %v14474_v8 = vrot.slane %v14401_v48, 1  ;;  %v22650_v48 = vld [vmem:[#allocation3 + $0xe0] sm:$0xff] }
 0x6a6   : > { %v15532_v18 = vadd.f32 %v15516_v60, %v15359_v31  ;;  %v14781_v55 = vadd.f32 %v14765_v12, %v14720_v56  ;;  %v15293_v15 = vsel %vm806_vm0, %v15291_v49, %v15292_v41  ;;  %v14357_v25 = vmul.f32 %v22566_v35, %v22316_v57  ;;  %v15214_v60 = vld [vmem:[#allocation3 + $0xe0] sm:$0xfe]  ;;  %v15389_v56 = vld [vmem:[#allocation3 + $0xf0] sm:$0x3]  ;;  %v14404_v12 = vld [vmem:[#allocation3 + $0xc8] sm:$0xfe] }
 0x6a7   : > { %v15466_v47 = vsel %vm1383_vm1, %v15464_v19, %v15465_v45  ;;  %v14475_v61 = vsel %vm806_vm0, %v14473_v52, %v14474_v8  ;;  %v14646_v63 = vrot.slane %v14572_v5, 2  ;;  %v14647_v2 = vrot.slane %v14574_v16, 2  ;;  %v15387_v38 = vld [vmem:[#allocation3 + $0xe0] sm:$0xfc]  ;;  %v14406_v52 = vld [vmem:[#allocation3 + $0xd8] sm:$0x1] }
 0x6a8   : > { %v15560_v3 = vadd.f32 %v22397_v62, %v15532_v18  ;;  %v14954_v53 = vadd.f32 %v14938_v51, %v14781_v55  ;;  %v14530_v4 = vmul.f32 %v22319_v58, %v14475_v61  ;;  %v14880_v9 = vrot.slane %v14806_v44, 1  ;;  %v14577_v8 = vld [vmem:[#allocation3 + $0xc8] sm:$0xfc]  ;;  %v14579_v44 = vld [vmem:[#allocation3 + $0xd8] sm:$0x3] }
 0x6a9   : > { %v14648_v39 = vsel %vm1383_vm1, %v14646_v63, %v14647_v2  ;;  %v14881_v35 = vrot.slane %v14808_v34, 1  ;;  %v15053_v1 = vrot.slane %v14979_v54, 2  ;;  %v15054_v21 = vrot.slane %v14981_v59, 2  ;;  %v14813_v61 = vld [vmem:[#allocation3 + $0xf8] sm:$0x1] }
 0x6aa   : > { %15685 = vmatmul.mubr.f32.vlgmr.msra.gmra.mrb[16].mxu1 %v15560_v3  ;;  %v15127_v24 = vadd.f32 %v15111_v40, %v14954_v53  ;;  %v15346_v26 = vmul.f32 %v22378_v14, %v15293_v15  ;;  %v14546_v49 = vadd.f32 %v14530_v4, %v14357_v25  ;;  %v14703_v37 = vmul.f32 %v22325_v0, %v14648_v39  ;;  %v14984_v39 = vld [vmem:[#allocation3 + $0xe8] sm:$0xfc] }
 0x6ab   : > { %v15519_v41 = vmul.f32 %v22386_v30, %v15466_v47  ;;  %v14882_v19 = vsel %vm806_vm0, %v14880_v9, %v14881_v35  ;;  %v15288_v45 = vrot.slane %v15214_v60, 1  ;;  %v15289_v31 = vrot.slane %v15216_v10, 1  ;;  %v14811_v47 = vld [vmem:[#allocation3 + $0xe8] sm:$0xfe]  ;;  %v14986_v35 = vld [vmem:[#allocation3 + $0xf8] sm:$0x3] }
 0x6ac   : > { %v15189_v5 = vadd.f32 %v15173_v46, %v15127_v24  ;;  %v14719_v16 = vadd.f32 %v14703_v37, %v14546_v49  ;;  %v14764_v51 = vmul.f32 %v22609_v43, %v22331_v6  ;;  %v15055_v40 = vsel %vm1383_vm1, %v15053_v1, %v15054_v21  ;;  %v15219_v49 = vld [vmem:[#allocation3 + $0x108] sm:$0xfe] }
 0x6ad   : > { %v14937_v18 = vmul.f32 %v22338_v13, %v14882_v19  ;;  %v15172_v55 = vmul.f32 %v22355_v27, %v22650_v48  ;;  %v15290_v15 = vsel %vm806_vm0, %v15288_v45, %v15289_v31  ;;  %v15461_v25 = vrot.slane %v15387_v38, 2  ;;  %v15221_v45 = vld [vmem:[#allocation3 + $0x118] sm:$0x1]  ;;  %v15392_v31 = vld [vmem:[#allocation3 + $0x108] sm:$0xfc] }
 0x6ae   : > { %v15362_v34 = vadd.f32 %v15346_v26, %v15189_v5  ;;  %v14780_v54 = vadd.f32 %v14764_v51, %v14719_v16  ;;  %v15462_v46 = vrot.slane %v15389_v56, 2  ;;  %v14482_v59 = vrot.slane %v14404_v12, 1  ;;  %v15394_v56 = vld [vmem:[#allocation3 + $0x118] sm:$0x3] }
 0x6af   : > { %v15110_v63 = vmul.f32 %v22350_v23, %v15055_v40  ;;  %v14483_v2 = vrot.slane %v14406_v52, 1  ;;  %v14655_v3 = vrot.slane %v14577_v8, 2  ;;  %v14656_v53 = vrot.slane %v14579_v44, 2  ;;  %v22674_v8 = vld [vmem:[#allocation3 + $0x108] sm:$0xff] }
 0x6b0   : > { %v15535_v4 = vadd.f32 %v15519_v41, %v15362_v34  ;;  %v14953_v9 = vadd.f32 %v14937_v18, %v14780_v54  ;;  %v15345_v60 = vmul.f32 %v22372_v17, %v15290_v15  ;;  %v14360_v10 = vmul.f32 %v22590_v50, %v22291_v28  ;;  %v14403_v18 = vld [vmem:[#allocation3 + $0xc0] sm:$0xfe]  ;;  %v14405_v15 = vld [vmem:[#allocation3 + $0xd0] sm:$0x1] }
 0x6b1   : > { %v14484_v1 = vsel %vm806_vm0, %v14482_v59, %v14483_v2  ;;  %v14657_v21 = vsel %vm1383_vm1, %v14655_v3, %v14656_v53  ;;  %v14889_v24 = vrot.slane %v14811_v47, 1  ;;  %v14890_v26 = vrot.slane %v14813_v61, 1  ;;  %v14578_v2 = vld [vmem:[#allocation3 + $0xd0] sm:$0x3] }
 0x6b2   : > { %v15563_v37 = vadd.f32 %v22440_v42, %v15535_v4  ;;  %v15126_v38 = vadd.f32 %v15110_v63, %v14953_v9  ;;  %v15463_v41 = vsel %vm1383_vm1, %v15461_v25, %v15462_v46  ;;  %v14533_v19 = vmul.f32 %v22294_v29, %v14484_v1 }
 0x6b3   : > { %v14767_v50 = vmul.f32 %v22630_v20, %v22334_v7  ;;  %v14891_v12 = vsel %vm806_vm0, %v14889_v24, %v14890_v26  ;;  %v15062_v5 = vrot.slane %v14984_v39, 2  ;;  %v15063_v16 = vrot.slane %v14986_v35, 2  ;;  %v14983_v24 = vld [vmem:[#allocation3 + $0xe0] sm:$0xfc]  ;;  %v14985_v26 = vld [vmem:[#allocation3 + $0xf0] sm:$0x3] }
 0x6b4   : > { %15689 = vmatprep.mubr.f32.mxu1 %v15563_v37  ;;  %v15188_v51 = vadd.f32 %v15172_v55, %v15126_v38  ;;  %v14549_v40 = vadd.f32 %v14533_v19, %v14360_v10  ;;  %v14706_v52 = vmul.f32 %v22300_v36, %v14657_v21  ;;  %v15297_v44 = vrot.slane %v15219_v49, 1  ;;  %v14576_v55 = vld [vmem:[#allocation3 + $0xc0] sm:$0xfc]  ;;  %v14812_v21 = vld [vmem:[#allocation3 + $0xf0] sm:$0x1] }
 0x6b5   : > { %v15064_v25 = vsel %vm1383_vm1, %v15062_v5, %v15063_v16  ;;  %v15298_v34 = vrot.slane %v15221_v45, 1  ;;  %v15470_v54 = vrot.slane %v15392_v31, 2  ;;  %v15471_v46 = vrot.slane %v15394_v56, 2  ;;  %v14810_v10 = vld [vmem:[#allocation3 + $0xe0] sm:$0xfe] }
 0x6b6   : > { %v15361_v59 = vadd.f32 %v15345_v60, %v15188_v51  ;;  %v15518_v47 = vmul.f32 %v22383_v32, %v15463_v41  ;;  %v14722_v61 = vadd.f32 %v14706_v52, %v14549_v40  ;;  %v14940_v63 = vmul.f32 %v22347_v22, %v14891_v12  ;;  %v15220_v12 = vld [vmem:[#allocation3 + $0x110] sm:$0x1] }
 0x6b7   : > { %v15113_v3 = vmul.f32 %v22360_v33, %v15064_v25  ;;  %v15175_v53 = vmul.f32 %v22367_v11, %v22674_v8  ;;  %v14479_v4 = vrot.slane %v14403_v18, 1  ;;  %v14480_v9 = vrot.slane %v14405_v15, 1  ;;  %v22693_v15 = vld [vmem:[#allocation3 + $0x100] sm:$0xff] }
 0x6b8   : > { %v15534_v39 = vadd.f32 %v15518_v47, %v15361_v59  ;;  %v14783_v35 = vadd.f32 %v14767_v50, %v14722_v61  ;;  %v15299_v1 = vsel %vm806_vm0, %v15297_v44, %v15298_v34  ;;  %v14359_v60 = vmul.f32 %v22609_v43, %v22316_v57  ;;  %v15218_v50 = vld [vmem:[#allocation3 + $0x100] sm:$0xfe]  ;;  %v15393_v34 = vld [vmem:[#allocation3 + $0x110] sm:$0x3]  ;;  %v14408_v61 = vld [vmem:[#allocation3 + $0xe8] sm:$0xfe] }
 0x6b9   : > { %v15472_v49 = vsel %vm1383_vm1, %v15470_v54, %v15471_v46  ;;  %v14481_v37 = vsel %vm806_vm0, %v14479_v4, %v14480_v9  ;;  %v14652_v38 = vrot.slane %v14576_v55, 2  ;;  %v14653_v41 = vrot.slane %v14578_v2, 2  ;;  %v15391_v25 = vld [vmem:[#allocation3 + $0x100] sm:$0xfc]  ;;  %v14410_v4 = vld [vmem:[#allocation3 + $0xf8] sm:$0x1] }
 0x6ba   : > { %v15562_v19 = vadd.f32 %v22397_v62, %v15534_v39  ;;  %v14956_v45 = vadd.f32 %v14940_v63, %v14783_v35  ;;  %v14532_v31 = vmul.f32 %v22319_v58, %v14481_v37  ;;  %v14886_v56 = vrot.slane %v14810_v10, 1  ;;  %v14581_v9 = vld [vmem:[#allocation3 + $0xe8] sm:$0xfc]  ;;  %v14583_v10 = vld [vmem:[#allocation3 + $0xf8] sm:$0x3] }
 0x6bb   : > { %v14654_v5 = vsel %vm1383_vm1, %v14652_v38, %v14653_v41  ;;  %v14887_v43 = vrot.slane %v14812_v21, 1  ;;  %v15059_v16 = vrot.slane %v14983_v24, 2  ;;  %v15060_v51 = vrot.slane %v14985_v26, 2  ;;  %v14815_v38 = vld [vmem:[#allocation3 + $0x108] sm:$0xfe] }
 0x6bc   : > { %15690 = vmatmul.mubr.f32.gmra.mrb[18].mxu1 %v15562_v19  ;;  %v15129_v40 = vadd.f32 %v15113_v3, %v14956_v45  ;;  %v14548_v52 = vadd.f32 %v14532_v31, %v14359_v60  ;;  %v14705_v44 = vmul.f32 %v22325_v0, %v14654_v5  ;;  %v14766_v18 = vmul.f32 %v22650_v48, %v22331_v6  ;;  %v14988_v5 = vld [vmem:[#allocation3 + $0x108] sm:$0xfc] }
 0x6bd   : > { %v14888_v54 = vsel %vm806_vm0, %v14886_v56, %v14887_v43  ;;  %v15061_v46 = vsel %vm1383_vm1, %v15059_v16, %v15060_v51  ;;  %v15294_v59 = vrot.slane %v15218_v50, 1  ;;  %v15295_v47 = vrot.slane %v15220_v12, 1  ;;  %v14990_v43 = vld [vmem:[#allocation3 + $0x118] sm:$0x3] }
 0x6be   : > { %v15191_v63 = vadd.f32 %v15175_v53, %v15129_v40  ;;  %v15348_v55 = vmul.f32 %v22378_v14, %v15299_v1  ;;  %v14721_v2 = vadd.f32 %v14705_v44, %v14548_v52  ;;  %v14939_v3 = vmul.f32 %v22338_v13, %v14888_v54  ;;  %v14817_v1 = vld [vmem:[#allocation3 + $0x118] sm:$0x1]  ;;  %v15223_v44 = vld [vmem:[#allocation3 + $0x128] sm:$0xfe] }
 0x6bf   : > { %v15521_v39 = vmul.f32 %v22386_v30, %v15472_v49  ;;  %v15174_v35 = vmul.f32 %v22355_v27, %v22693_v15  ;;  %v15467_v60 = vrot.slane %v15391_v25, 2  ;;  %v15468_v21 = vrot.slane %v15393_v34, 2 }
 0x6c0   : > { %v15364_v24 = vadd.f32 %v15348_v55, %v15191_v63  ;;  %v14782_v26 = vadd.f32 %v14766_v18, %v14721_v2  ;;  %v15112_v37 = vmul.f32 %v22350_v23, %v15061_v46  ;;  %v14488_v53 = vrot.slane %v14408_v61, 1  ;;  %v15225_v46 = vld [vmem:[#allocation3 + $0x138] sm:$0x1] }
 0x6c1   : > { %v15296_v41 = vsel %vm806_vm0, %v15294_v59, %v15295_v47  ;;  %v14489_v19 = vrot.slane %v14410_v4, 1  ;;  %v14661_v45 = vrot.slane %v14581_v9, 2  ;;  %v14662_v31 = vrot.slane %v14583_v10, 2  ;;  %v15396_v59 = vld [vmem:[#allocation3 + $0x128] sm:$0xfc] }
 0x6c2   : > { %v15537_v56 = vadd.f32 %v15521_v39, %v15364_v24  ;;  %v14955_v50 = vadd.f32 %v14939_v3, %v14782_v26  ;;  %v15469_v49 = vsel %vm1383_vm1, %v15467_v60, %v15468_v21  ;;  %v14362_v12 = vmul.f32 %v22630_v20, %v22291_v28  ;;  %v15398_v47 = vld [vmem:[#allocation3 + $0x138] sm:$0x3]  ;;  %v14407_v9 = vld [vmem:[#allocation3 + $0xe0] sm:$0xfe]  ;;  %v14409_v10 = vld [vmem:[#allocation3 + $0xf0] sm:$0x1] }
 0x6c3   : > { %v14490_v16 = vsel %vm806_vm0, %v14488_v53, %v14489_v19  ;;  %v14663_v51 = vsel %vm1383_vm1, %v14661_v45, %v14662_v31  ;;  %v14895_v40 = vrot.slane %v14815_v38, 1  ;;  %v14896_v52 = vrot.slane %v14817_v1, 1  ;;  %v14582_v38 = vld [vmem:[#allocation3 + $0xf0] sm:$0x3]  ;;  %v14814_v31 = vld [vmem:[#allocation3 + $0x100] sm:$0xfe] }
 0x6c4   : > { %v15565_v18 = vadd.f32 %v22440_v42, %v15537_v56  ;;  %v15128_v25 = vadd.f32 %v15112_v37, %v14955_v50  ;;  %v15347_v34 = vmul.f32 %v22372_v17, %v15296_v41  ;;  %v14535_v54 = vmul.f32 %v22294_v29, %v14490_v16  ;;  %v20246_v37 = vld [vmem:[#allocation3] sm:$0xff] }
 0x6c5   : > { %v15520_v28 = vmul.f32 %v22383_v32, %v15469_v49  ;;  %v14708_v20 = vmul.f32 %v22300_v36, %v14663_v51  ;;  %v15068_v61 = vrot.slane %v14988_v5, 2  ;;  %v15069_v63 = vrot.slane %v14990_v43, 2  ;;  %v14989_v5 = vld [vmem:[#allocation3 + $0x110] sm:$0x3] }
 0x6c6   : > { %15694 = vmatprep.mubr.f32.mxu1 %v15565_v18  ;;  %v15190_v55 = vadd.f32 %v15174_v35, %v15128_v25  ;;  %v14551_v2 = vadd.f32 %v14535_v54, %v14362_v12  ;;  %v14897_v3 = vsel %vm806_vm0, %v14895_v40, %v14896_v52  ;;  %v15303_v4 = vrot.slane %v15223_v44, 1  ;;  %v14580_v35 = vld [vmem:[#allocation3 + $0xe0] sm:$0xfc]  ;;  %v15224_v18 = vld [vmem:[#allocation3 + $0x130] sm:$0x1] }
 0x6c7   : > { %v15070_v39 = vsel %vm1383_vm1, %v15068_v61, %v15069_v63  ;;  %v15304_v29 = vrot.slane %v15225_v46, 1  ;;  %v15476_v60 = vrot.slane %v15396_v59, 2  ;;  %v15477_v21 = vrot.slane %v15398_v47, 2  ;;  %v15222_v44 = vld [vmem:[#allocation3 + $0x120] sm:$0xfe] }
 0x6c8   : > { %v15363_v24 = vadd.f32 %v15347_v34, %v15190_v55  ;;  %v14724_v26 = vadd.f32 %v14708_v20, %v14551_v2  ;;  %v14769_v36 = vmul.f32 %v22674_v8, %v22334_v7  ;;  %v15177_v53 = vmul.f32 %v20246_v37, %v22367_v11  ;;  %v14816_v7 = vld [vmem:[#allocation3 + $0x110] sm:$0x1]  ;;  %v14987_v8 = vld [vmem:[#allocation3 + $0x100] sm:$0xfc] }
 0x6c9   : > { %v14942_v1 = vmul.f32 %v22347_v22, %v14897_v3  ;;  %v15115_v41 = vmul.f32 %v22360_v33, %v15070_v39  ;;  %v14485_v19 = vrot.slane %v14407_v9, 1  ;;  %v14486_v45 = vrot.slane %v14409_v10, 1  ;;  %v15397_v20 = vld [vmem:[#allocation3 + $0x130] sm:$0x3] }
 0x6ca   : > { %v15536_v56 = vadd.f32 %v15520_v28, %v15363_v24  ;;  %v14785_v50 = vadd.f32 %v14769_v36, %v14724_v26  ;;  %v15305_v49 = vsel %vm806_vm0, %v15303_v4, %v15304_v29  ;;  %v14361_v12 = vmul.f32 %v22650_v48, %v22316_v57  ;;  %v15395_v28 = vld [vmem:[#allocation3 + $0x120] sm:$0xfc] }
 0x6cb   : > { %v15478_v11 = vsel %vm1383_vm1, %v15476_v60, %v15477_v21  ;;  %v14487_v43 = vsel %vm806_vm0, %v14485_v19, %v14486_v45  ;;  %v14658_v22 = vrot.slane %v14580_v35, 2  ;;  %v14659_v16 = vrot.slane %v14582_v38, 2 }
 0x6cc   : > { %v15564_v33 = vadd.f32 %v22397_v62, %v15536_v56  ;;  %v14958_v51 = vadd.f32 %v14942_v1, %v14785_v50  ;;  %v14534_v40 = vmul.f32 %v22319_v58, %v14487_v43  ;;  %v14892_v52 = vrot.slane %v14814_v31, 1 }
 0x6cd   : > { %v14660_v25 = vsel %vm1383_vm1, %v14658_v22, %v14659_v16  ;;  %v14893_v57 = vrot.slane %v14816_v7, 1  ;;  %v15065_v48 = vrot.slane %v14987_v8, 2  ;;  %v15066_v34 = vrot.slane %v14989_v5, 2 }
 0x6ce   : > { %15695 = vmatmul.mubr.f32.gmra.mrb[20].mxu1 %v15564_v33  ;;  %v15131_v54 = vadd.f32 %v15115_v41, %v14958_v51  ;;  %v15350_v46 = vmul.f32 %v22378_v14, %v15305_v49  ;;  %v14550_v59 = vadd.f32 %v14534_v40, %v14361_v12  ;;  %v14707_v47 = vmul.f32 %v22325_v0, %v14660_v25 }
 0x6cf   : > { %v14894_v61 = vsel %vm806_vm0, %v14892_v52, %v14893_v57  ;;  %v15300_v58 = vrot.slane %v15222_v44, 1  ;;  %v15301_v63 = vrot.slane %v15224_v18, 1  ;;  %v15523_v2 = vmul.f32 %v22386_v30, %v15478_v11 }
 0x6d0   : > { %v15193_v55 = vadd.f32 %v15177_v53, %v15131_v54  ;;  %v14723_v3 = vadd.f32 %v14707_v47, %v14550_v59  ;;  %v14768_v4 = vmul.f32 %v22693_v15, %v22331_v6  ;;  %v15067_v9 = vsel %vm1383_vm1, %v15065_v48, %v15066_v34 }
 0x6d1   : > { %v15473_v10 = vrot.slane %v15395_v28, 2  ;;  %v15474_v14 = vrot.slane %v15397_v20, 2  ;;  %v14941_v0 = vmul.f32 %v22338_v13, %v14894_v61  ;;  %v15302_v60 = vsel %vm806_vm0, %v15300_v58, %v15301_v63 }
 0x6d2   : > { %v15366_v39 = vadd.f32 %v15350_v46, %v15193_v55  ;;  %v14784_v29 = vadd.f32 %v14768_v4, %v14723_v3  ;;  %v15114_v26 = vmul.f32 %v22350_v23, %v15067_v9  ;;  %v15176_v30 = vmul.f32 %v20246_v37, %v22355_v27  ;;  %v22745_v27 = vld [vmem:[#allocation13] ss:$0 sm:$0xff] }
 0x6d3   : > { %v15475_v36 = vsel %vm1383_vm1, %v15473_v10, %v15474_v14  ;;  %v15349_v53 = vmul.f32 %v22372_v17, %v15302_v60  ;;  %vm15759_vm1 = vcmask 523264   ;;  %vm15783_vm11 = vcmask 516096  }
 0x6d4   : > { %v15539_v21 = vadd.f32 %v15523_v2, %v15366_v39  ;;  %v14957_v24 = vadd.f32 %v14941_v0, %v14784_v29  ;;  %v15522_v38 = vmul.f32 %v22383_v32, %v15475_v36 }
 0x6d6   : > { %v15567_v6 = vadd.f32 %v22440_v42, %v15539_v21  ;;  %v15130_v15 = vadd.f32 %v15114_v26, %v14957_v24  ;;  %v22748_v42 = vld [vmem:[#allocation15] ss:$0 sm:$0xff] }
 0x6d8   : > { %15699 = vmatprep.mubr.f32.mxu1 %v15567_v6  ;;  %v15192_v35 = vadd.f32 %v15176_v30, %v15130_v15 }
 0x6da   : > { %v15365_v13 = vadd.f32 %v15349_v53, %v15192_v35 }
 0x6dc   : > { %v15538_v1 = vadd.f32 %v15522_v38, %v15365_v13 }
 0x6de   : > { %v15566_v41 = vadd.f32 %v22397_v62, %v15538_v1 }
 0x6e0   : > { %15700 = vmatmul.mubr.f32.gmra.mrb[22].mxu1 %v15566_v41 }
 0x734   : > { %v17770_v19 = vpop.f32.mrb[16].mxu0 }
 0x735   : > { %v17771_v23 = vpop.f32.mrb[17].mxu0 }
 0x736   : > { %v17772_v45 = vadd.f32 %v17771_v23, %v17770_v19 }
 0x738   : > { %v15712_v37 = vmul.f32 %v17772_v45, %v22745_v27 }
 0x73a   : > { %v15727_v17 = vadd.f32 %v22748_v42, %v15712_v37 }
 0x73c   : > { %v15743_v32 = vmul.f32 0.01, %v15727_v17  ;;  %vm15735_vm0 = vcmp.gt.f32.partialorder %v15727_v17, 0.0 }
 0x73e   : > { %v15751_v12 = vsel %vm15735_vm0, %v15727_v17, %v15743_v32 }
 0x73f   : > { %v15760_v5 = vsel %vm15759_vm1, %v15751_v12, 0.0 }
 0x747   : > { %v17773_v31 = vpop.f32.mrb[18].mxu0 }
 0x748   : > { %v17774_v56 = vpop.f32.mrb[19].mxu0 }
 0x749   : > { %v17775_v50 = vadd.f32 %v17774_v56, %v17773_v31 }
 0x74b   : > { %v15713_v49 = vmul.f32 %v17775_v50, %v22745_v27 }
 0x74d   : > { %v15728_v62 = vadd.f32 %v22748_v42, %v15713_v49 }
 0x74f   : > { %vm15736_vm4 = vcmp.gt.f32.partialorder %v15728_v62, 0.0  ;;  %v15744_v7 = vmul.f32 0.01, %v15728_v62 }
 0x751   : > { %v15752_v8 = vsel %vm15736_vm4, %v15728_v62, %v15744_v7 }
 0x752   : > { %v15761_v11 = vsel %vm15759_vm1, %v15752_v8, 0.0 }
 0x753   : > { %v15762_v43 = vadd.f32 %v15761_v11, %v15760_v5 }
 0x759   : > { %v17776_v22 = vpop.f32.mrb[20].mxu0 }
 0x75a   : > { %v17777_v16 = vpop.f32.mrb[21].mxu0 }
 0x75b   : > { %v17778_v33 = vadd.f32 %v17777_v16, %v17776_v22 }
 0x75d   : > { %v15714_v51 = vmul.f32 %v17778_v33, %v22745_v27 }
 0x75f   : > { %v15729_v40 = vadd.f32 %v22748_v42, %v15714_v51 }
 0x761   : > { %vm15737_vm5 = vcmp.gt.f32.partialorder %v15729_v40, 0.0  ;;  %v15745_v52 = vmul.f32 0.01, %v15729_v40 }
 0x763   : > { %v15753_v44 = vsel %vm15737_vm5, %v15729_v40, %v15745_v52 }
 0x764   : > { %v15763_v18 = vsel %vm15759_vm1, %v15753_v44, 0.0 }
 0x765   : > { %v15764_v25 = vadd.f32 %v15763_v18, %v15762_v43 }
 0x76b   : > { %v17779_v57 = vpop.f32.mrb[22].mxu0 }
 0x76c   : > { %v17780_v48 = vpop.f32.mrb[23].mxu0 }
 0x76d   : > { %v17781_v34 = vadd.f32 %v17780_v48, %v17779_v57 }
 0x76f   : > { %v15715_v54 = vmul.f32 %v17781_v34, %v22745_v27 }
 0x771   : > { %v15730_v46 = vadd.f32 %v22748_v42, %v15715_v54 }
 0x773   : > { %vm15738_vm6 = vcmp.gt.f32.partialorder %v15730_v46, 0.0  ;;  %v15746_v59 = vmul.f32 0.01, %v15730_v46 }
 0x775   : > { %v15754_v47 = vsel %vm15738_vm6, %v15730_v46, %v15746_v59 }
 0x776   : > { %v15765_v28 = vsel %vm15759_vm1, %v15754_v47, 0.0 }
 0x777   : > { %v15766_v20 = vadd.f32 %v15765_v28, %v15764_v25 }
 0x77d   : > { %v17782_v61 = vpop.f32.mrb[16].mxu1 }
 0x77e   : > { %v17783_v58 = vpop.f32.mrb[17].mxu1 }
 0x77f   : > { %v17784_v63 = vadd.f32 %v17783_v58, %v17782_v61 }
 0x781   : > { %v15716_v55 = vmul.f32 %v17784_v63, %v22745_v27 }
 0x783   : > { %v15731_v2 = vadd.f32 %v22748_v42, %v15716_v55 }
 0x785   : > { %vm15739_vm7 = vcmp.gt.f32.partialorder %v15731_v2, 0.0  ;;  %v15747_v3 = vmul.f32 0.01, %v15731_v2 }
 0x787   : > { %v15755_v4 = vsel %vm15739_vm7, %v15731_v2, %v15747_v3 }
 0x788   : > { %v15767_v9 = vsel %vm15759_vm1, %v15755_v4, 0.0 }
 0x789   : > { %v15768_v10 = vadd.f32 %v15767_v9, %v15766_v20 }
 0x78f   : > { %v17785_v14 = vpop.f32.mrb[18].mxu1 }
 0x790   : > { %v17786_v39 = vpop.f32.mrb[19].mxu1 }
 0x791   : > { %v17787_v29 = vadd.f32 %v17786_v39, %v17785_v14 }
 0x793   : > { %v15717_v0 = vmul.f32 %v17787_v29, %v22745_v27 }
 0x795   : > { %v15732_v60 = vadd.f32 %v22748_v42, %v15717_v0 }
 0x797   : > { %vm15740_vm8 = vcmp.gt.f32.partialorder %v15732_v60, 0.0  ;;  %v15748_v21 = vmul.f32 0.01, %v15732_v60 }
 0x799   : > { %v15756_v24 = vsel %vm15740_vm8, %v15732_v60, %v15748_v21 }
 0x79a   : > { %v15769_v26 = vsel %vm15759_vm1, %v15756_v24, 0.0 }
 0x79b   : > { %v15770_v30 = vadd.f32 %v15769_v26, %v15768_v10 }
 0x7a1   : > { %v17788_v36 = vpop.f32.mrb[20].mxu1 }
 0x7a2   : > { %v17789_v6 = vpop.f32.mrb[21].mxu1 }
 0x7a3   : > { %v17790_v15 = vadd.f32 %v17789_v6, %v17788_v36 }
 0x7a5   : > { %v15718_v53 = vmul.f32 %v17790_v15, %v22745_v27 }
 0x7a7   : > { %v15733_v35 = vadd.f32 %v22748_v42, %v15718_v53 }
 0x7a9   : > { %vm15741_vm9 = vcmp.gt.f32.partialorder %v15733_v35, 0.0  ;;  %v15749_v38 = vmul.f32 0.01, %v15733_v35 }
 0x7ab   : > { %v15757_v13 = vsel %vm15741_vm9, %v15733_v35, %v15749_v38 }
 0x7ac   : > { %v15771_v1 = vsel %vm15759_vm1, %v15757_v13, 0.0 }
 0x7ad   : > { %v15772_v41 = vadd.f32 %v15771_v1, %v15770_v30 }
 0x7b3   : > { %v17791_v19 = vpop.f32.mrb[22].mxu1 }
 0x7b4   : > { %v17792_v23 = vpop.f32.mrb[23].mxu1 }
 0x7b5   : > { %v17793_v45 = vadd.f32 %v17792_v23, %v17791_v19 }
 0x7b7   : > { %v15719_v37 = vmul.f32 %v17793_v45, %v22745_v27 }
 0x7b9   : > { %v15734_v17 = vadd.f32 %v22748_v42, %v15719_v37 }
 0x7bb   : > { %vm15742_vm10 = vcmp.gt.f32.partialorder %v15734_v17, 0.0  ;;  %v15750_v31 = vmul.f32 0.01, %v15734_v17 }
 0x7bd   : > { %v15758_v56 = vsel %vm15742_vm10, %v15734_v17, %v15750_v31 }
 0x7be   : > { %v15773_v50 = vsel %vm15759_vm1, %v15758_v56, 0.0 }
 0x7bf   : > { %v15774_v32 = vadd.f32 %v15773_v50, %v15772_v41 }
 0x7c1   : > { %v15775_v49 = vrot.slane %v15774_v32, 4 }
 0x7c3   : > { %v15776_v62 = vadd.f32 %v15775_v49, %v15774_v32 }
 0x7c5   : > { %v15777_v12 = vrot.slane %v15776_v62, 2 }
 0x7c7   : > { %v15778_v7 = vadd.f32 %v15777_v12, %v15776_v62 }
 0x7c9   : > { %v15779_v8 = vrot.slane %v15778_v7, 1 }
 0x7cb   : > { %v15780_v5 = vadd.f32 %v15779_v8, %v15778_v7 }
 0x7cd   : > { %v15782_v27 = vmul.f32 0.015625, %v15780_v5 }
 0x7cf   : > { %15784 = vst.msk [vmem:[%s416_s17] sm:$0x1] %vm15783_vm11, %v15782_v27 }
 0x7d0   : > { %20456 = shalt.err (!%p20453_p6)
}
 0x7d1   : > { %s20457_s14 = scalar_lea.hbm %s22778_s2, 16  ;;  %s20461_s16 = scalar_lea.hbm %s22829_s9, 32 }
 0x7d2   : > { %p20458_p5 = scmp.ne.s32.totalorder %s22778_s2, %s20457_s14  ;;  %p20462_p10 = scmp.lt.u32.totalorder %s22778_s2, %s22829_s9 }
 0x7d3   : > { %p20463_p2 = scmp.lt.u32.totalorder %s20461_s16, %s20457_s14  ;;  %p20465_p4 = scmp.lt.u32.totalorder %s20457_s14, %s22778_s2 }
 0x7d4   : > { %p20459_p9 = pnand %p20458_p5, %p22857_p7 }
 0x7d5   : > { %p20464_p3 = por %p20463_p2, %p20462_p10 }
 0x7d6   : > { %p20460_p12 = pneg %p20459_p9 }
 0x7d7   : > { %p20466_p8 = por %p20465_p4, %p20464_p3 }
 0x7d9   : > { %p20467_p11 = pnand %p20466_p8, %p20460_p12 }
 0x7db   : > { %20470 = shalt.err (!%p20467_p11)
}
 0x7dc   : > { %18431 = dma.vmem_to_hbm [thread:$0]  (%p22857_p7), %s22780_s25, 16, %s22778_s2, %s15786_s18  }
 0x7dd PF: > { %p18473_p13 = scmp.ge.s32.totalorder %s20521_s12, 2  ;;  %s15810_s26 = sand.u32 1, %s20509_s30  }
 0x7de   : > { %p22858_p1 = scmp.ne.s32.totalorder %s22842_s20, 0  ;;  %s15811_s24 = scalar_lea.sflag [#allocation6], %s15810_s26 }
 0x7e0   : > { %p18456_p0 = pnand %p18473_p13, %p22858_p1 }
 0x7e2   : > { %20504 = dma.done.wait (!%p18456_p0), %s15811_s24, 16  }
 0x7e3   : > { %20506 = vsyncadd (!%p18456_p0), %s15811_s24, 4294967280  ;;  %s22859_s12 = sld [smem:[#allocation23_spill]]  ;;  %s22860_s17 = sld [smem:[#allocation22_spill]] }
 0x7e4   : > { %s22861_s11 = sld [smem:[#allocation24_spill]]  ;;  %s22862_s30 = smov %s20513_s10 }
 0x7e9   : > { %p23_p6 = scmp.ge.s32.totalorder %s22859_s12, 4   ;;  %s22863_s10 = smov %s22860_s17 }
 0x7eb   :  { %25 = sbr.rel (!%p23_p6) target bundleno = 10 (0xa), region = 132 }
 0x7f2   :  { %15815 = vsyncpa [#allocation5], 1 }
 0x7f3   :  { %15817 = vsyncpa [#allocation5 + $0x1], 1 }
 0x7f4   :  { %15818 = vsyncpa [#allocation8], 1 }
 0x7f5   :  { %15819 = vsyncpa [#allocation11], 1 }
 0x7f6   :  { %15820 = vsyncpa [#allocation14], 1 }
 0x7f7   :  { %15821 = vsyncpa [#allocation6], 1 }
 0x7f8   :  { %15823 = vsyncpa [#allocation6 + $0x1], 1 }

</bundles_post_ra>
